<compile_context>
chip_gen: v6e
topology: v6e:2x2x1
jax: 0.10.0
libtpu: 0.0.40
codegen_flags: <defaults>
</compile_context>

<pallas_src>
from functools import partial

import numpy as np
import jax
import jax.numpy as jnp
from jax.experimental import pallas as pl
from jax.experimental.pallas import tpu as pltpu


GROUPS = 32
EPS = 1e-5
SKIP_SCALE = float(np.sqrt(0.5))


# ----------------------------------------------------------------------------
# In-kernel helpers (operate on f32 VMEM values)
# ----------------------------------------------------------------------------

def _taps_same(h):
    """im2col for Conv1d(k=3, stride=1, padding=1): (L, C) -> (L, 3C).

    Column blocks are [h[l-1], h[l], h[l+1]] with zero boundary rows built in
    VMEM (no padded copy / tap copies in HBM)."""
    L, C = h.shape
    zrow = jnp.zeros((1, C), jnp.float32)
    left = jnp.concatenate([zrow, h[:L - 1, :]], axis=0)      # h[l-1]
    right = jnp.concatenate([h[1:, :], zrow], axis=0)         # h[l+1]
    return jnp.concatenate([left, h, right], axis=1)


def _taps_down(x2, cin):
    """im2col for Conv1d(k=3, stride=2, padding=1), even L.

    x2: (L/2, 2*cin) where row l holds [x[2l] | x[2l+1]] along lanes (free
    wrapper reshape).  Returns (L/2, 3*cin) columns [x[2l-1], x[2l], x[2l+1]]."""
    Lo = x2.shape[0]
    right = x2[:, cin:]                                       # x[2l+1]
    zrow = jnp.zeros((1, cin), jnp.float32)
    left = jnp.concatenate([zrow, right[:Lo - 1, :]], axis=0)  # x[2l-1]
    return jnp.concatenate([left, x2], axis=1)


def _gn_silu(x, gmat, gamma, beta, groups, eps):
    """GroupNorm (affine, biased variance as in PyTorch) + SiLU on (L, C).

    gmat is a constant (C, C) group-membership matrix; per-group sums are one
    tiny MXU matmul of the per-channel sums."""
    L, C = x.shape
    inv_n = 1.0 / float(L * (C // groups))
    s = jnp.sum(x, axis=0, keepdims=True)                     # (1, C)
    sq = jnp.sum(x * x, axis=0, keepdims=True)
    mean = jnp.dot(s, gmat, preferred_element_type=jnp.float32) * inv_n
    ex2 = jnp.dot(sq, gmat, preferred_element_type=jnp.float32) * inv_n
    var = ex2 - mean * mean
    y = (x - mean) * jax.lax.rsqrt(var + eps) * gamma + beta
    return y * jax.nn.sigmoid(y)                              # SiLU (EUP path)


# ----------------------------------------------------------------------------
# Pallas kernels
# ----------------------------------------------------------------------------

def _resnet_kernel(*refs, groups, eps, skip_scale, has_skip, has_shortcut):
    """Whole ResnetBlock fused: (concat) GN1+SiLU, conv1, GN2+SiLU, conv2,
    (1x1 shortcut), residual add + skip_scale.  One batch sample per step."""
    it = iter(refs)
    x_ref = next(it)
    skip_ref = next(it) if has_skip else None
    gm1_ref = next(it); g1_ref = next(it); b1_ref = next(it)
    w1_ref = next(it); c1b_ref = next(it)
    gm2_ref = next(it); g2_ref = next(it); b2_ref = next(it)
    w2_ref = next(it); c2b_ref = next(it)
    ws_ref = bs_ref = None
    if has_shortcut:
        ws_ref = next(it); bs_ref = next(it)
    o_ref = next(it)

    h0 = x_ref[0].astype(jnp.float32)                         # (L, Cx)
    if has_skip:                                              # fused torch.cat
        h0 = jnp.concatenate([h0, skip_ref[0].astype(jnp.float32)], axis=1)

    h = _gn_silu(h0, gm1_ref[...], g1_ref[...], b1_ref[...], groups, eps)
    h = jnp.dot(_taps_same(h), w1_ref[...],
                preferred_element_type=jnp.float32) + c1b_ref[...]
    h = _gn_silu(h, gm2_ref[...], g2_ref[...], b2_ref[...], groups, eps)
    h = jnp.dot(_taps_same(h), w2_ref[...],
                preferred_element_type=jnp.float32) + c2b_ref[...]

    if has_shortcut:
        res = jnp.dot(h0, ws_ref[...],
                      preferred_element_type=jnp.float32) + bs_ref[...]
    else:
        res = h0
    o_ref[0] = ((h + res) * skip_scale).astype(o_ref.dtype)


def _conv_k3_kernel(x_ref, w_ref, b_ref, o_ref, *, down, cin):
    """Standalone k=3 conv (stride 1, stride 2, or fused nearest-up variant —
    the up variant only differs in the folded weight/bias built by the wrapper)."""
    x = x_ref[0].astype(jnp.float32)
    cols = _taps_down(x, cin) if down else _taps_same(x)
    y = jnp.dot(cols, w_ref[...], preferred_element_type=jnp.float32) + b_ref[...]
    o_ref[0] = y.astype(o_ref.dtype)


def _gn_silu_conv_kernel(x_ref, gm_ref, g_ref, b_ref, w_ref, cb_ref, o_ref,
                         *, groups, eps):
    """Fused output head: GroupNorm + SiLU + conv_out (lane-padded output)."""
    x = x_ref[0].astype(jnp.float32)
    h = _gn_silu(x, gm_ref[...], g_ref[...], b_ref[...], groups, eps)
    y = jnp.dot(_taps_same(h), w_ref[...],
                preferred_element_type=jnp.float32) + cb_ref[...]
    o_ref[0] = y.astype(o_ref.dtype)


# ----------------------------------------------------------------------------
# Wrappers (weight folding, free reshapes, BlockSpecs)
# ----------------------------------------------------------------------------

def _group_matrix(C, groups):
    cs = C // groups
    gid = np.arange(C) // cs
    return jnp.asarray((gid[:, None] == gid[None, :]).astype(np.float32))


def _fold_k3(w):
    """(Cout, Cin, 3) PyTorch Conv1d weight -> (3*Cin, Cout) im2col weight."""
    return jnp.concatenate([jnp.transpose(w[:, :, t]) for t in range(3)], axis=0)


def _row_spec(L, C):
    return pl.BlockSpec((1, L, C), lambda i: (i, 0, 0))


def _const_spec(a):
    return pl.BlockSpec(a.shape, lambda i, _nd=a.ndim: (0,) * _nd)


def _parallel_params():
    # grid=(B,) marked parallel -> both TensorCores used on v7x.
    return pltpu.CompilerParams(dimension_semantics=("parallel",))


def conv1d_k3(x, w, b, *, stride=1, upsample=False):
    """Conv1d(k=3, padding=1), optionally stride-2 or fused nearest-upsample x2.

    x: (B, L, Cin); w: (Cout, Cin, 3) PyTorch layout; b: (Cout,)."""
    B, L, Cin = x.shape
    Cout = w.shape[0]
    w0, w1, w2 = (jnp.transpose(w[:, :, t]) for t in range(3))  # (Cin, Cout)

    if upsample:
        # Nearest-x2 upsample then conv, fused into one matmul:
        #   out[2l]   = W0 x[l-1] + (W1+W2) x[l]
        #   out[2l+1] = (W0+W1) x[l] + W2 x[l+1]
        # -> (L, 3Cin) @ (3Cin, 2Cout); the wrapper reshape (free) interleaves.
        zero = jnp.zeros_like(w0)
        wf = jnp.concatenate([
            jnp.concatenate([w0, zero], axis=1),
            jnp.concatenate([w1 + w2, w0 + w1], axis=1),
            jnp.concatenate([zero, w2], axis=1)], axis=0)       # (3Cin, 2Cout)
        bf = jnp.concatenate([b, b]).reshape(1, 2 * Cout)
        xin, down, Lo, Nout = x, False, L, 2 * Cout
    elif stride == 2:
        assert L % 2 == 0, "stride-2 conv requires even L"
        wf = jnp.concatenate([w0, w1, w2], axis=0)              # (3Cin, Cout)
        bf = b.reshape(1, Cout)
        xin = x.reshape(B, L // 2, 2 * Cin)                     # free reshape
        down, Lo, Nout = True, L // 2, Cout
    else:
        wf = jnp.concatenate([w0, w1, w2], axis=0)
        bf = b.reshape(1, Cout)
        xin, down, Lo, Nout = x, False, L, Cout

    Cx = xin.shape[-1]
    out = pl.pallas_call(
        partial(_conv_k3_kernel, down=down, cin=Cin),
        out_shape=jax.ShapeDtypeStruct((B, Lo, Nout), x.dtype),
        grid=(B,),
        in_specs=[_row_spec(Lo, Cx), _const_spec(wf), _const_spec(bf)],
        out_specs=_row_spec(Lo, Nout),
        compiler_params=_parallel_params(),
    )(xin, wf, bf)

    if upsample:
        out = out.reshape(B, 2 * L, Cout)                       # free reshape
    return out


def resnet_block(p, x, skip=None):
    """Entire ResnetBlock as one pallas_call; optional fused skip concat."""
    B, L, Cx = x.shape
    has_skip = skip is not None
    Cs = skip.shape[-1] if has_skip else 0
    Ct = Cx + Cs
    Cout = p["conv1"]["w"].shape[0]
    has_shortcut = "shortcut" in p

    arrays = [x]
    specs = [_row_spec(L, Cx)]
    if has_skip:
        arrays.append(skip)
        specs.append(_row_spec(L, Cs))

    consts = [
        _group_matrix(Ct, GROUPS),
        p["norm1"]["g"].reshape(1, Ct), p["norm1"]["b"].reshape(1, Ct),
        _fold_k3(p["conv1"]["w"]), p["conv1"]["b"].reshape(1, Cout),
        _group_matrix(Cout, GROUPS),
        p["norm2"]["g"].reshape(1, Cout), p["norm2"]["b"].reshape(1, Cout),
        _fold_k3(p["conv2"]["w"]), p["conv2"]["b"].reshape(1, Cout),
    ]
    if has_shortcut:
        consts += [jnp.transpose(p["shortcut"]["w"][:, :, 0]),
                   p["shortcut"]["b"].reshape(1, Cout)]
    for a in consts:
        arrays.append(a)
        specs.append(_const_spec(a))

    return pl.pallas_call(
        partial(_resnet_kernel, groups=GROUPS, eps=EPS, skip_scale=SKIP_SCALE,
                has_skip=has_skip, has_shortcut=has_shortcut),
        out_shape=jax.ShapeDtypeStruct((B, L, Cout), x.dtype),
        grid=(B,),
        in_specs=specs,
        out_specs=_row_spec(L, Cout),
        compiler_params=_parallel_params(),
    )(*arrays)


def out_head(x, gn_p, conv_p):
    """Fused norm_out + SiLU + conv_out; output padded to 128 lanes (unmasked
    stores) then sliced back to the true channel count in the wrapper."""
    B, L, C = x.shape
    Cout = conv_p["w"].shape[0]
    Npad = -(-Cout // 128) * 128
    wf = jnp.pad(_fold_k3(conv_p["w"]), ((0, 0), (0, Npad - Cout)))
    bf = jnp.pad(conv_p["b"], (0, Npad - Cout)).reshape(1, Npad)
    gm = _group_matrix(C, GROUPS)
    g2 = gn_p["g"].reshape(1, C)
    b2 = gn_p["b"].reshape(1, C)
    out = pl.pallas_call(
        partial(_gn_silu_conv_kernel, groups=GROUPS, eps=EPS),
        out_shape=jax.ShapeDtypeStruct((B, L, Npad), x.dtype),
        grid=(B,),
        in_specs=[_row_spec(L, C), _const_spec(gm), _const_spec(g2),
                  _const_spec(b2), _const_spec(wf), _const_spec(bf)],
        out_specs=_row_spec(L, Npad),
        compiler_params=_parallel_params(),
    )(x, gm, g2, b2, wf, bf)
    return out[:, :, :Cout]


# ----------------------------------------------------------------------------
# Deterministic parameter construction (mirrors the PyTorch module structure)
# ----------------------------------------------------------------------------

class ParamGen:
    def __init__(self, seed):
        self._key = jax.random.PRNGKey(seed)

    def normal(self, shape, scale):
        self._key, sub = jax.random.split(self._key)
        return scale * jax.random.normal(sub, shape, dtype=jnp.float32)


def conv_params(pg, cin, cout, k):
    scale = 1.0 / np.sqrt(cin * k)
    return {"w": pg.normal((cout, cin, k), scale), "b": pg.normal((cout,), scale)}


def gn_params(pg, c):
    return {"g": 1.0 + pg.normal((c,), 0.05), "b": pg.normal((c,), 0.05)}


def resnet_params(pg, cin, cout):
    p = {
        "norm1": gn_params(pg, cin),
        "conv1": conv_params(pg, cin, cout, 3),
        "norm2": gn_params(pg, cout),
        "conv2": conv_params(pg, cout, cout, 3),
    }
    if cin != cout:
        p["shortcut"] = conv_params(pg, cin, cout, 1)
    return p


def build_unet_params(pg, in_ch, out_ch, down_channels, up_channels, layer_per_block):
    params = {"conv_in": conv_params(pg, in_ch, down_channels[0], 3)}

    down = []
    cout = down_channels[0]
    for i in range(len(down_channels)):
        cin = cout
        cout = down_channels[i]
        nets = []
        for j in range(layer_per_block):
            ci = cin if j == 0 else cout
            nets.append(resnet_params(pg, ci, cout))
        blk = {"nets": nets}
        if i != len(down_channels) - 1:
            blk["downsample"] = conv_params(pg, cout, cout, 3)
        down.append(blk)
    params["down"] = down

    # MidBlock(num_layers=1) -> 2 resnet blocks
    params["mid"] = [resnet_params(pg, down_channels[-1], down_channels[-1])
                     for _ in range(2)]

    up = []
    cout = up_channels[0]
    for i in range(len(up_channels)):
        cin = cout
        cskip = down_channels[max(-2 - i, -len(down_channels))]
        cout = up_channels[i]
        nl = layer_per_block + 1
        nets = []
        for j in range(nl):
            cin_j = cin if j == 0 else cout
            cskip_j = cskip if j == nl - 1 else cout
            nets.append(resnet_params(pg, cin_j + cskip_j, cout))
        blk = {"nets": nets}
        if i != len(up_channels) - 1:
            blk["upsample"] = conv_params(pg, cout, cout, 3)
        up.append(blk)
    params["up"] = up

    params["norm_out"] = gn_params(pg, up_channels[-1])
    params["conv_out"] = conv_params(pg, up_channels[-1], out_ch, 3)
    return params


# ----------------------------------------------------------------------------
# Forward pass (matches GaussianUnet.forward semantics)
# ----------------------------------------------------------------------------

def unet_forward(params, x):
    # x: (B, L, C_in), channels-last
    x = conv1d_k3(x, params["conv_in"]["w"], params["conv_in"]["b"])
    xss = [x]
    for blk in params["down"]:
        for net in blk["nets"]:
            x = resnet_block(net, x)
            xss.append(x)
        if "downsample" in blk:
            x = conv1d_k3(x, blk["downsample"]["w"], blk["downsample"]["b"], stride=2)
            xss.append(x)
    for net in params["mid"]:
        x = resnet_block(net, x)
    for blk in params["up"]:
        n = len(blk["nets"])
        xs = xss[-n:]
        xss = xss[:-n]
        for net in blk["nets"]:
            skip = xs[-1]
            xs = xs[:-1]
            x = resnet_block(net, x, skip=skip)     # channel concat fused in-kernel
        if "upsample" in blk:
            # nearest x2 + conv fused into one kernel (analytic weight folding)
            x = conv1d_k3(x, blk["upsample"]["w"], blk["upsample"]["b"], upsample=True)
    # fused GroupNorm + SiLU + conv_out with lane-dense (128-padded) output
    return out_head(x, params["norm_out"], params["conv_out"])


# ----------------------------------------------------------------------------
# Main
# ----------------------------------------------------------------------------

if __name__ == "__main__":
    # Small, module-consistent config (channels are multiples of 32 for GroupNorm(32)).
    B, L = 2, 16
    IN_CH, OUT_CH = 14, 14
    DOWN_CHANNELS = (32, 64)
    UP_CHANNELS = (64, 32)
    LAYER_PER_BLOCK = 1

    key = jax.random.PRNGKey(0)
    x_ncl = jax.random.normal(key, (B, IN_CH, L), dtype=jnp.float32)  # PyTorch NCL input
    x = jnp.transpose(x_ncl, (0, 2, 1))                               # -> (B, L, C)

    pg = ParamGen(0)
    params = build_unet_params(pg, IN_CH, OUT_CH, DOWN_CHANNELS, UP_CHANNELS,
                               LAYER_PER_BLOCK)

    fwd = jax.jit(unet_forward)
    y = fwd(params, x)
    y_ncl = jnp.transpose(y, (0, 2, 1))                               # back to NCL
    jax.block_until_ready(y_ncl)
    assert y_ncl.shape == (B, OUT_CH, L), y_ncl.shape
    print("KERNEL_OK")
</pallas_src>

<mosaic_0001>
module attributes {stable_mosaic.version = 11 : i64} {
  func.func @_conv_k3_kernel(%arg0: i32, %arg1: memref<1x16x14xf32, #tpu.memory_space<vmem>>, %arg2: memref<42x32xf32, #tpu.memory_space<vmem>>, %arg3: memref<1x32xf32, #tpu.memory_space<vmem>>, %arg4: memref<1x16x32xf32, #tpu.memory_space<vmem>>) attributes {dimension_semantics = [#tpu.dimension_semantics<parallel>], iteration_bounds = array<i64: 2>, scalar_prefetch = 0 : i64, scratch_operands = 0 : i64, tpu.core_type = #tpu.core_type<tc>, window_params = [{transform_indices = @transform_0, window_bounds = array<i64: 1, 16, 14>}, {pipeline_mode = #tpu.pipeline_mode<synchronous>, transform_indices = @transform_1, window_bounds = array<i64: 42, 32>}, {pipeline_mode = #tpu.pipeline_mode<synchronous>, transform_indices = @transform_2, window_bounds = array<i64: 1, 32>}, {transform_indices = @transform_3, window_bounds = array<i64: 1, 16, 32>}]} {
    %c0 = arith.constant 0 : index
    %c0_0 = arith.constant 0 : index
    %c0_1 = arith.constant 0 : index
    %0 = vector.load %arg1[%c0, %c0_0, %c0_1] : memref<1x16x14xf32, #tpu.memory_space<vmem>>, vector<1x16x14xf32>
    %1 = vector.shape_cast %0 : vector<1x16x14xf32> to vector<16x14xf32>
    %cst = arith.constant 0.000000e+00 : f32
    %2 = vector.broadcast %cst : f32 to vector<1x14xf32>
    %3 = vector.extract_strided_slice %1 {offsets = [0, 0], sizes = [15, 14], strides = [1, 1]} : vector<16x14xf32> to vector<15x14xf32>
    %4 = tpu.concatenate %2, %3 in 0 : vector<1x14xf32>, vector<15x14xf32> -> vector<16x14xf32>
    %5 = vector.extract_strided_slice %1 {offsets = [1, 0], sizes = [15, 14], strides = [1, 1]} : vector<16x14xf32> to vector<15x14xf32>
    %6 = tpu.concatenate %5, %2 in 0 : vector<15x14xf32>, vector<1x14xf32> -> vector<16x14xf32>
    %7 = tpu.concatenate %4, %1, %6 in 1 : vector<16x14xf32>, vector<16x14xf32>, vector<16x14xf32> -> vector<16x42xf32>
    %c0_2 = arith.constant 0 : index
    %c0_3 = arith.constant 0 : index
    %8 = vector.load %arg2[%c0_2, %c0_3] : memref<42x32xf32, #tpu.memory_space<vmem>>, vector<42x32xf32>
    %cst_4 = arith.constant dense<0.000000e+00> : vector<16x32xf32>
    %9 = tpu.matmul %7, %8, %cst_4 {dimension_numbers = #tpu.dot_dimension_numbers<[1], [0], [0], [1], [0, 0, 1, 1], [], []>} : vector<16x42xf32>, vector<42x32xf32>, vector<16x32xf32> -> vector<16x32xf32>
    %c0_5 = arith.constant 0 : index
    %c0_6 = arith.constant 0 : index
    %10 = vector.load %arg3[%c0_5, %c0_6] : memref<1x32xf32, #tpu.memory_space<vmem>>, vector<1x32xf32>
    %11 = vector.broadcast %10 : vector<1x32xf32> to vector<16x32xf32>
    %12 = arith.addf %9, %11 : vector<16x32xf32>
    %c0_7 = arith.constant 0 : index
    %c0_8 = arith.constant 0 : index
    %c0_9 = arith.constant 0 : index
    %13 = vector.load %arg4[%c0_7, %c0_8, %c0_9] : memref<1x16x32xf32, #tpu.memory_space<vmem>>, vector<1x16x32xf32>
    %14 = vector.shape_cast %13 : vector<1x16x32xf32> to vector<16x32xf32>
    %15 = vector.shape_cast %12 : vector<16x32xf32> to vector<1x16x32xf32>
    tpu.vector_store %arg4[%c0_7, %c0_8, %c0_9], %15 {strides = array<i32>} : memref<1x16x32xf32, #tpu.memory_space<vmem>>, vector<1x16x32xf32>,
    return
  }
  func.func @transform_0(%arg0: i32) -> (i32, i32, i32) {
    %c0_i32 = arith.constant 0 : i32
    %c0_i32_0 = arith.constant 0 : i32
    %c0_i32_1 = arith.constant 0 : i32
    return %arg0, %c0_i32, %c0_i32_0 : i32, i32, i32
  }
  func.func @transform_1(%arg0: i32) -> (i32, i32) {
    %c0_i32 = arith.constant 0 : i32
    %c0_i32_0 = arith.constant 0 : i32
    %c0_i32_1 = arith.constant 0 : i32
    return %c0_i32, %c0_i32_0 : i32, i32
  }
  func.func @transform_2(%arg0: i32) -> (i32, i32) {
    %c0_i32 = arith.constant 0 : i32
    %c0_i32_0 = arith.constant 0 : i32
    %c0_i32_1 = arith.constant 0 : i32
    return %c0_i32, %c0_i32_0 : i32, i32
  }
  func.func @transform_3(%arg0: i32) -> (i32, i32, i32) {
    %c0_i32 = arith.constant 0 : i32
    %c0_i32_0 = arith.constant 0 : i32
    %c0_i32_1 = arith.constant 0 : i32
    return %arg0, %c0_i32, %c0_i32_0 : i32, i32, i32
  }
}

module attributes {stable_mosaic.version = 11 : i64} {
  func.func @_resnet_kernel(%arg0: i32, %arg1: memref<1x16x32xf32, #tpu.memory_space<vmem>>, %arg2: memref<32x32xf32, #tpu.memory_space<vmem>>, %arg3: memref<1x32xf32, #tpu.memory_space<vmem>>, %arg4: memref<1x32xf32, #tpu.memory_space<vmem>>, %arg5: memref<96x32xf32, #tpu.memory_space<vmem>>, %arg6: memref<1x32xf32, #tpu.memory_space<vmem>>, %arg7: memref<32x32xf32, #tpu.memory_space<vmem>>, %arg8: memref<1x32xf32, #tpu.memory_space<vmem>>, %arg9: memref<1x32xf32, #tpu.memory_space<vmem>>, %arg10: memref<96x32xf32, #tpu.memory_space<vmem>>, %arg11: memref<1x32xf32, #tpu.memory_space<vmem>>, %arg12: memref<1x16x32xf32, #tpu.memory_space<vmem>>) attributes {dimension_semantics = [#tpu.dimension_semantics<parallel>], iteration_bounds = array<i64: 2>, scalar_prefetch = 0 : i64, scratch_operands = 0 : i64, tpu.core_type = #tpu.core_type<tc>, window_params = [{transform_indices = @transform_0, window_bounds = array<i64: 1, 16, 32>}, {pipeline_mode = #tpu.pipeline_mode<synchronous>, transform_indices = @transform_1, window_bounds = array<i64: 32, 32>}, {pipeline_mode = #tpu.pipeline_mode<synchronous>, transform_indices = @transform_2, window_bounds = array<i64: 1, 32>}, {pipeline_mode = #tpu.pipeline_mode<synchronous>, transform_indices = @transform_3, window_bounds = array<i64: 1, 32>}, {pipeline_mode = #tpu.pipeline_mode<synchronous>, transform_indices = @transform_4, window_bounds = array<i64: 96, 32>}, {pipeline_mode = #tpu.pipeline_mode<synchronous>, transform_indices = @transform_5, window_bounds = array<i64: 1, 32>}, {pipeline_mode = #tpu.pipeline_mode<synchronous>, transform_indices = @transform_6, window_bounds = array<i64: 32, 32>}, {pipeline_mode = #tpu.pipeline_mode<synchronous>, transform_indices = @transform_7, window_bounds = array<i64: 1, 32>}, {pipeline_mode = #tpu.pipeline_mode<synchronous>, transform_indices = @transform_8, window_bounds = array<i64: 1, 32>}, {pipeline_mode = #tpu.pipeline_mode<synchronous>, transform_indices = @transform_9, window_bounds = array<i64: 96, 32>}, {pipeline_mode = #tpu.pipeline_mode<synchronous>, transform_indices = @transform_10, window_bounds = array<i64: 1, 32>}, {transform_indices = @transform_11, window_bounds = array<i64: 1, 16, 32>}]} {
    %c0 = arith.constant 0 : index
    %c0_0 = arith.constant 0 : index
    %c0_1 = arith.constant 0 : index
    %0 = vector.load %arg1[%c0, %c0_0, %c0_1] : memref<1x16x32xf32, #tpu.memory_space<vmem>>, vector<1x16x32xf32>
    %1 = vector.shape_cast %0 : vector<1x16x32xf32> to vector<16x32xf32>
    %c0_2 = arith.constant 0 : index
    %c0_3 = arith.constant 0 : index
    %2 = vector.load %arg2[%c0_2, %c0_3] : memref<32x32xf32, #tpu.memory_space<vmem>>, vector<32x32xf32>
    %c0_4 = arith.constant 0 : index
    %c0_5 = arith.constant 0 : index
    %3 = vector.load %arg3[%c0_4, %c0_5] : memref<1x32xf32, #tpu.memory_space<vmem>>, vector<1x32xf32>
    %c0_6 = arith.constant 0 : index
    %c0_7 = arith.constant 0 : index
    %4 = vector.load %arg4[%c0_6, %c0_7] : memref<1x32xf32, #tpu.memory_space<vmem>>, vector<1x32xf32>
    %cst = arith.constant dense<0.000000e+00> : vector<32xf32>
    %5 = vector.multi_reduction <add>, %1, %cst [0] : vector<16x32xf32> to vector<32xf32>
    %6 = vector.shape_cast %5 : vector<32xf32> to vector<1x32xf32>
    %7 = arith.mulf %1, %1 : vector<16x32xf32>
    %cst_8 = arith.constant dense<0.000000e+00> : vector<32xf32>
    %8 = vector.multi_reduction <add>, %7, %cst_8 [0] : vector<16x32xf32> to vector<32xf32>
    %9 = vector.shape_cast %8 : vector<32xf32> to vector<1x32xf32>
    %cst_9 = arith.constant dense<0.000000e+00> : vector<1x32xf32>
    %10 = tpu.matmul %6, %2, %cst_9 {dimension_numbers = #tpu.dot_dimension_numbers<[1], [0], [0], [1], [0, 0, 1, 1], [], []>} : vector<1x32xf32>, vector<32x32xf32>, vector<1x32xf32> -> vector<1x32xf32>
    %cst_10 = arith.constant 6.250000e-02 : f32
    %11 = vector.broadcast %cst_10 : f32 to vector<1x32xf32>
    %12 = arith.mulf %10, %11 : vector<1x32xf32>
    %cst_11 = arith.constant dense<0.000000e+00> : vector<1x32xf32>
    %13 = tpu.matmul %9, %2, %cst_11 {dimension_numbers = #tpu.dot_dimension_numbers<[1], [0], [0], [1], [0, 0, 1, 1], [], []>} : vector<1x32xf32>, vector<32x32xf32>, vector<1x32xf32> -> vector<1x32xf32>
    %cst_12 = arith.constant 6.250000e-02 : f32
    %14 = vector.broadcast %cst_12 : f32 to vector<1x32xf32>
    %15 = arith.mulf %13, %14 : vector<1x32xf32>
    %16 = arith.mulf %12, %12 : vector<1x32xf32>
    %17 = arith.subf %15, %16 : vector<1x32xf32>
    %18 = vector.broadcast %12 : vector<1x32xf32> to vector<16x32xf32>
    %19 = arith.subf %1, %18 : vector<16x32xf32>
    %cst_13 = arith.constant 9.99999974E-6 : f32
    %20 = vector.broadcast %cst_13 : f32 to vector<1x32xf32>
    %21 = arith.addf %17, %20 : vector<1x32xf32>
    %22 = math.rsqrt %21 : vector<1x32xf32>
    %23 = vector.broadcast %22 : vector<1x32xf32> to vector<16x32xf32>
    %24 = arith.mulf %19, %23 : vector<16x32xf32>
    %25 = vector.broadcast %3 : vector<1x32xf32> to vector<16x32xf32>
    %26 = arith.mulf %24, %25 : vector<16x32xf32>
    %27 = vector.broadcast %4 : vector<1x32xf32> to vector<16x32xf32>
    %28 = arith.addf %26, %27 : vector<16x32xf32>
    %29 = arith.negf %28 : vector<16x32xf32>
    %30 = math.exp %29 : vector<16x32xf32>
    %cst_14 = arith.constant 1.000000e+00 : f32
    %31 = vector.broadcast %cst_14 : f32 to vector<16x32xf32>
    %32 = arith.addf %31, %30 : vector<16x32xf32>
    %33 = arith.divf %31, %32 : vector<16x32xf32>
    %34 = arith.mulf %28, %33 : vector<16x32xf32>
    %cst_15 = arith.constant 0.000000e+00 : f32
    %35 = vector.broadcast %cst_15 : f32 to vector<1x32xf32>
    %36 = vector.extract_strided_slice %34 {offsets = [0, 0], sizes = [15, 32], strides = [1, 1]} : vector<16x32xf32> to vector<15x32xf32>
    %37 = tpu.concatenate %35, %36 in 0 : vector<1x32xf32>, vector<15x32xf32> -> vector<16x32xf32>
    %38 = vector.extract_strided_slice %34 {offsets = [1, 0], sizes = [15, 32], strides = [1, 1]} : vector<16x32xf32> to vector<15x32xf32>
    %39 = tpu.concatenate %38, %35 in 0 : vector<15x32xf32>, vector<1x32xf32> -> vector<16x32xf32>
    %40 = tpu.concatenate %37, %34, %39 in 1 : vector<16x32xf32>, vector<16x32xf32>, vector<16x32xf32> -> vector<16x96xf32>
    %c0_16 = arith.constant 0 : index
    %c0_17 = arith.constant 0 : index
    %41 = vector.load %arg5[%c0_16, %c0_17] : memref<96x32xf32, #tpu.memory_space<vmem>>, vector<96x32xf32>
    %cst_18 = arith.constant dense<0.000000e+00> : vector<16x32xf32>
    %42 = tpu.matmul %40, %41, %cst_18 {dimension_numbers = #tpu.dot_dimension_numbers<[1], [0], [0], [1], [0, 0, 1, 1], [], []>} : vector<16x96xf32>, vector<96x32xf32>, vector<16x32xf32> -> vector<16x32xf32>
    %c0_19 = arith.constant 0 : index
    %c0_20 = arith.constant 0 : index
    %43 = vector.load %arg6[%c0_19, %c0_20] : memref<1x32xf32, #tpu.memory_space<vmem>>, vector<1x32xf32>
    %44 = vector.broadcast %43 : vector<1x32xf32> to vector<16x32xf32>
    %45 = arith.addf %42, %44 : vector<16x32xf32>
    %c0_21 = arith.constant 0 : index
    %c0_22 = arith.constant 0 : index
    %46 = vector.load %arg7[%c0_21, %c0_22] : memref<32x32xf32, #tpu.memory_space<vmem>>, vector<32x32xf32>
    %c0_23 = arith.constant 0 : index
    %c0_24 = arith.constant 0 : index
    %47 = vector.load %arg8[%c0_23, %c0_24] : memref<1x32xf32, #tpu.memory_space<vmem>>, vector<1x32xf32>
    %c0_25 = arith.constant 0 : index
    %c0_26 = arith.constant 0 : index
    %48 = vector.load %arg9[%c0_25, %c0_26] : memref<1x32xf32, #tpu.memory_space<vmem>>, vector<1x32xf32>
    %cst_27 = arith.constant dense<0.000000e+00> : vector<32xf32>
    %49 = vector.multi_reduction <add>, %45, %cst_27 [0] : vector<16x32xf32> to vector<32xf32>
    %50 = vector.shape_cast %49 : vector<32xf32> to vector<1x32xf32>
    %51 = arith.mulf %45, %45 : vector<16x32xf32>
    %cst_28 = arith.constant dense<0.000000e+00> : vector<32xf32>
    %52 = vector.multi_reduction <add>, %51, %cst_28 [0] : vector<16x32xf32> to vector<32xf32>
    %53 = vector.shape_cast %52 : vector<32xf32> to vector<1x32xf32>
    %cst_29 = arith.constant dense<0.000000e+00> : vector<1x32xf32>
    %54 = tpu.matmul %50, %46, %cst_29 {dimension_numbers = #tpu.dot_dimension_numbers<[1], [0], [0], [1], [0, 0, 1, 1], [], []>} : vector<1x32xf32>, vector<32x32xf32>, vector<1x32xf32> -> vector<1x32xf32>
    %cst_30 = arith.constant 6.250000e-02 : f32
    %55 = vector.broadcast %cst_30 : f32 to vector<1x32xf32>
    %56 = arith.mulf %54, %55 : vector<1x32xf32>
    %cst_31 = arith.constant dense<0.000000e+00> : vector<1x32xf32>
    %57 = tpu.matmul %53, %46, %cst_31 {dimension_numbers = #tpu.dot_dimension_numbers<[1], [0], [0], [1], [0, 0, 1, 1], [], []>} : vector<1x32xf32>, vector<32x32xf32>, vector<1x32xf32> -> vector<1x32xf32>
    %cst_32 = arith.constant 6.250000e-02 : f32
    %58 = vector.broadcast %cst_32 : f32 to vector<1x32xf32>
    %59 = arith.mulf %57, %58 : vector<1x32xf32>
    %60 = arith.mulf %56, %56 : vector<1x32xf32>
    %61 = arith.subf %59, %60 : vector<1x32xf32>
    %62 = vector.broadcast %56 : vector<1x32xf32> to vector<16x32xf32>
    %63 = arith.subf %45, %62 : vector<16x32xf32>
    %cst_33 = arith.constant 9.99999974E-6 : f32
    %64 = vector.broadcast %cst_33 : f32 to vector<1x32xf32>
    %65 = arith.addf %61, %64 : vector<1x32xf32>
    %66 = math.rsqrt %65 : vector<1x32xf32>
    %67 = vector.broadcast %66 : vector<1x32xf32> to vector<16x32xf32>
    %68 = arith.mulf %63, %67 : vector<16x32xf32>
    %69 = vector.broadcast %47 : vector<1x32xf32> to vector<16x32xf32>
    %70 = arith.mulf %68, %69 : vector<16x32xf32>
    %71 = vector.broadcast %48 : vector<1x32xf32> to vector<16x32xf32>
    %72 = arith.addf %70, %71 : vector<16x32xf32>
    %73 = arith.negf %72 : vector<16x32xf32>
    %74 = math.exp %73 : vector<16x32xf32>
    %cst_34 = arith.constant 1.000000e+00 : f32
    %75 = vector.broadcast %cst_34 : f32 to vector<16x32xf32>
    %76 = arith.addf %75, %74 : vector<16x32xf32>
    %77 = arith.divf %75, %76 : vector<16x32xf32>
    %78 = arith.mulf %72, %77 : vector<16x32xf32>
    %cst_35 = arith.constant 0.000000e+00 : f32
    %79 = vector.broadcast %cst_35 : f32 to vector<1x32xf32>
    %80 = vector.extract_strided_slice %78 {offsets = [0, 0], sizes = [15, 32], strides = [1, 1]} : vector<16x32xf32> to vector<15x32xf32>
    %81 = tpu.concatenate %79, %80 in 0 : vector<1x32xf32>, vector<15x32xf32> -> vector<16x32xf32>
    %82 = vector.extract_strided_slice %78 {offsets = [1, 0], sizes = [15, 32], strides = [1, 1]} : vector<16x32xf32> to vector<15x32xf32>
    %83 = tpu.concatenate %82, %79 in 0 : vector<15x32xf32>, vector<1x32xf32> -> vector<16x32xf32>
    %84 = tpu.concatenate %81, %78, %83 in 1 : vector<16x32xf32>, vector<16x32xf32>, vector<16x32xf32> -> vector<16x96xf32>
    %c0_36 = arith.constant 0 : index
    %c0_37 = arith.constant 0 : index
    %85 = vector.load %arg10[%c0_36, %c0_37] : memref<96x32xf32, #tpu.memory_space<vmem>>, vector<96x32xf32>
    %cst_38 = arith.constant dense<0.000000e+00> : vector<16x32xf32>
    %86 = tpu.matmul %84, %85, %cst_38 {dimension_numbers = #tpu.dot_dimension_numbers<[1], [0], [0], [1], [0, 0, 1, 1], [], []>} : vector<16x96xf32>, vector<96x32xf32>, vector<16x32xf32> -> vector<16x32xf32>
    %c0_39 = arith.constant 0 : index
    %c0_40 = arith.constant 0 : index
    %87 = vector.load %arg11[%c0_39, %c0_40] : memref<1x32xf32, #tpu.memory_space<vmem>>, vector<1x32xf32>
    %88 = vector.broadcast %87 : vector<1x32xf32> to vector<16x32xf32>
    %89 = arith.addf %86, %88 : vector<16x32xf32>
    %90 = arith.addf %89, %1 : vector<16x32xf32>
    %cst_41 = arith.constant 0.707106769 : f32
    %91 = vector.broadcast %cst_41 : f32 to vector<16x32xf32>
    %92 = arith.mulf %90, %91 : vector<16x32xf32>
    %c0_42 = arith.constant 0 : index
    %c0_43 = arith.constant 0 : index
    %c0_44 = arith.constant 0 : index
    %93 = vector.load %arg12[%c0_42, %c0_43, %c0_44] : memref<1x16x32xf32, #tpu.memory_space<vmem>>, vector<1x16x32xf32>
    %94 = vector.shape_cast %93 : vector<1x16x32xf32> to vector<16x32xf32>
    %95 = vector.shape_cast %92 : vector<16x32xf32> to vector<1x16x32xf32>
    tpu.vector_store %arg12[%c0_42, %c0_43, %c0_44], %95 {strides = array<i32>} : memref<1x16x32xf32, #tpu.memory_space<vmem>>, vector<1x16x32xf32>,
    return
  }
  func.func @transform_0(%arg0: i32) -> (i32, i32, i32) {
    %c0_i32 = arith.constant 0 : i32
    %c0_i32_0 = arith.constant 0 : i32
    %c0_i32_1 = arith.constant 0 : i32
    return %arg0, %c0_i32, %c0_i32_0 : i32, i32, i32
  }
  func.func @transform_1(%arg0: i32) -> (i32, i32) {
    %c0_i32 = arith.constant 0 : i32
    %c0_i32_0 = arith.constant 0 : i32
    %c0_i32_1 = arith.constant 0 : i32
    return %c0_i32, %c0_i32_0 : i32, i32
  }
  func.func @transform_2(%arg0: i32) -> (i32, i32) {
    %c0_i32 = arith.constant 0 : i32
    %c0_i32_0 = arith.constant 0 : i32
    %c0_i32_1 = arith.constant 0 : i32
    return %c0_i32, %c0_i32_0 : i32, i32
  }
  func.func @transform_3(%arg0: i32) -> (i32, i32) {
    %c0_i32 = arith.constant 0 : i32
    %c0_i32_0 = arith.constant 0 : i32
    %c0_i32_1 = arith.constant 0 : i32
    return %c0_i32, %c0_i32_0 : i32, i32
  }
  func.func @transform_4(%arg0: i32) -> (i32, i32) {
    %c0_i32 = arith.constant 0 : i32
    %c0_i32_0 = arith.constant 0 : i32
    %c0_i32_1 = arith.constant 0 : i32
    return %c0_i32, %c0_i32_0 : i32, i32
  }
  func.func @transform_5(%arg0: i32) -> (i32, i32) {
    %c0_i32 = arith.constant 0 : i32
    %c0_i32_0 = arith.constant 0 : i32
    %c0_i32_1 = arith.constant 0 : i32
    return %c0_i32, %c0_i32_0 : i32, i32
  }
  func.func @transform_6(%arg0: i32) -> (i32, i32) {
    %c0_i32 = arith.constant 0 : i32
    %c0_i32_0 = arith.constant 0 : i32
    %c0_i32_1 = arith.constant 0 : i32
    return %c0_i32, %c0_i32_0 : i32, i32
  }
  func.func @transform_7(%arg0: i32) -> (i32, i32) {
    %c0_i32 = arith.constant 0 : i32
    %c0_i32_0 = arith.constant 0 : i32
    %c0_i32_1 = arith.constant 0 : i32
    return %c0_i32, %c0_i32_0 : i32, i32
  }
  func.func @transform_8(%arg0: i32) -> (i32, i32) {
    %c0_i32 = arith.constant 0 : i32
    %c0_i32_0 = arith.constant 0 : i32
    %c0_i32_1 = arith.constant 0 : i32
    return %c0_i32, %c0_i32_0 : i32, i32
  }
  func.func @transform_9(%arg0: i32) -> (i32, i32) {
    %c0_i32 = arith.constant 0 : i32
    %c0_i32_0 = arith.constant 0 : i32
    %c0_i32_1 = arith.constant 0 : i32
    return %c0_i32, %c0_i32_0 : i32, i32
  }
  func.func @transform_10(%arg0: i32) -> (i32, i32) {
    %c0_i32 = arith.constant 0 : i32
    %c0_i32_0 = arith.constant 0 : i32
    %c0_i32_1 = arith.constant 0 : i32
    return %c0_i32, %c0_i32_0 : i32, i32
  }
  func.func @transform_11(%arg0: i32) -> (i32, i32, i32) {
    %c0_i32 = arith.constant 0 : i32
    %c0_i32_0 = arith.constant 0 : i32
    %c0_i32_1 = arith.constant 0 : i32
    return %arg0, %c0_i32, %c0_i32_0 : i32, i32, i32
  }
}

module attributes {stable_mosaic.version = 11 : i64} {
  func.func @_conv_k3_kernel(%arg0: i32, %arg1: memref<1x8x64xf32, #tpu.memory_space<vmem>>, %arg2: memref<96x32xf32, #tpu.memory_space<vmem>>, %arg3: memref<1x32xf32, #tpu.memory_space<vmem>>, %arg4: memref<1x8x32xf32, #tpu.memory_space<vmem>>) attributes {dimension_semantics = [#tpu.dimension_semantics<parallel>], iteration_bounds = array<i64: 2>, scalar_prefetch = 0 : i64, scratch_operands = 0 : i64, tpu.core_type = #tpu.core_type<tc>, window_params = [{transform_indices = @transform_0, window_bounds = array<i64: 1, 8, 64>}, {pipeline_mode = #tpu.pipeline_mode<synchronous>, transform_indices = @transform_1, window_bounds = array<i64: 96, 32>}, {pipeline_mode = #tpu.pipeline_mode<synchronous>, transform_indices = @transform_2, window_bounds = array<i64: 1, 32>}, {transform_indices = @transform_3, window_bounds = array<i64: 1, 8, 32>}]} {
    %c0 = arith.constant 0 : index
    %c0_0 = arith.constant 0 : index
    %c0_1 = arith.constant 0 : index
    %0 = vector.load %arg1[%c0, %c0_0, %c0_1] : memref<1x8x64xf32, #tpu.memory_space<vmem>>, vector<1x8x64xf32>
    %1 = vector.shape_cast %0 : vector<1x8x64xf32> to vector<8x64xf32>
    %2 = vector.extract_strided_slice %1 {offsets = [0, 32], sizes = [8, 32], strides = [1, 1]} : vector<8x64xf32> to vector<8x32xf32>
    %cst = arith.constant 0.000000e+00 : f32
    %3 = vector.broadcast %cst : f32 to vector<1x32xf32>
    %4 = vector.extract_strided_slice %2 {offsets = [0, 0], sizes = [7, 32], strides = [1, 1]} : vector<8x32xf32> to vector<7x32xf32>
    %5 = tpu.concatenate %3, %4 in 0 : vector<1x32xf32>, vector<7x32xf32> -> vector<8x32xf32>
    %6 = tpu.concatenate %5, %1 in 1 : vector<8x32xf32>, vector<8x64xf32> -> vector<8x96xf32>
    %c0_2 = arith.constant 0 : index
    %c0_3 = arith.constant 0 : index
    %7 = vector.load %arg2[%c0_2, %c0_3] : memref<96x32xf32, #tpu.memory_space<vmem>>, vector<96x32xf32>
    %cst_4 = arith.constant dense<0.000000e+00> : vector<8x32xf32>
    %8 = tpu.matmul %6, %7, %cst_4 {dimension_numbers = #tpu.dot_dimension_numbers<[1], [0], [0], [1], [0, 0, 1, 1], [], []>} : vector<8x96xf32>, vector<96x32xf32>, vector<8x32xf32> -> vector<8x32xf32>
    %c0_5 = arith.constant 0 : index
    %c0_6 = arith.constant 0 : index
    %9 = vector.load %arg3[%c0_5, %c0_6] : memref<1x32xf32, #tpu.memory_space<vmem>>, vector<1x32xf32>
    %10 = vector.broadcast %9 : vector<1x32xf32> to vector<8x32xf32>
    %11 = arith.addf %8, %10 : vector<8x32xf32>
    %c0_7 = arith.constant 0 : index
    %c0_8 = arith.constant 0 : index
    %c0_9 = arith.constant 0 : index
    %12 = vector.load %arg4[%c0_7, %c0_8, %c0_9] : memref<1x8x32xf32, #tpu.memory_space<vmem>>, vector<1x8x32xf32>
    %13 = vector.shape_cast %12 : vector<1x8x32xf32> to vector<8x32xf32>
    %14 = vector.shape_cast %11 : vector<8x32xf32> to vector<1x8x32xf32>
    tpu.vector_store %arg4[%c0_7, %c0_8, %c0_9], %14 {strides = array<i32>} : memref<1x8x32xf32, #tpu.memory_space<vmem>>, vector<1x8x32xf32>,
    return
  }
  func.func @transform_0(%arg0: i32) -> (i32, i32, i32) {
    %c0_i32 = arith.constant 0 : i32
    %c0_i32_0 = arith.constant 0 : i32
    %c0_i32_1 = arith.constant 0 : i32
    return %arg0, %c0_i32, %c0_i32_0 : i32, i32, i32
  }
  func.func @transform_1(%arg0: i32) -> (i32, i32) {
    %c0_i32 = arith.constant 0 : i32
    %c0_i32_0 = arith.constant 0 : i32
    %c0_i32_1 = arith.constant 0 : i32
    return %c0_i32, %c0_i32_0 : i32, i32
  }
  func.func @transform_2(%arg0: i32) -> (i32, i32) {
    %c0_i32 = arith.constant 0 : i32
    %c0_i32_0 = arith.constant 0 : i32
    %c0_i32_1 = arith.constant 0 : i32
    return %c0_i32, %c0_i32_0 : i32, i32
  }
  func.func @transform_3(%arg0: i32) -> (i32, i32, i32) {
    %c0_i32 = arith.constant 0 : i32
    %c0_i32_0 = arith.constant 0 : i32
    %c0_i32_1 = arith.constant 0 : i32
    return %arg0, %c0_i32, %c0_i32_0 : i32, i32, i32
  }
}

module attributes {stable_mosaic.version = 11 : i64} {
  func.func @_resnet_kernel(%arg0: i32, %arg1: memref<1x8x32xf32, #tpu.memory_space<vmem>>, %arg2: memref<32x32xf32, #tpu.memory_space<vmem>>, %arg3: memref<1x32xf32, #tpu.memory_space<vmem>>, %arg4: memref<1x32xf32, #tpu.memory_space<vmem>>, %arg5: memref<96x64xf32, #tpu.memory_space<vmem>>, %arg6: memref<1x64xf32, #tpu.memory_space<vmem>>, %arg7: memref<64x64xf32, #tpu.memory_space<vmem>>, %arg8: memref<1x64xf32, #tpu.memory_space<vmem>>, %arg9: memref<1x64xf32, #tpu.memory_space<vmem>>, %arg10: memref<192x64xf32, #tpu.memory_space<vmem>>, %arg11: memref<1x64xf32, #tpu.memory_space<vmem>>, %arg12: memref<32x64xf32, #tpu.memory_space<vmem>>, %arg13: memref<1x64xf32, #tpu.memory_space<vmem>>, %arg14: memref<1x8x64xf32, #tpu.memory_space<vmem>>) attributes {dimension_semantics = [#tpu.dimension_semantics<parallel>], iteration_bounds = array<i64: 2>, scalar_prefetch = 0 : i64, scratch_operands = 0 : i64, tpu.core_type = #tpu.core_type<tc>, window_params = [{transform_indices = @transform_0, window_bounds = array<i64: 1, 8, 32>}, {pipeline_mode = #tpu.pipeline_mode<synchronous>, transform_indices = @transform_1, window_bounds = array<i64: 32, 32>}, {pipeline_mode = #tpu.pipeline_mode<synchronous>, transform_indices = @transform_2, window_bounds = array<i64: 1, 32>}, {pipeline_mode = #tpu.pipeline_mode<synchronous>, transform_indices = @transform_3, window_bounds = array<i64: 1, 32>}, {pipeline_mode = #tpu.pipeline_mode<synchronous>, transform_indices = @transform_4, window_bounds = array<i64: 96, 64>}, {pipeline_mode = #tpu.pipeline_mode<synchronous>, transform_indices = @transform_5, window_bounds = array<i64: 1, 64>}, {pipeline_mode = #tpu.pipeline_mode<synchronous>, transform_indices = @transform_6, window_bounds = array<i64: 64, 64>}, {pipeline_mode = #tpu.pipeline_mode<synchronous>, transform_indices = @transform_7, window_bounds = array<i64: 1, 64>}, {pipeline_mode = #tpu.pipeline_mode<synchronous>, transform_indices = @transform_8, window_bounds = array<i64: 1, 64>}, {pipeline_mode = #tpu.pipeline_mode<synchronous>, transform_indices = @transform_9, window_bounds = array<i64: 192, 64>}, {pipeline_mode = #tpu.pipeline_mode<synchronous>, transform_indices = @transform_10, window_bounds = array<i64: 1, 64>}, {pipeline_mode = #tpu.pipeline_mode<synchronous>, transform_indices = @transform_11, window_bounds = array<i64: 32, 64>}, {pipeline_mode = #tpu.pipeline_mode<synchronous>, transform_indices = @transform_12, window_bounds = array<i64: 1, 64>}, {transform_indices = @transform_13, window_bounds = array<i64: 1, 8, 64>}]} {
    %c0 = arith.constant 0 : index
    %c0_0 = arith.constant 0 : index
    %c0_1 = arith.constant 0 : index
    %0 = vector.load %arg1[%c0, %c0_0, %c0_1] : memref<1x8x32xf32, #tpu.memory_space<vmem>>, vector<1x8x32xf32>
    %1 = vector.shape_cast %0 : vector<1x8x32xf32> to vector<8x32xf32>
    %c0_2 = arith.constant 0 : index
    %c0_3 = arith.constant 0 : index
    %2 = vector.load %arg2[%c0_2, %c0_3] : memref<32x32xf32, #tpu.memory_space<vmem>>, vector<32x32xf32>
    %c0_4 = arith.constant 0 : index
    %c0_5 = arith.constant 0 : index
    %3 = vector.load %arg3[%c0_4, %c0_5] : memref<1x32xf32, #tpu.memory_space<vmem>>, vector<1x32xf32>
    %c0_6 = arith.constant 0 : index
    %c0_7 = arith.constant 0 : index
    %4 = vector.load %arg4[%c0_6, %c0_7] : memref<1x32xf32, #tpu.memory_space<vmem>>, vector<1x32xf32>
    %cst = arith.constant dense<0.000000e+00> : vector<32xf32>
    %5 = vector.multi_reduction <add>, %1, %cst [0] : vector<8x32xf32> to vector<32xf32>
    %6 = vector.shape_cast %5 : vector<32xf32> to vector<1x32xf32>
    %7 = arith.mulf %1, %1 : vector<8x32xf32>
    %cst_8 = arith.constant dense<0.000000e+00> : vector<32xf32>
    %8 = vector.multi_reduction <add>, %7, %cst_8 [0] : vector<8x32xf32> to vector<32xf32>
    %9 = vector.shape_cast %8 : vector<32xf32> to vector<1x32xf32>
    %cst_9 = arith.constant dense<0.000000e+00> : vector<1x32xf32>
    %10 = tpu.matmul %6, %2, %cst_9 {dimension_numbers = #tpu.dot_dimension_numbers<[1], [0], [0], [1], [0, 0, 1, 1], [], []>} : vector<1x32xf32>, vector<32x32xf32>, vector<1x32xf32> -> vector<1x32xf32>
    %cst_10 = arith.constant 1.250000e-01 : f32
    %11 = vector.broadcast %cst_10 : f32 to vector<1x32xf32>
    %12 = arith.mulf %10, %11 : vector<1x32xf32>
    %cst_11 = arith.constant dense<0.000000e+00> : vector<1x32xf32>
    %13 = tpu.matmul %9, %2, %cst_11 {dimension_numbers = #tpu.dot_dimension_numbers<[1], [0], [0], [1], [0, 0, 1, 1], [], []>} : vector<1x32xf32>, vector<32x32xf32>, vector<1x32xf32> -> vector<1x32xf32>
    %cst_12 = arith.constant 1.250000e-01 : f32
    %14 = vector.broadcast %cst_12 : f32 to vector<1x32xf32>
    %15 = arith.mulf %13, %14 : vector<1x32xf32>
    %16 = arith.mulf %12, %12 : vector<1x32xf32>
    %17 = arith.subf %15, %16 : vector<1x32xf32>
    %18 = vector.broadcast %12 : vector<1x32xf32> to vector<8x32xf32>
    %19 = arith.subf %1, %18 : vector<8x32xf32>
    %cst_13 = arith.constant 9.99999974E-6 : f32
    %20 = vector.broadcast %cst_13 : f32 to vector<1x32xf32>
    %21 = arith.addf %17, %20 : vector<1x32xf32>
    %22 = math.rsqrt %21 : vector<1x32xf32>
    %23 = vector.broadcast %22 : vector<1x32xf32> to vector<8x32xf32>
    %24 = arith.mulf %19, %23 : vector<8x32xf32>
    %25 = vector.broadcast %3 : vector<1x32xf32> to vector<8x32xf32>
    %26 = arith.mulf %24, %25 : vector<8x32xf32>
    %27 = vector.broadcast %4 : vector<1x32xf32> to vector<8x32xf32>
    %28 = arith.addf %26, %27 : vector<8x32xf32>
    %29 = arith.negf %28 : vector<8x32xf32>
    %30 = math.exp %29 : vector<8x32xf32>
    %cst_14 = arith.constant 1.000000e+00 : f32
    %31 = vector.broadcast %cst_14 : f32 to vector<8x32xf32>
    %32 = arith.addf %31, %30 : vector<8x32xf32>
    %33 = arith.divf %31, %32 : vector<8x32xf32>
    %34 = arith.mulf %28, %33 : vector<8x32xf32>
    %cst_15 = arith.constant 0.000000e+00 : f32
    %35 = vector.broadcast %cst_15 : f32 to vector<1x32xf32>
    %36 = vector.extract_strided_slice %34 {offsets = [0, 0], sizes = [7, 32], strides = [1, 1]} : vector<8x32xf32> to vector<7x32xf32>
    %37 = tpu.concatenate %35, %36 in 0 : vector<1x32xf32>, vector<7x32xf32> -> vector<8x32xf32>
    %38 = vector.extract_strided_slice %34 {offsets = [1, 0], sizes = [7, 32], strides = [1, 1]} : vector<8x32xf32> to vector<7x32xf32>
    %39 = tpu.concatenate %38, %35 in 0 : vector<7x32xf32>, vector<1x32xf32> -> vector<8x32xf32>
    %40 = tpu.concatenate %37, %34, %39 in 1 : vector<8x32xf32>, vector<8x32xf32>, vector<8x32xf32> -> vector<8x96xf32>
    %c0_16 = arith.constant 0 : index
    %c0_17 = arith.constant 0 : index
    %41 = vector.load %arg5[%c0_16, %c0_17] : memref<96x64xf32, #tpu.memory_space<vmem>>, vector<96x64xf32>
    %cst_18 = arith.constant dense<0.000000e+00> : vector<8x64xf32>
    %42 = tpu.matmul %40, %41, %cst_18 {dimension_numbers = #tpu.dot_dimension_numbers<[1], [0], [0], [1], [0, 0, 1, 1], [], []>} : vector<8x96xf32>, vector<96x64xf32>, vector<8x64xf32> -> vector<8x64xf32>
    %c0_19 = arith.constant 0 : index
    %c0_20 = arith.constant 0 : index
    %43 = vector.load %arg6[%c0_19, %c0_20] : memref<1x64xf32, #tpu.memory_space<vmem>>, vector<1x64xf32>
    %44 = vector.broadcast %43 : vector<1x64xf32> to vector<8x64xf32>
    %45 = arith.addf %42, %44 : vector<8x64xf32>
    %c0_21 = arith.constant 0 : index
    %c0_22 = arith.constant 0 : index
    %46 = vector.load %arg7[%c0_21, %c0_22] : memref<64x64xf32, #tpu.memory_space<vmem>>, vector<64x64xf32>
    %c0_23 = arith.constant 0 : index
    %c0_24 = arith.constant 0 : index
    %47 = vector.load %arg8[%c0_23, %c0_24] : memref<1x64xf32, #tpu.memory_space<vmem>>, vector<1x64xf32>
    %c0_25 = arith.constant 0 : index
    %c0_26 = arith.constant 0 : index
    %48 = vector.load %arg9[%c0_25, %c0_26] : memref<1x64xf32, #tpu.memory_space<vmem>>, vector<1x64xf32>
    %cst_27 = arith.constant dense<0.000000e+00> : vector<64xf32>
    %49 = vector.multi_reduction <add>, %45, %cst_27 [0] : vector<8x64xf32> to vector<64xf32>
    %50 = vector.shape_cast %49 : vector<64xf32> to vector<1x64xf32>
    %51 = arith.mulf %45, %45 : vector<8x64xf32>
    %cst_28 = arith.constant dense<0.000000e+00> : vector<64xf32>
    %52 = vector.multi_reduction <add>, %51, %cst_28 [0] : vector<8x64xf32> to vector<64xf32>
    %53 = vector.shape_cast %52 : vector<64xf32> to vector<1x64xf32>
    %cst_29 = arith.constant dense<0.000000e+00> : vector<1x64xf32>
    %54 = tpu.matmul %50, %46, %cst_29 {dimension_numbers = #tpu.dot_dimension_numbers<[1], [0], [0], [1], [0, 0, 1, 1], [], []>} : vector<1x64xf32>, vector<64x64xf32>, vector<1x64xf32> -> vector<1x64xf32>
    %cst_30 = arith.constant 6.250000e-02 : f32
    %55 = vector.broadcast %cst_30 : f32 to vector<1x64xf32>
    %56 = arith.mulf %54, %55 : vector<1x64xf32>
    %cst_31 = arith.constant dense<0.000000e+00> : vector<1x64xf32>
    %57 = tpu.matmul %53, %46, %cst_31 {dimension_numbers = #tpu.dot_dimension_numbers<[1], [0], [0], [1], [0, 0, 1, 1], [], []>} : vector<1x64xf32>, vector<64x64xf32>, vector<1x64xf32> -> vector<1x64xf32>
    %cst_32 = arith.constant 6.250000e-02 : f32
    %58 = vector.broadcast %cst_32 : f32 to vector<1x64xf32>
    %59 = arith.mulf %57, %58 : vector<1x64xf32>
    %60 = arith.mulf %56, %56 : vector<1x64xf32>
    %61 = arith.subf %59, %60 : vector<1x64xf32>
    %62 = vector.broadcast %56 : vector<1x64xf32> to vector<8x64xf32>
    %63 = arith.subf %45, %62 : vector<8x64xf32>
    %cst_33 = arith.constant 9.99999974E-6 : f32
    %64 = vector.broadcast %cst_33 : f32 to vector<1x64xf32>
    %65 = arith.addf %61, %64 : vector<1x64xf32>
    %66 = math.rsqrt %65 : vector<1x64xf32>
    %67 = vector.broadcast %66 : vector<1x64xf32> to vector<8x64xf32>
    %68 = arith.mulf %63, %67 : vector<8x64xf32>
    %69 = vector.broadcast %47 : vector<1x64xf32> to vector<8x64xf32>
    %70 = arith.mulf %68, %69 : vector<8x64xf32>
    %71 = vector.broadcast %48 : vector<1x64xf32> to vector<8x64xf32>
    %72 = arith.addf %70, %71 : vector<8x64xf32>
    %73 = arith.negf %72 : vector<8x64xf32>
    %74 = math.exp %73 : vector<8x64xf32>
    %cst_34 = arith.constant 1.000000e+00 : f32
    %75 = vector.broadcast %cst_34 : f32 to vector<8x64xf32>
    %76 = arith.addf %75, %74 : vector<8x64xf32>
    %77 = arith.divf %75, %76 : vector<8x64xf32>
    %78 = arith.mulf %72, %77 : vector<8x64xf32>
    %cst_35 = arith.constant 0.000000e+00 : f32
    %79 = vector.broadcast %cst_35 : f32 to vector<1x64xf32>
    %80 = vector.extract_strided_slice %78 {offsets = [0, 0], sizes = [7, 64], strides = [1, 1]} : vector<8x64xf32> to vector<7x64xf32>
    %81 = tpu.concatenate %79, %80 in 0 : vector<1x64xf32>, vector<7x64xf32> -> vector<8x64xf32>
    %82 = vector.extract_strided_slice %78 {offsets = [1, 0], sizes = [7, 64], strides = [1, 1]} : vector<8x64xf32> to vector<7x64xf32>
    %83 = tpu.concatenate %82, %79 in 0 : vector<7x64xf32>, vector<1x64xf32> -> vector<8x64xf32>
    %84 = tpu.concatenate %81, %78, %83 in 1 : vector<8x64xf32>, vector<8x64xf32>, vector<8x64xf32> -> vector<8x192xf32>
    %c0_36 = arith.constant 0 : index
    %c0_37 = arith.constant 0 : index
    %85 = vector.load %arg10[%c0_36, %c0_37] : memref<192x64xf32, #tpu.memory_space<vmem>>, vector<192x64xf32>
    %cst_38 = arith.constant dense<0.000000e+00> : vector<8x64xf32>
    %86 = tpu.matmul %84, %85, %cst_38 {dimension_numbers = #tpu.dot_dimension_numbers<[1], [0], [0], [1], [0, 0, 1, 1], [], []>} : vector<8x192xf32>, vector<192x64xf32>, vector<8x64xf32> -> vector<8x64xf32>
    %c0_39 = arith.constant 0 : index
    %c0_40 = arith.constant 0 : index
    %87 = vector.load %arg11[%c0_39, %c0_40] : memref<1x64xf32, #tpu.memory_space<vmem>>, vector<1x64xf32>
    %88 = vector.broadcast %87 : vector<1x64xf32> to vector<8x64xf32>
    %89 = arith.addf %86, %88 : vector<8x64xf32>
    %c0_41 = arith.constant 0 : index
    %c0_42 = arith.constant 0 : index
    %90 = vector.load %arg12[%c0_41, %c0_42] : memref<32x64xf32, #tpu.memory_space<vmem>>, vector<32x64xf32>
    %cst_43 = arith.constant dense<0.000000e+00> : vector<8x64xf32>
    %91 = tpu.matmul %1, %90, %cst_43 {dimension_numbers = #tpu.dot_dimension_numbers<[1], [0], [0], [1], [0, 0, 1, 1], [], []>} : vector<8x32xf32>, vector<32x64xf32>, vector<8x64xf32> -> vector<8x64xf32>
    %c0_44 = arith.constant 0 : index
    %c0_45 = arith.constant 0 : index
    %92 = vector.load %arg13[%c0_44, %c0_45] : memref<1x64xf32, #tpu.memory_space<vmem>>, vector<1x64xf32>
    %93 = vector.broadcast %92 : vector<1x64xf32> to vector<8x64xf32>
    %94 = arith.addf %91, %93 : vector<8x64xf32>
    %95 = arith.addf %89, %94 : vector<8x64xf32>
    %cst_46 = arith.constant 0.707106769 : f32
    %96 = vector.broadcast %cst_46 : f32 to vector<8x64xf32>
    %97 = arith.mulf %95, %96 : vector<8x64xf32>
    %c0_47 = arith.constant 0 : index
    %c0_48 = arith.constant 0 : index
    %c0_49 = arith.constant 0 : index
    %98 = vector.load %arg14[%c0_47, %c0_48, %c0_49] : memref<1x8x64xf32, #tpu.memory_space<vmem>>, vector<1x8x64xf32>
    %99 = vector.shape_cast %98 : vector<1x8x64xf32> to vector<8x64xf32>
    %100 = vector.shape_cast %97 : vector<8x64xf32> to vector<1x8x64xf32>
    tpu.vector_store %arg14[%c0_47, %c0_48, %c0_49], %100 {strides = array<i32>} : memref<1x8x64xf32, #tpu.memory_space<vmem>>, vector<1x8x64xf32>,
    return
  }
  func.func @transform_0(%arg0: i32) -> (i32, i32, i32) {
    %c0_i32 = arith.constant 0 : i32
    %c0_i32_0 = arith.constant 0 : i32
    %c0_i32_1 = arith.constant 0 : i32
    return %arg0, %c0_i32, %c0_i32_0 : i32, i32, i32
  }
  func.func @transform_1(%arg0: i32) -> (i32, i32) {
    %c0_i32 = arith.constant 0 : i32
    %c0_i32_0 = arith.constant 0 : i32
    %c0_i32_1 = arith.constant 0 : i32
    return %c0_i32, %c0_i32_0 : i32, i32
  }
  func.func @transform_2(%arg0: i32) -> (i32, i32) {
    %c0_i32 = arith.constant 0 : i32
    %c0_i32_0 = arith.constant 0 : i32
    %c0_i32_1 = arith.constant 0 : i32
    return %c0_i32, %c0_i32_0 : i32, i32
  }
  func.func @transform_3(%arg0: i32) -> (i32, i32) {
    %c0_i32 = arith.constant 0 : i32
    %c0_i32_0 = arith.constant 0 : i32
    %c0_i32_1 = arith.constant 0 : i32
    return %c0_i32, %c0_i32_0 : i32, i32
  }
  func.func @transform_4(%arg0: i32) -> (i32, i32) {
    %c0_i32 = arith.constant 0 : i32
    %c0_i32_0 = arith.constant 0 : i32
    %c0_i32_1 = arith.constant 0 : i32
    return %c0_i32, %c0_i32_0 : i32, i32
  }
  func.func @transform_5(%arg0: i32) -> (i32, i32) {
    %c0_i32 = arith.constant 0 : i32
    %c0_i32_0 = arith.constant 0 : i32
    %c0_i32_1 = arith.constant 0 : i32
    return %c0_i32, %c0_i32_0 : i32, i32
  }
  func.func @transform_6(%arg0: i32) -> (i32, i32) {
    %c0_i32 = arith.constant 0 : i32
    %c0_i32_0 = arith.constant 0 : i32
    %c0_i32_1 = arith.constant 0 : i32
    return %c0_i32, %c0_i32_0 : i32, i32
  }
  func.func @transform_7(%arg0: i32) -> (i32, i32) {
    %c0_i32 = arith.constant 0 : i32
    %c0_i32_0 = arith.constant 0 : i32
    %c0_i32_1 = arith.constant 0 : i32
    return %c0_i32, %c0_i32_0 : i32, i32
  }
  func.func @transform_8(%arg0: i32) -> (i32, i32) {
    %c0_i32 = arith.constant 0 : i32
    %c0_i32_0 = arith.constant 0 : i32
    %c0_i32_1 = arith.constant 0 : i32
    return %c0_i32, %c0_i32_0 : i32, i32
  }
  func.func @transform_9(%arg0: i32) -> (i32, i32) {
    %c0_i32 = arith.constant 0 : i32
    %c0_i32_0 = arith.constant 0 : i32
    %c0_i32_1 = arith.constant 0 : i32
    return %c0_i32, %c0_i32_0 : i32, i32
  }
  func.func @transform_10(%arg0: i32) -> (i32, i32) {
    %c0_i32 = arith.constant 0 : i32
    %c0_i32_0 = arith.constant 0 : i32
    %c0_i32_1 = arith.constant 0 : i32
    return %c0_i32, %c0_i32_0 : i32, i32
  }
  func.func @transform_11(%arg0: i32) -> (i32, i32) {
    %c0_i32 = arith.constant 0 : i32
    %c0_i32_0 = arith.constant 0 : i32
    %c0_i32_1 = arith.constant 0 : i32
    return %c0_i32, %c0_i32_0 : i32, i32
  }
  func.func @transform_12(%arg0: i32) -> (i32, i32) {
    %c0_i32 = arith.constant 0 : i32
    %c0_i32_0 = arith.constant 0 : i32
    %c0_i32_1 = arith.constant 0 : i32
    return %c0_i32, %c0_i32_0 : i32, i32
  }
  func.func @transform_13(%arg0: i32) -> (i32, i32, i32) {
    %c0_i32 = arith.constant 0 : i32
    %c0_i32_0 = arith.constant 0 : i32
    %c0_i32_1 = arith.constant 0 : i32
    return %arg0, %c0_i32, %c0_i32_0 : i32, i32, i32
  }
}

module attributes {stable_mosaic.version = 11 : i64} {
  func.func @_resnet_kernel(%arg0: i32, %arg1: memref<1x8x64xf32, #tpu.memory_space<vmem>>, %arg2: memref<64x64xf32, #tpu.memory_space<vmem>>, %arg3: memref<1x64xf32, #tpu.memory_space<vmem>>, %arg4: memref<1x64xf32, #tpu.memory_space<vmem>>, %arg5: memref<192x64xf32, #tpu.memory_space<vmem>>, %arg6: memref<1x64xf32, #tpu.memory_space<vmem>>, %arg7: memref<64x64xf32, #tpu.memory_space<vmem>>, %arg8: memref<1x64xf32, #tpu.memory_space<vmem>>, %arg9: memref<1x64xf32, #tpu.memory_space<vmem>>, %arg10: memref<192x64xf32, #tpu.memory_space<vmem>>, %arg11: memref<1x64xf32, #tpu.memory_space<vmem>>, %arg12: memref<1x8x64xf32, #tpu.memory_space<vmem>>) attributes {dimension_semantics = [#tpu.dimension_semantics<parallel>], iteration_bounds = array<i64: 2>, scalar_prefetch = 0 : i64, scratch_operands = 0 : i64, tpu.core_type = #tpu.core_type<tc>, window_params = [{transform_indices = @transform_0, window_bounds = array<i64: 1, 8, 64>}, {pipeline_mode = #tpu.pipeline_mode<synchronous>, transform_indices = @transform_1, window_bounds = array<i64: 64, 64>}, {pipeline_mode = #tpu.pipeline_mode<synchronous>, transform_indices = @transform_2, window_bounds = array<i64: 1, 64>}, {pipeline_mode = #tpu.pipeline_mode<synchronous>, transform_indices = @transform_3, window_bounds = array<i64: 1, 64>}, {pipeline_mode = #tpu.pipeline_mode<synchronous>, transform_indices = @transform_4, window_bounds = array<i64: 192, 64>}, {pipeline_mode = #tpu.pipeline_mode<synchronous>, transform_indices = @transform_5, window_bounds = array<i64: 1, 64>}, {pipeline_mode = #tpu.pipeline_mode<synchronous>, transform_indices = @transform_6, window_bounds = array<i64: 64, 64>}, {pipeline_mode = #tpu.pipeline_mode<synchronous>, transform_indices = @transform_7, window_bounds = array<i64: 1, 64>}, {pipeline_mode = #tpu.pipeline_mode<synchronous>, transform_indices = @transform_8, window_bounds = array<i64: 1, 64>}, {pipeline_mode = #tpu.pipeline_mode<synchronous>, transform_indices = @transform_9, window_bounds = array<i64: 192, 64>}, {pipeline_mode = #tpu.pipeline_mode<synchronous>, transform_indices = @transform_10, window_bounds = array<i64: 1, 64>}, {transform_indices = @transform_11, window_bounds = array<i64: 1, 8, 64>}]} {
    %c0 = arith.constant 0 : index
    %c0_0 = arith.constant 0 : index
    %c0_1 = arith.constant 0 : index
    %0 = vector.load %arg1[%c0, %c0_0, %c0_1] : memref<1x8x64xf32, #tpu.memory_space<vmem>>, vector<1x8x64xf32>
    %1 = vector.shape_cast %0 : vector<1x8x64xf32> to vector<8x64xf32>
    %c0_2 = arith.constant 0 : index
    %c0_3 = arith.constant 0 : index
    %2 = vector.load %arg2[%c0_2, %c0_3] : memref<64x64xf32, #tpu.memory_space<vmem>>, vector<64x64xf32>
    %c0_4 = arith.constant 0 : index
    %c0_5 = arith.constant 0 : index
    %3 = vector.load %arg3[%c0_4, %c0_5] : memref<1x64xf32, #tpu.memory_space<vmem>>, vector<1x64xf32>
    %c0_6 = arith.constant 0 : index
    %c0_7 = arith.constant 0 : index
    %4 = vector.load %arg4[%c0_6, %c0_7] : memref<1x64xf32, #tpu.memory_space<vmem>>, vector<1x64xf32>
    %cst = arith.constant dense<0.000000e+00> : vector<64xf32>
    %5 = vector.multi_reduction <add>, %1, %cst [0] : vector<8x64xf32> to vector<64xf32>
    %6 = vector.shape_cast %5 : vector<64xf32> to vector<1x64xf32>
    %7 = arith.mulf %1, %1 : vector<8x64xf32>
    %cst_8 = arith.constant dense<0.000000e+00> : vector<64xf32>
    %8 = vector.multi_reduction <add>, %7, %cst_8 [0] : vector<8x64xf32> to vector<64xf32>
    %9 = vector.shape_cast %8 : vector<64xf32> to vector<1x64xf32>
    %cst_9 = arith.constant dense<0.000000e+00> : vector<1x64xf32>
    %10 = tpu.matmul %6, %2, %cst_9 {dimension_numbers = #tpu.dot_dimension_numbers<[1], [0], [0], [1], [0, 0, 1, 1], [], []>} : vector<1x64xf32>, vector<64x64xf32>, vector<1x64xf32> -> vector<1x64xf32>
    %cst_10 = arith.constant 6.250000e-02 : f32
    %11 = vector.broadcast %cst_10 : f32 to vector<1x64xf32>
    %12 = arith.mulf %10, %11 : vector<1x64xf32>
    %cst_11 = arith.constant dense<0.000000e+00> : vector<1x64xf32>
    %13 = tpu.matmul %9, %2, %cst_11 {dimension_numbers = #tpu.dot_dimension_numbers<[1], [0], [0], [1], [0, 0, 1, 1], [], []>} : vector<1x64xf32>, vector<64x64xf32>, vector<1x64xf32> -> vector<1x64xf32>
    %cst_12 = arith.constant 6.250000e-02 : f32
    %14 = vector.broadcast %cst_12 : f32 to vector<1x64xf32>
    %15 = arith.mulf %13, %14 : vector<1x64xf32>
    %16 = arith.mulf %12, %12 : vector<1x64xf32>
    %17 = arith.subf %15, %16 : vector<1x64xf32>
    %18 = vector.broadcast %12 : vector<1x64xf32> to vector<8x64xf32>
    %19 = arith.subf %1, %18 : vector<8x64xf32>
    %cst_13 = arith.constant 9.99999974E-6 : f32
    %20 = vector.broadcast %cst_13 : f32 to vector<1x64xf32>
    %21 = arith.addf %17, %20 : vector<1x64xf32>
    %22 = math.rsqrt %21 : vector<1x64xf32>
    %23 = vector.broadcast %22 : vector<1x64xf32> to vector<8x64xf32>
    %24 = arith.mulf %19, %23 : vector<8x64xf32>
    %25 = vector.broadcast %3 : vector<1x64xf32> to vector<8x64xf32>
    %26 = arith.mulf %24, %25 : vector<8x64xf32>
    %27 = vector.broadcast %4 : vector<1x64xf32> to vector<8x64xf32>
    %28 = arith.addf %26, %27 : vector<8x64xf32>
    %29 = arith.negf %28 : vector<8x64xf32>
    %30 = math.exp %29 : vector<8x64xf32>
    %cst_14 = arith.constant 1.000000e+00 : f32
    %31 = vector.broadcast %cst_14 : f32 to vector<8x64xf32>
    %32 = arith.addf %31, %30 : vector<8x64xf32>
    %33 = arith.divf %31, %32 : vector<8x64xf32>
    %34 = arith.mulf %28, %33 : vector<8x64xf32>
    %cst_15 = arith.constant 0.000000e+00 : f32
    %35 = vector.broadcast %cst_15 : f32 to vector<1x64xf32>
    %36 = vector.extract_strided_slice %34 {offsets = [0, 0], sizes = [7, 64], strides = [1, 1]} : vector<8x64xf32> to vector<7x64xf32>
    %37 = tpu.concatenate %35, %36 in 0 : vector<1x64xf32>, vector<7x64xf32> -> vector<8x64xf32>
    %38 = vector.extract_strided_slice %34 {offsets = [1, 0], sizes = [7, 64], strides = [1, 1]} : vector<8x64xf32> to vector<7x64xf32>
    %39 = tpu.concatenate %38, %35 in 0 : vector<7x64xf32>, vector<1x64xf32> -> vector<8x64xf32>
    %40 = tpu.concatenate %37, %34, %39 in 1 : vector<8x64xf32>, vector<8x64xf32>, vector<8x64xf32> -> vector<8x192xf32>
    %c0_16 = arith.constant 0 : index
    %c0_17 = arith.constant 0 : index
    %41 = vector.load %arg5[%c0_16, %c0_17] : memref<192x64xf32, #tpu.memory_space<vmem>>, vector<192x64xf32>
    %cst_18 = arith.constant dense<0.000000e+00> : vector<8x64xf32>
    %42 = tpu.matmul %40, %41, %cst_18 {dimension_numbers = #tpu.dot_dimension_numbers<[1], [0], [0], [1], [0, 0, 1, 1], [], []>} : vector<8x192xf32>, vector<192x64xf32>, vector<8x64xf32> -> vector<8x64xf32>
    %c0_19 = arith.constant 0 : index
    %c0_20 = arith.constant 0 : index
    %43 = vector.load %arg6[%c0_19, %c0_20] : memref<1x64xf32, #tpu.memory_space<vmem>>, vector<1x64xf32>
    %44 = vector.broadcast %43 : vector<1x64xf32> to vector<8x64xf32>
    %45 = arith.addf %42, %44 : vector<8x64xf32>
    %c0_21 = arith.constant 0 : index
    %c0_22 = arith.constant 0 : index
    %46 = vector.load %arg7[%c0_21, %c0_22] : memref<64x64xf32, #tpu.memory_space<vmem>>, vector<64x64xf32>
    %c0_23 = arith.constant 0 : index
    %c0_24 = arith.constant 0 : index
    %47 = vector.load %arg8[%c0_23, %c0_24] : memref<1x64xf32, #tpu.memory_space<vmem>>, vector<1x64xf32>
    %c0_25 = arith.constant 0 : index
    %c0_26 = arith.constant 0 : index
    %48 = vector.load %arg9[%c0_25, %c0_26] : memref<1x64xf32, #tpu.memory_space<vmem>>, vector<1x64xf32>
    %cst_27 = arith.constant dense<0.000000e+00> : vector<64xf32>
    %49 = vector.multi_reduction <add>, %45, %cst_27 [0] : vector<8x64xf32> to vector<64xf32>
    %50 = vector.shape_cast %49 : vector<64xf32> to vector<1x64xf32>
    %51 = arith.mulf %45, %45 : vector<8x64xf32>
    %cst_28 = arith.constant dense<0.000000e+00> : vector<64xf32>
    %52 = vector.multi_reduction <add>, %51, %cst_28 [0] : vector<8x64xf32> to vector<64xf32>
    %53 = vector.shape_cast %52 : vector<64xf32> to vector<1x64xf32>
    %cst_29 = arith.constant dense<0.000000e+00> : vector<1x64xf32>
    %54 = tpu.matmul %50, %46, %cst_29 {dimension_numbers = #tpu.dot_dimension_numbers<[1], [0], [0], [1], [0, 0, 1, 1], [], []>} : vector<1x64xf32>, vector<64x64xf32>, vector<1x64xf32> -> vector<1x64xf32>
    %cst_30 = arith.constant 6.250000e-02 : f32
    %55 = vector.broadcast %cst_30 : f32 to vector<1x64xf32>
    %56 = arith.mulf %54, %55 : vector<1x64xf32>
    %cst_31 = arith.constant dense<0.000000e+00> : vector<1x64xf32>
    %57 = tpu.matmul %53, %46, %cst_31 {dimension_numbers = #tpu.dot_dimension_numbers<[1], [0], [0], [1], [0, 0, 1, 1], [], []>} : vector<1x64xf32>, vector<64x64xf32>, vector<1x64xf32> -> vector<1x64xf32>
    %cst_32 = arith.constant 6.250000e-02 : f32
    %58 = vector.broadcast %cst_32 : f32 to vector<1x64xf32>
    %59 = arith.mulf %57, %58 : vector<1x64xf32>
    %60 = arith.mulf %56, %56 : vector<1x64xf32>
    %61 = arith.subf %59, %60 : vector<1x64xf32>
    %62 = vector.broadcast %56 : vector<1x64xf32> to vector<8x64xf32>
    %63 = arith.subf %45, %62 : vector<8x64xf32>
    %cst_33 = arith.constant 9.99999974E-6 : f32
    %64 = vector.broadcast %cst_33 : f32 to vector<1x64xf32>
    %65 = arith.addf %61, %64 : vector<1x64xf32>
    %66 = math.rsqrt %65 : vector<1x64xf32>
    %67 = vector.broadcast %66 : vector<1x64xf32> to vector<8x64xf32>
    %68 = arith.mulf %63, %67 : vector<8x64xf32>
    %69 = vector.broadcast %47 : vector<1x64xf32> to vector<8x64xf32>
    %70 = arith.mulf %68, %69 : vector<8x64xf32>
    %71 = vector.broadcast %48 : vector<1x64xf32> to vector<8x64xf32>
    %72 = arith.addf %70, %71 : vector<8x64xf32>
    %73 = arith.negf %72 : vector<8x64xf32>
    %74 = math.exp %73 : vector<8x64xf32>
    %cst_34 = arith.constant 1.000000e+00 : f32
    %75 = vector.broadcast %cst_34 : f32 to vector<8x64xf32>
    %76 = arith.addf %75, %74 : vector<8x64xf32>
    %77 = arith.divf %75, %76 : vector<8x64xf32>
    %78 = arith.mulf %72, %77 : vector<8x64xf32>
    %cst_35 = arith.constant 0.000000e+00 : f32
    %79 = vector.broadcast %cst_35 : f32 to vector<1x64xf32>
    %80 = vector.extract_strided_slice %78 {offsets = [0, 0], sizes = [7, 64], strides = [1, 1]} : vector<8x64xf32> to vector<7x64xf32>
    %81 = tpu.concatenate %79, %80 in 0 : vector<1x64xf32>, vector<7x64xf32> -> vector<8x64xf32>
    %82 = vector.extract_strided_slice %78 {offsets = [1, 0], sizes = [7, 64], strides = [1, 1]} : vector<8x64xf32> to vector<7x64xf32>
    %83 = tpu.concatenate %82, %79 in 0 : vector<7x64xf32>, vector<1x64xf32> -> vector<8x64xf32>
    %84 = tpu.concatenate %81, %78, %83 in 1 : vector<8x64xf32>, vector<8x64xf32>, vector<8x64xf32> -> vector<8x192xf32>
    %c0_36 = arith.constant 0 : index
    %c0_37 = arith.constant 0 : index
    %85 = vector.load %arg10[%c0_36, %c0_37] : memref<192x64xf32, #tpu.memory_space<vmem>>, vector<192x64xf32>
    %cst_38 = arith.constant dense<0.000000e+00> : vector<8x64xf32>
    %86 = tpu.matmul %84, %85, %cst_38 {dimension_numbers = #tpu.dot_dimension_numbers<[1], [0], [0], [1], [0, 0, 1, 1], [], []>} : vector<8x192xf32>, vector<192x64xf32>, vector<8x64xf32> -> vector<8x64xf32>
    %c0_39 = arith.constant 0 : index
    %c0_40 = arith.constant 0 : index
    %87 = vector.load %arg11[%c0_39, %c0_40] : memref<1x64xf32, #tpu.memory_space<vmem>>, vector<1x64xf32>
    %88 = vector.broadcast %87 : vector<1x64xf32> to vector<8x64xf32>
    %89 = arith.addf %86, %88 : vector<8x64xf32>
    %90 = arith.addf %89, %1 : vector<8x64xf32>
    %cst_41 = arith.constant 0.707106769 : f32
    %91 = vector.broadcast %cst_41 : f32 to vector<8x64xf32>
    %92 = arith.mulf %90, %91 : vector<8x64xf32>
    %c0_42 = arith.constant 0 : index
    %c0_43 = arith.constant 0 : index
    %c0_44 = arith.constant 0 : index
    %93 = vector.load %arg12[%c0_42, %c0_43, %c0_44] : memref<1x8x64xf32, #tpu.memory_space<vmem>>, vector<1x8x64xf32>
    %94 = vector.shape_cast %93 : vector<1x8x64xf32> to vector<8x64xf32>
    %95 = vector.shape_cast %92 : vector<8x64xf32> to vector<1x8x64xf32>
    tpu.vector_store %arg12[%c0_42, %c0_43, %c0_44], %95 {strides = array<i32>} : memref<1x8x64xf32, #tpu.memory_space<vmem>>, vector<1x8x64xf32>,
    return
  }
  func.func @transform_0(%arg0: i32) -> (i32, i32, i32) {
    %c0_i32 = arith.constant 0 : i32
    %c0_i32_0 = arith.constant 0 : i32
    %c0_i32_1 = arith.constant 0 : i32
    return %arg0, %c0_i32, %c0_i32_0 : i32, i32, i32
  }
  func.func @transform_1(%arg0: i32) -> (i32, i32) {
    %c0_i32 = arith.constant 0 : i32
    %c0_i32_0 = arith.constant 0 : i32
    %c0_i32_1 = arith.constant 0 : i32
    return %c0_i32, %c0_i32_0 : i32, i32
  }
  func.func @transform_2(%arg0: i32) -> (i32, i32) {
    %c0_i32 = arith.constant 0 : i32
    %c0_i32_0 = arith.constant 0 : i32
    %c0_i32_1 = arith.constant 0 : i32
    return %c0_i32, %c0_i32_0 : i32, i32
  }
  func.func @transform_3(%arg0: i32) -> (i32, i32) {
    %c0_i32 = arith.constant 0 : i32
    %c0_i32_0 = arith.constant 0 : i32
    %c0_i32_1 = arith.constant 0 : i32
    return %c0_i32, %c0_i32_0 : i32, i32
  }
  func.func @transform_4(%arg0: i32) -> (i32, i32) {
    %c0_i32 = arith.constant 0 : i32
    %c0_i32_0 = arith.constant 0 : i32
    %c0_i32_1 = arith.constant 0 : i32
    return %c0_i32, %c0_i32_0 : i32, i32
  }
  func.func @transform_5(%arg0: i32) -> (i32, i32) {
    %c0_i32 = arith.constant 0 : i32
    %c0_i32_0 = arith.constant 0 : i32
    %c0_i32_1 = arith.constant 0 : i32
    return %c0_i32, %c0_i32_0 : i32, i32
  }
  func.func @transform_6(%arg0: i32) -> (i32, i32) {
    %c0_i32 = arith.constant 0 : i32
    %c0_i32_0 = arith.constant 0 : i32
    %c0_i32_1 = arith.constant 0 : i32
    return %c0_i32, %c0_i32_0 : i32, i32
  }
  func.func @transform_7(%arg0: i32) -> (i32, i32) {
    %c0_i32 = arith.constant 0 : i32
    %c0_i32_0 = arith.constant 0 : i32
    %c0_i32_1 = arith.constant 0 : i32
    return %c0_i32, %c0_i32_0 : i32, i32
  }
  func.func @transform_8(%arg0: i32) -> (i32, i32) {
    %c0_i32 = arith.constant 0 : i32
    %c0_i32_0 = arith.constant 0 : i32
    %c0_i32_1 = arith.constant 0 : i32
    return %c0_i32, %c0_i32_0 : i32, i32
  }
  func.func @transform_9(%arg0: i32) -> (i32, i32) {
    %c0_i32 = arith.constant 0 : i32
    %c0_i32_0 = arith.constant 0 : i32
    %c0_i32_1 = arith.constant 0 : i32
    return %c0_i32, %c0_i32_0 : i32, i32
  }
  func.func @transform_10(%arg0: i32) -> (i32, i32) {
    %c0_i32 = arith.constant 0 : i32
    %c0_i32_0 = arith.constant 0 : i32
    %c0_i32_1 = arith.constant 0 : i32
    return %c0_i32, %c0_i32_0 : i32, i32
  }
  func.func @transform_11(%arg0: i32) -> (i32, i32, i32) {
    %c0_i32 = arith.constant 0 : i32
    %c0_i32_0 = arith.constant 0 : i32
    %c0_i32_1 = arith.constant 0 : i32
    return %arg0, %c0_i32, %c0_i32_0 : i32, i32, i32
  }
}

module attributes {stable_mosaic.version = 11 : i64} {
  func.func @_resnet_kernel(%arg0: i32, %arg1: memref<1x8x64xf32, #tpu.memory_space<vmem>>, %arg2: memref<1x8x64xf32, #tpu.memory_space<vmem>>, %arg3: memref<128x128xf32, #tpu.memory_space<vmem>>, %arg4: memref<1x128xf32, #tpu.memory_space<vmem>>, %arg5: memref<1x128xf32, #tpu.memory_space<vmem>>, %arg6: memref<384x64xf32, #tpu.memory_space<vmem>>, %arg7: memref<1x64xf32, #tpu.memory_space<vmem>>, %arg8: memref<64x64xf32, #tpu.memory_space<vmem>>, %arg9: memref<1x64xf32, #tpu.memory_space<vmem>>, %arg10: memref<1x64xf32, #tpu.memory_space<vmem>>, %arg11: memref<192x64xf32, #tpu.memory_space<vmem>>, %arg12: memref<1x64xf32, #tpu.memory_space<vmem>>, %arg13: memref<128x64xf32, #tpu.memory_space<vmem>>, %arg14: memref<1x64xf32, #tpu.memory_space<vmem>>, %arg15: memref<1x8x64xf32, #tpu.memory_space<vmem>>) attributes {dimension_semantics = [#tpu.dimension_semantics<parallel>], iteration_bounds = array<i64: 2>, scalar_prefetch = 0 : i64, scratch_operands = 0 : i64, tpu.core_type = #tpu.core_type<tc>, window_params = [{transform_indices = @transform_0, window_bounds = array<i64: 1, 8, 64>}, {transform_indices = @transform_1, window_bounds = array<i64: 1, 8, 64>}, {pipeline_mode = #tpu.pipeline_mode<synchronous>, transform_indices = @transform_2, window_bounds = array<i64: 128, 128>}, {pipeline_mode = #tpu.pipeline_mode<synchronous>, transform_indices = @transform_3, window_bounds = array<i64: 1, 128>}, {pipeline_mode = #tpu.pipeline_mode<synchronous>, transform_indices = @transform_4, window_bounds = array<i64: 1, 128>}, {pipeline_mode = #tpu.pipeline_mode<synchronous>, transform_indices = @transform_5, window_bounds = array<i64: 384, 64>}, {pipeline_mode = #tpu.pipeline_mode<synchronous>, transform_indices = @transform_6, window_bounds = array<i64: 1, 64>}, {pipeline_mode = #tpu.pipeline_mode<synchronous>, transform_indices = @transform_7, window_bounds = array<i64: 64, 64>}, {pipeline_mode = #tpu.pipeline_mode<synchronous>, transform_indices = @transform_8, window_bounds = array<i64: 1, 64>}, {pipeline_mode = #tpu.pipeline_mode<synchronous>, transform_indices = @transform_9, window_bounds = array<i64: 1, 64>}, {pipeline_mode = #tpu.pipeline_mode<synchronous>, transform_indices = @transform_10, window_bounds = array<i64: 192, 64>}, {pipeline_mode = #tpu.pipeline_mode<synchronous>, transform_indices = @transform_11, window_bounds = array<i64: 1, 64>}, {pipeline_mode = #tpu.pipeline_mode<synchronous>, transform_indices = @transform_12, window_bounds = array<i64: 128, 64>}, {pipeline_mode = #tpu.pipeline_mode<synchronous>, transform_indices = @transform_13, window_bounds = array<i64: 1, 64>}, {transform_indices = @transform_14, window_bounds = array<i64: 1, 8, 64>}]} {
    %c0 = arith.constant 0 : index
    %c0_0 = arith.constant 0 : index
    %c0_1 = arith.constant 0 : index
    %0 = vector.load %arg1[%c0, %c0_0, %c0_1] : memref<1x8x64xf32, #tpu.memory_space<vmem>>, vector<1x8x64xf32>
    %1 = vector.shape_cast %0 : vector<1x8x64xf32> to vector<8x64xf32>
    %c0_2 = arith.constant 0 : index
    %c0_3 = arith.constant 0 : index
    %c0_4 = arith.constant 0 : index
    %2 = vector.load %arg2[%c0_2, %c0_3, %c0_4] : memref<1x8x64xf32, #tpu.memory_space<vmem>>, vector<1x8x64xf32>
    %3 = vector.shape_cast %2 : vector<1x8x64xf32> to vector<8x64xf32>
    %4 = tpu.concatenate %1, %3 in 1 : vector<8x64xf32>, vector<8x64xf32> -> vector<8x128xf32>
    %c0_5 = arith.constant 0 : index
    %c0_6 = arith.constant 0 : index
    %5 = vector.load %arg3[%c0_5, %c0_6] : memref<128x128xf32, #tpu.memory_space<vmem>>, vector<128x128xf32>
    %c0_7 = arith.constant 0 : index
    %c0_8 = arith.constant 0 : index
    %6 = vector.load %arg4[%c0_7, %c0_8] : memref<1x128xf32, #tpu.memory_space<vmem>>, vector<1x128xf32>
    %c0_9 = arith.constant 0 : index
    %c0_10 = arith.constant 0 : index
    %7 = vector.load %arg5[%c0_9, %c0_10] : memref<1x128xf32, #tpu.memory_space<vmem>>, vector<1x128xf32>
    %cst = arith.constant dense<0.000000e+00> : vector<128xf32>
    %8 = vector.multi_reduction <add>, %4, %cst [0] : vector<8x128xf32> to vector<128xf32>
    %9 = vector.shape_cast %8 : vector<128xf32> to vector<1x128xf32>
    %10 = arith.mulf %4, %4 : vector<8x128xf32>
    %cst_11 = arith.constant dense<0.000000e+00> : vector<128xf32>
    %11 = vector.multi_reduction <add>, %10, %cst_11 [0] : vector<8x128xf32> to vector<128xf32>
    %12 = vector.shape_cast %11 : vector<128xf32> to vector<1x128xf32>
    %cst_12 = arith.constant dense<0.000000e+00> : vector<1x128xf32>
    %13 = tpu.matmul %9, %5, %cst_12 {dimension_numbers = #tpu.dot_dimension_numbers<[1], [0], [0], [1], [0, 0, 1, 1], [], []>} : vector<1x128xf32>, vector<128x128xf32>, vector<1x128xf32> -> vector<1x128xf32>
    %cst_13 = arith.constant 3.125000e-02 : f32
    %14 = vector.broadcast %cst_13 : f32 to vector<1x128xf32>
    %15 = arith.mulf %13, %14 : vector<1x128xf32>
    %cst_14 = arith.constant dense<0.000000e+00> : vector<1x128xf32>
    %16 = tpu.matmul %12, %5, %cst_14 {dimension_numbers = #tpu.dot_dimension_numbers<[1], [0], [0], [1], [0, 0, 1, 1], [], []>} : vector<1x128xf32>, vector<128x128xf32>, vector<1x128xf32> -> vector<1x128xf32>
    %cst_15 = arith.constant 3.125000e-02 : f32
    %17 = vector.broadcast %cst_15 : f32 to vector<1x128xf32>
    %18 = arith.mulf %16, %17 : vector<1x128xf32>
    %19 = arith.mulf %15, %15 : vector<1x128xf32>
    %20 = arith.subf %18, %19 : vector<1x128xf32>
    %21 = vector.broadcast %15 : vector<1x128xf32> to vector<8x128xf32>
    %22 = arith.subf %4, %21 : vector<8x128xf32>
    %cst_16 = arith.constant 9.99999974E-6 : f32
    %23 = vector.broadcast %cst_16 : f32 to vector<1x128xf32>
    %24 = arith.addf %20, %23 : vector<1x128xf32>
    %25 = math.rsqrt %24 : vector<1x128xf32>
    %26 = vector.broadcast %25 : vector<1x128xf32> to vector<8x128xf32>
    %27 = arith.mulf %22, %26 : vector<8x128xf32>
    %28 = vector.broadcast %6 : vector<1x128xf32> to vector<8x128xf32>
    %29 = arith.mulf %27, %28 : vector<8x128xf32>
    %30 = vector.broadcast %7 : vector<1x128xf32> to vector<8x128xf32>
    %31 = arith.addf %29, %30 : vector<8x128xf32>
    %32 = arith.negf %31 : vector<8x128xf32>
    %33 = math.exp %32 : vector<8x128xf32>
    %cst_17 = arith.constant 1.000000e+00 : f32
    %34 = vector.broadcast %cst_17 : f32 to vector<8x128xf32>
    %35 = arith.addf %34, %33 : vector<8x128xf32>
    %36 = arith.divf %34, %35 : vector<8x128xf32>
    %37 = arith.mulf %31, %36 : vector<8x128xf32>
    %cst_18 = arith.constant 0.000000e+00 : f32
    %38 = vector.broadcast %cst_18 : f32 to vector<1x128xf32>
    %39 = vector.extract_strided_slice %37 {offsets = [0, 0], sizes = [7, 128], strides = [1, 1]} : vector<8x128xf32> to vector<7x128xf32>
    %40 = tpu.concatenate %38, %39 in 0 : vector<1x128xf32>, vector<7x128xf32> -> vector<8x128xf32>
    %41 = vector.extract_strided_slice %37 {offsets = [1, 0], sizes = [7, 128], strides = [1, 1]} : vector<8x128xf32> to vector<7x128xf32>
    %42 = tpu.concatenate %41, %38 in 0 : vector<7x128xf32>, vector<1x128xf32> -> vector<8x128xf32>
    %43 = tpu.concatenate %40, %37, %42 in 1 : vector<8x128xf32>, vector<8x128xf32>, vector<8x128xf32> -> vector<8x384xf32>
    %c0_19 = arith.constant 0 : index
    %c0_20 = arith.constant 0 : index
    %44 = vector.load %arg6[%c0_19, %c0_20] : memref<384x64xf32, #tpu.memory_space<vmem>>, vector<384x64xf32>
    %cst_21 = arith.constant dense<0.000000e+00> : vector<8x64xf32>
    %45 = tpu.matmul %43, %44, %cst_21 {dimension_numbers = #tpu.dot_dimension_numbers<[1], [0], [0], [1], [0, 0, 1, 1], [], []>} : vector<8x384xf32>, vector<384x64xf32>, vector<8x64xf32> -> vector<8x64xf32>
    %c0_22 = arith.constant 0 : index
    %c0_23 = arith.constant 0 : index
    %46 = vector.load %arg7[%c0_22, %c0_23] : memref<1x64xf32, #tpu.memory_space<vmem>>, vector<1x64xf32>
    %47 = vector.broadcast %46 : vector<1x64xf32> to vector<8x64xf32>
    %48 = arith.addf %45, %47 : vector<8x64xf32>
    %c0_24 = arith.constant 0 : index
    %c0_25 = arith.constant 0 : index
    %49 = vector.load %arg8[%c0_24, %c0_25] : memref<64x64xf32, #tpu.memory_space<vmem>>, vector<64x64xf32>
    %c0_26 = arith.constant 0 : index
    %c0_27 = arith.constant 0 : index
    %50 = vector.load %arg9[%c0_26, %c0_27] : memref<1x64xf32, #tpu.memory_space<vmem>>, vector<1x64xf32>
    %c0_28 = arith.constant 0 : index
    %c0_29 = arith.constant 0 : index
    %51 = vector.load %arg10[%c0_28, %c0_29] : memref<1x64xf32, #tpu.memory_space<vmem>>, vector<1x64xf32>
    %cst_30 = arith.constant dense<0.000000e+00> : vector<64xf32>
    %52 = vector.multi_reduction <add>, %48, %cst_30 [0] : vector<8x64xf32> to vector<64xf32>
    %53 = vector.shape_cast %52 : vector<64xf32> to vector<1x64xf32>
    %54 = arith.mulf %48, %48 : vector<8x64xf32>
    %cst_31 = arith.constant dense<0.000000e+00> : vector<64xf32>
    %55 = vector.multi_reduction <add>, %54, %cst_31 [0] : vector<8x64xf32> to vector<64xf32>
    %56 = vector.shape_cast %55 : vector<64xf32> to vector<1x64xf32>
    %cst_32 = arith.constant dense<0.000000e+00> : vector<1x64xf32>
    %57 = tpu.matmul %53, %49, %cst_32 {dimension_numbers = #tpu.dot_dimension_numbers<[1], [0], [0], [1], [0, 0, 1, 1], [], []>} : vector<1x64xf32>, vector<64x64xf32>, vector<1x64xf32> -> vector<1x64xf32>
    %cst_33 = arith.constant 6.250000e-02 : f32
    %58 = vector.broadcast %cst_33 : f32 to vector<1x64xf32>
    %59 = arith.mulf %57, %58 : vector<1x64xf32>
    %cst_34 = arith.constant dense<0.000000e+00> : vector<1x64xf32>
    %60 = tpu.matmul %56, %49, %cst_34 {dimension_numbers = #tpu.dot_dimension_numbers<[1], [0], [0], [1], [0, 0, 1, 1], [], []>} : vector<1x64xf32>, vector<64x64xf32>, vector<1x64xf32> -> vector<1x64xf32>
    %cst_35 = arith.constant 6.250000e-02 : f32
    %61 = vector.broadcast %cst_35 : f32 to vector<1x64xf32>
    %62 = arith.mulf %60, %61 : vector<1x64xf32>
    %63 = arith.mulf %59, %59 : vector<1x64xf32>
    %64 = arith.subf %62, %63 : vector<1x64xf32>
    %65 = vector.broadcast %59 : vector<1x64xf32> to vector<8x64xf32>
    %66 = arith.subf %48, %65 : vector<8x64xf32>
    %cst_36 = arith.constant 9.99999974E-6 : f32
    %67 = vector.broadcast %cst_36 : f32 to vector<1x64xf32>
    %68 = arith.addf %64, %67 : vector<1x64xf32>
    %69 = math.rsqrt %68 : vector<1x64xf32>
    %70 = vector.broadcast %69 : vector<1x64xf32> to vector<8x64xf32>
    %71 = arith.mulf %66, %70 : vector<8x64xf32>
    %72 = vector.broadcast %50 : vector<1x64xf32> to vector<8x64xf32>
    %73 = arith.mulf %71, %72 : vector<8x64xf32>
    %74 = vector.broadcast %51 : vector<1x64xf32> to vector<8x64xf32>
    %75 = arith.addf %73, %74 : vector<8x64xf32>
    %76 = arith.negf %75 : vector<8x64xf32>
    %77 = math.exp %76 : vector<8x64xf32>
    %cst_37 = arith.constant 1.000000e+00 : f32
    %78 = vector.broadcast %cst_37 : f32 to vector<8x64xf32>
    %79 = arith.addf %78, %77 : vector<8x64xf32>
    %80 = arith.divf %78, %79 : vector<8x64xf32>
    %81 = arith.mulf %75, %80 : vector<8x64xf32>
    %cst_38 = arith.constant 0.000000e+00 : f32
    %82 = vector.broadcast %cst_38 : f32 to vector<1x64xf32>
    %83 = vector.extract_strided_slice %81 {offsets = [0, 0], sizes = [7, 64], strides = [1, 1]} : vector<8x64xf32> to vector<7x64xf32>
    %84 = tpu.concatenate %82, %83 in 0 : vector<1x64xf32>, vector<7x64xf32> -> vector<8x64xf32>
    %85 = vector.extract_strided_slice %81 {offsets = [1, 0], sizes = [7, 64], strides = [1, 1]} : vector<8x64xf32> to vector<7x64xf32>
    %86 = tpu.concatenate %85, %82 in 0 : vector<7x64xf32>, vector<1x64xf32> -> vector<8x64xf32>
    %87 = tpu.concatenate %84, %81, %86 in 1 : vector<8x64xf32>, vector<8x64xf32>, vector<8x64xf32> -> vector<8x192xf32>
    %c0_39 = arith.constant 0 : index
    %c0_40 = arith.constant 0 : index
    %88 = vector.load %arg11[%c0_39, %c0_40] : memref<192x64xf32, #tpu.memory_space<vmem>>, vector<192x64xf32>
    %cst_41 = arith.constant dense<0.000000e+00> : vector<8x64xf32>
    %89 = tpu.matmul %87, %88, %cst_41 {dimension_numbers = #tpu.dot_dimension_numbers<[1], [0], [0], [1], [0, 0, 1, 1], [], []>} : vector<8x192xf32>, vector<192x64xf32>, vector<8x64xf32> -> vector<8x64xf32>
    %c0_42 = arith.constant 0 : index
    %c0_43 = arith.constant 0 : index
    %90 = vector.load %arg12[%c0_42, %c0_43] : memref<1x64xf32, #tpu.memory_space<vmem>>, vector<1x64xf32>
    %91 = vector.broadcast %90 : vector<1x64xf32> to vector<8x64xf32>
    %92 = arith.addf %89, %91 : vector<8x64xf32>
    %c0_44 = arith.constant 0 : index
    %c0_45 = arith.constant 0 : index
    %93 = vector.load %arg13[%c0_44, %c0_45] : memref<128x64xf32, #tpu.memory_space<vmem>>, vector<128x64xf32>
    %cst_46 = arith.constant dense<0.000000e+00> : vector<8x64xf32>
    %94 = tpu.matmul %4, %93, %cst_46 {dimension_numbers = #tpu.dot_dimension_numbers<[1], [0], [0], [1], [0, 0, 1, 1], [], []>} : vector<8x128xf32>, vector<128x64xf32>, vector<8x64xf32> -> vector<8x64xf32>
    %c0_47 = arith.constant 0 : index
    %c0_48 = arith.constant 0 : index
    %95 = vector.load %arg14[%c0_47, %c0_48] : memref<1x64xf32, #tpu.memory_space<vmem>>, vector<1x64xf32>
    %96 = vector.broadcast %95 : vector<1x64xf32> to vector<8x64xf32>
    %97 = arith.addf %94, %96 : vector<8x64xf32>
    %98 = arith.addf %92, %97 : vector<8x64xf32>
    %cst_49 = arith.constant 0.707106769 : f32
    %99 = vector.broadcast %cst_49 : f32 to vector<8x64xf32>
    %100 = arith.mulf %98, %99 : vector<8x64xf32>
    %c0_50 = arith.constant 0 : index
    %c0_51 = arith.constant 0 : index
    %c0_52 = arith.constant 0 : index
    %101 = vector.load %arg15[%c0_50, %c0_51, %c0_52] : memref<1x8x64xf32, #tpu.memory_space<vmem>>, vector<1x8x64xf32>
    %102 = vector.shape_cast %101 : vector<1x8x64xf32> to vector<8x64xf32>
    %103 = vector.shape_cast %100 : vector<8x64xf32> to vector<1x8x64xf32>
    tpu.vector_store %arg15[%c0_50, %c0_51, %c0_52], %103 {strides = array<i32>} : memref<1x8x64xf32, #tpu.memory_space<vmem>>, vector<1x8x64xf32>,
    return
  }
  func.func @transform_0(%arg0: i32) -> (i32, i32, i32) {
    %c0_i32 = arith.constant 0 : i32
    %c0_i32_0 = arith.constant 0 : i32
    %c0_i32_1 = arith.constant 0 : i32
    return %arg0, %c0_i32, %c0_i32_0 : i32, i32, i32
  }
  func.func @transform_1(%arg0: i32) -> (i32, i32, i32) {
    %c0_i32 = arith.constant 0 : i32
    %c0_i32_0 = arith.constant 0 : i32
    %c0_i32_1 = arith.constant 0 : i32
    return %arg0, %c0_i32, %c0_i32_0 : i32, i32, i32
  }
  func.func @transform_2(%arg0: i32) -> (i32, i32) {
    %c0_i32 = arith.constant 0 : i32
    %c0_i32_0 = arith.constant 0 : i32
    %c0_i32_1 = arith.constant 0 : i32
    return %c0_i32, %c0_i32_0 : i32, i32
  }
  func.func @transform_3(%arg0: i32) -> (i32, i32) {
    %c0_i32 = arith.constant 0 : i32
    %c0_i32_0 = arith.constant 0 : i32
    %c0_i32_1 = arith.constant 0 : i32
    return %c0_i32, %c0_i32_0 : i32, i32
  }
  func.func @transform_4(%arg0: i32) -> (i32, i32) {
    %c0_i32 = arith.constant 0 : i32
    %c0_i32_0 = arith.constant 0 : i32
    %c0_i32_1 = arith.constant 0 : i32
    return %c0_i32, %c0_i32_0 : i32, i32
  }
  func.func @transform_5(%arg0: i32) -> (i32, i32) {
    %c0_i32 = arith.constant 0 : i32
    %c0_i32_0 = arith.constant 0 : i32
    %c0_i32_1 = arith.constant 0 : i32
    return %c0_i32, %c0_i32_0 : i32, i32
  }
  func.func @transform_6(%arg0: i32) -> (i32, i32) {
    %c0_i32 = arith.constant 0 : i32
    %c0_i32_0 = arith.constant 0 : i32
    %c0_i32_1 = arith.constant 0 : i32
    return %c0_i32, %c0_i32_0 : i32, i32
  }
  func.func @transform_7(%arg0: i32) -> (i32, i32) {
    %c0_i32 = arith.constant 0 : i32
    %c0_i32_0 = arith.constant 0 : i32
    %c0_i32_1 = arith.constant 0 : i32
    return %c0_i32, %c0_i32_0 : i32, i32
  }
  func.func @transform_8(%arg0: i32) -> (i32, i32) {
    %c0_i32 = arith.constant 0 : i32
    %c0_i32_0 = arith.constant 0 : i32
    %c0_i32_1 = arith.constant 0 : i32
    return %c0_i32, %c0_i32_0 : i32, i32
  }
  func.func @transform_9(%arg0: i32) -> (i32, i32) {
    %c0_i32 = arith.constant 0 : i32
    %c0_i32_0 = arith.constant 0 : i32
    %c0_i32_1 = arith.constant 0 : i32
    return %c0_i32, %c0_i32_0 : i32, i32
  }
  func.func @transform_10(%arg0: i32) -> (i32, i32) {
    %c0_i32 = arith.constant 0 : i32
    %c0_i32_0 = arith.constant 0 : i32
    %c0_i32_1 = arith.constant 0 : i32
    return %c0_i32, %c0_i32_0 : i32, i32
  }
  func.func @transform_11(%arg0: i32) -> (i32, i32) {
    %c0_i32 = arith.constant 0 : i32
    %c0_i32_0 = arith.constant 0 : i32
    %c0_i32_1 = arith.constant 0 : i32
    return %c0_i32, %c0_i32_0 : i32, i32
  }
  func.func @transform_12(%arg0: i32) -> (i32, i32) {
    %c0_i32 = arith.constant 0 : i32
    %c0_i32_0 = arith.constant 0 : i32
    %c0_i32_1 = arith.constant 0 : i32
    return %c0_i32, %c0_i32_0 : i32, i32
  }
  func.func @transform_13(%arg0: i32) -> (i32, i32) {
    %c0_i32 = arith.constant 0 : i32
    %c0_i32_0 = arith.constant 0 : i32
    %c0_i32_1 = arith.constant 0 : i32
    return %c0_i32, %c0_i32_0 : i32, i32
  }
  func.func @transform_14(%arg0: i32) -> (i32, i32, i32) {
    %c0_i32 = arith.constant 0 : i32
    %c0_i32_0 = arith.constant 0 : i32
    %c0_i32_1 = arith.constant 0 : i32
    return %arg0, %c0_i32, %c0_i32_0 : i32, i32, i32
  }
}

module attributes {stable_mosaic.version = 11 : i64} {
  func.func @_resnet_kernel(%arg0: i32, %arg1: memref<1x8x64xf32, #tpu.memory_space<vmem>>, %arg2: memref<1x8x32xf32, #tpu.memory_space<vmem>>, %arg3: memref<96x96xf32, #tpu.memory_space<vmem>>, %arg4: memref<1x96xf32, #tpu.memory_space<vmem>>, %arg5: memref<1x96xf32, #tpu.memory_space<vmem>>, %arg6: memref<288x64xf32, #tpu.memory_space<vmem>>, %arg7: memref<1x64xf32, #tpu.memory_space<vmem>>, %arg8: memref<64x64xf32, #tpu.memory_space<vmem>>, %arg9: memref<1x64xf32, #tpu.memory_space<vmem>>, %arg10: memref<1x64xf32, #tpu.memory_space<vmem>>, %arg11: memref<192x64xf32, #tpu.memory_space<vmem>>, %arg12: memref<1x64xf32, #tpu.memory_space<vmem>>, %arg13: memref<96x64xf32, #tpu.memory_space<vmem>>, %arg14: memref<1x64xf32, #tpu.memory_space<vmem>>, %arg15: memref<1x8x64xf32, #tpu.memory_space<vmem>>) attributes {dimension_semantics = [#tpu.dimension_semantics<parallel>], iteration_bounds = array<i64: 2>, scalar_prefetch = 0 : i64, scratch_operands = 0 : i64, tpu.core_type = #tpu.core_type<tc>, window_params = [{transform_indices = @transform_0, window_bounds = array<i64: 1, 8, 64>}, {transform_indices = @transform_1, window_bounds = array<i64: 1, 8, 32>}, {pipeline_mode = #tpu.pipeline_mode<synchronous>, transform_indices = @transform_2, window_bounds = array<i64: 96, 96>}, {pipeline_mode = #tpu.pipeline_mode<synchronous>, transform_indices = @transform_3, window_bounds = array<i64: 1, 96>}, {pipeline_mode = #tpu.pipeline_mode<synchronous>, transform_indices = @transform_4, window_bounds = array<i64: 1, 96>}, {pipeline_mode = #tpu.pipeline_mode<synchronous>, transform_indices = @transform_5, window_bounds = array<i64: 288, 64>}, {pipeline_mode = #tpu.pipeline_mode<synchronous>, transform_indices = @transform_6, window_bounds = array<i64: 1, 64>}, {pipeline_mode = #tpu.pipeline_mode<synchronous>, transform_indices = @transform_7, window_bounds = array<i64: 64, 64>}, {pipeline_mode = #tpu.pipeline_mode<synchronous>, transform_indices = @transform_8, window_bounds = array<i64: 1, 64>}, {pipeline_mode = #tpu.pipeline_mode<synchronous>, transform_indices = @transform_9, window_bounds = array<i64: 1, 64>}, {pipeline_mode = #tpu.pipeline_mode<synchronous>, transform_indices = @transform_10, window_bounds = array<i64: 192, 64>}, {pipeline_mode = #tpu.pipeline_mode<synchronous>, transform_indices = @transform_11, window_bounds = array<i64: 1, 64>}, {pipeline_mode = #tpu.pipeline_mode<synchronous>, transform_indices = @transform_12, window_bounds = array<i64: 96, 64>}, {pipeline_mode = #tpu.pipeline_mode<synchronous>, transform_indices = @transform_13, window_bounds = array<i64: 1, 64>}, {transform_indices = @transform_14, window_bounds = array<i64: 1, 8, 64>}]} {
    %c0 = arith.constant 0 : index
    %c0_0 = arith.constant 0 : index
    %c0_1 = arith.constant 0 : index
    %0 = vector.load %arg1[%c0, %c0_0, %c0_1] : memref<1x8x64xf32, #tpu.memory_space<vmem>>, vector<1x8x64xf32>
    %1 = vector.shape_cast %0 : vector<1x8x64xf32> to vector<8x64xf32>
    %c0_2 = arith.constant 0 : index
    %c0_3 = arith.constant 0 : index
    %c0_4 = arith.constant 0 : index
    %2 = vector.load %arg2[%c0_2, %c0_3, %c0_4] : memref<1x8x32xf32, #tpu.memory_space<vmem>>, vector<1x8x32xf32>
    %3 = vector.shape_cast %2 : vector<1x8x32xf32> to vector<8x32xf32>
    %4 = tpu.concatenate %1, %3 in 1 : vector<8x64xf32>, vector<8x32xf32> -> vector<8x96xf32>
    %c0_5 = arith.constant 0 : index
    %c0_6 = arith.constant 0 : index
    %5 = vector.load %arg3[%c0_5, %c0_6] : memref<96x96xf32, #tpu.memory_space<vmem>>, vector<96x96xf32>
    %c0_7 = arith.constant 0 : index
    %c0_8 = arith.constant 0 : index
    %6 = vector.load %arg4[%c0_7, %c0_8] : memref<1x96xf32, #tpu.memory_space<vmem>>, vector<1x96xf32>
    %c0_9 = arith.constant 0 : index
    %c0_10 = arith.constant 0 : index
    %7 = vector.load %arg5[%c0_9, %c0_10] : memref<1x96xf32, #tpu.memory_space<vmem>>, vector<1x96xf32>
    %cst = arith.constant dense<0.000000e+00> : vector<96xf32>
    %8 = vector.multi_reduction <add>, %4, %cst [0] : vector<8x96xf32> to vector<96xf32>
    %9 = vector.shape_cast %8 : vector<96xf32> to vector<1x96xf32>
    %10 = arith.mulf %4, %4 : vector<8x96xf32>
    %cst_11 = arith.constant dense<0.000000e+00> : vector<96xf32>
    %11 = vector.multi_reduction <add>, %10, %cst_11 [0] : vector<8x96xf32> to vector<96xf32>
    %12 = vector.shape_cast %11 : vector<96xf32> to vector<1x96xf32>
    %cst_12 = arith.constant dense<0.000000e+00> : vector<1x96xf32>
    %13 = tpu.matmul %9, %5, %cst_12 {dimension_numbers = #tpu.dot_dimension_numbers<[1], [0], [0], [1], [0, 0, 1, 1], [], []>} : vector<1x96xf32>, vector<96x96xf32>, vector<1x96xf32> -> vector<1x96xf32>
    %cst_13 = arith.constant 0.0416666679 : f32
    %14 = vector.broadcast %cst_13 : f32 to vector<1x96xf32>
    %15 = arith.mulf %13, %14 : vector<1x96xf32>
    %cst_14 = arith.constant dense<0.000000e+00> : vector<1x96xf32>
    %16 = tpu.matmul %12, %5, %cst_14 {dimension_numbers = #tpu.dot_dimension_numbers<[1], [0], [0], [1], [0, 0, 1, 1], [], []>} : vector<1x96xf32>, vector<96x96xf32>, vector<1x96xf32> -> vector<1x96xf32>
    %cst_15 = arith.constant 0.0416666679 : f32
    %17 = vector.broadcast %cst_15 : f32 to vector<1x96xf32>
    %18 = arith.mulf %16, %17 : vector<1x96xf32>
    %19 = arith.mulf %15, %15 : vector<1x96xf32>
    %20 = arith.subf %18, %19 : vector<1x96xf32>
    %21 = vector.broadcast %15 : vector<1x96xf32> to vector<8x96xf32>
    %22 = arith.subf %4, %21 : vector<8x96xf32>
    %cst_16 = arith.constant 9.99999974E-6 : f32
    %23 = vector.broadcast %cst_16 : f32 to vector<1x96xf32>
    %24 = arith.addf %20, %23 : vector<1x96xf32>
    %25 = math.rsqrt %24 : vector<1x96xf32>
    %26 = vector.broadcast %25 : vector<1x96xf32> to vector<8x96xf32>
    %27 = arith.mulf %22, %26 : vector<8x96xf32>
    %28 = vector.broadcast %6 : vector<1x96xf32> to vector<8x96xf32>
    %29 = arith.mulf %27, %28 : vector<8x96xf32>
    %30 = vector.broadcast %7 : vector<1x96xf32> to vector<8x96xf32>
    %31 = arith.addf %29, %30 : vector<8x96xf32>
    %32 = arith.negf %31 : vector<8x96xf32>
    %33 = math.exp %32 : vector<8x96xf32>
    %cst_17 = arith.constant 1.000000e+00 : f32
    %34 = vector.broadcast %cst_17 : f32 to vector<8x96xf32>
    %35 = arith.addf %34, %33 : vector<8x96xf32>
    %36 = arith.divf %34, %35 : vector<8x96xf32>
    %37 = arith.mulf %31, %36 : vector<8x96xf32>
    %cst_18 = arith.constant 0.000000e+00 : f32
    %38 = vector.broadcast %cst_18 : f32 to vector<1x96xf32>
    %39 = vector.extract_strided_slice %37 {offsets = [0, 0], sizes = [7, 96], strides = [1, 1]} : vector<8x96xf32> to vector<7x96xf32>
    %40 = tpu.concatenate %38, %39 in 0 : vector<1x96xf32>, vector<7x96xf32> -> vector<8x96xf32>
    %41 = vector.extract_strided_slice %37 {offsets = [1, 0], sizes = [7, 96], strides = [1, 1]} : vector<8x96xf32> to vector<7x96xf32>
    %42 = tpu.concatenate %41, %38 in 0 : vector<7x96xf32>, vector<1x96xf32> -> vector<8x96xf32>
    %43 = tpu.concatenate %40, %37, %42 in 1 : vector<8x96xf32>, vector<8x96xf32>, vector<8x96xf32> -> vector<8x288xf32>
    %c0_19 = arith.constant 0 : index
    %c0_20 = arith.constant 0 : index
    %44 = vector.load %arg6[%c0_19, %c0_20] : memref<288x64xf32, #tpu.memory_space<vmem>>, vector<288x64xf32>
    %cst_21 = arith.constant dense<0.000000e+00> : vector<8x64xf32>
    %45 = tpu.matmul %43, %44, %cst_21 {dimension_numbers = #tpu.dot_dimension_numbers<[1], [0], [0], [1], [0, 0, 1, 1], [], []>} : vector<8x288xf32>, vector<288x64xf32>, vector<8x64xf32> -> vector<8x64xf32>
    %c0_22 = arith.constant 0 : index
    %c0_23 = arith.constant 0 : index
    %46 = vector.load %arg7[%c0_22, %c0_23] : memref<1x64xf32, #tpu.memory_space<vmem>>, vector<1x64xf32>
    %47 = vector.broadcast %46 : vector<1x64xf32> to vector<8x64xf32>
    %48 = arith.addf %45, %47 : vector<8x64xf32>
    %c0_24 = arith.constant 0 : index
    %c0_25 = arith.constant 0 : index
    %49 = vector.load %arg8[%c0_24, %c0_25] : memref<64x64xf32, #tpu.memory_space<vmem>>, vector<64x64xf32>
    %c0_26 = arith.constant 0 : index
    %c0_27 = arith.constant 0 : index
    %50 = vector.load %arg9[%c0_26, %c0_27] : memref<1x64xf32, #tpu.memory_space<vmem>>, vector<1x64xf32>
    %c0_28 = arith.constant 0 : index
    %c0_29 = arith.constant 0 : index
    %51 = vector.load %arg10[%c0_28, %c0_29] : memref<1x64xf32, #tpu.memory_space<vmem>>, vector<1x64xf32>
    %cst_30 = arith.constant dense<0.000000e+00> : vector<64xf32>
    %52 = vector.multi_reduction <add>, %48, %cst_30 [0] : vector<8x64xf32> to vector<64xf32>
    %53 = vector.shape_cast %52 : vector<64xf32> to vector<1x64xf32>
    %54 = arith.mulf %48, %48 : vector<8x64xf32>
    %cst_31 = arith.constant dense<0.000000e+00> : vector<64xf32>
    %55 = vector.multi_reduction <add>, %54, %cst_31 [0] : vector<8x64xf32> to vector<64xf32>
    %56 = vector.shape_cast %55 : vector<64xf32> to vector<1x64xf32>
    %cst_32 = arith.constant dense<0.000000e+00> : vector<1x64xf32>
    %57 = tpu.matmul %53, %49, %cst_32 {dimension_numbers = #tpu.dot_dimension_numbers<[1], [0], [0], [1], [0, 0, 1, 1], [], []>} : vector<1x64xf32>, vector<64x64xf32>, vector<1x64xf32> -> vector<1x64xf32>
    %cst_33 = arith.constant 6.250000e-02 : f32
    %58 = vector.broadcast %cst_33 : f32 to vector<1x64xf32>
    %59 = arith.mulf %57, %58 : vector<1x64xf32>
    %cst_34 = arith.constant dense<0.000000e+00> : vector<1x64xf32>
    %60 = tpu.matmul %56, %49, %cst_34 {dimension_numbers = #tpu.dot_dimension_numbers<[1], [0], [0], [1], [0, 0, 1, 1], [], []>} : vector<1x64xf32>, vector<64x64xf32>, vector<1x64xf32> -> vector<1x64xf32>
    %cst_35 = arith.constant 6.250000e-02 : f32
    %61 = vector.broadcast %cst_35 : f32 to vector<1x64xf32>
    %62 = arith.mulf %60, %61 : vector<1x64xf32>
    %63 = arith.mulf %59, %59 : vector<1x64xf32>
    %64 = arith.subf %62, %63 : vector<1x64xf32>
    %65 = vector.broadcast %59 : vector<1x64xf32> to vector<8x64xf32>
    %66 = arith.subf %48, %65 : vector<8x64xf32>
    %cst_36 = arith.constant 9.99999974E-6 : f32
    %67 = vector.broadcast %cst_36 : f32 to vector<1x64xf32>
    %68 = arith.addf %64, %67 : vector<1x64xf32>
    %69 = math.rsqrt %68 : vector<1x64xf32>
    %70 = vector.broadcast %69 : vector<1x64xf32> to vector<8x64xf32>
    %71 = arith.mulf %66, %70 : vector<8x64xf32>
    %72 = vector.broadcast %50 : vector<1x64xf32> to vector<8x64xf32>
    %73 = arith.mulf %71, %72 : vector<8x64xf32>
    %74 = vector.broadcast %51 : vector<1x64xf32> to vector<8x64xf32>
    %75 = arith.addf %73, %74 : vector<8x64xf32>
    %76 = arith.negf %75 : vector<8x64xf32>
    %77 = math.exp %76 : vector<8x64xf32>
    %cst_37 = arith.constant 1.000000e+00 : f32
    %78 = vector.broadcast %cst_37 : f32 to vector<8x64xf32>
    %79 = arith.addf %78, %77 : vector<8x64xf32>
    %80 = arith.divf %78, %79 : vector<8x64xf32>
    %81 = arith.mulf %75, %80 : vector<8x64xf32>
    %cst_38 = arith.constant 0.000000e+00 : f32
    %82 = vector.broadcast %cst_38 : f32 to vector<1x64xf32>
    %83 = vector.extract_strided_slice %81 {offsets = [0, 0], sizes = [7, 64], strides = [1, 1]} : vector<8x64xf32> to vector<7x64xf32>
    %84 = tpu.concatenate %82, %83 in 0 : vector<1x64xf32>, vector<7x64xf32> -> vector<8x64xf32>
    %85 = vector.extract_strided_slice %81 {offsets = [1, 0], sizes = [7, 64], strides = [1, 1]} : vector<8x64xf32> to vector<7x64xf32>
    %86 = tpu.concatenate %85, %82 in 0 : vector<7x64xf32>, vector<1x64xf32> -> vector<8x64xf32>
    %87 = tpu.concatenate %84, %81, %86 in 1 : vector<8x64xf32>, vector<8x64xf32>, vector<8x64xf32> -> vector<8x192xf32>
    %c0_39 = arith.constant 0 : index
    %c0_40 = arith.constant 0 : index
    %88 = vector.load %arg11[%c0_39, %c0_40] : memref<192x64xf32, #tpu.memory_space<vmem>>, vector<192x64xf32>
    %cst_41 = arith.constant dense<0.000000e+00> : vector<8x64xf32>
    %89 = tpu.matmul %87, %88, %cst_41 {dimension_numbers = #tpu.dot_dimension_numbers<[1], [0], [0], [1], [0, 0, 1, 1], [], []>} : vector<8x192xf32>, vector<192x64xf32>, vector<8x64xf32> -> vector<8x64xf32>
    %c0_42 = arith.constant 0 : index
    %c0_43 = arith.constant 0 : index
    %90 = vector.load %arg12[%c0_42, %c0_43] : memref<1x64xf32, #tpu.memory_space<vmem>>, vector<1x64xf32>
    %91 = vector.broadcast %90 : vector<1x64xf32> to vector<8x64xf32>
    %92 = arith.addf %89, %91 : vector<8x64xf32>
    %c0_44 = arith.constant 0 : index
    %c0_45 = arith.constant 0 : index
    %93 = vector.load %arg13[%c0_44, %c0_45] : memref<96x64xf32, #tpu.memory_space<vmem>>, vector<96x64xf32>
    %cst_46 = arith.constant dense<0.000000e+00> : vector<8x64xf32>
    %94 = tpu.matmul %4, %93, %cst_46 {dimension_numbers = #tpu.dot_dimension_numbers<[1], [0], [0], [1], [0, 0, 1, 1], [], []>} : vector<8x96xf32>, vector<96x64xf32>, vector<8x64xf32> -> vector<8x64xf32>
    %c0_47 = arith.constant 0 : index
    %c0_48 = arith.constant 0 : index
    %95 = vector.load %arg14[%c0_47, %c0_48] : memref<1x64xf32, #tpu.memory_space<vmem>>, vector<1x64xf32>
    %96 = vector.broadcast %95 : vector<1x64xf32> to vector<8x64xf32>
    %97 = arith.addf %94, %96 : vector<8x64xf32>
    %98 = arith.addf %92, %97 : vector<8x64xf32>
    %cst_49 = arith.constant 0.707106769 : f32
    %99 = vector.broadcast %cst_49 : f32 to vector<8x64xf32>
    %100 = arith.mulf %98, %99 : vector<8x64xf32>
    %c0_50 = arith.constant 0 : index
    %c0_51 = arith.constant 0 : index
    %c0_52 = arith.constant 0 : index
    %101 = vector.load %arg15[%c0_50, %c0_51, %c0_52] : memref<1x8x64xf32, #tpu.memory_space<vmem>>, vector<1x8x64xf32>
    %102 = vector.shape_cast %101 : vector<1x8x64xf32> to vector<8x64xf32>
    %103 = vector.shape_cast %100 : vector<8x64xf32> to vector<1x8x64xf32>
    tpu.vector_store %arg15[%c0_50, %c0_51, %c0_52], %103 {strides = array<i32>} : memref<1x8x64xf32, #tpu.memory_space<vmem>>, vector<1x8x64xf32>,
    return
  }
  func.func @transform_0(%arg0: i32) -> (i32, i32, i32) {
    %c0_i32 = arith.constant 0 : i32
    %c0_i32_0 = arith.constant 0 : i32
    %c0_i32_1 = arith.constant 0 : i32
    return %arg0, %c0_i32, %c0_i32_0 : i32, i32, i32
  }
  func.func @transform_1(%arg0: i32) -> (i32, i32, i32) {
    %c0_i32 = arith.constant 0 : i32
    %c0_i32_0 = arith.constant 0 : i32
    %c0_i32_1 = arith.constant 0 : i32
    return %arg0, %c0_i32, %c0_i32_0 : i32, i32, i32
  }
  func.func @transform_2(%arg0: i32) -> (i32, i32) {
    %c0_i32 = arith.constant 0 : i32
    %c0_i32_0 = arith.constant 0 : i32
    %c0_i32_1 = arith.constant 0 : i32
    return %c0_i32, %c0_i32_0 : i32, i32
  }
  func.func @transform_3(%arg0: i32) -> (i32, i32) {
    %c0_i32 = arith.constant 0 : i32
    %c0_i32_0 = arith.constant 0 : i32
    %c0_i32_1 = arith.constant 0 : i32
    return %c0_i32, %c0_i32_0 : i32, i32
  }
  func.func @transform_4(%arg0: i32) -> (i32, i32) {
    %c0_i32 = arith.constant 0 : i32
    %c0_i32_0 = arith.constant 0 : i32
    %c0_i32_1 = arith.constant 0 : i32
    return %c0_i32, %c0_i32_0 : i32, i32
  }
  func.func @transform_5(%arg0: i32) -> (i32, i32) {
    %c0_i32 = arith.constant 0 : i32
    %c0_i32_0 = arith.constant 0 : i32
    %c0_i32_1 = arith.constant 0 : i32
    return %c0_i32, %c0_i32_0 : i32, i32
  }
  func.func @transform_6(%arg0: i32) -> (i32, i32) {
    %c0_i32 = arith.constant 0 : i32
    %c0_i32_0 = arith.constant 0 : i32
    %c0_i32_1 = arith.constant 0 : i32
    return %c0_i32, %c0_i32_0 : i32, i32
  }
  func.func @transform_7(%arg0: i32) -> (i32, i32) {
    %c0_i32 = arith.constant 0 : i32
    %c0_i32_0 = arith.constant 0 : i32
    %c0_i32_1 = arith.constant 0 : i32
    return %c0_i32, %c0_i32_0 : i32, i32
  }
  func.func @transform_8(%arg0: i32) -> (i32, i32) {
    %c0_i32 = arith.constant 0 : i32
    %c0_i32_0 = arith.constant 0 : i32
    %c0_i32_1 = arith.constant 0 : i32
    return %c0_i32, %c0_i32_0 : i32, i32
  }
  func.func @transform_9(%arg0: i32) -> (i32, i32) {
    %c0_i32 = arith.constant 0 : i32
    %c0_i32_0 = arith.constant 0 : i32
    %c0_i32_1 = arith.constant 0 : i32
    return %c0_i32, %c0_i32_0 : i32, i32
  }
  func.func @transform_10(%arg0: i32) -> (i32, i32) {
    %c0_i32 = arith.constant 0 : i32
    %c0_i32_0 = arith.constant 0 : i32
    %c0_i32_1 = arith.constant 0 : i32
    return %c0_i32, %c0_i32_0 : i32, i32
  }
  func.func @transform_11(%arg0: i32) -> (i32, i32) {
    %c0_i32 = arith.constant 0 : i32
    %c0_i32_0 = arith.constant 0 : i32
    %c0_i32_1 = arith.constant 0 : i32
    return %c0_i32, %c0_i32_0 : i32, i32
  }
  func.func @transform_12(%arg0: i32) -> (i32, i32) {
    %c0_i32 = arith.constant 0 : i32
    %c0_i32_0 = arith.constant 0 : i32
    %c0_i32_1 = arith.constant 0 : i32
    return %c0_i32, %c0_i32_0 : i32, i32
  }
  func.func @transform_13(%arg0: i32) -> (i32, i32) {
    %c0_i32 = arith.constant 0 : i32
    %c0_i32_0 = arith.constant 0 : i32
    %c0_i32_1 = arith.constant 0 : i32
    return %c0_i32, %c0_i32_0 : i32, i32
  }
  func.func @transform_14(%arg0: i32) -> (i32, i32, i32) {
    %c0_i32 = arith.constant 0 : i32
    %c0_i32_0 = arith.constant 0 : i32
    %c0_i32_1 = arith.constant 0 : i32
    return %arg0, %c0_i32, %c0_i32_0 : i32, i32, i32
  }
}

module attributes {stable_mosaic.version = 11 : i64} {
  func.func @_conv_k3_kernel(%arg0: i32, %arg1: memref<1x8x64xf32, #tpu.memory_space<vmem>>, %arg2: memref<192x128xf32, #tpu.memory_space<vmem>>, %arg3: memref<1x128xf32, #tpu.memory_space<vmem>>, %arg4: memref<1x8x128xf32, #tpu.memory_space<vmem>>) attributes {dimension_semantics = [#tpu.dimension_semantics<parallel>], iteration_bounds = array<i64: 2>, scalar_prefetch = 0 : i64, scratch_operands = 0 : i64, tpu.core_type = #tpu.core_type<tc>, window_params = [{transform_indices = @transform_0, window_bounds = array<i64: 1, 8, 64>}, {pipeline_mode = #tpu.pipeline_mode<synchronous>, transform_indices = @transform_1, window_bounds = array<i64: 192, 128>}, {pipeline_mode = #tpu.pipeline_mode<synchronous>, transform_indices = @transform_2, window_bounds = array<i64: 1, 128>}, {transform_indices = @transform_3, window_bounds = array<i64: 1, 8, 128>}]} {
    %c0 = arith.constant 0 : index
    %c0_0 = arith.constant 0 : index
    %c0_1 = arith.constant 0 : index
    %0 = vector.load %arg1[%c0, %c0_0, %c0_1] : memref<1x8x64xf32, #tpu.memory_space<vmem>>, vector<1x8x64xf32>
    %1 = vector.shape_cast %0 : vector<1x8x64xf32> to vector<8x64xf32>
    %cst = arith.constant 0.000000e+00 : f32
    %2 = vector.broadcast %cst : f32 to vector<1x64xf32>
    %3 = vector.extract_strided_slice %1 {offsets = [0, 0], sizes = [7, 64], strides = [1, 1]} : vector<8x64xf32> to vector<7x64xf32>
    %4 = tpu.concatenate %2, %3 in 0 : vector<1x64xf32>, vector<7x64xf32> -> vector<8x64xf32>
    %5 = vector.extract_strided_slice %1 {offsets = [1, 0], sizes = [7, 64], strides = [1, 1]} : vector<8x64xf32> to vector<7x64xf32>
    %6 = tpu.concatenate %5, %2 in 0 : vector<7x64xf32>, vector<1x64xf32> -> vector<8x64xf32>
    %7 = tpu.concatenate %4, %1, %6 in 1 : vector<8x64xf32>, vector<8x64xf32>, vector<8x64xf32> -> vector<8x192xf32>
    %c0_2 = arith.constant 0 : index
    %c0_3 = arith.constant 0 : index
    %8 = vector.load %arg2[%c0_2, %c0_3] : memref<192x128xf32, #tpu.memory_space<vmem>>, vector<192x128xf32>
    %cst_4 = arith.constant dense<0.000000e+00> : vector<8x128xf32>
    %9 = tpu.matmul %7, %8, %cst_4 {dimension_numbers = #tpu.dot_dimension_numbers<[1], [0], [0], [1], [0, 0, 1, 1], [], []>} : vector<8x192xf32>, vector<192x128xf32>, vector<8x128xf32> -> vector<8x128xf32>
    %c0_5 = arith.constant 0 : index
    %c0_6 = arith.constant 0 : index
    %10 = vector.load %arg3[%c0_5, %c0_6] : memref<1x128xf32, #tpu.memory_space<vmem>>, vector<1x128xf32>
    %11 = vector.broadcast %10 : vector<1x128xf32> to vector<8x128xf32>
    %12 = arith.addf %9, %11 : vector<8x128xf32>
    %c0_7 = arith.constant 0 : index
    %c0_8 = arith.constant 0 : index
    %c0_9 = arith.constant 0 : index
    %13 = vector.load %arg4[%c0_7, %c0_8, %c0_9] : memref<1x8x128xf32, #tpu.memory_space<vmem>>, vector<1x8x128xf32>
    %14 = vector.shape_cast %13 : vector<1x8x128xf32> to vector<8x128xf32>
    %15 = vector.shape_cast %12 : vector<8x128xf32> to vector<1x8x128xf32>
    tpu.vector_store %arg4[%c0_7, %c0_8, %c0_9], %15 {strides = array<i32>} : memref<1x8x128xf32, #tpu.memory_space<vmem>>, vector<1x8x128xf32>,
    return
  }
  func.func @transform_0(%arg0: i32) -> (i32, i32, i32) {
    %c0_i32 = arith.constant 0 : i32
    %c0_i32_0 = arith.constant 0 : i32
    %c0_i32_1 = arith.constant 0 : i32
    return %arg0, %c0_i32, %c0_i32_0 : i32, i32, i32
  }
  func.func @transform_1(%arg0: i32) -> (i32, i32) {
    %c0_i32 = arith.constant 0 : i32
    %c0_i32_0 = arith.constant 0 : i32
    %c0_i32_1 = arith.constant 0 : i32
    return %c0_i32, %c0_i32_0 : i32, i32
  }
  func.func @transform_2(%arg0: i32) -> (i32, i32) {
    %c0_i32 = arith.constant 0 : i32
    %c0_i32_0 = arith.constant 0 : i32
    %c0_i32_1 = arith.constant 0 : i32
    return %c0_i32, %c0_i32_0 : i32, i32
  }
  func.func @transform_3(%arg0: i32) -> (i32, i32, i32) {
    %c0_i32 = arith.constant 0 : i32
    %c0_i32_0 = arith.constant 0 : i32
    %c0_i32_1 = arith.constant 0 : i32
    return %arg0, %c0_i32, %c0_i32_0 : i32, i32, i32
  }
}

module attributes {stable_mosaic.version = 11 : i64} {
  func.func @_resnet_kernel(%arg0: i32, %arg1: memref<1x16x64xf32, #tpu.memory_space<vmem>>, %arg2: memref<1x16x32xf32, #tpu.memory_space<vmem>>, %arg3: memref<96x96xf32, #tpu.memory_space<vmem>>, %arg4: memref<1x96xf32, #tpu.memory_space<vmem>>, %arg5: memref<1x96xf32, #tpu.memory_space<vmem>>, %arg6: memref<288x32xf32, #tpu.memory_space<vmem>>, %arg7: memref<1x32xf32, #tpu.memory_space<vmem>>, %arg8: memref<32x32xf32, #tpu.memory_space<vmem>>, %arg9: memref<1x32xf32, #tpu.memory_space<vmem>>, %arg10: memref<1x32xf32, #tpu.memory_space<vmem>>, %arg11: memref<96x32xf32, #tpu.memory_space<vmem>>, %arg12: memref<1x32xf32, #tpu.memory_space<vmem>>, %arg13: memref<96x32xf32, #tpu.memory_space<vmem>>, %arg14: memref<1x32xf32, #tpu.memory_space<vmem>>, %arg15: memref<1x16x32xf32, #tpu.memory_space<vmem>>) attributes {dimension_semantics = [#tpu.dimension_semantics<parallel>], iteration_bounds = array<i64: 2>, scalar_prefetch = 0 : i64, scratch_operands = 0 : i64, tpu.core_type = #tpu.core_type<tc>, window_params = [{transform_indices = @transform_0, window_bounds = array<i64: 1, 16, 64>}, {transform_indices = @transform_1, window_bounds = array<i64: 1, 16, 32>}, {pipeline_mode = #tpu.pipeline_mode<synchronous>, transform_indices = @transform_2, window_bounds = array<i64: 96, 96>}, {pipeline_mode = #tpu.pipeline_mode<synchronous>, transform_indices = @transform_3, window_bounds = array<i64: 1, 96>}, {pipeline_mode = #tpu.pipeline_mode<synchronous>, transform_indices = @transform_4, window_bounds = array<i64: 1, 96>}, {pipeline_mode = #tpu.pipeline_mode<synchronous>, transform_indices = @transform_5, window_bounds = array<i64: 288, 32>}, {pipeline_mode = #tpu.pipeline_mode<synchronous>, transform_indices = @transform_6, window_bounds = array<i64: 1, 32>}, {pipeline_mode = #tpu.pipeline_mode<synchronous>, transform_indices = @transform_7, window_bounds = array<i64: 32, 32>}, {pipeline_mode = #tpu.pipeline_mode<synchronous>, transform_indices = @transform_8, window_bounds = array<i64: 1, 32>}, {pipeline_mode = #tpu.pipeline_mode<synchronous>, transform_indices = @transform_9, window_bounds = array<i64: 1, 32>}, {pipeline_mode = #tpu.pipeline_mode<synchronous>, transform_indices = @transform_10, window_bounds = array<i64: 96, 32>}, {pipeline_mode = #tpu.pipeline_mode<synchronous>, transform_indices = @transform_11, window_bounds = array<i64: 1, 32>}, {pipeline_mode = #tpu.pipeline_mode<synchronous>, transform_indices = @transform_12, window_bounds = array<i64: 96, 32>}, {pipeline_mode = #tpu.pipeline_mode<synchronous>, transform_indices = @transform_13, window_bounds = array<i64: 1, 32>}, {transform_indices = @transform_14, window_bounds = array<i64: 1, 16, 32>}]} {
    %c0 = arith.constant 0 : index
    %c0_0 = arith.constant 0 : index
    %c0_1 = arith.constant 0 : index
    %0 = vector.load %arg1[%c0, %c0_0, %c0_1] : memref<1x16x64xf32, #tpu.memory_space<vmem>>, vector<1x16x64xf32>
    %1 = vector.shape_cast %0 : vector<1x16x64xf32> to vector<16x64xf32>
    %c0_2 = arith.constant 0 : index
    %c0_3 = arith.constant 0 : index
    %c0_4 = arith.constant 0 : index
    %2 = vector.load %arg2[%c0_2, %c0_3, %c0_4] : memref<1x16x32xf32, #tpu.memory_space<vmem>>, vector<1x16x32xf32>
    %3 = vector.shape_cast %2 : vector<1x16x32xf32> to vector<16x32xf32>
    %4 = tpu.concatenate %1, %3 in 1 : vector<16x64xf32>, vector<16x32xf32> -> vector<16x96xf32>
    %c0_5 = arith.constant 0 : index
    %c0_6 = arith.constant 0 : index
    %5 = vector.load %arg3[%c0_5, %c0_6] : memref<96x96xf32, #tpu.memory_space<vmem>>, vector<96x96xf32>
    %c0_7 = arith.constant 0 : index
    %c0_8 = arith.constant 0 : index
    %6 = vector.load %arg4[%c0_7, %c0_8] : memref<1x96xf32, #tpu.memory_space<vmem>>, vector<1x96xf32>
    %c0_9 = arith.constant 0 : index
    %c0_10 = arith.constant 0 : index
    %7 = vector.load %arg5[%c0_9, %c0_10] : memref<1x96xf32, #tpu.memory_space<vmem>>, vector<1x96xf32>
    %cst = arith.constant dense<0.000000e+00> : vector<96xf32>
    %8 = vector.multi_reduction <add>, %4, %cst [0] : vector<16x96xf32> to vector<96xf32>
    %9 = vector.shape_cast %8 : vector<96xf32> to vector<1x96xf32>
    %10 = arith.mulf %4, %4 : vector<16x96xf32>
    %cst_11 = arith.constant dense<0.000000e+00> : vector<96xf32>
    %11 = vector.multi_reduction <add>, %10, %cst_11 [0] : vector<16x96xf32> to vector<96xf32>
    %12 = vector.shape_cast %11 : vector<96xf32> to vector<1x96xf32>
    %cst_12 = arith.constant dense<0.000000e+00> : vector<1x96xf32>
    %13 = tpu.matmul %9, %5, %cst_12 {dimension_numbers = #tpu.dot_dimension_numbers<[1], [0], [0], [1], [0, 0, 1, 1], [], []>} : vector<1x96xf32>, vector<96x96xf32>, vector<1x96xf32> -> vector<1x96xf32>
    %cst_13 = arith.constant 0.020833334 : f32
    %14 = vector.broadcast %cst_13 : f32 to vector<1x96xf32>
    %15 = arith.mulf %13, %14 : vector<1x96xf32>
    %cst_14 = arith.constant dense<0.000000e+00> : vector<1x96xf32>
    %16 = tpu.matmul %12, %5, %cst_14 {dimension_numbers = #tpu.dot_dimension_numbers<[1], [0], [0], [1], [0, 0, 1, 1], [], []>} : vector<1x96xf32>, vector<96x96xf32>, vector<1x96xf32> -> vector<1x96xf32>
    %cst_15 = arith.constant 0.020833334 : f32
    %17 = vector.broadcast %cst_15 : f32 to vector<1x96xf32>
    %18 = arith.mulf %16, %17 : vector<1x96xf32>
    %19 = arith.mulf %15, %15 : vector<1x96xf32>
    %20 = arith.subf %18, %19 : vector<1x96xf32>
    %21 = vector.broadcast %15 : vector<1x96xf32> to vector<16x96xf32>
    %22 = arith.subf %4, %21 : vector<16x96xf32>
    %cst_16 = arith.constant 9.99999974E-6 : f32
    %23 = vector.broadcast %cst_16 : f32 to vector<1x96xf32>
    %24 = arith.addf %20, %23 : vector<1x96xf32>
    %25 = math.rsqrt %24 : vector<1x96xf32>
    %26 = vector.broadcast %25 : vector<1x96xf32> to vector<16x96xf32>
    %27 = arith.mulf %22, %26 : vector<16x96xf32>
    %28 = vector.broadcast %6 : vector<1x96xf32> to vector<16x96xf32>
    %29 = arith.mulf %27, %28 : vector<16x96xf32>
    %30 = vector.broadcast %7 : vector<1x96xf32> to vector<16x96xf32>
    %31 = arith.addf %29, %30 : vector<16x96xf32>
    %32 = arith.negf %31 : vector<16x96xf32>
    %33 = math.exp %32 : vector<16x96xf32>
    %cst_17 = arith.constant 1.000000e+00 : f32
    %34 = vector.broadcast %cst_17 : f32 to vector<16x96xf32>
    %35 = arith.addf %34, %33 : vector<16x96xf32>
    %36 = arith.divf %34, %35 : vector<16x96xf32>
    %37 = arith.mulf %31, %36 : vector<16x96xf32>
    %cst_18 = arith.constant 0.000000e+00 : f32
    %38 = vector.broadcast %cst_18 : f32 to vector<1x96xf32>
    %39 = vector.extract_strided_slice %37 {offsets = [0, 0], sizes = [15, 96], strides = [1, 1]} : vector<16x96xf32> to vector<15x96xf32>
    %40 = tpu.concatenate %38, %39 in 0 : vector<1x96xf32>, vector<15x96xf32> -> vector<16x96xf32>
    %41 = vector.extract_strided_slice %37 {offsets = [1, 0], sizes = [15, 96], strides = [1, 1]} : vector<16x96xf32> to vector<15x96xf32>
    %42 = tpu.concatenate %41, %38 in 0 : vector<15x96xf32>, vector<1x96xf32> -> vector<16x96xf32>
    %43 = tpu.concatenate %40, %37, %42 in 1 : vector<16x96xf32>, vector<16x96xf32>, vector<16x96xf32> -> vector<16x288xf32>
    %c0_19 = arith.constant 0 : index
    %c0_20 = arith.constant 0 : index
    %44 = vector.load %arg6[%c0_19, %c0_20] : memref<288x32xf32, #tpu.memory_space<vmem>>, vector<288x32xf32>
    %cst_21 = arith.constant dense<0.000000e+00> : vector<16x32xf32>
    %45 = tpu.matmul %43, %44, %cst_21 {dimension_numbers = #tpu.dot_dimension_numbers<[1], [0], [0], [1], [0, 0, 1, 1], [], []>} : vector<16x288xf32>, vector<288x32xf32>, vector<16x32xf32> -> vector<16x32xf32>
    %c0_22 = arith.constant 0 : index
    %c0_23 = arith.constant 0 : index
    %46 = vector.load %arg7[%c0_22, %c0_23] : memref<1x32xf32, #tpu.memory_space<vmem>>, vector<1x32xf32>
    %47 = vector.broadcast %46 : vector<1x32xf32> to vector<16x32xf32>
    %48 = arith.addf %45, %47 : vector<16x32xf32>
    %c0_24 = arith.constant 0 : index
    %c0_25 = arith.constant 0 : index
    %49 = vector.load %arg8[%c0_24, %c0_25] : memref<32x32xf32, #tpu.memory_space<vmem>>, vector<32x32xf32>
    %c0_26 = arith.constant 0 : index
    %c0_27 = arith.constant 0 : index
    %50 = vector.load %arg9[%c0_26, %c0_27] : memref<1x32xf32, #tpu.memory_space<vmem>>, vector<1x32xf32>
    %c0_28 = arith.constant 0 : index
    %c0_29 = arith.constant 0 : index
    %51 = vector.load %arg10[%c0_28, %c0_29] : memref<1x32xf32, #tpu.memory_space<vmem>>, vector<1x32xf32>
    %cst_30 = arith.constant dense<0.000000e+00> : vector<32xf32>
    %52 = vector.multi_reduction <add>, %48, %cst_30 [0] : vector<16x32xf32> to vector<32xf32>
    %53 = vector.shape_cast %52 : vector<32xf32> to vector<1x32xf32>
    %54 = arith.mulf %48, %48 : vector<16x32xf32>
    %cst_31 = arith.constant dense<0.000000e+00> : vector<32xf32>
    %55 = vector.multi_reduction <add>, %54, %cst_31 [0] : vector<16x32xf32> to vector<32xf32>
    %56 = vector.shape_cast %55 : vector<32xf32> to vector<1x32xf32>
    %cst_32 = arith.constant dense<0.000000e+00> : vector<1x32xf32>
    %57 = tpu.matmul %53, %49, %cst_32 {dimension_numbers = #tpu.dot_dimension_numbers<[1], [0], [0], [1], [0, 0, 1, 1], [], []>} : vector<1x32xf32>, vector<32x32xf32>, vector<1x32xf32> -> vector<1x32xf32>
    %cst_33 = arith.constant 6.250000e-02 : f32
    %58 = vector.broadcast %cst_33 : f32 to vector<1x32xf32>
    %59 = arith.mulf %57, %58 : vector<1x32xf32>
    %cst_34 = arith.constant dense<0.000000e+00> : vector<1x32xf32>
    %60 = tpu.matmul %56, %49, %cst_34 {dimension_numbers = #tpu.dot_dimension_numbers<[1], [0], [0], [1], [0, 0, 1, 1], [], []>} : vector<1x32xf32>, vector<32x32xf32>, vector<1x32xf32> -> vector<1x32xf32>
    %cst_35 = arith.constant 6.250000e-02 : f32
    %61 = vector.broadcast %cst_35 : f32 to vector<1x32xf32>
    %62 = arith.mulf %60, %61 : vector<1x32xf32>
    %63 = arith.mulf %59, %59 : vector<1x32xf32>
    %64 = arith.subf %62, %63 : vector<1x32xf32>
    %65 = vector.broadcast %59 : vector<1x32xf32> to vector<16x32xf32>
    %66 = arith.subf %48, %65 : vector<16x32xf32>
    %cst_36 = arith.constant 9.99999974E-6 : f32
    %67 = vector.broadcast %cst_36 : f32 to vector<1x32xf32>
    %68 = arith.addf %64, %67 : vector<1x32xf32>
    %69 = math.rsqrt %68 : vector<1x32xf32>
    %70 = vector.broadcast %69 : vector<1x32xf32> to vector<16x32xf32>
    %71 = arith.mulf %66, %70 : vector<16x32xf32>
    %72 = vector.broadcast %50 : vector<1x32xf32> to vector<16x32xf32>
    %73 = arith.mulf %71, %72 : vector<16x32xf32>
    %74 = vector.broadcast %51 : vector<1x32xf32> to vector<16x32xf32>
    %75 = arith.addf %73, %74 : vector<16x32xf32>
    %76 = arith.negf %75 : vector<16x32xf32>
    %77 = math.exp %76 : vector<16x32xf32>
    %cst_37 = arith.constant 1.000000e+00 : f32
    %78 = vector.broadcast %cst_37 : f32 to vector<16x32xf32>
    %79 = arith.addf %78, %77 : vector<16x32xf32>
    %80 = arith.divf %78, %79 : vector<16x32xf32>
    %81 = arith.mulf %75, %80 : vector<16x32xf32>
    %cst_38 = arith.constant 0.000000e+00 : f32
    %82 = vector.broadcast %cst_38 : f32 to vector<1x32xf32>
    %83 = vector.extract_strided_slice %81 {offsets = [0, 0], sizes = [15, 32], strides = [1, 1]} : vector<16x32xf32> to vector<15x32xf32>
    %84 = tpu.concatenate %82, %83 in 0 : vector<1x32xf32>, vector<15x32xf32> -> vector<16x32xf32>
    %85 = vector.extract_strided_slice %81 {offsets = [1, 0], sizes = [15, 32], strides = [1, 1]} : vector<16x32xf32> to vector<15x32xf32>
    %86 = tpu.concatenate %85, %82 in 0 : vector<15x32xf32>, vector<1x32xf32> -> vector<16x32xf32>
    %87 = tpu.concatenate %84, %81, %86 in 1 : vector<16x32xf32>, vector<16x32xf32>, vector<16x32xf32> -> vector<16x96xf32>
    %c0_39 = arith.constant 0 : index
    %c0_40 = arith.constant 0 : index
    %88 = vector.load %arg11[%c0_39, %c0_40] : memref<96x32xf32, #tpu.memory_space<vmem>>, vector<96x32xf32>
    %cst_41 = arith.constant dense<0.000000e+00> : vector<16x32xf32>
    %89 = tpu.matmul %87, %88, %cst_41 {dimension_numbers = #tpu.dot_dimension_numbers<[1], [0], [0], [1], [0, 0, 1, 1], [], []>} : vector<16x96xf32>, vector<96x32xf32>, vector<16x32xf32> -> vector<16x32xf32>
    %c0_42 = arith.constant 0 : index
    %c0_43 = arith.constant 0 : index
    %90 = vector.load %arg12[%c0_42, %c0_43] : memref<1x32xf32, #tpu.memory_space<vmem>>, vector<1x32xf32>
    %91 = vector.broadcast %90 : vector<1x32xf32> to vector<16x32xf32>
    %92 = arith.addf %89, %91 : vector<16x32xf32>
    %c0_44 = arith.constant 0 : index
    %c0_45 = arith.constant 0 : index
    %93 = vector.load %arg13[%c0_44, %c0_45] : memref<96x32xf32, #tpu.memory_space<vmem>>, vector<96x32xf32>
    %cst_46 = arith.constant dense<0.000000e+00> : vector<16x32xf32>
    %94 = tpu.matmul %4, %93, %cst_46 {dimension_numbers = #tpu.dot_dimension_numbers<[1], [0], [0], [1], [0, 0, 1, 1], [], []>} : vector<16x96xf32>, vector<96x32xf32>, vector<16x32xf32> -> vector<16x32xf32>
    %c0_47 = arith.constant 0 : index
    %c0_48 = arith.constant 0 : index
    %95 = vector.load %arg14[%c0_47, %c0_48] : memref<1x32xf32, #tpu.memory_space<vmem>>, vector<1x32xf32>
    %96 = vector.broadcast %95 : vector<1x32xf32> to vector<16x32xf32>
    %97 = arith.addf %94, %96 : vector<16x32xf32>
    %98 = arith.addf %92, %97 : vector<16x32xf32>
    %cst_49 = arith.constant 0.707106769 : f32
    %99 = vector.broadcast %cst_49 : f32 to vector<16x32xf32>
    %100 = arith.mulf %98, %99 : vector<16x32xf32>
    %c0_50 = arith.constant 0 : index
    %c0_51 = arith.constant 0 : index
    %c0_52 = arith.constant 0 : index
    %101 = vector.load %arg15[%c0_50, %c0_51, %c0_52] : memref<1x16x32xf32, #tpu.memory_space<vmem>>, vector<1x16x32xf32>
    %102 = vector.shape_cast %101 : vector<1x16x32xf32> to vector<16x32xf32>
    %103 = vector.shape_cast %100 : vector<16x32xf32> to vector<1x16x32xf32>
    tpu.vector_store %arg15[%c0_50, %c0_51, %c0_52], %103 {strides = array<i32>} : memref<1x16x32xf32, #tpu.memory_space<vmem>>, vector<1x16x32xf32>,
    return
  }
  func.func @transform_0(%arg0: i32) -> (i32, i32, i32) {
    %c0_i32 = arith.constant 0 : i32
    %c0_i32_0 = arith.constant 0 : i32
    %c0_i32_1 = arith.constant 0 : i32
    return %arg0, %c0_i32, %c0_i32_0 : i32, i32, i32
  }
  func.func @transform_1(%arg0: i32) -> (i32, i32, i32) {
    %c0_i32 = arith.constant 0 : i32
    %c0_i32_0 = arith.constant 0 : i32
    %c0_i32_1 = arith.constant 0 : i32
    return %arg0, %c0_i32, %c0_i32_0 : i32, i32, i32
  }
  func.func @transform_2(%arg0: i32) -> (i32, i32) {
    %c0_i32 = arith.constant 0 : i32
    %c0_i32_0 = arith.constant 0 : i32
    %c0_i32_1 = arith.constant 0 : i32
    return %c0_i32, %c0_i32_0 : i32, i32
  }
  func.func @transform_3(%arg0: i32) -> (i32, i32) {
    %c0_i32 = arith.constant 0 : i32
    %c0_i32_0 = arith.constant 0 : i32
    %c0_i32_1 = arith.constant 0 : i32
    return %c0_i32, %c0_i32_0 : i32, i32
  }
  func.func @transform_4(%arg0: i32) -> (i32, i32) {
    %c0_i32 = arith.constant 0 : i32
    %c0_i32_0 = arith.constant 0 : i32
    %c0_i32_1 = arith.constant 0 : i32
    return %c0_i32, %c0_i32_0 : i32, i32
  }
  func.func @transform_5(%arg0: i32) -> (i32, i32) {
    %c0_i32 = arith.constant 0 : i32
    %c0_i32_0 = arith.constant 0 : i32
    %c0_i32_1 = arith.constant 0 : i32
    return %c0_i32, %c0_i32_0 : i32, i32
  }
  func.func @transform_6(%arg0: i32) -> (i32, i32) {
    %c0_i32 = arith.constant 0 : i32
    %c0_i32_0 = arith.constant 0 : i32
    %c0_i32_1 = arith.constant 0 : i32
    return %c0_i32, %c0_i32_0 : i32, i32
  }
  func.func @transform_7(%arg0: i32) -> (i32, i32) {
    %c0_i32 = arith.constant 0 : i32
    %c0_i32_0 = arith.constant 0 : i32
    %c0_i32_1 = arith.constant 0 : i32
    return %c0_i32, %c0_i32_0 : i32, i32
  }
  func.func @transform_8(%arg0: i32) -> (i32, i32) {
    %c0_i32 = arith.constant 0 : i32
    %c0_i32_0 = arith.constant 0 : i32
    %c0_i32_1 = arith.constant 0 : i32
    return %c0_i32, %c0_i32_0 : i32, i32
  }
  func.func @transform_9(%arg0: i32) -> (i32, i32) {
    %c0_i32 = arith.constant 0 : i32
    %c0_i32_0 = arith.constant 0 : i32
    %c0_i32_1 = arith.constant 0 : i32
    return %c0_i32, %c0_i32_0 : i32, i32
  }
  func.func @transform_10(%arg0: i32) -> (i32, i32) {
    %c0_i32 = arith.constant 0 : i32
    %c0_i32_0 = arith.constant 0 : i32
    %c0_i32_1 = arith.constant 0 : i32
    return %c0_i32, %c0_i32_0 : i32, i32
  }
  func.func @transform_11(%arg0: i32) -> (i32, i32) {
    %c0_i32 = arith.constant 0 : i32
    %c0_i32_0 = arith.constant 0 : i32
    %c0_i32_1 = arith.constant 0 : i32
    return %c0_i32, %c0_i32_0 : i32, i32
  }
  func.func @transform_12(%arg0: i32) -> (i32, i32) {
    %c0_i32 = arith.constant 0 : i32
    %c0_i32_0 = arith.constant 0 : i32
    %c0_i32_1 = arith.constant 0 : i32
    return %c0_i32, %c0_i32_0 : i32, i32
  }
  func.func @transform_13(%arg0: i32) -> (i32, i32) {
    %c0_i32 = arith.constant 0 : i32
    %c0_i32_0 = arith.constant 0 : i32
    %c0_i32_1 = arith.constant 0 : i32
    return %c0_i32, %c0_i32_0 : i32, i32
  }
  func.func @transform_14(%arg0: i32) -> (i32, i32, i32) {
    %c0_i32 = arith.constant 0 : i32
    %c0_i32_0 = arith.constant 0 : i32
    %c0_i32_1 = arith.constant 0 : i32
    return %arg0, %c0_i32, %c0_i32_0 : i32, i32, i32
  }
}

module attributes {stable_mosaic.version = 11 : i64} {
  func.func @_resnet_kernel(%arg0: i32, %arg1: memref<1x16x32xf32, #tpu.memory_space<vmem>>, %arg2: memref<1x16x32xf32, #tpu.memory_space<vmem>>, %arg3: memref<64x64xf32, #tpu.memory_space<vmem>>, %arg4: memref<1x64xf32, #tpu.memory_space<vmem>>, %arg5: memref<1x64xf32, #tpu.memory_space<vmem>>, %arg6: memref<192x32xf32, #tpu.memory_space<vmem>>, %arg7: memref<1x32xf32, #tpu.memory_space<vmem>>, %arg8: memref<32x32xf32, #tpu.memory_space<vmem>>, %arg9: memref<1x32xf32, #tpu.memory_space<vmem>>, %arg10: memref<1x32xf32, #tpu.memory_space<vmem>>, %arg11: memref<96x32xf32, #tpu.memory_space<vmem>>, %arg12: memref<1x32xf32, #tpu.memory_space<vmem>>, %arg13: memref<64x32xf32, #tpu.memory_space<vmem>>, %arg14: memref<1x32xf32, #tpu.memory_space<vmem>>, %arg15: memref<1x16x32xf32, #tpu.memory_space<vmem>>) attributes {dimension_semantics = [#tpu.dimension_semantics<parallel>], iteration_bounds = array<i64: 2>, scalar_prefetch = 0 : i64, scratch_operands = 0 : i64, tpu.core_type = #tpu.core_type<tc>, window_params = [{transform_indices = @transform_0, window_bounds = array<i64: 1, 16, 32>}, {transform_indices = @transform_1, window_bounds = array<i64: 1, 16, 32>}, {pipeline_mode = #tpu.pipeline_mode<synchronous>, transform_indices = @transform_2, window_bounds = array<i64: 64, 64>}, {pipeline_mode = #tpu.pipeline_mode<synchronous>, transform_indices = @transform_3, window_bounds = array<i64: 1, 64>}, {pipeline_mode = #tpu.pipeline_mode<synchronous>, transform_indices = @transform_4, window_bounds = array<i64: 1, 64>}, {pipeline_mode = #tpu.pipeline_mode<synchronous>, transform_indices = @transform_5, window_bounds = array<i64: 192, 32>}, {pipeline_mode = #tpu.pipeline_mode<synchronous>, transform_indices = @transform_6, window_bounds = array<i64: 1, 32>}, {pipeline_mode = #tpu.pipeline_mode<synchronous>, transform_indices = @transform_7, window_bounds = array<i64: 32, 32>}, {pipeline_mode = #tpu.pipeline_mode<synchronous>, transform_indices = @transform_8, window_bounds = array<i64: 1, 32>}, {pipeline_mode = #tpu.pipeline_mode<synchronous>, transform_indices = @transform_9, window_bounds = array<i64: 1, 32>}, {pipeline_mode = #tpu.pipeline_mode<synchronous>, transform_indices = @transform_10, window_bounds = array<i64: 96, 32>}, {pipeline_mode = #tpu.pipeline_mode<synchronous>, transform_indices = @transform_11, window_bounds = array<i64: 1, 32>}, {pipeline_mode = #tpu.pipeline_mode<synchronous>, transform_indices = @transform_12, window_bounds = array<i64: 64, 32>}, {pipeline_mode = #tpu.pipeline_mode<synchronous>, transform_indices = @transform_13, window_bounds = array<i64: 1, 32>}, {transform_indices = @transform_14, window_bounds = array<i64: 1, 16, 32>}]} {
    %c0 = arith.constant 0 : index
    %c0_0 = arith.constant 0 : index
    %c0_1 = arith.constant 0 : index
    %0 = vector.load %arg1[%c0, %c0_0, %c0_1] : memref<1x16x32xf32, #tpu.memory_space<vmem>>, vector<1x16x32xf32>
    %1 = vector.shape_cast %0 : vector<1x16x32xf32> to vector<16x32xf32>
    %c0_2 = arith.constant 0 : index
    %c0_3 = arith.constant 0 : index
    %c0_4 = arith.constant 0 : index
    %2 = vector.load %arg2[%c0_2, %c0_3, %c0_4] : memref<1x16x32xf32, #tpu.memory_space<vmem>>, vector<1x16x32xf32>
    %3 = vector.shape_cast %2 : vector<1x16x32xf32> to vector<16x32xf32>
    %4 = tpu.concatenate %1, %3 in 1 : vector<16x32xf32>, vector<16x32xf32> -> vector<16x64xf32>
    %c0_5 = arith.constant 0 : index
    %c0_6 = arith.constant 0 : index
    %5 = vector.load %arg3[%c0_5, %c0_6] : memref<64x64xf32, #tpu.memory_space<vmem>>, vector<64x64xf32>
    %c0_7 = arith.constant 0 : index
    %c0_8 = arith.constant 0 : index
    %6 = vector.load %arg4[%c0_7, %c0_8] : memref<1x64xf32, #tpu.memory_space<vmem>>, vector<1x64xf32>
    %c0_9 = arith.constant 0 : index
    %c0_10 = arith.constant 0 : index
    %7 = vector.load %arg5[%c0_9, %c0_10] : memref<1x64xf32, #tpu.memory_space<vmem>>, vector<1x64xf32>
    %cst = arith.constant dense<0.000000e+00> : vector<64xf32>
    %8 = vector.multi_reduction <add>, %4, %cst [0] : vector<16x64xf32> to vector<64xf32>
    %9 = vector.shape_cast %8 : vector<64xf32> to vector<1x64xf32>
    %10 = arith.mulf %4, %4 : vector<16x64xf32>
    %cst_11 = arith.constant dense<0.000000e+00> : vector<64xf32>
    %11 = vector.multi_reduction <add>, %10, %cst_11 [0] : vector<16x64xf32> to vector<64xf32>
    %12 = vector.shape_cast %11 : vector<64xf32> to vector<1x64xf32>
    %cst_12 = arith.constant dense<0.000000e+00> : vector<1x64xf32>
    %13 = tpu.matmul %9, %5, %cst_12 {dimension_numbers = #tpu.dot_dimension_numbers<[1], [0], [0], [1], [0, 0, 1, 1], [], []>} : vector<1x64xf32>, vector<64x64xf32>, vector<1x64xf32> -> vector<1x64xf32>
    %cst_13 = arith.constant 3.125000e-02 : f32
    %14 = vector.broadcast %cst_13 : f32 to vector<1x64xf32>
    %15 = arith.mulf %13, %14 : vector<1x64xf32>
    %cst_14 = arith.constant dense<0.000000e+00> : vector<1x64xf32>
    %16 = tpu.matmul %12, %5, %cst_14 {dimension_numbers = #tpu.dot_dimension_numbers<[1], [0], [0], [1], [0, 0, 1, 1], [], []>} : vector<1x64xf32>, vector<64x64xf32>, vector<1x64xf32> -> vector<1x64xf32>
    %cst_15 = arith.constant 3.125000e-02 : f32
    %17 = vector.broadcast %cst_15 : f32 to vector<1x64xf32>
    %18 = arith.mulf %16, %17 : vector<1x64xf32>
    %19 = arith.mulf %15, %15 : vector<1x64xf32>
    %20 = arith.subf %18, %19 : vector<1x64xf32>
    %21 = vector.broadcast %15 : vector<1x64xf32> to vector<16x64xf32>
    %22 = arith.subf %4, %21 : vector<16x64xf32>
    %cst_16 = arith.constant 9.99999974E-6 : f32
    %23 = vector.broadcast %cst_16 : f32 to vector<1x64xf32>
    %24 = arith.addf %20, %23 : vector<1x64xf32>
    %25 = math.rsqrt %24 : vector<1x64xf32>
    %26 = vector.broadcast %25 : vector<1x64xf32> to vector<16x64xf32>
    %27 = arith.mulf %22, %26 : vector<16x64xf32>
    %28 = vector.broadcast %6 : vector<1x64xf32> to vector<16x64xf32>
    %29 = arith.mulf %27, %28 : vector<16x64xf32>
    %30 = vector.broadcast %7 : vector<1x64xf32> to vector<16x64xf32>
    %31 = arith.addf %29, %30 : vector<16x64xf32>
    %32 = arith.negf %31 : vector<16x64xf32>
    %33 = math.exp %32 : vector<16x64xf32>
    %cst_17 = arith.constant 1.000000e+00 : f32
    %34 = vector.broadcast %cst_17 : f32 to vector<16x64xf32>
    %35 = arith.addf %34, %33 : vector<16x64xf32>
    %36 = arith.divf %34, %35 : vector<16x64xf32>
    %37 = arith.mulf %31, %36 : vector<16x64xf32>
    %cst_18 = arith.constant 0.000000e+00 : f32
    %38 = vector.broadcast %cst_18 : f32 to vector<1x64xf32>
    %39 = vector.extract_strided_slice %37 {offsets = [0, 0], sizes = [15, 64], strides = [1, 1]} : vector<16x64xf32> to vector<15x64xf32>
    %40 = tpu.concatenate %38, %39 in 0 : vector<1x64xf32>, vector<15x64xf32> -> vector<16x64xf32>
    %41 = vector.extract_strided_slice %37 {offsets = [1, 0], sizes = [15, 64], strides = [1, 1]} : vector<16x64xf32> to vector<15x64xf32>
    %42 = tpu.concatenate %41, %38 in 0 : vector<15x64xf32>, vector<1x64xf32> -> vector<16x64xf32>
    %43 = tpu.concatenate %40, %37, %42 in 1 : vector<16x64xf32>, vector<16x64xf32>, vector<16x64xf32> -> vector<16x192xf32>
    %c0_19 = arith.constant 0 : index
    %c0_20 = arith.constant 0 : index
    %44 = vector.load %arg6[%c0_19, %c0_20] : memref<192x32xf32, #tpu.memory_space<vmem>>, vector<192x32xf32>
    %cst_21 = arith.constant dense<0.000000e+00> : vector<16x32xf32>
    %45 = tpu.matmul %43, %44, %cst_21 {dimension_numbers = #tpu.dot_dimension_numbers<[1], [0], [0], [1], [0, 0, 1, 1], [], []>} : vector<16x192xf32>, vector<192x32xf32>, vector<16x32xf32> -> vector<16x32xf32>
    %c0_22 = arith.constant 0 : index
    %c0_23 = arith.constant 0 : index
    %46 = vector.load %arg7[%c0_22, %c0_23] : memref<1x32xf32, #tpu.memory_space<vmem>>, vector<1x32xf32>
    %47 = vector.broadcast %46 : vector<1x32xf32> to vector<16x32xf32>
    %48 = arith.addf %45, %47 : vector<16x32xf32>
    %c0_24 = arith.constant 0 : index
    %c0_25 = arith.constant 0 : index
    %49 = vector.load %arg8[%c0_24, %c0_25] : memref<32x32xf32, #tpu.memory_space<vmem>>, vector<32x32xf32>
    %c0_26 = arith.constant 0 : index
    %c0_27 = arith.constant 0 : index
    %50 = vector.load %arg9[%c0_26, %c0_27] : memref<1x32xf32, #tpu.memory_space<vmem>>, vector<1x32xf32>
    %c0_28 = arith.constant 0 : index
    %c0_29 = arith.constant 0 : index
    %51 = vector.load %arg10[%c0_28, %c0_29] : memref<1x32xf32, #tpu.memory_space<vmem>>, vector<1x32xf32>
    %cst_30 = arith.constant dense<0.000000e+00> : vector<32xf32>
    %52 = vector.multi_reduction <add>, %48, %cst_30 [0] : vector<16x32xf32> to vector<32xf32>
    %53 = vector.shape_cast %52 : vector<32xf32> to vector<1x32xf32>
    %54 = arith.mulf %48, %48 : vector<16x32xf32>
    %cst_31 = arith.constant dense<0.000000e+00> : vector<32xf32>
    %55 = vector.multi_reduction <add>, %54, %cst_31 [0] : vector<16x32xf32> to vector<32xf32>
    %56 = vector.shape_cast %55 : vector<32xf32> to vector<1x32xf32>
    %cst_32 = arith.constant dense<0.000000e+00> : vector<1x32xf32>
    %57 = tpu.matmul %53, %49, %cst_32 {dimension_numbers = #tpu.dot_dimension_numbers<[1], [0], [0], [1], [0, 0, 1, 1], [], []>} : vector<1x32xf32>, vector<32x32xf32>, vector<1x32xf32> -> vector<1x32xf32>
    %cst_33 = arith.constant 6.250000e-02 : f32
    %58 = vector.broadcast %cst_33 : f32 to vector<1x32xf32>
    %59 = arith.mulf %57, %58 : vector<1x32xf32>
    %cst_34 = arith.constant dense<0.000000e+00> : vector<1x32xf32>
    %60 = tpu.matmul %56, %49, %cst_34 {dimension_numbers = #tpu.dot_dimension_numbers<[1], [0], [0], [1], [0, 0, 1, 1], [], []>} : vector<1x32xf32>, vector<32x32xf32>, vector<1x32xf32> -> vector<1x32xf32>
    %cst_35 = arith.constant 6.250000e-02 : f32
    %61 = vector.broadcast %cst_35 : f32 to vector<1x32xf32>
    %62 = arith.mulf %60, %61 : vector<1x32xf32>
    %63 = arith.mulf %59, %59 : vector<1x32xf32>
    %64 = arith.subf %62, %63 : vector<1x32xf32>
    %65 = vector.broadcast %59 : vector<1x32xf32> to vector<16x32xf32>
    %66 = arith.subf %48, %65 : vector<16x32xf32>
    %cst_36 = arith.constant 9.99999974E-6 : f32
    %67 = vector.broadcast %cst_36 : f32 to vector<1x32xf32>
    %68 = arith.addf %64, %67 : vector<1x32xf32>
    %69 = math.rsqrt %68 : vector<1x32xf32>
    %70 = vector.broadcast %69 : vector<1x32xf32> to vector<16x32xf32>
    %71 = arith.mulf %66, %70 : vector<16x32xf32>
    %72 = vector.broadcast %50 : vector<1x32xf32> to vector<16x32xf32>
    %73 = arith.mulf %71, %72 : vector<16x32xf32>
    %74 = vector.broadcast %51 : vector<1x32xf32> to vector<16x32xf32>
    %75 = arith.addf %73, %74 : vector<16x32xf32>
    %76 = arith.negf %75 : vector<16x32xf32>
    %77 = math.exp %76 : vector<16x32xf32>
    %cst_37 = arith.constant 1.000000e+00 : f32
    %78 = vector.broadcast %cst_37 : f32 to vector<16x32xf32>
    %79 = arith.addf %78, %77 : vector<16x32xf32>
    %80 = arith.divf %78, %79 : vector<16x32xf32>
    %81 = arith.mulf %75, %80 : vector<16x32xf32>
    %cst_38 = arith.constant 0.000000e+00 : f32
    %82 = vector.broadcast %cst_38 : f32 to vector<1x32xf32>
    %83 = vector.extract_strided_slice %81 {offsets = [0, 0], sizes = [15, 32], strides = [1, 1]} : vector<16x32xf32> to vector<15x32xf32>
    %84 = tpu.concatenate %82, %83 in 0 : vector<1x32xf32>, vector<15x32xf32> -> vector<16x32xf32>
    %85 = vector.extract_strided_slice %81 {offsets = [1, 0], sizes = [15, 32], strides = [1, 1]} : vector<16x32xf32> to vector<15x32xf32>
    %86 = tpu.concatenate %85, %82 in 0 : vector<15x32xf32>, vector<1x32xf32> -> vector<16x32xf32>
    %87 = tpu.concatenate %84, %81, %86 in 1 : vector<16x32xf32>, vector<16x32xf32>, vector<16x32xf32> -> vector<16x96xf32>
    %c0_39 = arith.constant 0 : index
    %c0_40 = arith.constant 0 : index
    %88 = vector.load %arg11[%c0_39, %c0_40] : memref<96x32xf32, #tpu.memory_space<vmem>>, vector<96x32xf32>
    %cst_41 = arith.constant dense<0.000000e+00> : vector<16x32xf32>
    %89 = tpu.matmul %87, %88, %cst_41 {dimension_numbers = #tpu.dot_dimension_numbers<[1], [0], [0], [1], [0, 0, 1, 1], [], []>} : vector<16x96xf32>, vector<96x32xf32>, vector<16x32xf32> -> vector<16x32xf32>
    %c0_42 = arith.constant 0 : index
    %c0_43 = arith.constant 0 : index
    %90 = vector.load %arg12[%c0_42, %c0_43] : memref<1x32xf32, #tpu.memory_space<vmem>>, vector<1x32xf32>
    %91 = vector.broadcast %90 : vector<1x32xf32> to vector<16x32xf32>
    %92 = arith.addf %89, %91 : vector<16x32xf32>
    %c0_44 = arith.constant 0 : index
    %c0_45 = arith.constant 0 : index
    %93 = vector.load %arg13[%c0_44, %c0_45] : memref<64x32xf32, #tpu.memory_space<vmem>>, vector<64x32xf32>
    %cst_46 = arith.constant dense<0.000000e+00> : vector<16x32xf32>
    %94 = tpu.matmul %4, %93, %cst_46 {dimension_numbers = #tpu.dot_dimension_numbers<[1], [0], [0], [1], [0, 0, 1, 1], [], []>} : vector<16x64xf32>, vector<64x32xf32>, vector<16x32xf32> -> vector<16x32xf32>
    %c0_47 = arith.constant 0 : index
    %c0_48 = arith.constant 0 : index
    %95 = vector.load %arg14[%c0_47, %c0_48] : memref<1x32xf32, #tpu.memory_space<vmem>>, vector<1x32xf32>
    %96 = vector.broadcast %95 : vector<1x32xf32> to vector<16x32xf32>
    %97 = arith.addf %94, %96 : vector<16x32xf32>
    %98 = arith.addf %92, %97 : vector<16x32xf32>
    %cst_49 = arith.constant 0.707106769 : f32
    %99 = vector.broadcast %cst_49 : f32 to vector<16x32xf32>
    %100 = arith.mulf %98, %99 : vector<16x32xf32>
    %c0_50 = arith.constant 0 : index
    %c0_51 = arith.constant 0 : index
    %c0_52 = arith.constant 0 : index
    %101 = vector.load %arg15[%c0_50, %c0_51, %c0_52] : memref<1x16x32xf32, #tpu.memory_space<vmem>>, vector<1x16x32xf32>
    %102 = vector.shape_cast %101 : vector<1x16x32xf32> to vector<16x32xf32>
    %103 = vector.shape_cast %100 : vector<16x32xf32> to vector<1x16x32xf32>
    tpu.vector_store %arg15[%c0_50, %c0_51, %c0_52], %103 {strides = array<i32>} : memref<1x16x32xf32, #tpu.memory_space<vmem>>, vector<1x16x32xf32>,
    return
  }
  func.func @transform_0(%arg0: i32) -> (i32, i32, i32) {
    %c0_i32 = arith.constant 0 : i32
    %c0_i32_0 = arith.constant 0 : i32
    %c0_i32_1 = arith.constant 0 : i32
    return %arg0, %c0_i32, %c0_i32_0 : i32, i32, i32
  }
  func.func @transform_1(%arg0: i32) -> (i32, i32, i32) {
    %c0_i32 = arith.constant 0 : i32
    %c0_i32_0 = arith.constant 0 : i32
    %c0_i32_1 = arith.constant 0 : i32
    return %arg0, %c0_i32, %c0_i32_0 : i32, i32, i32
  }
  func.func @transform_2(%arg0: i32) -> (i32, i32) {
    %c0_i32 = arith.constant 0 : i32
    %c0_i32_0 = arith.constant 0 : i32
    %c0_i32_1 = arith.constant 0 : i32
    return %c0_i32, %c0_i32_0 : i32, i32
  }
  func.func @transform_3(%arg0: i32) -> (i32, i32) {
    %c0_i32 = arith.constant 0 : i32
    %c0_i32_0 = arith.constant 0 : i32
    %c0_i32_1 = arith.constant 0 : i32
    return %c0_i32, %c0_i32_0 : i32, i32
  }
  func.func @transform_4(%arg0: i32) -> (i32, i32) {
    %c0_i32 = arith.constant 0 : i32
    %c0_i32_0 = arith.constant 0 : i32
    %c0_i32_1 = arith.constant 0 : i32
    return %c0_i32, %c0_i32_0 : i32, i32
  }
  func.func @transform_5(%arg0: i32) -> (i32, i32) {
    %c0_i32 = arith.constant 0 : i32
    %c0_i32_0 = arith.constant 0 : i32
    %c0_i32_1 = arith.constant 0 : i32
    return %c0_i32, %c0_i32_0 : i32, i32
  }
  func.func @transform_6(%arg0: i32) -> (i32, i32) {
    %c0_i32 = arith.constant 0 : i32
    %c0_i32_0 = arith.constant 0 : i32
    %c0_i32_1 = arith.constant 0 : i32
    return %c0_i32, %c0_i32_0 : i32, i32
  }
  func.func @transform_7(%arg0: i32) -> (i32, i32) {
    %c0_i32 = arith.constant 0 : i32
    %c0_i32_0 = arith.constant 0 : i32
    %c0_i32_1 = arith.constant 0 : i32
    return %c0_i32, %c0_i32_0 : i32, i32
  }
  func.func @transform_8(%arg0: i32) -> (i32, i32) {
    %c0_i32 = arith.constant 0 : i32
    %c0_i32_0 = arith.constant 0 : i32
    %c0_i32_1 = arith.constant 0 : i32
    return %c0_i32, %c0_i32_0 : i32, i32
  }
  func.func @transform_9(%arg0: i32) -> (i32, i32) {
    %c0_i32 = arith.constant 0 : i32
    %c0_i32_0 = arith.constant 0 : i32
    %c0_i32_1 = arith.constant 0 : i32
    return %c0_i32, %c0_i32_0 : i32, i32
  }
  func.func @transform_10(%arg0: i32) -> (i32, i32) {
    %c0_i32 = arith.constant 0 : i32
    %c0_i32_0 = arith.constant 0 : i32
    %c0_i32_1 = arith.constant 0 : i32
    return %c0_i32, %c0_i32_0 : i32, i32
  }
  func.func @transform_11(%arg0: i32) -> (i32, i32) {
    %c0_i32 = arith.constant 0 : i32
    %c0_i32_0 = arith.constant 0 : i32
    %c0_i32_1 = arith.constant 0 : i32
    return %c0_i32, %c0_i32_0 : i32, i32
  }
  func.func @transform_12(%arg0: i32) -> (i32, i32) {
    %c0_i32 = arith.constant 0 : i32
    %c0_i32_0 = arith.constant 0 : i32
    %c0_i32_1 = arith.constant 0 : i32
    return %c0_i32, %c0_i32_0 : i32, i32
  }
  func.func @transform_13(%arg0: i32) -> (i32, i32) {
    %c0_i32 = arith.constant 0 : i32
    %c0_i32_0 = arith.constant 0 : i32
    %c0_i32_1 = arith.constant 0 : i32
    return %c0_i32, %c0_i32_0 : i32, i32
  }
  func.func @transform_14(%arg0: i32) -> (i32, i32, i32) {
    %c0_i32 = arith.constant 0 : i32
    %c0_i32_0 = arith.constant 0 : i32
    %c0_i32_1 = arith.constant 0 : i32
    return %arg0, %c0_i32, %c0_i32_0 : i32, i32, i32
  }
}

module attributes {stable_mosaic.version = 11 : i64} {
  func.func @_gn_silu_conv_kernel(%arg0: i32, %arg1: memref<1x16x32xf32, #tpu.memory_space<vmem>>, %arg2: memref<32x32xf32, #tpu.memory_space<vmem>>, %arg3: memref<1x32xf32, #tpu.memory_space<vmem>>, %arg4: memref<1x32xf32, #tpu.memory_space<vmem>>, %arg5: memref<96x128xf32, #tpu.memory_space<vmem>>, %arg6: memref<1x128xf32, #tpu.memory_space<vmem>>, %arg7: memref<1x16x128xf32, #tpu.memory_space<vmem>>) attributes {dimension_semantics = [#tpu.dimension_semantics<parallel>], iteration_bounds = array<i64: 2>, scalar_prefetch = 0 : i64, scratch_operands = 0 : i64, tpu.core_type = #tpu.core_type<tc>, window_params = [{transform_indices = @transform_0, window_bounds = array<i64: 1, 16, 32>}, {pipeline_mode = #tpu.pipeline_mode<synchronous>, transform_indices = @transform_1, window_bounds = array<i64: 32, 32>}, {pipeline_mode = #tpu.pipeline_mode<synchronous>, transform_indices = @transform_2, window_bounds = array<i64: 1, 32>}, {pipeline_mode = #tpu.pipeline_mode<synchronous>, transform_indices = @transform_3, window_bounds = array<i64: 1, 32>}, {pipeline_mode = #tpu.pipeline_mode<synchronous>, transform_indices = @transform_4, window_bounds = array<i64: 96, 128>}, {pipeline_mode = #tpu.pipeline_mode<synchronous>, transform_indices = @transform_5, window_bounds = array<i64: 1, 128>}, {transform_indices = @transform_6, window_bounds = array<i64: 1, 16, 128>}]} {
    %c0 = arith.constant 0 : index
    %c0_0 = arith.constant 0 : index
    %c0_1 = arith.constant 0 : index
    %0 = vector.load %arg1[%c0, %c0_0, %c0_1] : memref<1x16x32xf32, #tpu.memory_space<vmem>>, vector<1x16x32xf32>
    %1 = vector.shape_cast %0 : vector<1x16x32xf32> to vector<16x32xf32>
    %c0_2 = arith.constant 0 : index
    %c0_3 = arith.constant 0 : index
    %2 = vector.load %arg2[%c0_2, %c0_3] : memref<32x32xf32, #tpu.memory_space<vmem>>, vector<32x32xf32>
    %c0_4 = arith.constant 0 : index
    %c0_5 = arith.constant 0 : index
    %3 = vector.load %arg3[%c0_4, %c0_5] : memref<1x32xf32, #tpu.memory_space<vmem>>, vector<1x32xf32>
    %c0_6 = arith.constant 0 : index
    %c0_7 = arith.constant 0 : index
    %4 = vector.load %arg4[%c0_6, %c0_7] : memref<1x32xf32, #tpu.memory_space<vmem>>, vector<1x32xf32>
    %cst = arith.constant dense<0.000000e+00> : vector<32xf32>
    %5 = vector.multi_reduction <add>, %1, %cst [0] : vector<16x32xf32> to vector<32xf32>
    %6 = vector.shape_cast %5 : vector<32xf32> to vector<1x32xf32>
    %7 = arith.mulf %1, %1 : vector<16x32xf32>
    %cst_8 = arith.constant dense<0.000000e+00> : vector<32xf32>
    %8 = vector.multi_reduction <add>, %7, %cst_8 [0] : vector<16x32xf32> to vector<32xf32>
    %9 = vector.shape_cast %8 : vector<32xf32> to vector<1x32xf32>
    %cst_9 = arith.constant dense<0.000000e+00> : vector<1x32xf32>
    %10 = tpu.matmul %6, %2, %cst_9 {dimension_numbers = #tpu.dot_dimension_numbers<[1], [0], [0], [1], [0, 0, 1, 1], [], []>} : vector<1x32xf32>, vector<32x32xf32>, vector<1x32xf32> -> vector<1x32xf32>
    %cst_10 = arith.constant 6.250000e-02 : f32
    %11 = vector.broadcast %cst_10 : f32 to vector<1x32xf32>
    %12 = arith.mulf %10, %11 : vector<1x32xf32>
    %cst_11 = arith.constant dense<0.000000e+00> : vector<1x32xf32>
    %13 = tpu.matmul %9, %2, %cst_11 {dimension_numbers = #tpu.dot_dimension_numbers<[1], [0], [0], [1], [0, 0, 1, 1], [], []>} : vector<1x32xf32>, vector<32x32xf32>, vector<1x32xf32> -> vector<1x32xf32>
    %cst_12 = arith.constant 6.250000e-02 : f32
    %14 = vector.broadcast %cst_12 : f32 to vector<1x32xf32>
    %15 = arith.mulf %13, %14 : vector<1x32xf32>
    %16 = arith.mulf %12, %12 : vector<1x32xf32>
    %17 = arith.subf %15, %16 : vector<1x32xf32>
    %18 = vector.broadcast %12 : vector<1x32xf32> to vector<16x32xf32>
    %19 = arith.subf %1, %18 : vector<16x32xf32>
    %cst_13 = arith.constant 9.99999974E-6 : f32
    %20 = vector.broadcast %cst_13 : f32 to vector<1x32xf32>
    %21 = arith.addf %17, %20 : vector<1x32xf32>
    %22 = math.rsqrt %21 : vector<1x32xf32>
    %23 = vector.broadcast %22 : vector<1x32xf32> to vector<16x32xf32>
    %24 = arith.mulf %19, %23 : vector<16x32xf32>
    %25 = vector.broadcast %3 : vector<1x32xf32> to vector<16x32xf32>
    %26 = arith.mulf %24, %25 : vector<16x32xf32>
    %27 = vector.broadcast %4 : vector<1x32xf32> to vector<16x32xf32>
    %28 = arith.addf %26, %27 : vector<16x32xf32>
    %29 = arith.negf %28 : vector<16x32xf32>
    %30 = math.exp %29 : vector<16x32xf32>
    %cst_14 = arith.constant 1.000000e+00 : f32
    %31 = vector.broadcast %cst_14 : f32 to vector<16x32xf32>
    %32 = arith.addf %31, %30 : vector<16x32xf32>
    %33 = arith.divf %31, %32 : vector<16x32xf32>
    %34 = arith.mulf %28, %33 : vector<16x32xf32>
    %cst_15 = arith.constant 0.000000e+00 : f32
    %35 = vector.broadcast %cst_15 : f32 to vector<1x32xf32>
    %36 = vector.extract_strided_slice %34 {offsets = [0, 0], sizes = [15, 32], strides = [1, 1]} : vector<16x32xf32> to vector<15x32xf32>
    %37 = tpu.concatenate %35, %36 in 0 : vector<1x32xf32>, vector<15x32xf32> -> vector<16x32xf32>
    %38 = vector.extract_strided_slice %34 {offsets = [1, 0], sizes = [15, 32], strides = [1, 1]} : vector<16x32xf32> to vector<15x32xf32>
    %39 = tpu.concatenate %38, %35 in 0 : vector<15x32xf32>, vector<1x32xf32> -> vector<16x32xf32>
    %40 = tpu.concatenate %37, %34, %39 in 1 : vector<16x32xf32>, vector<16x32xf32>, vector<16x32xf32> -> vector<16x96xf32>
    %c0_16 = arith.constant 0 : index
    %c0_17 = arith.constant 0 : index
    %41 = vector.load %arg5[%c0_16, %c0_17] : memref<96x128xf32, #tpu.memory_space<vmem>>, vector<96x128xf32>
    %cst_18 = arith.constant dense<0.000000e+00> : vector<16x128xf32>
    %42 = tpu.matmul %40, %41, %cst_18 {dimension_numbers = #tpu.dot_dimension_numbers<[1], [0], [0], [1], [0, 0, 1, 1], [], []>} : vector<16x96xf32>, vector<96x128xf32>, vector<16x128xf32> -> vector<16x128xf32>
    %c0_19 = arith.constant 0 : index
    %c0_20 = arith.constant 0 : index
    %43 = vector.load %arg6[%c0_19, %c0_20] : memref<1x128xf32, #tpu.memory_space<vmem>>, vector<1x128xf32>
    %44 = vector.broadcast %43 : vector<1x128xf32> to vector<16x128xf32>
    %45 = arith.addf %42, %44 : vector<16x128xf32>
    %c0_21 = arith.constant 0 : index
    %c0_22 = arith.constant 0 : index
    %c0_23 = arith.constant 0 : index
    %46 = vector.load %arg7[%c0_21, %c0_22, %c0_23] : memref<1x16x128xf32, #tpu.memory_space<vmem>>, vector<1x16x128xf32>
    %47 = vector.shape_cast %46 : vector<1x16x128xf32> to vector<16x128xf32>
    %48 = vector.shape_cast %45 : vector<16x128xf32> to vector<1x16x128xf32>
    tpu.vector_store %arg7[%c0_21, %c0_22, %c0_23], %48 {strides = array<i32>} : memref<1x16x128xf32, #tpu.memory_space<vmem>>, vector<1x16x128xf32>,
    return
  }
  func.func @transform_0(%arg0: i32) -> (i32, i32, i32) {
    %c0_i32 = arith.constant 0 : i32
    %c0_i32_0 = arith.constant 0 : i32
    %c0_i32_1 = arith.constant 0 : i32
    return %arg0, %c0_i32, %c0_i32_0 : i32, i32, i32
  }
  func.func @transform_1(%arg0: i32) -> (i32, i32) {
    %c0_i32 = arith.constant 0 : i32
    %c0_i32_0 = arith.constant 0 : i32
    %c0_i32_1 = arith.constant 0 : i32
    return %c0_i32, %c0_i32_0 : i32, i32
  }
  func.func @transform_2(%arg0: i32) -> (i32, i32) {
    %c0_i32 = arith.constant 0 : i32
    %c0_i32_0 = arith.constant 0 : i32
    %c0_i32_1 = arith.constant 0 : i32
    return %c0_i32, %c0_i32_0 : i32, i32
  }
  func.func @transform_3(%arg0: i32) -> (i32, i32) {
    %c0_i32 = arith.constant 0 : i32
    %c0_i32_0 = arith.constant 0 : i32
    %c0_i32_1 = arith.constant 0 : i32
    return %c0_i32, %c0_i32_0 : i32, i32
  }
  func.func @transform_4(%arg0: i32) -> (i32, i32) {
    %c0_i32 = arith.constant 0 : i32
    %c0_i32_0 = arith.constant 0 : i32
    %c0_i32_1 = arith.constant 0 : i32
    return %c0_i32, %c0_i32_0 : i32, i32
  }
  func.func @transform_5(%arg0: i32) -> (i32, i32) {
    %c0_i32 = arith.constant 0 : i32
    %c0_i32_0 = arith.constant 0 : i32
    %c0_i32_1 = arith.constant 0 : i32
    return %c0_i32, %c0_i32_0 : i32, i32
  }
  func.func @transform_6(%arg0: i32) -> (i32, i32, i32) {
    %c0_i32 = arith.constant 0 : i32
    %c0_i32_0 = arith.constant 0 : i32
    %c0_i32_1 = arith.constant 0 : i32
    return %arg0, %c0_i32, %c0_i32_0 : i32, i32, i32
  }
}

</mosaic_0001>

<bundles_post_ra>
// kernel: unet_forward.12
= control target key start
LH: loop header
LB: loop body
LE: loop exit
PB: predicated region body
PF: predicated region fallthrough
CT: control target
= control target key end

     0   :  { %s444_s12 = smov 0   ;;  %s491_s0 = inlined_call_operand.vmem [shape: f32[2,16,14], index: 0, kind: input, shape index: {}]   ;;  %s492_s1 = inlined_call_operand.vmem [shape: f32[42,32], index: 1, kind: input, shape index: {}]   ;;  %s493_s2 = inlined_call_operand.vmem [shape: f32[1,32], index: 2, kind: input, shape index: {}]   ;;  %s494_s3 = inlined_call_operand.vmem [shape: f32[2,16,32], index: 3, kind: output, shape index: {}]  }
   0x1 LB: > { %s364_s13 = sadd.s32 4294967295, %s420_s12   ;;  %p368_p0 = scmp.ge.s32.totalorder %s420_s12, 1  ;;  %s420_s12 = sphi %s444_s12, %s13_s12  }
   0x2   : > { %p137_p1 = scmp.lt.s32.totalorder %s420_s12, 3 }
   0x4   : > { %p138_p2 = pnand %p368_p0, %p137_p1 }
   0x5   : > { %p161_p3 = scmp.lt.s32.totalorder (!%p138_p2), %s364_s13, 1  ;;  %s422_s28 = smov (!%p138_p2), 14  }
   0x6   : > { %141 = sbr.rel (%p138_p2) target bundleno = 336 (0x150), region = 32  ;;  %s423_s4 = smov (!%p138_p2), 28  }
   0xb   : > { %v212_v0 = vld [vmem:[%s492_s1 + $0x28] sm:$0x3]  ;;  %vm227_vm0 = vcmask 1041408   ;;  %v211_v1 = vld [vmem:[%s492_s1 + $0x20] sm:$0xff]  ;;  %s496_s13 = smov (!%p161_p3, %s364_s13), 1  ;;  %v210_v2 = vld [vmem:[%s492_s1 + $0x18] sm:$0xff] }
   0xc   : > { %389 = vmatprep.subr.msk.mxu0 %vm227_vm0, %v212_v0  ;;  %s379_s20 = sshll.u32 %s496_s13, 4  ;;  %v209_v3 = vld [vmem:[%s492_s1 + $0x10] sm:$0xff]  ;;  %vm182_vm1 = vcmask 1046528   ;;  %v208_v6 = vld [vmem:[%s492_s1 + $0x8] sm:$0xff]  ;;  %vm175_vm2 = vcmask 1040384   ;;  %v207_v11 = vld [vmem:[%s492_s1] sm:$0xff] }
   0xd   : > { %390 = vmatpush3.msk.msra.mxu0 %vm227_vm0, %v212_v0  ;;  %s165_s25 = scalar_lea.vmem %s491_s0, %s379_s20  ;;  %vm201_vm3 = vcmask 113664   ;;  %vm204_vm4 = vcmask 228352   ;;  %vm220_vm5 = vcmask 343040   ;;  %v373_v24 = vld [vmem:[%s493_s2] ss:$0 sm:$0xff]  ;;  %s170_s9 = scalar_lea.vmem %s494_s3, %s379_s20  ;;  %vm306_vm6 = vcmask 261120  }
   0xe   : > { %391 = vmatprep.subr.mxu0 %v211_v1  ;;  %v171_v4 = vld [vmem:[%s165_s25] sm:$0xff]  ;;  %v172_v5 = vld [vmem:[%s165_s25 + $0x8] sm:$0xff] }
   0xf   : > { %392 = vmatpush3.msra.mxu0 %v211_v1  ;;  %v177_v7 = vrot.slane %v172_v5, 7  ;;  %188 = vrot.lane.b32.xlu0 %v171_v4, %s422_s28  ;;  %v176_v8 = vrot.slane %v171_v4, 7  ;;  %v183_v9 = vrot.slane %v171_v4, 1  ;;  %v184_v10 = vrot.slane %v172_v5, 1 }
  0x10   : > { %393 = vmatprep.subr.mxu0 %v210_v2 }
  0x11   : > { %394 = vmatpush3.msra.mxu0 %v210_v2  ;;  %v185_v12 = vsel %vm182_vm1, %v183_v9, %v184_v10  ;;  %v178_v13 = vsel %vm175_vm2, %v176_v8, %v177_v7  ;;  %v187_v14 = vsel %vm182_vm1, %v184_v10, 0.0  ;;  %v181_v15 = vsel %vm175_vm2, 0.0, %v176_v8 }
  0x12   : > { %395 = vmatprep.subr.mxu0 %v209_v3  ;;  %195 = vrot.lane.b32.xlu1 %v185_v12, %s423_s4 }
  0x13   : > { %396 = vmatpush3.msra.mxu0 %v209_v3  ;;  %190 = vrot.lane.b32.xlu0 %v172_v5, %s422_s28 }
  0x14   : > { %397 = vmatprep.subr.mxu0 %v208_v6 }
  0x15   : > { %398 = vmatpush3.msra.mxu0 %v208_v6 }
  0x16   : > { %399 = vmatprep.subr.mxu0 %v207_v11  ;;  %197 = vrot.lane.b32.xlu1 %v187_v14, %s423_s4 }
  0x17   : > { %400 = vmatpush3.msra.mxu0 %v207_v11 }
  0x81   : > { %v189_v16 = vpop.permute.xlu0 %188 }
  0x82   : > { %v202_v17 = vsel %vm201_vm3, %v181_v15, %v189_v16 }
  0x84   : > { %v196_v18 = vpop.permute.xlu1 %195 }
  0x85   : > { %v205_v19 = vsel %vm204_vm4, %v202_v17, %v196_v18  ;;  %v191_v20 = vpop.permute.xlu0 %190 }
  0x86   : > { %401 = vmatprep.mubr.msk.f32.mxu0 %vm220_vm5, %v205_v19  ;;  %v203_v21 = vsel %vm201_vm3, %v178_v13, %v191_v20 }
  0x88   : > { %v198_v22 = vpop.permute.xlu1 %197 }
  0x89   : > { %v206_v23 = vsel %vm204_vm4, %v203_v21, %v198_v22 }
  0x8a   : > { %402 = vmatmul.mubr.msk.f32.vlgmr.msra.gmra.mxu0 %vm220_vm5, %v206_v23 }
 0x14a   : > { %v403_v25 = vpop.f32.mrf.mxu0 }
 0x14b   : > { %v303_v26 = vadd.f32 %v403_v25, %v373_v24 }
 0x14c   : > { %v297_v27 = vpop.f32.mrf.mxu0 }
 0x14d   : > { %308 = vst.msk [vmem:[%s170_s9 + $0x8] sm:$0xff] %vm306_vm6, %v303_v26  ;;  %v298_v28 = vadd.f32 %v373_v24, %v297_v27 }
 0x14f   : > { %307 = vst.msk [vmem:[%s170_s9] sm:$0xff] %vm306_vm6, %v298_v28 }
 0x150 PF: > { %s13_s12 = sadd.s32 1, %s420_s12  }
 0x151   : > { %p10_p4 = scmp.ge.s32.totalorder %s13_s12, 4  }
 0x153   :  { %12 = sbr.rel (!%p10_p4) target bundleno = 1 (0x1), region = 62 }

// kernel: unet_forward.14
= control target key start
LH: loop header
LB: loop body
LE: loop exit
PB: predicated region body
PF: predicated region fallthrough
CT: control target
= control target key end

     0   :  { %s421_s12 = smov 0   ;;  %s484_s0 = inlined_call_operand.vmem [shape: f32[2,8,64], index: 0, kind: input, shape index: {}]   ;;  %s485_s1 = inlined_call_operand.vmem [shape: f32[96,32], index: 1, kind: input, shape index: {}]   ;;  %s486_s2 = inlined_call_operand.vmem [shape: f32[1,32], index: 2, kind: input, shape index: {}]   ;;  %s487_s3 = inlined_call_operand.vmem [shape: f32[2,8,32], index: 3, kind: output, shape index: {}]  }
   0x1 LB: > { %s326_s13 = sadd.s32 4294967295, %s395_s12   ;;  %p330_p0 = scmp.ge.s32.totalorder %s395_s12, 1  ;;  %s395_s12 = sphi %s421_s12, %s13_s12  }
   0x2   : > { %p136_p1 = scmp.lt.s32.totalorder %s395_s12, 3 }
   0x4   : > { %p137_p2 = pnand %p330_p0, %p136_p1 }
   0x5   : > { %p158_p3 = scmp.lt.s32.totalorder (!%p137_p2), %s326_s13, 1  ;;  %s399_s28 = smov (!%p137_p2), 96  }
   0x6   : > { %140 = sbr.rel (%p137_p2) target bundleno = 333 (0x14d), region = 32  ;;  %s400_s6 = smov (!%p137_p2), 32  }
   0xb   : > { %v190_v0 = vld [vmem:[%s485_s1 + $0x58] sm:$0xff]  ;;  %v397_v1 = vmov 0.0   ;;  %v189_v2 = vld [vmem:[%s485_s1 + $0x50] sm:$0xff]  ;;  %s489_s13 = smov (!%p158_p3, %s326_s13), 1  ;;  %v188_v3 = vld [vmem:[%s485_s1 + $0x48] sm:$0xff]  ;;  %vm398_vm0 = vmmov 0  }
   0xc   : > { %350 = vmatprep.subr.mxu0 %v397_v1  ;;  %374 = vmatprep.mubr.msk.f32.mxu0 %vm398_vm0, %v397_v1  ;;  %s331_s20 = sshll.u32 %s489_s13, 3  ;;  %v187_v4 = vld [vmem:[%s485_s1 + $0x40] sm:$0xff]  ;;  %v186_v7 = vld [vmem:[%s485_s1 + $0x38] sm:$0xff]  ;;  %v185_v8 = vld [vmem:[%s485_s1 + $0x30] sm:$0xff]  ;;  %vm172_vm1 = vcmask 1040384   ;;  %vm177_vm2 = vcmask 261120  }
   0xd   : > { %351 = vmatpush3.msra.mxu0 %v190_v0  ;;  %s161_s23 = scalar_lea.vmem %s484_s0, %s331_s20  ;;  %v184_v9 = vld [vmem:[%s485_s1 + $0x28] sm:$0xff]  ;;  %v183_v10 = vld [vmem:[%s485_s1 + $0x20] sm:$0xff]  ;;  %v182_v11 = vld [vmem:[%s485_s1 + $0x18] sm:$0xff]  ;;  %vm198_vm3 = vcmask 785408   ;;  %s165_s24 = scalar_lea.vmem %s487_s3, %s331_s20 }
   0xe   : > { %352 = vmatprep.subr.mxu0 %v397_v1  ;;  %v166_v5 = vld [vmem:[%s161_s23] sm:$0xff]  ;;  %v181_v12 = vld [vmem:[%s485_s1 + $0x10] sm:$0xff]  ;;  %v180_v13 = vld [vmem:[%s485_s1 + $0x8] sm:$0xff] }
   0xf   : > { %353 = vmatpush3.msra.mxu0 %v189_v2  ;;  %v168_v6 = vrot.slane %v166_v5, 7  ;;  %v179_v14 = vld [vmem:[%s485_s1] sm:$0xff] }
  0x10   : > { %354 = vmatprep.subr.mxu0 %v397_v1  ;;  %v333_v19 = vld [vmem:[%s486_s2] ss:$0 sm:$0xff] }
  0x11   : > { %355 = vmatpush3.msra.mxu0 %v188_v3  ;;  %169 = vrot.lane.b32.xlu0 %v168_v6, %s399_s28 }
  0x12   : > { %356 = vmatprep.subr.mxu0 %v397_v1 }
  0x13   : > { %357 = vmatpush3.msra.mxu0 %v187_v4 }
  0x14   : > { %358 = vmatprep.subr.mxu0 %v397_v1 }
  0x15   : > { %359 = vmatpush3.msra.mxu0 %v186_v7  ;;  %174 = vrot.lane.b32.xlu0 %v166_v5, %s400_s6 }
  0x16   : > { %360 = vmatprep.subr.mxu0 %v397_v1 }
  0x17   : > { %361 = vmatpush3.msra.mxu0 %v185_v8 }
  0x18   : > { %362 = vmatprep.subr.mxu0 %v397_v1 }
  0x19   : > { %363 = vmatpush3.msra.mxu0 %v184_v9 }
  0x1a   : > { %364 = vmatprep.subr.mxu0 %v397_v1 }
  0x1b   : > { %365 = vmatpush3.msra.mxu0 %v183_v10 }
  0x1c   : > { %366 = vmatprep.subr.mxu0 %v397_v1 }
  0x1d   : > { %367 = vmatpush3.msra.mxu0 %v182_v11 }
  0x1e   : > { %368 = vmatprep.subr.mxu0 %v397_v1 }
  0x1f   : > { %369 = vmatpush3.msra.mxu0 %v181_v12 }
  0x20   : > { %370 = vmatprep.subr.mxu0 %v397_v1 }
  0x21   : > { %371 = vmatpush3.msra.mxu0 %v180_v13 }
  0x22   : > { %372 = vmatprep.subr.mxu0 %v397_v1 }
  0x23   : > { %373 = vmatpush3.msra.mxu0 %v179_v14 }
  0x83   : > { %v170_v15 = vpop.permute.xlu0 %169 }
  0x84   : > { %v173_v16 = vsel %vm172_vm1, 0.0, %v170_v15 }
  0x87   : > { %v175_v17 = vpop.permute.xlu0 %174 }
  0x88   : > { %v178_v18 = vsel %vm177_vm2, %v173_v16, %v175_v17 }
  0x89   : > { %375 = vmatmul.mubr.msk.f32.vlgmr.msra.gmra.mxu0 %vm198_vm3, %v178_v18 }
 0x149   : > { %v268_v20 = vpop.f32.mrf.mxu0 }
 0x14a   : > { %v269_v21 = vadd.f32 %v333_v19, %v268_v20 }
 0x14b   : > { %v376_v22 = vpop.f32.mrf.mxu0 }
 0x14c   : > { %272 = vst.msk [vmem:[%s165_s24] sm:$0xff] %vm177_vm2, %v269_v21 }
 0x14d PF: > { %s13_s12 = sadd.s32 1, %s395_s12  }
 0x14e   : > { %p10_p4 = scmp.ge.s32.totalorder %s13_s12, 4  }
 0x150   :  { %12 = sbr.rel (!%p10_p4) target bundleno = 1 (0x1), region = 62 }

// kernel: unet_forward.13
= control target key start
LH: loop header
LB: loop body
LE: loop exit
PB: predicated region body
PF: predicated region fallthrough
CT: control target
= control target key end

     0   :  { %s1436_s17 = smov 0   ;;  %s1672_s0 = inlined_call_operand.vmem [shape: f32[2,16,32], index: 0, kind: input, shape index: {}]   ;;  %s1673_s1 = inlined_call_operand.vmem [shape: f32[32,32], index: 1, kind: input, shape index: {}, may-alias: {1,6}]   ;;  %s1674_s2 = inlined_call_operand.vmem [shape: f32[1,32], index: 2, kind: input, shape index: {}]   ;;  %s1675_s3 = inlined_call_operand.vmem [shape: f32[1,32], index: 3, kind: input, shape index: {}]   ;;  %s1676_s4 = inlined_call_operand.vmem [shape: f32[96,32], index: 4, kind: input, shape index: {}]   ;;  %s1677_s5 = inlined_call_operand.vmem [shape: f32[1,32], index: 5, kind: input, shape index: {}]   ;;  %s1678_s6 = inlined_call_operand.vmem [shape: f32[32,32], index: 6, kind: input, shape index: {}, may-alias: {1,6}]   ;;  %s1679_s7 = inlined_call_operand.vmem [shape: f32[1,32], index: 7, kind: input, shape index: {}]   ;;  %s1680_s8 = inlined_call_operand.vmem [shape: f32[1,32], index: 8, kind: input, shape index: {}]   ;;  %s1681_s9 = inlined_call_operand.vmem [shape: f32[96,32], index: 9, kind: input, shape index: {}]   ;;  %s1682_s10 = inlined_call_operand.vmem [shape: f32[1,32], index: 10, kind: input, shape index: {}]   ;;  %s1683_s11 = inlined_call_operand.vmem [shape: f32[2,16,32], index: 11, kind: output, shape index: {}]  }
   0x1 LB: > { %s1155_s18 = sadd.s32 4294967295, %s1370_s17   ;;  %p1159_p0 = scmp.ge.s32.totalorder %s1370_s17, 1  ;;  %s1370_s17 = sphi %s1436_s17, %s21_s17  }
   0x2   : > { %p337_p1 = scmp.lt.s32.totalorder %s1370_s17, 3 }
   0x4   : > { %p338_p2 = pnand %p1159_p0, %p337_p1 }
   0x5   : > { %p377_p3 = scmp.lt.s32.totalorder (!%p338_p2), %s1155_s18, 1  ;;  %s1374_s27 = smov (!%p338_p2), 32  }
   0x6   : > { %341 = sbr.rel (%p338_p2) target bundleno = 1216 (0x4c0), region = 64  ;;  %s1375_s28 = smov (!%p338_p2), 64  }
   0xb   : > { %v392_v0 = vld [vmem:[%s1673_s1 + $0x18] sm:$0xff]  ;;  %v1372_v1 = vmov 0.0   ;;  %v391_v2 = vld [vmem:[%s1673_s1 + $0x10] sm:$0xff]  ;;  %vm1373_vm0 = vmmov 0   ;;  %s1685_s18 = smov (!%p377_p3, %s1155_s18), 1  ;;  %v390_v3 = vld [vmem:[%s1673_s1 + $0x8] sm:$0xff]  ;;  %v566_v43 = vlaneseq }
   0xc   : > { %1234 = vmatprep.subr.mxu0 %v1372_v1  ;;  %1242 = vmatprep.mubr.msk.f32.mxu0 %vm1373_vm0, %v1372_v1  ;;  %s1184_s25 = sshll.u32 %s1685_s18, 4  ;;  %vm395_vm1 = vcmask 261120   ;;  %v389_v4 = vld [vmem:[%s1673_s1] sm:$0xff]  ;;  %v654_v27 = vld [vmem:[%s1676_s4 + $0x58] sm:$0xff]  ;;  %v653_v28 = vld [vmem:[%s1676_s4 + $0x50] sm:$0xff]  ;;  %vm619_vm2 = vcmask 1046528  }
   0xd   : > { %1235 = vmatpush3.msra.mxu0 %v392_v0  ;;  %1283 = vmatprep.subr.mxu1 %v1372_v1  ;;  %s381_s30 = scalar_lea.vmem %s1672_s0, %s1184_s25  ;;  %v652_v29 = vld [vmem:[%s1676_s4 + $0x48] sm:$0xff]  ;;  %v651_v30 = vld [vmem:[%s1676_s4 + $0x40] sm:$0xff]  ;;  %v650_v31 = vld [vmem:[%s1676_s4 + $0x38] sm:$0xff]  ;;  %v567_v45 = vshrl.u32 %v566_v43, 7  ;;  %vm612_vm3 = vcmask 1040384   ;;  %vm640_vm4 = vcmask 523264   ;;  %s386_s24 = scalar_lea.vmem %s1683_s11, %s1184_s25 }
   0xe   : > { %1236 = vmatprep.subr.mxu0 %v1372_v1  ;;  %1291 = vmatprep.mubr.msk.f32.mxu1 %vm1373_vm0, %v1372_v1  ;;  %v1472_v5 = vld [vmem:[%s381_s30] sm:$0xff]  ;;  %v1474_v6 = vld [vmem:[%s381_s30 + $0x8] sm:$0xff]  ;;  %v649_v32 = vld [vmem:[%s1676_s4 + $0x30] sm:$0xff]  ;;  %vm662_vm5 = vcmask 785408  }
   0xf   : > { %1237 = vmatpush3.msra.mxu0 %v391_v2  ;;  %v396_v7 = vsel %vm395_vm1, %v1472_v5, 0.0  ;;  %v397_v8 = vsel %vm395_vm1, %v1474_v6, 0.0  ;;  %v405_v9 = vmul.f32 %v1472_v5, %v1472_v5  ;;  %v406_v10 = vmul.f32 %v1474_v6, %v1474_v6  ;;  %v648_v33 = vld [vmem:[%s1676_s4 + $0x28] sm:$0xff]  ;;  %v647_v34 = vld [vmem:[%s1676_s4 + $0x20] sm:$0xff] }
  0x10   : > { %1238 = vmatprep.subr.mxu0 %v1372_v1  ;;  %v398_v11 = vadd.f32 %v397_v8, %v396_v7  ;;  %v1519_v46 = vsub.s32 0, %v567_v45  ;;  %v1166_v52 = vld [vmem:[%s1674_s2] ss:$0 sm:$0xff]  ;;  %v644_v7 = vld [vmem:[%s1676_s4 + $0x8] sm:$0xff] }
  0x11   : > { %1239 = vmatpush3.msra.mxu0 %v390_v3  ;;  %v407_v12 = vsel %vm395_vm1, %v405_v9, 0.0  ;;  %v408_v13 = vsel %vm395_vm1, %v406_v10, 0.0  ;;  %v1167_v55 = vld [vmem:[%s1675_s3] ss:$0 sm:$0xff] }
  0x12   : > { %1240 = vmatprep.subr.mxu0 %v1372_v1  ;;  %v399_v14 = vrot.slane %v398_v11, 4  ;;  %v409_v15 = vadd.f32 %v408_v13, %v407_v12  ;;  %v643_v8 = vld [vmem:[%s1676_s4] sm:$0xff] }
  0x13   : > { %1241 = vmatpush3.msra.mxu0 %v389_v4 }
  0x14   : > { %1245 = vmatprep.subr.mxu0 %v1372_v1  ;;  %v400_v16 = vadd.f32 %v399_v14, %v398_v11  ;;  %v410_v17 = vrot.slane %v409_v15, 4 }
  0x16   : > { %v401_v18 = vrot.slane %v400_v16, 2  ;;  %v411_v19 = vadd.f32 %v410_v17, %v409_v15 }
  0x18   : > { %v402_v20 = vadd.f32 %v401_v18, %v400_v16  ;;  %v412_v21 = vrot.slane %v411_v19, 2 }
  0x1a   : > { %v403_v22 = vrot.slane %v402_v20, 1  ;;  %v413_v23 = vadd.f32 %v412_v21, %v411_v19 }
  0x1c   : > { %v404_v24 = vadd.f32 %v403_v22, %v402_v20  ;;  %v414_v25 = vrot.slane %v413_v23, 1 }
  0x1e   : > { %1243 = vmatmul.mubr.msk.f32.vlgmr.msra.gmra.mxu0 %vm395_vm1, %v404_v24  ;;  %v415_v26 = vadd.f32 %v414_v25, %v413_v23 }
  0x1f   : > { %1246 = vmatpush3.msra.mxu0 %v392_v0  ;;  %1253 = vmatprep.mubr.msk.f32.mxu0 %vm1373_vm0, %v1372_v1 }
  0x20   : > { %1247 = vmatprep.subr.mxu0 %v1372_v1 }
  0x21   : > { %1248 = vmatpush3.msra.mxu0 %v391_v2 }
  0x22   : > { %1249 = vmatprep.subr.mxu0 %v1372_v1 }
  0x23   : > { %1250 = vmatpush3.msra.mxu0 %v390_v3  ;;  %v646_v3 = vld [vmem:[%s1676_s4 + $0x18] sm:$0xff] }
  0x24   : > { %1251 = vmatprep.subr.mxu0 %v1372_v1 }
  0x25   : > { %1252 = vmatpush3.msra.mxu0 %v389_v4  ;;  %v645_v4 = vld [vmem:[%s1676_s4 + $0x10] sm:$0xff] }
  0x26   : > { %1254 = vmatmul.mubr.msk.f32.vlgmr.msra.gmra.mxu0 %vm395_vm1, %v415_v26  ;;  %1256 = vmatprep.subr.mxu0 %v654_v27 }
  0x27   : > { %1257 = vmatpush3.msra.mxu0 %v654_v27 }
  0x28   : > { %1258 = vmatprep.subr.mxu0 %v653_v28 }
  0x29   : > { %1259 = vmatpush3.msra.mxu0 %v653_v28 }
  0x2a   : > { %1260 = vmatprep.subr.mxu0 %v652_v29 }
  0x2b   : > { %1261 = vmatpush3.msra.mxu0 %v652_v29  ;;  %v747_v29 = vld [vmem:[%s1678_s6 + $0x18] sm:$0xff] }
  0x2c   : > { %1262 = vmatprep.subr.mxu0 %v651_v30  ;;  %1284 = vmatpush3.msra.mxu1 %v747_v29 }
  0x2d   : > { %1263 = vmatpush3.msra.mxu0 %v651_v30  ;;  %1285 = vmatprep.subr.mxu1 %v1372_v1  ;;  %v746_v30 = vld [vmem:[%s1678_s6 + $0x10] sm:$0xff] }
  0x2e   : > { %1264 = vmatprep.subr.mxu0 %v650_v31  ;;  %1286 = vmatpush3.msra.mxu1 %v746_v30 }
  0x2f   : > { %1265 = vmatpush3.msra.mxu0 %v650_v31  ;;  %1287 = vmatprep.subr.mxu1 %v1372_v1  ;;  %v745_v31 = vld [vmem:[%s1678_s6 + $0x8] sm:$0xff] }
  0x30   : > { %1266 = vmatprep.subr.mxu0 %v649_v32  ;;  %1288 = vmatpush3.msra.mxu1 %v745_v31 }
  0x31   : > { %1267 = vmatpush3.msra.mxu0 %v649_v32  ;;  %v744_v32 = vld [vmem:[%s1678_s6] sm:$0xff]  ;;  %1289 = vmatprep.subr.mxu1 %v1372_v1 }
  0x32   : > { %1268 = vmatprep.subr.mxu0 %v648_v33  ;;  %1290 = vmatpush3.msra.mxu1 %v744_v32 }
  0x33   : > { %1269 = vmatpush3.msra.mxu0 %v648_v33  ;;  %1294 = vmatprep.subr.mxu1 %v1372_v1  ;;  %v1170_v33 = vld [vmem:[%s1677_s5] ss:$0 sm:$0xff] }
  0x34   : > { %1270 = vmatprep.subr.mxu0 %v647_v34 }
  0x35   : > { %1271 = vmatpush3.msra.mxu0 %v647_v34 }
  0x36   : > { %1272 = vmatprep.subr.mxu0 %v646_v3 }
  0x37   : > { %1273 = vmatpush3.msra.mxu0 %v646_v3  ;;  %v997_v3 = vld [vmem:[%s1681_s9 + $0x18] sm:$0xff] }
  0x38   : > { %1274 = vmatprep.subr.mxu0 %v645_v4 }
  0x39   : > { %1275 = vmatpush3.msra.mxu0 %v645_v4 }
  0x3a   : > { %1276 = vmatprep.subr.mxu0 %v644_v7 }
  0x3b   : > { %1277 = vmatpush3.msra.mxu0 %v644_v7 }
  0x3c   : > { %1278 = vmatprep.subr.mxu0 %v643_v8 }
  0x3d   : > { %1279 = vmatpush3.msra.mxu0 %v643_v8 }
  0xde   : > { %v485_v35 = vpop.f32.mrf.mxu0 }
  0xdf   : > { %v489_v37 = vmul.f32 0.0625, %v485_v35 }
  0xe0   : > { %v1244_v36 = vpop.f32.mrf.mxu0 }
  0xe1   : > { %v564_v39 = vmul.f32 %v489_v37, %v489_v37  ;;  %v569_v47 = vrot.slane %v489_v37, %v1519_v46 }
  0xe3   : > { %v570_v49 = vsub.f32 %v1472_v5, %v569_v47  ;;  %v571_v50 = vsub.f32 %v1474_v6, %v569_v47 }
  0xe6   : > { %v559_v38 = vpop.f32.mrf.mxu0 }
  0xe7   : > { %v563_v40 = vmul.f32 0.0625, %v559_v38 }
  0xe8   : > { %v1255_v41 = vpop.f32.mrf.mxu0 }
  0xe9   : > { %v565_v42 = vsub.f32 %v563_v40, %v564_v39 }
  0xeb   : > { %v572_v44 = vadd.f32 1e-05, %v565_v42 }
  0xed   : > { %1344 = vrsqrt.f32 %v572_v44 }
  0xfa   : > { %v1345_v48 = vpop.eup %1344 }
  0xfb   : > { %v577_v51 = vrot.slane %v1345_v48, %v1519_v46 }
  0xfd   : > { %v578_v53 = vmul.f32 %v577_v51, %v570_v49  ;;  %v579_v54 = vmul.f32 %v577_v51, %v571_v50 }
  0xff   : > { %v586_v56 = vmul.f32 %v1166_v52, %v578_v53  ;;  %v587_v57 = vmul.f32 %v1166_v52, %v579_v54 }
 0x101   : > { %v594_v58 = vadd.f32 %v1167_v55, %v586_v56  ;;  %v595_v59 = vadd.f32 %v1167_v55, %v587_v57 }
 0x103   : > { %v1168_v60 = vmul.f32 -1.442695, %v594_v58  ;;  %v1169_v61 = vmul.f32 -1.442695, %v595_v59 }
 0x105   : > { %1346 = vpow2.f32 %v1168_v60  ;;  %v1004_v60 = vld [vmem:[%s1681_s9 + $0x50] sm:$0xff] }
 0x106   : > { %1348 = vpow2.f32 %v1169_v61  ;;  %v1003_v61 = vld [vmem:[%s1681_s9 + $0x48] sm:$0xff] }
 0x112   : > { %v1347_v62 = vpop.eup %1346 }
 0x113   : > { %v1349_v63 = vpop.eup %1348  ;;  %v602_v0 = vadd.f32 1.0, %v1347_v62  ;;  %v1001_v62 = vld [vmem:[%s1681_s9 + $0x38] sm:$0xff] }
 0x114   : > { %v603_v2 = vadd.f32 1.0, %v1349_v63  ;;  %v1000_v63 = vld [vmem:[%s1681_s9 + $0x30] sm:$0xff] }
 0x115   : > { %1350 = vrcp.f32 %v602_v0  ;;  %v999_v0 = vld [vmem:[%s1681_s9 + $0x28] sm:$0xff] }
 0x116   : > { %1352 = vrcp.f32 %v603_v2  ;;  %v998_v2 = vld [vmem:[%s1681_s9 + $0x20] sm:$0xff] }
 0x122   : > { %v1351_v9 = vpop.eup %1350 }
 0x123   : > { %v1353_v10 = vpop.eup %1352  ;;  %v608_v11 = vmul.f32 %v1351_v9, %v594_v58 }
 0x124   : > { %v609_v12 = vmul.f32 %v1353_v10, %v595_v59  ;;  %v1005_v59 = vld [vmem:[%s1681_s9 + $0x58] sm:$0xff] }
 0x125   : > { %625 = vrot.lane.b32.xlu0 %v608_v11, %s1374_s27  ;;  %v620_v13 = vrot.slane %v608_v11, 1  ;;  %v613_v14 = vrot.slane %v608_v11, 7 }
 0x126   : > { %v621_v15 = vrot.slane %v609_v12, 1  ;;  %v614_v16 = vrot.slane %v609_v12, 7 }
 0x127   : > { %v618_v21 = vsel %vm612_vm3, 0.0, %v613_v14 }
 0x128   : > { %v622_v17 = vsel %vm619_vm2, %v620_v13, %v621_v15  ;;  %v615_v18 = vsel %vm612_vm3, %v613_v14, %v614_v16  ;;  %v624_v19 = vsel %vm619_vm2, %v621_v15, 0.0 }
 0x129   : > { %632 = vrot.lane.b32.xlu1 %v622_v17, %s1375_s28  ;;  %627 = vrot.lane.b32.xlu0 %v609_v12, %s1374_s27 }
 0x12d   : > { %634 = vrot.lane.b32.xlu1 %v624_v19, %s1375_s28 }
 0x197   : > { %v626_v20 = vpop.permute.xlu0 %625 }
 0x198   : > { %v638_v22 = vsel %vm395_vm1, %v618_v21, %v626_v20  ;;  %v1175_v20 = vld [vmem:[%s1679_s7] ss:$0 sm:$0xff] }
 0x19b   : > { %v633_v23 = vpop.permute.xlu1 %632  ;;  %v628_v25 = vpop.permute.xlu0 %627 }
 0x19c   : > { %v641_v24 = vsel %vm640_vm4, %v638_v22, %v633_v23  ;;  %v639_v26 = vsel %vm395_vm1, %v615_v18, %v628_v25  ;;  %v1176_v23 = vld [vmem:[%s1680_s8] ss:$0 sm:$0xff] }
 0x19d   : > { %1280 = vmatprep.mubr.msk.f32.mxu0 %vm662_vm5, %v641_v24 }
 0x19f   : > { %v635_v27 = vpop.permute.xlu1 %634 }
 0x1a0   : > { %v642_v28 = vsel %vm640_vm4, %v639_v26, %v635_v27 }
 0x1a1   : > { %1281 = vmatmul.mubr.msk.f32.vlgmr.msra.gmra.mxu0 %vm662_vm5, %v642_v28 }
 0x261   : > { %v1282_v34 = vpop.f32.mrf.mxu0 }
 0x262   : > { %v1576_v35 = vadd.f32 %v1282_v34, %v1170_v33  ;;  %v995_v34 = vld [vmem:[%s1681_s9 + $0x8] sm:$0xff] }
 0x263   : > { %v735_v36 = vpop.f32.mrf.mxu0 }
 0x264   : > { %v760_v37 = vmul.f32 %v1576_v35, %v1576_v35  ;;  %v1580_v38 = vadd.f32 %v1170_v33, %v735_v36  ;;  %v751_v39 = vsel %vm395_vm1, %v1576_v35, 0.0  ;;  %v996_v33 = vld [vmem:[%s1681_s9 + $0x10] sm:$0xff] }
 0x266   : > { %v750_v40 = vsel %vm395_vm1, %v1580_v38, 0.0  ;;  %v759_v41 = vmul.f32 %v1580_v38, %v1580_v38  ;;  %v762_v43 = vsel %vm395_vm1, %v760_v37, 0.0 }
 0x267   : > { %v752_v42 = vadd.f32 %v751_v39, %v750_v40 }
 0x268   : > { %v761_v44 = vsel %vm395_vm1, %v759_v41, 0.0 }
 0x269   : > { %v753_v45 = vrot.slane %v752_v42, 4  ;;  %v763_v47 = vadd.f32 %v762_v43, %v761_v44 }
 0x26b   : > { %v754_v48 = vadd.f32 %v753_v45, %v752_v42  ;;  %v764_v49 = vrot.slane %v763_v47, 4 }
 0x26d   : > { %v755_v50 = vrot.slane %v754_v48, 2  ;;  %v765_v51 = vadd.f32 %v764_v49, %v763_v47 }
 0x26f   : > { %v766_v52 = vrot.slane %v765_v51, 2  ;;  %v756_v53 = vadd.f32 %v755_v50, %v754_v48 }
 0x271   : > { %v757_v54 = vrot.slane %v756_v53, 1  ;;  %v767_v55 = vadd.f32 %v766_v52, %v765_v51 }
 0x273   : > { %v758_v56 = vadd.f32 %v757_v54, %v756_v53  ;;  %v768_v57 = vrot.slane %v767_v55, 1 }
 0x275   : > { %1292 = vmatmul.mubr.msk.f32.vlgmr.msra.gmra.mxu1 %vm395_vm1, %v758_v56  ;;  %v769_v58 = vadd.f32 %v768_v57, %v767_v55  ;;  %v1179_v57 = vld [vmem:[%s1682_s10] ss:$0 sm:$0xff] }
 0x276   : > { %1295 = vmatpush3.msra.mxu1 %v747_v29  ;;  %1302 = vmatprep.mubr.msk.f32.mxu1 %vm1373_vm0, %v1372_v1 }
 0x277   : > { %1296 = vmatprep.subr.mxu1 %v1372_v1 }
 0x278   : > { %1297 = vmatpush3.msra.mxu1 %v746_v30 }
 0x279   : > { %1298 = vmatprep.subr.mxu1 %v1372_v1 }
 0x27a   : > { %1299 = vmatpush3.msra.mxu1 %v745_v31 }
 0x27b   : > { %1300 = vmatprep.subr.mxu1 %v1372_v1  ;;  %v1002_v1 = vld [vmem:[%s1681_s9 + $0x40] sm:$0xff] }
 0x27c   : > { %1301 = vmatpush3.msra.mxu1 %v744_v32 }
 0x27d   : > { %1303 = vmatmul.mubr.msk.f32.vlgmr.msra.gmra.mxu1 %vm395_vm1, %v769_v58  ;;  %1305 = vmatprep.subr.mxu1 %v1005_v59 }
 0x27e   : > { %1306 = vmatpush3.msra.mxu1 %v1005_v59 }
 0x27f   : > { %1307 = vmatprep.subr.mxu1 %v1004_v60 }
 0x280   : > { %1308 = vmatpush3.msra.mxu1 %v1004_v60 }
 0x281   : > { %1309 = vmatprep.subr.mxu1 %v1003_v61 }
 0x282   : > { %1310 = vmatpush3.msra.mxu1 %v1003_v61 }
 0x283   : > { %1311 = vmatprep.subr.mxu1 %v1002_v1 }
 0x284   : > { %1312 = vmatpush3.msra.mxu1 %v1002_v1 }
 0x285   : > { %1313 = vmatprep.subr.mxu1 %v1001_v62 }
 0x286   : > { %1314 = vmatpush3.msra.mxu1 %v1001_v62 }
 0x287   : > { %1315 = vmatprep.subr.mxu1 %v1000_v63 }
 0x288   : > { %1316 = vmatpush3.msra.mxu1 %v1000_v63 }
 0x289   : > { %1317 = vmatprep.subr.mxu1 %v999_v0 }
 0x28a   : > { %1318 = vmatpush3.msra.mxu1 %v999_v0 }
 0x28b   : > { %1319 = vmatprep.subr.mxu1 %v998_v2 }
 0x28c   : > { %1320 = vmatpush3.msra.mxu1 %v998_v2 }
 0x28d   : > { %1321 = vmatprep.subr.mxu1 %v997_v3 }
 0x28e   : > { %1322 = vmatpush3.msra.mxu1 %v997_v3 }
 0x28f   : > { %1323 = vmatprep.subr.mxu1 %v996_v33 }
 0x290   : > { %1324 = vmatpush3.msra.mxu1 %v996_v33 }
 0x291   : > { %1325 = vmatprep.subr.mxu1 %v995_v34 }
 0x292   : > { %1326 = vmatpush3.msra.mxu1 %v995_v34 }
 0x335   : > { %v839_v4 = vpop.f32.mrf.mxu1 }
 0x336   : > { %v843_v8 = vmul.f32 0.0625, %v839_v4 }
 0x337   : > { %v1293_v7 = vpop.f32.mrf.mxu1 }
 0x338   : > { %v918_v10 = vmul.f32 %v843_v8, %v843_v8  ;;  %v923_v15 = vrot.slane %v843_v8, %v1519_v46 }
 0x33a   : > { %v924_v17 = vsub.f32 %v1580_v38, %v923_v15  ;;  %v925_v18 = vsub.f32 %v1576_v35, %v923_v15  ;;  %v994_v35 = vld [vmem:[%s1681_s9] sm:$0xff] }
 0x33b   : > { %1327 = vmatprep.subr.mxu1 %v994_v35 }
 0x33c   : > { %1328 = vmatpush3.msra.mxu1 %v994_v35 }
 0x33d   : > { %v913_v9 = vpop.f32.mrf.mxu1 }
 0x33e   : > { %v917_v11 = vmul.f32 0.0625, %v913_v9 }
 0x33f   : > { %v1304_v12 = vpop.f32.mrf.mxu1 }
 0x340   : > { %v919_v13 = vsub.f32 %v917_v11, %v918_v10 }
 0x342   : > { %v926_v14 = vadd.f32 1e-05, %v919_v13 }
 0x344   : > { %1354 = vrsqrt.f32 %v926_v14 }
 0x351   : > { %v1355_v16 = vpop.eup %1354 }
 0x352   : > { %v931_v19 = vrot.slane %v1355_v16, %v1519_v46 }
 0x354   : > { %v933_v21 = vmul.f32 %v931_v19, %v925_v18  ;;  %v932_v22 = vmul.f32 %v931_v19, %v924_v17 }
 0x356   : > { %v941_v24 = vmul.f32 %v1175_v20, %v933_v21  ;;  %v940_v25 = vmul.f32 %v1175_v20, %v932_v22 }
 0x358   : > { %v949_v26 = vadd.f32 %v1176_v23, %v941_v24  ;;  %v948_v27 = vadd.f32 %v1176_v23, %v940_v25 }
 0x35a   : > { %v1178_v28 = vmul.f32 -1.442695, %v949_v26  ;;  %v1177_v29 = vmul.f32 -1.442695, %v948_v27 }
 0x35c   : > { %1356 = vpow2.f32 %v1178_v28 }
 0x35d   : > { %1358 = vpow2.f32 %v1177_v29 }
 0x369   : > { %v1357_v30 = vpop.eup %1356 }
 0x36a   : > { %v1359_v46 = vpop.eup %1358  ;;  %v957_v31 = vadd.f32 1.0, %v1357_v30 }
 0x36b   : > { %v956_v32 = vadd.f32 1.0, %v1359_v46 }
 0x36c   : > { %1360 = vrcp.f32 %v957_v31 }
 0x36d   : > { %1362 = vrcp.f32 %v956_v32 }
 0x379   : > { %v1361_v36 = vpop.eup %1360 }
 0x37a   : > { %v1363_v37 = vpop.eup %1362  ;;  %v963_v38 = vmul.f32 %v1361_v36, %v949_v26 }
 0x37b   : > { %v962_v39 = vmul.f32 %v1363_v37, %v948_v27 }
 0x37c   : > { %979 = vrot.lane.b32.xlu1 %v963_v38, %s1374_s27  ;;  %v973_v40 = vrot.slane %v963_v38, 1  ;;  %v967_v41 = vrot.slane %v963_v38, 7 }
 0x37d   : > { %977 = vrot.lane.b32.xlu0 %v962_v39, %s1374_s27  ;;  %v972_v42 = vrot.slane %v962_v39, 1  ;;  %v966_v43 = vrot.slane %v962_v39, 7 }
 0x37e   : > { %v976_v44 = vsel %vm619_vm2, %v973_v40, 0.0 }
 0x37f   : > { %v974_v45 = vsel %vm619_vm2, %v972_v42, %v973_v40  ;;  %v968_v47 = vsel %vm612_vm3, %v966_v43, %v967_v41  ;;  %v971_v51 = vsel %vm612_vm3, 0.0, %v966_v43 }
 0x380   : > { %986 = vrot.lane.b32.xlu1 %v976_v44, %s1375_s28 }
 0x381   : > { %984 = vrot.lane.b32.xlu0 %v974_v45, %s1375_s28 }
 0x3ee   : > { %v980_v48 = vpop.permute.xlu1 %979 }
 0x3ef   : > { %v978_v49 = vpop.permute.xlu0 %977  ;;  %v991_v50 = vsel %vm395_vm1, %v968_v47, %v980_v48 }
 0x3f0   : > { %v990_v53 = vsel %vm395_vm1, %v971_v51, %v978_v49 }
 0x3f2   : > { %v987_v52 = vpop.permute.xlu1 %986 }
 0x3f3   : > { %v993_v54 = vsel %vm640_vm4, %v991_v50, %v987_v52  ;;  %v985_v55 = vpop.permute.xlu0 %984 }
 0x3f4   : > { %v992_v56 = vsel %vm640_vm4, %v990_v53, %v985_v55 }
 0x3f5   : > { %1329 = vmatprep.mubr.msk.f32.mxu1 %vm662_vm5, %v992_v56 }
 0x3f6   : > { %1330 = vmatmul.mubr.msk.f32.vlgmr.msra.gmra.mxu1 %vm662_vm5, %v993_v54 }
 0x4b6   : > { %v1331_v58 = vpop.f32.mrf.mxu1 }
 0x4b7   : > { %v1091_v59 = vadd.f32 %v1331_v58, %v1179_v57 }
 0x4b8   : > { %v1085_v60 = vpop.f32.mrf.mxu1 }
 0x4b9   : > { %v1095_v61 = vadd.f32 %v1091_v59, %v1474_v6  ;;  %v1086_v1 = vadd.f32 %v1179_v57, %v1085_v60 }
 0x4bb   : > { %v1097_v62 = vmul.f32 0.70710677, %v1095_v61  ;;  %v1094_v63 = vadd.f32 %v1086_v1, %v1472_v5 }
 0x4bd   : > { %1099 = vst.msk [vmem:[%s386_s24 + $0x8] sm:$0xff] %vm395_vm1, %v1097_v62  ;;  %v1096_v0 = vmul.f32 0.70710677, %v1094_v63 }
 0x4bf   : > { %1098 = vst.msk [vmem:[%s386_s24] sm:$0xff] %vm395_vm1, %v1096_v0 }
 0x4c0 PF: > { %s21_s17 = sadd.s32 1, %s1370_s17  }
 0x4c1   : > { %p18_p4 = scmp.ge.s32.totalorder %s21_s17, 4  }
 0x4c3   :  { %20 = sbr.rel (!%p18_p4) target bundleno = 1 (0x1), region = 94 }

// kernel: unet_forward.16
= control target key start
LH: loop header
LB: loop body
LE: loop exit
PB: predicated region body
PF: predicated region fallthrough
CT: control target
= control target key end

     0   :  { %s1317_s17 = smov 0   ;;  %s1677_s0 = inlined_call_operand.vmem [shape: f32[2,8,64], index: 0, kind: input, shape index: {}]   ;;  %s1678_s1 = inlined_call_operand.vmem [shape: f32[64,64], index: 1, kind: input, shape index: {}, may-alias: {1,6}]   ;;  %s1679_s2 = inlined_call_operand.vmem [shape: f32[1,64], index: 2, kind: input, shape index: {}]   ;;  %s1680_s3 = inlined_call_operand.vmem [shape: f32[1,64], index: 3, kind: input, shape index: {}]   ;;  %s1681_s4 = inlined_call_operand.vmem [shape: f32[192,64], index: 4, kind: input, shape index: {}]   ;;  %s1682_s5 = inlined_call_operand.vmem [shape: f32[1,64], index: 5, kind: input, shape index: {}]   ;;  %s1683_s6 = inlined_call_operand.vmem [shape: f32[64,64], index: 6, kind: input, shape index: {}, may-alias: {1,6}]   ;;  %s1684_s7 = inlined_call_operand.vmem [shape: f32[1,64], index: 7, kind: input, shape index: {}]   ;;  %s1685_s8 = inlined_call_operand.vmem [shape: f32[1,64], index: 8, kind: input, shape index: {}]   ;;  %s1686_s9 = inlined_call_operand.vmem [shape: f32[192,64], index: 9, kind: input, shape index: {}]   ;;  %s1687_s10 = inlined_call_operand.vmem [shape: f32[1,64], index: 10, kind: input, shape index: {}]   ;;  %s1688_s11 = inlined_call_operand.vmem [shape: f32[2,8,64], index: 11, kind: output, shape index: {}]  }
   0x1 LB: > { %s1088_s18 = sadd.s32 4294967295, %s1252_s17   ;;  %p1092_p0 = scmp.ge.s32.totalorder %s1252_s17, 1  ;;  %s1252_s17 = sphi %s1317_s17, %s21_s17  }
   0x2   : > { %p336_p1 = scmp.lt.s32.totalorder %s1252_s17, 3 }
   0x4   : > { %p337_p2 = pnand %p1092_p0, %p336_p1 }
   0x5   : > { %p374_p3 = scmp.lt.s32.totalorder (!%p337_p2), %s1088_s18, 1  ;;  %s1256_s27 = smov (!%p337_p2), 64  }
   0x6   : > { %340 = sbr.rel (%p337_p2) target bundleno = 1210 (0x4ba), region = 64 }
   0xb   : > { %v390_v0 = vld [vmem:[%s1678_s1 + $0x38] sm:$0xff]  ;;  %v1254_v1 = vmov 0.0   ;;  %v389_v2 = vld [vmem:[%s1678_s1 + $0x30] sm:$0xff]  ;;  %vm1255_vm0 = vmmov 0   ;;  %s1690_s18 = smov (!%p374_p3, %s1088_s18), 1  ;;  %v388_v3 = vld [vmem:[%s1678_s1 + $0x28] sm:$0xff]  ;;  %v559_v56 = vlaneseq }
   0xc   : > { %1147 = vmatprep.subr.mxu0 %v1254_v1  ;;  %1163 = vmatprep.mubr.msk.f32.mxu0 %vm1255_vm0, %v1254_v1  ;;  %s1093_s25 = sshll.u32 %s1690_s18, 3  ;;  %vm393_vm1 = vcmask 523264   ;;  %v387_v4 = vld [vmem:[%s1678_s1 + $0x20] sm:$0xff]  ;;  %v386_v6 = vld [vmem:[%s1678_s1 + $0x18] sm:$0xff]  ;;  %v385_v10 = vld [vmem:[%s1678_s1 + $0x10] sm:$0xff]  ;;  %vm599_vm2 = vcmask 1046528  }
   0xd   : > { %1148 = vmatpush3.msra.mxu0 %v390_v0  ;;  %1185 = vmatprep.subr.mxu1 %v1254_v1  ;;  %s377_s30 = scalar_lea.vmem %s1677_s0, %s1093_s25  ;;  %v384_v13 = vld [vmem:[%s1678_s1 + $0x8] sm:$0xff]  ;;  %v383_v16 = vld [vmem:[%s1678_s1] sm:$0xff]  ;;  %v620_v25 = vld [vmem:[%s1681_s4 + $0x78] sm:$0xff]  ;;  %v560_v58 = vshrl.u32 %v559_v56, 7  ;;  %vm595_vm3 = vcmask 1040384   ;;  %s381_s24 = scalar_lea.vmem %s1688_s11, %s1093_s25 }
   0xe   : > { %1149 = vmatprep.subr.mxu0 %v1254_v1  ;;  %1201 = vmatprep.mubr.msk.f32.mxu1 %vm1255_vm0, %v1254_v1  ;;  %v1353_v5 = vld [vmem:[%s377_s30] sm:$0xff]  ;;  %v619_v26 = vld [vmem:[%s1681_s4 + $0x70] sm:$0xff]  ;;  %v618_v27 = vld [vmem:[%s1681_s4 + $0x68] sm:$0xff] }
   0xf   : > { %1150 = vmatpush3.msra.mxu0 %v389_v2  ;;  %v394_v7 = vsel %vm393_vm1, %v1353_v5, 0.0  ;;  %v401_v8 = vmul.f32 %v1353_v5, %v1353_v5  ;;  %v617_v28 = vld [vmem:[%s1681_s4 + $0x60] sm:$0xff]  ;;  %v616_v29 = vld [vmem:[%s1681_s4 + $0x58] sm:$0xff]  ;;  %v615_v30 = vld [vmem:[%s1681_s4 + $0x50] sm:$0xff]  ;;  %v1482_v59 = vsub.s32 0, %v560_v58 }
  0x10   : > { %1151 = vmatprep.subr.mxu0 %v1254_v1  ;;  %v395_v9 = vrot.slane %v394_v7, 4  ;;  %v614_v31 = vld [vmem:[%s1681_s4 + $0x48] sm:$0xff]  ;;  %v613_v32 = vld [vmem:[%s1681_s4 + $0x40] sm:$0xff]  ;;  %v612_v33 = vld [vmem:[%s1681_s4 + $0x38] sm:$0xff] }
  0x11   : > { %1152 = vmatpush3.msra.mxu0 %v388_v3  ;;  %v402_v11 = vsel %vm393_vm1, %v401_v8, 0.0  ;;  %v611_v34 = vld [vmem:[%s1681_s4 + $0x30] sm:$0xff]  ;;  %v610_v35 = vld [vmem:[%s1681_s4 + $0x28] sm:$0xff]  ;;  %v609_v36 = vld [vmem:[%s1681_s4 + $0x20] sm:$0xff] }
  0x12   : > { %1153 = vmatprep.subr.mxu0 %v1254_v1  ;;  %v396_v12 = vadd.f32 %v395_v9, %v394_v7  ;;  %v403_v15 = vrot.slane %v402_v11, 4  ;;  %v608_v37 = vld [vmem:[%s1681_s4 + $0x18] sm:$0xff]  ;;  %v607_v38 = vld [vmem:[%s1681_s4 + $0x10] sm:$0xff]  ;;  %v606_v39 = vld [vmem:[%s1681_s4 + $0x8] sm:$0xff] }
  0x13   : > { %1154 = vmatpush3.msra.mxu0 %v387_v4  ;;  %v605_v40 = vld [vmem:[%s1681_s4] sm:$0xff]  ;;  %v628_v41 = vld [vmem:[%s1681_s4 + $0xb8] sm:$0xff]  ;;  %v627_v42 = vld [vmem:[%s1681_s4 + $0xb0] sm:$0xff] }
  0x14   : > { %1155 = vmatprep.subr.mxu0 %v1254_v1  ;;  %v397_v14 = vrot.slane %v396_v12, 2  ;;  %v404_v19 = vadd.f32 %v403_v15, %v402_v11  ;;  %v626_v43 = vld [vmem:[%s1681_s4 + $0xa8] sm:$0xff]  ;;  %v625_v44 = vld [vmem:[%s1681_s4 + $0xa0] sm:$0xff]  ;;  %v624_v45 = vld [vmem:[%s1681_s4 + $0x98] sm:$0xff] }
  0x15   : > { %1156 = vmatpush3.msra.mxu0 %v386_v6  ;;  %v623_v46 = vld [vmem:[%s1681_s4 + $0x90] sm:$0xff]  ;;  %v622_v47 = vld [vmem:[%s1681_s4 + $0x88] sm:$0xff]  ;;  %v931_v58 = vld [vmem:[%s1686_s9 + $0x18] sm:$0xff] }
  0x16   : > { %1157 = vmatprep.subr.mxu0 %v1254_v1  ;;  %v398_v17 = vadd.f32 %v397_v14, %v396_v12  ;;  %v405_v21 = vrot.slane %v404_v19, 2  ;;  %v933_v56 = vld [vmem:[%s1686_s9 + $0x28] sm:$0xff] }
  0x17   : > { %1158 = vmatpush3.msra.mxu0 %v385_v10 }
  0x18   : > { %1159 = vmatprep.subr.mxu0 %v1254_v1  ;;  %v399_v18 = vrot.slane %v398_v17, 1  ;;  %v406_v22 = vadd.f32 %v405_v21, %v404_v19  ;;  %v716_v19 = vld [vmem:[%s1683_s6 + $0x38] sm:$0xff]  ;;  %v714_v21 = vld [vmem:[%s1683_s6 + $0x28] sm:$0xff] }
  0x19   : > { %1160 = vmatpush3.msra.mxu0 %v384_v13  ;;  %1186 = vmatpush3.msra.mxu1 %v716_v19 }
  0x1a   : > { %1161 = vmatprep.subr.mxu0 %v1254_v1  ;;  %v400_v20 = vadd.f32 %v399_v18, %v398_v17  ;;  %v407_v23 = vrot.slane %v406_v22, 1  ;;  %1187 = vmatprep.subr.mxu1 %v1254_v1 }
  0x1b   : > { %1162 = vmatpush3.msra.mxu0 %v383_v16 }
  0x1c   : > { %1166 = vmatprep.subr.mxu0 %v1254_v1  ;;  %1164 = vmatmul.mubr.msk.f32.vlgmr.msra.gmra.mxu0 %vm393_vm1, %v400_v20  ;;  %v408_v24 = vadd.f32 %v407_v23, %v406_v22  ;;  %v715_v20 = vld [vmem:[%s1683_s6 + $0x30] sm:$0xff]  ;;  %v713_v22 = vld [vmem:[%s1683_s6 + $0x20] sm:$0xff]  ;;  %v712_v23 = vld [vmem:[%s1683_s6 + $0x18] sm:$0xff] }
  0x1d   : > { %1167 = vmatpush3.msra.mxu0 %v390_v0  ;;  %1182 = vmatprep.mubr.msk.f32.mxu0 %vm1255_vm0, %v1254_v1  ;;  %v1097_v0 = vld [vmem:[%s1679_s2] ss:$0 sm:$0xff] }
  0x1e   : > { %1168 = vmatprep.subr.mxu0 %v1254_v1  ;;  %1188 = vmatpush3.msra.mxu1 %v715_v20 }
  0x1f   : > { %1169 = vmatpush3.msra.mxu0 %v389_v2  ;;  %1189 = vmatprep.subr.mxu1 %v1254_v1 }
  0x20   : > { %1170 = vmatprep.subr.mxu0 %v1254_v1  ;;  %1190 = vmatpush3.msra.mxu1 %v714_v21 }
  0x21   : > { %1171 = vmatpush3.msra.mxu0 %v388_v3  ;;  %v1098_v3 = vld [vmem:[%s1680_s3] ss:$0 sm:$0xff]  ;;  %1191 = vmatprep.subr.mxu1 %v1254_v1 }
  0x22   : > { %1172 = vmatprep.subr.mxu0 %v1254_v1  ;;  %1192 = vmatpush3.msra.mxu1 %v713_v22 }
  0x23   : > { %1173 = vmatpush3.msra.mxu0 %v387_v4  ;;  %1193 = vmatprep.subr.mxu1 %v1254_v1 }
  0x24   : > { %1174 = vmatprep.subr.mxu0 %v1254_v1  ;;  %1194 = vmatpush3.msra.mxu1 %v712_v23 }
  0x25   : > { %1175 = vmatpush3.msra.mxu0 %v386_v6  ;;  %1195 = vmatprep.subr.mxu1 %v1254_v1 }
  0x26   : > { %1176 = vmatprep.subr.mxu0 %v1254_v1 }
  0x27   : > { %1177 = vmatpush3.msra.mxu0 %v385_v10  ;;  %v621_v10 = vld [vmem:[%s1681_s4 + $0x80] sm:$0xff] }
  0x28   : > { %1178 = vmatprep.subr.mxu0 %v1254_v1 }
  0x29   : > { %1179 = vmatpush3.msra.mxu0 %v384_v13 }
  0x2a   : > { %1180 = vmatprep.subr.mxu0 %v1254_v1 }
  0x2b   : > { %1181 = vmatpush3.msra.mxu0 %v383_v16 }
  0x2c   : > { %1183 = vmatmul.mubr.msk.f32.vlgmr.msra.gmra.mxu0 %vm393_vm1, %v408_v24  ;;  %639 = vmatprep.subr.mxu0 %v1254_v1  ;;  %v711_v24 = vld [vmem:[%s1683_s6 + $0x10] sm:$0xff] }
  0x2d   : > { %640 = vmatpush1.msra.mxu0 %v620_v25  ;;  %1196 = vmatpush3.msra.mxu1 %v711_v24  ;;  %v710_v25 = vld [vmem:[%s1683_s6 + $0x8] sm:$0xff] }
  0x2e   : > { %641 = vmatprep.subr.mxu0 %v1254_v1  ;;  %1197 = vmatprep.subr.mxu1 %v1254_v1 }
  0x2f   : > { %642 = vmatpush1.msra.mxu0 %v619_v26  ;;  %1198 = vmatpush3.msra.mxu1 %v710_v25  ;;  %v709_v26 = vld [vmem:[%s1683_s6] sm:$0xff] }
  0x30   : > { %643 = vmatprep.subr.mxu0 %v1254_v1  ;;  %1199 = vmatprep.subr.mxu1 %v1254_v1 }
  0x31   : > { %644 = vmatpush1.msra.mxu0 %v618_v27  ;;  %1200 = vmatpush3.msra.mxu1 %v709_v26  ;;  %v1100_v27 = vld [vmem:[%s1682_s5] ss:$0 sm:$0xff] }
  0x32   : > { %645 = vmatprep.subr.mxu0 %v1254_v1  ;;  %1204 = vmatprep.subr.mxu1 %v1254_v1 }
  0x33   : > { %646 = vmatpush1.msra.mxu0 %v617_v28 }
  0x34   : > { %647 = vmatprep.subr.mxu0 %v1254_v1 }
  0x35   : > { %648 = vmatpush1.msra.mxu0 %v616_v29 }
  0x36   : > { %649 = vmatprep.subr.mxu0 %v1254_v1 }
  0x37   : > { %650 = vmatpush1.msra.mxu0 %v615_v30 }
  0x38   : > { %651 = vmatprep.subr.mxu0 %v1254_v1 }
  0x39   : > { %652 = vmatpush1.msra.mxu0 %v614_v31 }
  0x3a   : > { %653 = vmatprep.subr.mxu0 %v1254_v1 }
  0x3b   : > { %654 = vmatpush1.msra.mxu0 %v613_v32 }
  0x3c   : > { %655 = vmatprep.subr.mxu0 %v1254_v1 }
  0x3d   : > { %656 = vmatpush1.msra.mxu0 %v612_v33 }
  0x3e   : > { %657 = vmatprep.subr.mxu0 %v1254_v1 }
  0x3f   : > { %658 = vmatpush1.msra.mxu0 %v611_v34 }
  0x40   : > { %659 = vmatprep.subr.mxu0 %v1254_v1 }
  0x41   : > { %660 = vmatpush1.msra.mxu0 %v610_v35 }
  0x42   : > { %661 = vmatprep.subr.mxu0 %v1254_v1 }
  0x43   : > { %662 = vmatpush1.msra.mxu0 %v609_v36 }
  0x44   : > { %663 = vmatprep.subr.mxu0 %v1254_v1 }
  0x45   : > { %664 = vmatpush1.msra.mxu0 %v608_v37 }
  0x46   : > { %665 = vmatprep.subr.mxu0 %v1254_v1 }
  0x47   : > { %666 = vmatpush1.msra.mxu0 %v607_v38 }
  0x48   : > { %667 = vmatprep.subr.mxu0 %v1254_v1 }
  0x49   : > { %668 = vmatpush1.msra.mxu0 %v606_v39 }
  0x4a   : > { %669 = vmatprep.subr.mxu0 %v1254_v1 }
  0x4b   : > { %670 = vmatpush1.msra.mxu0 %v605_v40 }
  0x4c   : > { %687 = vmatprep.subr.mxu0 %v1254_v1 }
  0x4d   : > { %688 = vmatpush2.msra.mxu0 %v628_v41 }
  0x4e   : > { %689 = vmatprep.subr.mxu0 %v1254_v1 }
  0x4f   : > { %690 = vmatpush2.msra.mxu0 %v627_v42 }
  0x50   : > { %691 = vmatprep.subr.mxu0 %v1254_v1 }
  0x51   : > { %692 = vmatpush2.msra.mxu0 %v626_v43 }
  0x52   : > { %693 = vmatprep.subr.mxu0 %v1254_v1 }
  0x53   : > { %694 = vmatpush2.msra.mxu0 %v625_v44 }
  0x54   : > { %695 = vmatprep.subr.mxu0 %v1254_v1 }
  0x55   : > { %696 = vmatpush2.msra.mxu0 %v624_v45 }
  0x56   : > { %697 = vmatprep.subr.mxu0 %v1254_v1 }
  0x57   : > { %698 = vmatpush2.msra.mxu0 %v623_v46  ;;  %v943_v46 = vld [vmem:[%s1686_s9 + $0x78] sm:$0xff] }
  0x58   : > { %699 = vmatprep.subr.mxu0 %v1254_v1 }
  0x59   : > { %700 = vmatpush2.msra.mxu0 %v622_v47  ;;  %v942_v47 = vld [vmem:[%s1686_s9 + $0x70] sm:$0xff] }
  0x5a   : > { %701 = vmatprep.subr.mxu0 %v1254_v1 }
  0x5b   : > { %702 = vmatpush2.msra.mxu0 %v621_v10 }
  0xdc   : > { %v478_v48 = vpop.f32.mrf.mxu0 }
  0xdd   : > { %v482_v50 = vmul.f32 0.0625, %v478_v48  ;;  %v941_v48 = vld [vmem:[%s1686_s9 + $0x68] sm:$0xff] }
  0xde   : > { %v1165_v49 = vpop.f32.mrf.mxu0 }
  0xdf   : > { %v557_v52 = vmul.f32 %v482_v50, %v482_v50  ;;  %v562_v60 = vrot.slane %v482_v50, %v1482_v59  ;;  %v940_v49 = vld [vmem:[%s1686_s9 + $0x60] sm:$0xff]  ;;  %v939_v50 = vld [vmem:[%s1686_s9 + $0x58] sm:$0xff] }
  0xe1   : > { %v563_v62 = vsub.f32 %v1353_v5, %v562_v60  ;;  %v930_v60 = vld [vmem:[%s1686_s9 + $0x10] sm:$0xff] }
  0xec   : > { %v552_v51 = vpop.f32.mrf.mxu0 }
  0xed   : > { %v556_v53 = vmul.f32 0.0625, %v552_v51  ;;  %v938_v51 = vld [vmem:[%s1686_s9 + $0x50] sm:$0xff] }
  0xee   : > { %v1184_v54 = vpop.f32.mrf.mxu0 }
  0xef   : > { %v558_v55 = vsub.f32 %v556_v53, %v557_v52  ;;  %v937_v52 = vld [vmem:[%s1686_s9 + $0x48] sm:$0xff]  ;;  %v936_v53 = vld [vmem:[%s1686_s9 + $0x40] sm:$0xff]  ;;  %v935_v54 = vld [vmem:[%s1686_s9 + $0x38] sm:$0xff] }
  0xf1   : > { %v564_v57 = vadd.f32 1e-05, %v558_v55  ;;  %v934_v55 = vld [vmem:[%s1686_s9 + $0x30] sm:$0xff] }
  0xf3   : > { %1234 = vrsqrt.f32 %v564_v57  ;;  %v932_v57 = vld [vmem:[%s1686_s9 + $0x20] sm:$0xff] }
 0x100   : > { %v1235_v61 = vpop.eup %1234 }
 0x101   : > { %v569_v63 = vrot.slane %v1235_v61, %v1482_v59  ;;  %v929_v61 = vld [vmem:[%s1686_s9 + $0x8] sm:$0xff] }
 0x103   : > { %v570_v2 = vmul.f32 %v569_v63, %v563_v62  ;;  %v928_v62 = vld [vmem:[%s1686_s9] sm:$0xff]  ;;  %v951_v63 = vld [vmem:[%s1686_s9 + $0xb8] sm:$0xff] }
 0x105   : > { %v577_v4 = vmul.f32 %v1097_v0, %v570_v2  ;;  %v950_v0 = vld [vmem:[%s1686_s9 + $0xb0] sm:$0xff]  ;;  %v949_v2 = vld [vmem:[%s1686_s9 + $0xa8] sm:$0xff] }
 0x107   : > { %v584_v6 = vadd.f32 %v1098_v3, %v577_v4  ;;  %v948_v3 = vld [vmem:[%s1686_s9 + $0xa0] sm:$0xff]  ;;  %v947_v4 = vld [vmem:[%s1686_s9 + $0x98] sm:$0xff] }
 0x109   : > { %v1099_v7 = vmul.f32 -1.442695, %v584_v6 }
 0x10b   : > { %1236 = vpow2.f32 %v1099_v7  ;;  %v945_v7 = vld [vmem:[%s1686_s9 + $0x88] sm:$0xff] }
 0x118   : > { %v1237_v8 = vpop.eup %1236 }
 0x119   : > { %v588_v9 = vadd.f32 1.0, %v1237_v8 }
 0x11b   : > { %1238 = vrcp.f32 %v588_v9 }
 0x128   : > { %v1239_v11 = vpop.eup %1238 }
 0x129   : > { %v591_v12 = vmul.f32 %v1239_v11, %v584_v6  ;;  %v946_v6 = vld [vmem:[%s1686_s9 + $0x90] sm:$0xff] }
 0x12b   : > { %601 = vrot.lane.b32.xlu0 %v591_v12, %s1256_s27  ;;  %v597_v13 = vrot.slane %v591_v12, 1  ;;  %v593_v15 = vrot.slane %v591_v12, 7 }
 0x12d   : > { %v600_v14 = vsel %vm599_vm2, %v597_v13, 0.0  ;;  %v596_v17 = vsel %vm595_vm3, 0.0, %v593_v15 }
 0x12e   : > { %1101 = vmatprep.mubr.msk.f32.mxu0 %vm393_vm1, %v600_v14 }
 0x19d   : > { %v602_v16 = vpop.permute.xlu0 %601 }
 0x19e   : > { %v604_v18 = vsel %vm393_vm1, %v596_v17, %v602_v16 }
 0x19f   : > { %704 = vmatmul.mubr.f32.vlgmr.msra.gmra.mxu0 %v604_v18 }
 0x25f   : > { %v705_v28 = vpop.f32.mrf.mxu0 }
 0x260   : > { %v1536_v29 = vadd.f32 %v1100_v27, %v705_v28 }
 0x261   : > { %v707_v30 = vpop.f32.mrf.mxu0 }
 0x262   : > { %v719_v31 = vsel %vm393_vm1, %v1536_v29, 0.0  ;;  %v726_v32 = vmul.f32 %v1536_v29, %v1536_v29 }
 0x263   : > { %v720_v33 = vrot.slane %v719_v31, 4 }
 0x264   : > { %v727_v35 = vsel %vm393_vm1, %v726_v32, 0.0 }
 0x265   : > { %v721_v34 = vadd.f32 %v720_v33, %v719_v31  ;;  %v728_v38 = vrot.slane %v727_v35, 4 }
 0x267   : > { %v722_v36 = vrot.slane %v721_v34, 2  ;;  %v729_v40 = vadd.f32 %v728_v38, %v727_v35 }
 0x269   : > { %v723_v37 = vadd.f32 %v722_v36, %v721_v34  ;;  %v730_v42 = vrot.slane %v729_v40, 2  ;;  %v1107_v36 = vld [vmem:[%s1687_s10] ss:$0 sm:$0xff] }
 0x26b   : > { %v724_v39 = vrot.slane %v723_v37, 1  ;;  %v731_v43 = vadd.f32 %v730_v42, %v729_v40 }
 0x26d   : > { %v725_v41 = vadd.f32 %v724_v39, %v723_v37  ;;  %v732_v44 = vrot.slane %v731_v43, 1 }
 0x26f   : > { %1202 = vmatmul.mubr.msk.f32.vlgmr.msra.gmra.mxu1 %vm393_vm1, %v725_v41  ;;  %v733_v45 = vadd.f32 %v732_v44, %v731_v43 }
 0x270   : > { %1205 = vmatpush3.msra.mxu1 %v716_v19  ;;  %1220 = vmatprep.mubr.msk.f32.mxu1 %vm1255_vm0, %v1254_v1 }
 0x271   : > { %1206 = vmatprep.subr.mxu1 %v1254_v1 }
 0x272   : > { %1207 = vmatpush3.msra.mxu1 %v715_v20 }
 0x273   : > { %1208 = vmatprep.subr.mxu1 %v1254_v1 }
 0x274   : > { %1209 = vmatpush3.msra.mxu1 %v714_v21 }
 0x275   : > { %1210 = vmatprep.subr.mxu1 %v1254_v1 }
 0x276   : > { %1211 = vmatpush3.msra.mxu1 %v713_v22  ;;  %v1105_v22 = vld [vmem:[%s1685_s8] ss:$0 sm:$0xff] }
 0x277   : > { %1212 = vmatprep.subr.mxu1 %v1254_v1 }
 0x278   : > { %1213 = vmatpush3.msra.mxu1 %v712_v23 }
 0x279   : > { %1214 = vmatprep.subr.mxu1 %v1254_v1 }
 0x27a   : > { %1215 = vmatpush3.msra.mxu1 %v711_v24 }
 0x27b   : > { %1216 = vmatprep.subr.mxu1 %v1254_v1 }
 0x27c   : > { %1217 = vmatpush3.msra.mxu1 %v710_v25 }
 0x27d   : > { %1218 = vmatprep.subr.mxu1 %v1254_v1 }
 0x27e   : > { %1219 = vmatpush3.msra.mxu1 %v709_v26 }
 0x27f   : > { %1221 = vmatmul.mubr.msk.f32.vlgmr.msra.gmra.mxu1 %vm393_vm1, %v733_v45  ;;  %962 = vmatprep.subr.mxu1 %v1254_v1 }
 0x280   : > { %963 = vmatpush1.msra.mxu1 %v943_v46 }
 0x281   : > { %964 = vmatprep.subr.mxu1 %v1254_v1 }
 0x282   : > { %965 = vmatpush1.msra.mxu1 %v942_v47 }
 0x283   : > { %966 = vmatprep.subr.mxu1 %v1254_v1 }
 0x284   : > { %967 = vmatpush1.msra.mxu1 %v941_v48 }
 0x285   : > { %968 = vmatprep.subr.mxu1 %v1254_v1 }
 0x286   : > { %969 = vmatpush1.msra.mxu1 %v940_v49 }
 0x287   : > { %970 = vmatprep.subr.mxu1 %v1254_v1 }
 0x288   : > { %971 = vmatpush1.msra.mxu1 %v939_v50 }
 0x289   : > { %972 = vmatprep.subr.mxu1 %v1254_v1 }
 0x28a   : > { %973 = vmatpush1.msra.mxu1 %v938_v51 }
 0x28b   : > { %974 = vmatprep.subr.mxu1 %v1254_v1 }
 0x28c   : > { %975 = vmatpush1.msra.mxu1 %v937_v52 }
 0x28d   : > { %976 = vmatprep.subr.mxu1 %v1254_v1 }
 0x28e   : > { %977 = vmatpush1.msra.mxu1 %v936_v53 }
 0x28f   : > { %978 = vmatprep.subr.mxu1 %v1254_v1 }
 0x290   : > { %979 = vmatpush1.msra.mxu1 %v935_v54 }
 0x291   : > { %980 = vmatprep.subr.mxu1 %v1254_v1 }
 0x292   : > { %981 = vmatpush1.msra.mxu1 %v934_v55 }
 0x293   : > { %982 = vmatprep.subr.mxu1 %v1254_v1 }
 0x294   : > { %983 = vmatpush1.msra.mxu1 %v933_v56 }
 0x295   : > { %984 = vmatprep.subr.mxu1 %v1254_v1 }
 0x296   : > { %985 = vmatpush1.msra.mxu1 %v932_v57 }
 0x297   : > { %986 = vmatprep.subr.mxu1 %v1254_v1 }
 0x298   : > { %987 = vmatpush1.msra.mxu1 %v931_v58 }
 0x299   : > { %988 = vmatprep.subr.mxu1 %v1254_v1 }
 0x29a   : > { %989 = vmatpush1.msra.mxu1 %v930_v60 }
 0x29b   : > { %990 = vmatprep.subr.mxu1 %v1254_v1 }
 0x29c   : > { %991 = vmatpush1.msra.mxu1 %v929_v61 }
 0x29d   : > { %992 = vmatprep.subr.mxu1 %v1254_v1 }
 0x29e   : > { %993 = vmatpush1.msra.mxu1 %v928_v62 }
 0x29f   : > { %1010 = vmatprep.subr.mxu1 %v1254_v1 }
 0x2a0   : > { %1011 = vmatpush2.msra.mxu1 %v951_v63 }
 0x2a1   : > { %1012 = vmatprep.subr.mxu1 %v1254_v1 }
 0x2a2   : > { %1013 = vmatpush2.msra.mxu1 %v950_v0 }
 0x2a3   : > { %1014 = vmatprep.subr.mxu1 %v1254_v1 }
 0x2a4   : > { %1015 = vmatpush2.msra.mxu1 %v949_v2 }
 0x2a5   : > { %1016 = vmatprep.subr.mxu1 %v1254_v1 }
 0x2a6   : > { %1017 = vmatpush2.msra.mxu1 %v948_v3 }
 0x2a7   : > { %1018 = vmatprep.subr.mxu1 %v1254_v1 }
 0x2a8   : > { %1019 = vmatpush2.msra.mxu1 %v947_v4 }
 0x2a9   : > { %1020 = vmatprep.subr.mxu1 %v1254_v1 }
 0x2aa   : > { %1021 = vmatpush2.msra.mxu1 %v946_v6 }
 0x2ab   : > { %1022 = vmatprep.subr.mxu1 %v1254_v1 }
 0x2ac   : > { %1023 = vmatpush2.msra.mxu1 %v945_v7 }
 0x2ad   : > { %1024 = vmatprep.subr.mxu1 %v1254_v1  ;;  %v1104_v1 = vld [vmem:[%s1684_s7] ss:$0 sm:$0xff] }
 0x32f   : > { %v803_v8 = vpop.f32.mrf.mxu1 }
 0x330   : > { %v807_v10 = vmul.f32 0.0625, %v803_v8 }
 0x331   : > { %v1203_v9 = vpop.f32.mrf.mxu1 }
 0x332   : > { %v882_v12 = vmul.f32 %v807_v10, %v807_v10  ;;  %v887_v17 = vrot.slane %v807_v10, %v1482_v59 }
 0x334   : > { %v888_v19 = vsub.f32 %v1536_v29, %v887_v17 }
 0x33f   : > { %v877_v11 = vpop.f32.mrf.mxu1 }
 0x340   : > { %v881_v13 = vmul.f32 0.0625, %v877_v11 }
 0x341   : > { %v1222_v14 = vpop.f32.mrf.mxu1 }
 0x342   : > { %v883_v15 = vsub.f32 %v881_v13, %v882_v12 }
 0x344   : > { %v889_v16 = vadd.f32 1e-05, %v883_v15 }
 0x346   : > { %1240 = vrsqrt.f32 %v889_v16 }
 0x353   : > { %v1241_v18 = vpop.eup %1240 }
 0x354   : > { %v894_v20 = vrot.slane %v1241_v18, %v1482_v59  ;;  %v944_v59 = vld [vmem:[%s1686_s9 + $0x80] sm:$0xff] }
 0x355   : > { %1025 = vmatpush2.msra.mxu1 %v944_v59 }
 0x356   : > { %v895_v21 = vmul.f32 %v894_v20, %v888_v19 }
 0x358   : > { %v902_v23 = vmul.f32 %v1104_v1, %v895_v21 }
 0x35a   : > { %v909_v24 = vadd.f32 %v1105_v22, %v902_v23 }
 0x35c   : > { %v1106_v25 = vmul.f32 -1.442695, %v909_v24 }
 0x35e   : > { %1242 = vpow2.f32 %v1106_v25 }
 0x36b   : > { %v1243_v26 = vpop.eup %1242 }
 0x36c   : > { %v913_v27 = vadd.f32 1.0, %v1243_v26 }
 0x36e   : > { %1244 = vrcp.f32 %v913_v27 }
 0x37b   : > { %v1245_v28 = vpop.eup %1244 }
 0x37c   : > { %v916_v29 = vmul.f32 %v1245_v28, %v909_v24 }
 0x37e   : > { %924 = vrot.lane.b32.xlu0 %v916_v29, %s1256_s27  ;;  %v921_v30 = vrot.slane %v916_v29, 1  ;;  %v918_v32 = vrot.slane %v916_v29, 7 }
 0x380   : > { %v923_v31 = vsel %vm599_vm2, %v921_v30, 0.0  ;;  %v920_v34 = vsel %vm595_vm3, 0.0, %v918_v32 }
 0x381   : > { %1108 = vmatprep.mubr.msk.f32.mxu1 %vm393_vm1, %v923_v31 }
 0x3f0   : > { %v925_v33 = vpop.permute.xlu0 %924 }
 0x3f1   : > { %v927_v35 = vsel %vm393_vm1, %v920_v34, %v925_v33 }
 0x3f2   : > { %1027 = vmatmul.mubr.f32.vlgmr.msra.gmra.mxu1 %v927_v35 }
 0x4b2   : > { %v1028_v37 = vpop.f32.mrf.mxu1 }
 0x4b3   : > { %v1029_v38 = vadd.f32 %v1107_v36, %v1028_v37 }
 0x4b4   : > { %v1030_v39 = vpop.f32.mrf.mxu1 }
 0x4b5   : > { %v1032_v40 = vadd.f32 %v1029_v38, %v1353_v5 }
 0x4b7   : > { %v1033_v41 = vmul.f32 0.70710677, %v1032_v40 }
 0x4b9   : > { %1034 = vst.msk [vmem:[%s381_s24] sm:$0xff] %vm393_vm1, %v1033_v41 }
 0x4ba PF: > { %s21_s17 = sadd.s32 1, %s1252_s17  }
 0x4bb   : > { %p18_p4 = scmp.ge.s32.totalorder %s21_s17, 4  }
 0x4bd   :  { %20 = sbr.rel (!%p18_p4) target bundleno = 1 (0x1), region = 94 }

// kernel: unet_forward.15
= control target key start
LH: loop header
LB: loop body
LE: loop exit
PB: predicated region body
PF: predicated region fallthrough
CT: control target
= control target key end

     0   :  { %s1492_s25 = smov 0   ;;  %s1808_s0 = inlined_call_operand.vmem [shape: f32[2,8,32], index: 0, kind: input, shape index: {}]   ;;  %s1809_s1 = inlined_call_operand.vmem [shape: f32[32,32], index: 1, kind: input, shape index: {}]   ;;  %s1810_s2 = inlined_call_operand.vmem [shape: f32[1,32], index: 2, kind: input, shape index: {}]   ;;  %s1811_s3 = inlined_call_operand.vmem [shape: f32[1,32], index: 3, kind: input, shape index: {}]   ;;  %s1812_s4 = inlined_call_operand.vmem [shape: f32[96,64], index: 4, kind: input, shape index: {}]   ;;  %s1813_s5 = inlined_call_operand.vmem [shape: f32[1,64], index: 5, kind: input, shape index: {}]   ;;  %s1814_s6 = inlined_call_operand.vmem [shape: f32[64,64], index: 6, kind: input, shape index: {}]   ;;  %s1815_s7 = inlined_call_operand.vmem [shape: f32[1,64], index: 7, kind: input, shape index: {}]   ;;  %s1816_s8 = inlined_call_operand.vmem [shape: f32[1,64], index: 8, kind: input, shape index: {}]   ;;  %s1817_s9 = inlined_call_operand.vmem [shape: f32[192,64], index: 9, kind: input, shape index: {}]   ;;  %s1818_s10 = inlined_call_operand.vmem [shape: f32[1,64], index: 10, kind: input, shape index: {}]   ;;  %s1819_s11 = inlined_call_operand.vmem [shape: f32[32,64], index: 11, kind: input, shape index: {}]   ;;  %s1820_s12 = inlined_call_operand.vmem [shape: f32[1,64], index: 12, kind: input, shape index: {}]   ;;  %s1821_s13 = inlined_call_operand.vmem [shape: f32[2,8,64], index: 13, kind: output, shape index: {}]  }
   0x1 LB: > { %s1217_s26 = sadd.s32 4294967295, %s1416_s25   ;;  %p1221_p0 = scmp.ge.s32.totalorder %s1416_s25, 1  ;;  %s1416_s25 = sphi %s1492_s25, %s23_s25  }
   0x2   : > { %p386_p1 = scmp.lt.s32.totalorder %s1416_s25, 3 }
   0x4   : > { %p387_p2 = pnand %p1221_p0, %p386_p1 }
   0x5   : > { %p428_p3 = scmp.lt.s32.totalorder (!%p387_p2), %s1217_s26, 1  ;;  %s1420_s22 = smov (!%p387_p2), 32  }
   0x6   : > { %390 = sbr.rel (%p387_p2) target bundleno = 1206 (0x4b6), region = 72  ;;  %s1421_s23 = smov (!%p387_p2), 64  }
   0xb   : > { %v440_v0 = vld [vmem:[%s1809_s1 + $0x18] sm:$0xff]  ;;  %v1418_v1 = vmov 0.0   ;;  %v439_v2 = vld [vmem:[%s1809_s1 + $0x10] sm:$0xff]  ;;  %vm1419_vm0 = vmmov 0   ;;  %s1823_s26 = smov (!%p428_p3, %s1217_s26), 1  ;;  %v438_v3 = vld [vmem:[%s1809_s1 + $0x8] sm:$0xff]  ;;  %v609_v38 = vlaneseq }
   0xc   : > { %1288 = vmatprep.subr.mxu1 %v1418_v1  ;;  %1296 = vmatprep.mubr.msk.f32.mxu1 %vm1419_vm0, %v1418_v1  ;;  %s1222_s16 = sshll.u32 %s1823_s26, 3  ;;  %vm443_vm1 = vcmask 261120   ;;  %v437_v4 = vld [vmem:[%s1809_s1] sm:$0xff]  ;;  %v672_v21 = vld [vmem:[%s1812_s4 + $0x58] sm:$0xff]  ;;  %v671_v22 = vld [vmem:[%s1812_s4 + $0x50] sm:$0xff]  ;;  %vm649_vm2 = vcmask 1046528  }
   0xd   : > { %1289 = vmatpush3.msra.mxu1 %v440_v0  ;;  %1310 = vmatprep.subr.mxu0 %v1418_v1  ;;  %s431_s21 = scalar_lea.vmem %s1808_s0, %s1222_s16  ;;  %v670_v23 = vld [vmem:[%s1812_s4 + $0x48] sm:$0xff]  ;;  %v669_v24 = vld [vmem:[%s1812_s4 + $0x40] sm:$0xff]  ;;  %v668_v25 = vld [vmem:[%s1812_s4 + $0x38] sm:$0xff]  ;;  %v610_v40 = vshrl.u32 %v609_v38, 7  ;;  %vm645_vm3 = vcmask 1040384   ;;  %vm659_vm4 = vcmask 523264   ;;  %s435_s14 = scalar_lea.vmem %s1821_s13, %s1222_s16 }
   0xe   : > { %1290 = vmatprep.subr.mxu1 %v1418_v1  ;;  %1334 = vmatprep.mubr.msk.f32.mxu0 %vm1419_vm0, %v1418_v1  ;;  %v1528_v5 = vld [vmem:[%s431_s21] sm:$0xff]  ;;  %v667_v26 = vld [vmem:[%s1812_s4 + $0x30] sm:$0xff]  ;;  %v666_v27 = vld [vmem:[%s1812_s4 + $0x28] sm:$0xff]  ;;  %vm680_vm5 = vcmask 785408  }
   0xf   : > { %1291 = vmatpush3.msra.mxu1 %v439_v2  ;;  %v444_v6 = vsel %vm443_vm1, %v1528_v5, 0.0  ;;  %v451_v7 = vmul.f32 %v1528_v5, %v1528_v5  ;;  %1311 = vmatpush3.msra.mxu0 %v672_v21  ;;  %v665_v28 = vld [vmem:[%s1812_s4 + $0x20] sm:$0xff]  ;;  %v664_v29 = vld [vmem:[%s1812_s4 + $0x18] sm:$0xff]  ;;  %v1583_v41 = vsub.s32 0, %v610_v40  ;;  %v663_v54 = vld [vmem:[%s1812_s4 + $0x10] sm:$0xff] }
  0x10   : > { %1292 = vmatprep.subr.mxu1 %v1418_v1  ;;  %v445_v8 = vrot.slane %v444_v6, 4  ;;  %1312 = vmatprep.subr.mxu0 %v1418_v1  ;;  %v1226_v46 = vld [vmem:[%s1810_s2] ss:$0 sm:$0xff]  ;;  %v662_v55 = vld [vmem:[%s1812_s4 + $0x8] sm:$0xff]  ;;  %v1079_v38 = vld [vmem:[%s1819_s11 + $0x10] sm:$0xff] }
  0x11   : > { %1293 = vmatpush3.msra.mxu1 %v438_v3  ;;  %v452_v9 = vsel %vm443_vm1, %v451_v7, 0.0  ;;  %1313 = vmatpush3.msra.mxu0 %v671_v22  ;;  %v1227_v48 = vld [vmem:[%s1811_s3] ss:$0 sm:$0xff]  ;;  %v759_v7 = vld [vmem:[%s1814_s6 + $0x28] sm:$0xff] }
  0x12   : > { %1294 = vmatprep.subr.mxu1 %v1418_v1  ;;  %v446_v10 = vadd.f32 %v445_v8, %v444_v6  ;;  %v453_v11 = vrot.slane %v452_v9, 4  ;;  %1314 = vmatprep.subr.mxu0 %v1418_v1  ;;  %v661_v56 = vld [vmem:[%s1812_s4] sm:$0xff]  ;;  %v760_v6 = vld [vmem:[%s1814_s6 + $0x30] sm:$0xff]  ;;  %v1078_v40 = vld [vmem:[%s1819_s11 + $0x8] sm:$0xff] }
  0x13   : > { %1295 = vmatpush3.msra.mxu1 %v437_v4  ;;  %1315 = vmatpush3.msra.mxu0 %v670_v23  ;;  %v758_v8 = vld [vmem:[%s1814_s6 + $0x20] sm:$0xff] }
  0x14   : > { %1299 = vmatprep.subr.mxu1 %v1418_v1  ;;  %v447_v12 = vrot.slane %v446_v10, 2  ;;  %v454_v13 = vadd.f32 %v453_v11, %v452_v9  ;;  %1316 = vmatprep.subr.mxu0 %v1418_v1  ;;  %v757_v9 = vld [vmem:[%s1814_s6 + $0x18] sm:$0xff]  ;;  %v755_v11 = vld [vmem:[%s1814_s6 + $0x8] sm:$0xff] }
  0x15   : > { %1317 = vmatpush3.msra.mxu0 %v669_v24 }
  0x16   : > { %v448_v14 = vadd.f32 %v447_v12, %v446_v10  ;;  %v455_v15 = vrot.slane %v454_v13, 2  ;;  %1318 = vmatprep.subr.mxu0 %v1418_v1  ;;  %v756_v10 = vld [vmem:[%s1814_s6 + $0x10] sm:$0xff]  ;;  %v754_v12 = vld [vmem:[%s1814_s6] sm:$0xff] }
  0x17   : > { %1319 = vmatpush3.msra.mxu0 %v668_v25 }
  0x18   : > { %v449_v16 = vrot.slane %v448_v14, 1  ;;  %v456_v17 = vadd.f32 %v455_v15, %v454_v13  ;;  %1320 = vmatprep.subr.mxu0 %v1418_v1  ;;  %v1229_v13 = vld [vmem:[%s1813_s5] ss:$0 sm:$0xff] }
  0x19   : > { %1321 = vmatpush3.msra.mxu0 %v667_v26 }
  0x1a   : > { %v450_v18 = vadd.f32 %v449_v16, %v448_v14  ;;  %v457_v19 = vrot.slane %v456_v17, 1  ;;  %1322 = vmatprep.subr.mxu0 %v1418_v1 }
  0x1b   : > { %1323 = vmatpush3.msra.mxu0 %v666_v27 }
  0x1c   : > { %1297 = vmatmul.mubr.msk.f32.vlgmr.msra.gmra.mxu1 %vm443_vm1, %v450_v18  ;;  %v458_v20 = vadd.f32 %v457_v19, %v456_v17  ;;  %1324 = vmatprep.subr.mxu0 %v1418_v1 }
  0x1d   : > { %1300 = vmatpush3.msra.mxu1 %v440_v0  ;;  %1307 = vmatprep.mubr.msk.f32.mxu1 %vm1419_vm0, %v1418_v1 }
  0x1e   : > { %1301 = vmatprep.subr.mxu1 %v1418_v1  ;;  %1325 = vmatpush3.msra.mxu0 %v665_v28 }
  0x1f   : > { %1302 = vmatpush3.msra.mxu1 %v439_v2  ;;  %1326 = vmatprep.subr.mxu0 %v1418_v1 }
  0x20   : > { %1303 = vmatprep.subr.mxu1 %v1418_v1  ;;  %1327 = vmatpush3.msra.mxu0 %v664_v29 }
  0x21   : > { %1304 = vmatpush3.msra.mxu1 %v438_v3  ;;  %1328 = vmatprep.subr.mxu0 %v1418_v1 }
  0x22   : > { %1305 = vmatprep.subr.mxu1 %v1418_v1  ;;  %1329 = vmatpush3.msra.mxu0 %v663_v54  ;;  %v994_v54 = vld [vmem:[%s1817_s9 + $0xa8] sm:$0xff] }
  0x23   : > { %1306 = vmatpush3.msra.mxu1 %v437_v4  ;;  %1330 = vmatprep.subr.mxu0 %v1418_v1  ;;  %v761_v4 = vld [vmem:[%s1814_s6 + $0x38] sm:$0xff] }
  0x24   : > { %1308 = vmatmul.mubr.msk.f32.vlgmr.msra.gmra.mxu1 %vm443_vm1, %v458_v20  ;;  %1337 = vmatprep.subr.mxu1 %v1418_v1 }
  0x25   : > { %1353 = vmatprep.mubr.msk.f32.mxu1 %vm1419_vm0, %v1418_v1  ;;  %1331 = vmatpush3.msra.mxu0 %v662_v55  ;;  %v993_v55 = vld [vmem:[%s1817_s9 + $0xa0] sm:$0xff] }
  0x26   : > { %1332 = vmatprep.subr.mxu0 %v1418_v1  ;;  %1338 = vmatpush3.msra.mxu1 %v761_v4 }
  0x27   : > { %1333 = vmatpush3.msra.mxu0 %v661_v56  ;;  %1339 = vmatprep.subr.mxu1 %v1418_v1  ;;  %v992_v56 = vld [vmem:[%s1817_s9 + $0x98] sm:$0xff] }
  0x28   : > { %1007 = vmatprep.subr.mxu0 %v1418_v1  ;;  %1340 = vmatpush3.msra.mxu1 %v760_v6 }
  0x29   : > { %1341 = vmatprep.subr.mxu1 %v1418_v1 }
  0x2a   : > { %1342 = vmatpush3.msra.mxu1 %v759_v7 }
  0x2b   : > { %1343 = vmatprep.subr.mxu1 %v1418_v1 }
  0x2c   : > { %1344 = vmatpush3.msra.mxu1 %v758_v8 }
  0x2d   : > { %1345 = vmatprep.subr.mxu1 %v1418_v1 }
  0x2e   : > { %1346 = vmatpush3.msra.mxu1 %v757_v9 }
  0x2f   : > { %1347 = vmatprep.subr.mxu1 %v1418_v1 }
  0x30   : > { %1348 = vmatpush3.msra.mxu1 %v756_v10 }
  0x31   : > { %1349 = vmatprep.subr.mxu1 %v1418_v1 }
  0x32   : > { %1350 = vmatpush3.msra.mxu1 %v755_v11 }
  0x33   : > { %1351 = vmatprep.subr.mxu1 %v1418_v1 }
  0x34   : > { %1352 = vmatpush3.msra.mxu1 %v754_v12 }
  0x35   : > { %1356 = vmatprep.subr.mxu1 %v1418_v1 }
  0xdc   : > { %v528_v30 = vpop.f32.mrf.mxu1 }
  0xdd   : > { %v532_v32 = vmul.f32 0.125, %v528_v30 }
  0xde   : > { %v1298_v31 = vpop.f32.mrf.mxu1 }
  0xdf   : > { %v607_v34 = vmul.f32 %v532_v32, %v532_v32  ;;  %v612_v42 = vrot.slane %v532_v32, %v1583_v41  ;;  %v988_v32 = vld [vmem:[%s1817_s9 + $0x78] sm:$0xff] }
  0xe1   : > { %v613_v44 = vsub.f32 %v1528_v5, %v612_v42  ;;  %v982_v42 = vld [vmem:[%s1817_s9 + $0x48] sm:$0xff] }
  0xe4   : > { %v602_v33 = vpop.f32.mrf.mxu1 }
  0xe5   : > { %v606_v35 = vmul.f32 0.125, %v602_v33  ;;  %v987_v33 = vld [vmem:[%s1817_s9 + $0x70] sm:$0xff] }
  0xe6   : > { %v1309_v36 = vpop.f32.mrf.mxu1 }
  0xe7   : > { %v608_v37 = vsub.f32 %v606_v35, %v607_v34  ;;  %v986_v34 = vld [vmem:[%s1817_s9 + $0x68] sm:$0xff]  ;;  %v985_v35 = vld [vmem:[%s1817_s9 + $0x60] sm:$0xff]  ;;  %v984_v36 = vld [vmem:[%s1817_s9 + $0x58] sm:$0xff] }
  0xe9   : > { %v614_v39 = vadd.f32 1e-05, %v608_v37  ;;  %v1080_v37 = vld [vmem:[%s1819_s11 + $0x18] sm:$0xff] }
  0xeb   : > { %1398 = vrsqrt.f32 %v614_v39  ;;  %v983_v39 = vld [vmem:[%s1817_s9 + $0x50] sm:$0xff] }
  0xf8   : > { %v1399_v43 = vpop.eup %1398 }
  0xf9   : > { %v619_v45 = vrot.slane %v1399_v43, %v1583_v41  ;;  %v1077_v43 = vld [vmem:[%s1819_s11] sm:$0xff] }
  0xfb   : > { %v620_v47 = vmul.f32 %v619_v45, %v613_v44  ;;  %v981_v44 = vld [vmem:[%s1817_s9 + $0x40] sm:$0xff]  ;;  %v980_v45 = vld [vmem:[%s1817_s9 + $0x38] sm:$0xff] }
  0xfd   : > { %v627_v49 = vmul.f32 %v1226_v46, %v620_v47  ;;  %v979_v46 = vld [vmem:[%s1817_s9 + $0x30] sm:$0xff]  ;;  %v978_v47 = vld [vmem:[%s1817_s9 + $0x28] sm:$0xff] }
  0xff   : > { %v634_v50 = vadd.f32 %v1227_v48, %v627_v49  ;;  %v976_v48 = vld [vmem:[%s1817_s9 + $0x18] sm:$0xff]  ;;  %v975_v49 = vld [vmem:[%s1817_s9 + $0x10] sm:$0xff] }
 0x101   : > { %v1228_v51 = vmul.f32 -1.442695, %v634_v50 }
 0x103   : > { %1400 = vpow2.f32 %v1228_v51  ;;  %v973_v51 = vld [vmem:[%s1817_s9] sm:$0xff] }
 0x110   : > { %v1401_v52 = vpop.eup %1400 }
 0x111   : > { %v638_v53 = vadd.f32 1.0, %v1401_v52  ;;  %v996_v52 = vld [vmem:[%s1817_s9 + $0xb8] sm:$0xff] }
 0x113   : > { %1402 = vrcp.f32 %v638_v53  ;;  %v995_v53 = vld [vmem:[%s1817_s9 + $0xb0] sm:$0xff] }
 0x120   : > { %v1403_v57 = vpop.eup %1402 }
 0x121   : > { %v641_v58 = vmul.f32 %v1403_v57, %v634_v50  ;;  %v974_v50 = vld [vmem:[%s1817_s9 + $0x8] sm:$0xff]  ;;  %v991_v57 = vld [vmem:[%s1817_s9 + $0x90] sm:$0xff] }
 0x123   : > { %651 = vrot.lane.b32.xlu0 %v641_v58, %s1420_s22  ;;  %v647_v59 = vrot.slane %v641_v58, 1  ;;  %v643_v61 = vrot.slane %v641_v58, 7  ;;  %v990_v58 = vld [vmem:[%s1817_s9 + $0x88] sm:$0xff] }
 0x125   : > { %v650_v60 = vsel %vm649_vm2, %v647_v59, 0.0  ;;  %v646_v63 = vsel %vm645_vm3, 0.0, %v643_v61 }
 0x127   : > { %655 = vrot.lane.b32.xlu0 %v650_v60, %s1421_s23 }
 0x195   : > { %v652_v62 = vpop.permute.xlu0 %651 }
 0x196   : > { %v658_v0 = vsel %vm443_vm1, %v646_v63, %v652_v62 }
 0x199   : > { %v656_v2 = vpop.permute.xlu0 %655 }
 0x19a   : > { %v660_v3 = vsel %vm659_vm4, %v658_v0, %v656_v2 }
 0x19b   : > { %1335 = vmatmul.mubr.msk.f32.vlgmr.msra.gmra.mxu0 %vm680_vm5, %v660_v3 }
 0x19c   : > { %1008 = vmatpush1.msra.mxu0 %v988_v32 }
 0x19d   : > { %1009 = vmatprep.subr.mxu0 %v1418_v1 }
 0x19e   : > { %1010 = vmatpush1.msra.mxu0 %v987_v33 }
 0x19f   : > { %1011 = vmatprep.subr.mxu0 %v1418_v1 }
 0x1a0   : > { %1012 = vmatpush1.msra.mxu0 %v986_v34 }
 0x1a1   : > { %1013 = vmatprep.subr.mxu0 %v1418_v1 }
 0x1a2   : > { %1014 = vmatpush1.msra.mxu0 %v985_v35 }
 0x1a3   : > { %1015 = vmatprep.subr.mxu0 %v1418_v1 }
 0x1a4   : > { %1016 = vmatpush1.msra.mxu0 %v984_v36 }
 0x1a5   : > { %1017 = vmatprep.subr.mxu0 %v1418_v1 }
 0x1a6   : > { %1018 = vmatpush1.msra.mxu0 %v983_v39 }
 0x1a7   : > { %1019 = vmatprep.subr.mxu0 %v1418_v1 }
 0x1a8   : > { %1020 = vmatpush1.msra.mxu0 %v982_v42 }
 0x1a9   : > { %1021 = vmatprep.subr.mxu0 %v1418_v1 }
 0x1aa   : > { %1022 = vmatpush1.msra.mxu0 %v981_v44 }
 0x1ab   : > { %1023 = vmatprep.subr.mxu0 %v1418_v1 }
 0x1ac   : > { %1024 = vmatpush1.msra.mxu0 %v980_v45 }
 0x1ad   : > { %1025 = vmatprep.subr.mxu0 %v1418_v1 }
 0x1ae   : > { %1026 = vmatpush1.msra.mxu0 %v979_v46 }
 0x1af   : > { %1027 = vmatprep.subr.mxu0 %v1418_v1 }
 0x1b0   : > { %1028 = vmatpush1.msra.mxu0 %v978_v47 }
 0x1b1   : > { %1029 = vmatprep.subr.mxu0 %v1418_v1 }
 0x25b   : > { %v750_v14 = vpop.f32.mrf.mxu0 }
 0x25c   : > { %v1646_v15 = vadd.f32 %v1229_v13, %v750_v14 }
 0x25d   : > { %v1336_v16 = vpop.f32.mrf.mxu0 }
 0x25e   : > { %v764_v17 = vsel %vm659_vm4, %v1646_v15, 0.0  ;;  %v771_v18 = vmul.f32 %v1646_v15, %v1646_v15 }
 0x25f   : > { %v765_v19 = vrot.slane %v764_v17, 4 }
 0x260   : > { %v772_v21 = vsel %vm659_vm4, %v771_v18, 0.0 }
 0x261   : > { %v766_v20 = vadd.f32 %v765_v19, %v764_v17  ;;  %v773_v24 = vrot.slane %v772_v21, 4 }
 0x263   : > { %v767_v22 = vrot.slane %v766_v20, 2  ;;  %v774_v27 = vadd.f32 %v773_v24, %v772_v21 }
 0x265   : > { %v768_v23 = vadd.f32 %v767_v22, %v766_v20  ;;  %v775_v28 = vrot.slane %v774_v27, 2 }
 0x267   : > { %v769_v25 = vrot.slane %v768_v23, 1  ;;  %v776_v29 = vadd.f32 %v775_v28, %v774_v27  ;;  %v1238_v27 = vld [vmem:[%s1820_s12] ss:$0 sm:$0xff] }
 0x268   : > { %v1236_v28 = vld [vmem:[%s1818_s10] ss:$0 sm:$0xff] }
 0x269   : > { %v770_v26 = vadd.f32 %v769_v25, %v768_v23  ;;  %v777_v30 = vrot.slane %v776_v29, 1 }
 0x26b   : > { %1354 = vmatmul.mubr.msk.f32.vlgmr.msra.gmra.mxu1 %vm659_vm4, %v770_v26  ;;  %v778_v31 = vadd.f32 %v777_v30, %v776_v29 }
 0x26c   : > { %1357 = vmatpush3.msra.mxu1 %v761_v4  ;;  %1372 = vmatprep.mubr.msk.f32.mxu1 %vm1419_vm0, %v1418_v1 }
 0x26d   : > { %1358 = vmatprep.subr.mxu1 %v1418_v1 }
 0x26e   : > { %1359 = vmatpush3.msra.mxu1 %v760_v6 }
 0x26f   : > { %1360 = vmatprep.subr.mxu1 %v1418_v1 }
 0x270   : > { %1361 = vmatpush3.msra.mxu1 %v759_v7 }
 0x271   : > { %1362 = vmatprep.subr.mxu1 %v1418_v1 }
 0x272   : > { %1363 = vmatpush3.msra.mxu1 %v758_v8 }
 0x273   : > { %1364 = vmatprep.subr.mxu1 %v1418_v1 }
 0x274   : > { %1365 = vmatpush3.msra.mxu1 %v757_v9 }
 0x275   : > { %1366 = vmatprep.subr.mxu1 %v1418_v1 }
 0x276   : > { %1367 = vmatpush3.msra.mxu1 %v756_v10 }
 0x277   : > { %1368 = vmatprep.subr.mxu1 %v1418_v1 }
 0x278   : > { %1369 = vmatpush3.msra.mxu1 %v755_v11  ;;  %v1234_v11 = vld [vmem:[%s1816_s8] ss:$0 sm:$0xff] }
 0x279   : > { %1370 = vmatprep.subr.mxu1 %v1418_v1 }
 0x27a   : > { %1371 = vmatpush3.msra.mxu1 %v754_v12 }
 0x27b   : > { %1373 = vmatmul.mubr.msk.f32.vlgmr.msra.gmra.mxu1 %vm659_vm4, %v778_v31  ;;  %1375 = vmatprep.subr.mxu1 %v1418_v1 }
 0x27c   : > { %1383 = vmatprep.mubr.msk.f32.mxu1 %vm1419_vm0, %v1418_v1  ;;  %1376 = vmatpush3.msra.mxu1 %v1080_v37 }
 0x27d   : > { %1377 = vmatprep.subr.mxu1 %v1418_v1 }
 0x27e   : > { %1378 = vmatpush3.msra.mxu1 %v1079_v38 }
 0x27f   : > { %1379 = vmatprep.subr.mxu1 %v1418_v1 }
 0x280   : > { %1380 = vmatpush3.msra.mxu1 %v1078_v40 }
 0x281   : > { %1381 = vmatprep.subr.mxu1 %v1418_v1 }
 0x282   : > { %1382 = vmatpush3.msra.mxu1 %v1077_v43 }
 0x283   : > { %1384 = vmatmul.mubr.msk.f32.vlgmr.msra.gmra.mxu1 %vm443_vm1, %v1528_v5  ;;  %v977_v5 = vld [vmem:[%s1817_s9 + $0x20] sm:$0xff] }
 0x284   : > { %1030 = vmatpush1.msra.mxu0 %v977_v5 }
 0x285   : > { %1031 = vmatprep.subr.mxu0 %v1418_v1 }
 0x286   : > { %1032 = vmatpush1.msra.mxu0 %v976_v48 }
 0x287   : > { %1033 = vmatprep.subr.mxu0 %v1418_v1 }
 0x288   : > { %1034 = vmatpush1.msra.mxu0 %v975_v49 }
 0x289   : > { %1035 = vmatprep.subr.mxu0 %v1418_v1 }
 0x28a   : > { %1036 = vmatpush1.msra.mxu0 %v974_v50 }
 0x28b   : > { %1037 = vmatprep.subr.mxu0 %v1418_v1 }
 0x28c   : > { %1038 = vmatpush1.msra.mxu0 %v973_v51 }
 0x28d   : > { %1055 = vmatprep.subr.mxu0 %v1418_v1 }
 0x28e   : > { %1056 = vmatpush2.msra.mxu0 %v996_v52 }
 0x28f   : > { %1057 = vmatprep.subr.mxu0 %v1418_v1 }
 0x290   : > { %1058 = vmatpush2.msra.mxu0 %v995_v53 }
 0x291   : > { %1059 = vmatprep.subr.mxu0 %v1418_v1 }
 0x292   : > { %1060 = vmatpush2.msra.mxu0 %v994_v54 }
 0x293   : > { %1061 = vmatprep.subr.mxu0 %v1418_v1 }
 0x294   : > { %1062 = vmatpush2.msra.mxu0 %v993_v55 }
 0x295   : > { %1063 = vmatprep.subr.mxu0 %v1418_v1 }
 0x296   : > { %1064 = vmatpush2.msra.mxu0 %v992_v56 }
 0x297   : > { %1065 = vmatprep.subr.mxu0 %v1418_v1 }
 0x298   : > { %1066 = vmatpush2.msra.mxu0 %v991_v57 }
 0x299   : > { %1067 = vmatprep.subr.mxu0 %v1418_v1 }
 0x29a   : > { %1068 = vmatpush2.msra.mxu0 %v990_v58 }
 0x29b   : > { %1069 = vmatprep.subr.mxu0 %v1418_v1  ;;  %v1233_v1 = vld [vmem:[%s1815_s7] ss:$0 sm:$0xff] }
 0x32b   : > { %v848_v59 = vpop.f32.mrf.mxu1 }
 0x32c   : > { %v852_v61 = vmul.f32 0.0625, %v848_v59 }
 0x32d   : > { %v1355_v60 = vpop.f32.mrf.mxu1 }
 0x32e   : > { %v927_v63 = vmul.f32 %v852_v61, %v852_v61  ;;  %v932_v6 = vrot.slane %v852_v61, %v1583_v41 }
 0x330   : > { %v933_v8 = vsub.f32 %v1646_v15, %v932_v6 }
 0x33b   : > { %v922_v62 = vpop.f32.mrf.mxu1 }
 0x33c   : > { %v926_v0 = vmul.f32 0.0625, %v922_v62 }
 0x33d   : > { %v1374_v2 = vpop.f32.mrf.mxu1 }
 0x33e   : > { %v928_v3 = vsub.f32 %v926_v0, %v927_v63 }
 0x340   : > { %v934_v4 = vadd.f32 1e-05, %v928_v3 }
 0x342   : > { %1404 = vrsqrt.f32 %v934_v4 }
 0x343   : > { %v1157_v21 = vpop.f32.mrf.mxu1 }
 0x344   : > { %v1158_v29 = vadd.f32 %v1238_v27, %v1157_v21 }
 0x345   : > { %v1385_v22 = vpop.f32.mrf.mxu1 }
 0x34f   : > { %v1405_v7 = vpop.eup %1404 }
 0x350   : > { %v939_v9 = vrot.slane %v1405_v7, %v1583_v41  ;;  %v989_v41 = vld [vmem:[%s1817_s9 + $0x80] sm:$0xff] }
 0x351   : > { %1070 = vmatpush2.msra.mxu0 %v989_v41 }
 0x352   : > { %v940_v10 = vmul.f32 %v939_v9, %v933_v8 }
 0x354   : > { %v947_v12 = vmul.f32 %v1233_v1, %v940_v10 }
 0x356   : > { %v954_v13 = vadd.f32 %v1234_v11, %v947_v12 }
 0x358   : > { %v1235_v14 = vmul.f32 -1.442695, %v954_v13 }
 0x35a   : > { %1406 = vpow2.f32 %v1235_v14 }
 0x367   : > { %v1407_v16 = vpop.eup %1406 }
 0x368   : > { %v958_v17 = vadd.f32 1.0, %v1407_v16 }
 0x36a   : > { %1408 = vrcp.f32 %v958_v17 }
 0x377   : > { %v1409_v15 = vpop.eup %1408 }
 0x378   : > { %v961_v18 = vmul.f32 %v1409_v15, %v954_v13 }
 0x37a   : > { %969 = vrot.lane.b32.xlu1 %v961_v18, %s1421_s23  ;;  %v966_v19 = vrot.slane %v961_v18, 1  ;;  %v963_v23 = vrot.slane %v961_v18, 7 }
 0x37c   : > { %v968_v20 = vsel %vm649_vm2, %v966_v19, 0.0  ;;  %v965_v25 = vsel %vm645_vm3, 0.0, %v963_v23 }
 0x37d   : > { %1237 = vmatprep.mubr.msk.f32.mxu0 %vm659_vm4, %v968_v20 }
 0x3ec   : > { %v970_v24 = vpop.permute.xlu1 %969 }
 0x3ed   : > { %v972_v26 = vsel %vm659_vm4, %v965_v25, %v970_v24 }
 0x3ee   : > { %1072 = vmatmul.mubr.f32.vlgmr.msra.gmra.mxu0 %v972_v26 }
 0x4ae   : > { %v1073_v30 = vpop.f32.mrf.mxu0 }
 0x4af   : > { %v1074_v31 = vadd.f32 %v1236_v28, %v1073_v30 }
 0x4b0   : > { %v1075_v32 = vpop.f32.mrf.mxu0 }
 0x4b1   : > { %v1161_v33 = vadd.f32 %v1158_v29, %v1074_v31 }
 0x4b3   : > { %v1162_v34 = vmul.f32 0.70710677, %v1161_v33 }
 0x4b5   : > { %1163 = vst.msk [vmem:[%s435_s14] sm:$0xff] %vm659_vm4, %v1162_v34 }
 0x4b6 PF: > { %s23_s25 = sadd.s32 1, %s1416_s25  }
 0x4b7   : > { %p20_p4 = scmp.ge.s32.totalorder %s23_s25, 4  }
 0x4b9   :  { %22 = sbr.rel (!%p20_p4) target bundleno = 1 (0x1), region = 102 }

// kernel: unet_forward.18
= control target key start
LH: loop header
LB: loop body
LE: loop exit
PB: predicated region body
PF: predicated region fallthrough
CT: control target
= control target key end

     0   :  { %s1817_s29 = smov 0   ;;  %s2349_s0 = inlined_call_operand.vmem [shape: f32[2,8,64], index: 0, kind: input, shape index: {}]   ;;  %s2350_s1 = inlined_call_operand.vmem [shape: f32[2,8,64], index: 1, kind: input, shape index: {}]   ;;  %s2351_s2 = inlined_call_operand.vmem [shape: f32[128,128], index: 2, kind: input, shape index: {}]   ;;  %s2352_s3 = inlined_call_operand.vmem [shape: f32[1,128], index: 3, kind: input, shape index: {}]   ;;  %s2353_s4 = inlined_call_operand.vmem [shape: f32[1,128], index: 4, kind: input, shape index: {}]   ;;  %s2354_s5 = inlined_call_operand.vmem [shape: f32[384,64], index: 5, kind: input, shape index: {}]   ;;  %s2355_s6 = inlined_call_operand.vmem [shape: f32[1,64], index: 6, kind: input, shape index: {}]   ;;  %s2356_s7 = inlined_call_operand.vmem [shape: f32[64,64], index: 7, kind: input, shape index: {}]   ;;  %s2357_s8 = inlined_call_operand.vmem [shape: f32[1,64], index: 8, kind: input, shape index: {}]   ;;  %s2358_s9 = inlined_call_operand.vmem [shape: f32[1,64], index: 9, kind: input, shape index: {}]   ;;  %s2359_s10 = inlined_call_operand.vmem [shape: f32[192,64], index: 10, kind: input, shape index: {}]   ;;  %s2360_s11 = inlined_call_operand.vmem [shape: f32[1,64], index: 11, kind: input, shape index: {}]   ;;  %s2361_s12 = inlined_call_operand.vmem [shape: f32[128,64], index: 12, kind: input, shape index: {}]   ;;  %s2362_s13 = inlined_call_operand.vmem [shape: f32[1,64], index: 13, kind: input, shape index: {}]   ;;  %s2363_s14 = inlined_call_operand.vmem [shape: f32[2,8,64], index: 14, kind: output, shape index: {}]  }
   0x1 LB: > { %s1384_s30 = sadd.s32 4294967295, %s1737_s29   ;;  %p1388_p0 = scmp.ge.s32.totalorder %s1737_s29, 1  ;;  %s1737_s29 = sphi %s1817_s29, %s24_s29  }
   0x2   : > { %p420_p1 = scmp.lt.s32.totalorder %s1737_s29, 3 }
   0x4   : > { %p421_p2 = pnand %p1388_p0, %p420_p1 }
   0x5   : > { %p468_p3 = scmp.lt.s32.totalorder (!%p421_p2), %s1384_s30, 1  ;;  %s1740_s27 = smov (!%p421_p2), 64  }
   0x6   : > { %424 = sbr.rel (%p421_p2) target bundleno = 1192 (0x4a8), region = 76 }
   0xb   : > { %v503_v0 = vld [vmem:[%s2351_s2 + $0x78] sm:$0xff]  ;;  %v1739_v1 = vmov 0.0   ;;  %v502_v2 = vld [vmem:[%s2351_s2 + $0x70] sm:$0xff]  ;;  %s2365_s30 = smov (!%p468_p3, %s1384_s30), 1  ;;  %v501_v3 = vld [vmem:[%s2351_s2 + $0x68] sm:$0xff]  ;;  %vm1741_vm0 = vmmov 0  }
   0xc   : > { %1530 = vmatprep.subr.mxu0 %v1739_v1  ;;  %1565 = vmatprep.subr.mxu1 %v1739_v1  ;;  %s1838_s21 = sshll.u32 %s2365_s30, 3  ;;  %v500_v4 = vld [vmem:[%s2351_s2 + $0x60] sm:$0xff]  ;;  %v499_v6 = vld [vmem:[%s2351_s2 + $0x58] sm:$0xff]  ;;  %v498_v7 = vld [vmem:[%s2351_s2 + $0x50] sm:$0xff]  ;;  %vm486_vm1 = vcmask 523264   ;;  %vm699_vm2 = vcmask 1040384  }
   0xd   : > { %1531 = vmatpush3.msra.mxu0 %v503_v0  ;;  %1566 = vmatpush3.msra.mxu1 %v503_v0  ;;  %s475_s24 = scalar_lea.vmem %s2350_s1, %s1838_s21  ;;  %v497_v8 = vld [vmem:[%s2351_s2 + $0x48] sm:$0xff]  ;;  %v496_v9 = vld [vmem:[%s2351_s2 + $0x40] sm:$0xff]  ;;  %v495_v10 = vld [vmem:[%s2351_s2 + $0x38] sm:$0xff]  ;;  %s471_s28 = scalar_lea.vmem %s2349_s0, %s1838_s21  ;;  %vm703_vm4 = vcmask 1046528  }
   0xe   : > { %1532 = vmatprep.subr.mxu0 %v1739_v1  ;;  %1567 = vmatprep.subr.mxu1 %v1739_v1  ;;  %v481_v5 = vld [vmem:[%s475_s24] sm:$0xff]  ;;  %v494_v11 = vld [vmem:[%s2351_s2 + $0x30] sm:$0xff]  ;;  %v493_v12 = vld [vmem:[%s2351_s2 + $0x28] sm:$0xff] }
   0xf   : > { %1533 = vmatpush3.msra.mxu0 %v502_v2  ;;  %1568 = vmatpush3.msra.mxu1 %v502_v2  ;;  %v492_v13 = vld [vmem:[%s2351_s2 + $0x20] sm:$0xff]  ;;  %v491_v14 = vld [vmem:[%s2351_s2 + $0x18] sm:$0xff]  ;;  %v490_v15 = vld [vmem:[%s2351_s2 + $0x10] sm:$0xff] }
  0x10   : > { %1534 = vmatprep.subr.mxu0 %v1739_v1  ;;  %1569 = vmatprep.subr.mxu1 %v1739_v1  ;;  %v489_v16 = vld [vmem:[%s2351_s2 + $0x8] sm:$0xff]  ;;  %v488_v17 = vld [vmem:[%s2351_s2] sm:$0xff]  ;;  %v736_v34 = vld [vmem:[%s2354_s5 + $0xf8] sm:$0xff] }
  0x11   : > { %1535 = vmatpush3.msra.mxu0 %v501_v3  ;;  %1570 = vmatpush3.msra.mxu1 %v501_v3  ;;  %v480_v18 = vld [vmem:[%s471_s28] sm:$0xff]  ;;  %v720_v35 = vld [vmem:[%s2354_s5 + $0x78] sm:$0xff]  ;;  %v735_v37 = vld [vmem:[%s2354_s5 + $0xf0] sm:$0xff]  ;;  %s479_s28 = scalar_lea.vmem %s2363_s14, %s1838_s21 }
  0x12   : > { %483 = vrot.lane.b32.xlu0 %v481_v5, %s1740_s27  ;;  %1536 = vmatprep.subr.mxu0 %v1739_v1  ;;  %v752_v36 = vld [vmem:[%s2354_s5 + $0x178] sm:$0xff]  ;;  %v719_v38 = vld [vmem:[%s2354_s5 + $0x70] sm:$0xff]  ;;  %v734_v40 = vld [vmem:[%s2354_s5 + $0xe8] sm:$0xff] }
  0x13   : > { %1537 = vmatpush3.msra.mxu0 %v500_v4  ;;  %1571 = vmatprep.subr.mxu1 %v1739_v1  ;;  %v751_v39 = vld [vmem:[%s2354_s5 + $0x170] sm:$0xff]  ;;  %v750_v41 = vld [vmem:[%s2354_s5 + $0x168] sm:$0xff]  ;;  %v733_v43 = vld [vmem:[%s2354_s5 + $0xe0] sm:$0xff] }
  0x14   : > { %1538 = vmatprep.subr.mxu0 %v1739_v1  ;;  %1572 = vmatpush3.msra.mxu1 %v500_v4  ;;  %v718_v42 = vld [vmem:[%s2354_s5 + $0x68] sm:$0xff]  ;;  %v749_v44 = vld [vmem:[%s2354_s5 + $0x160] sm:$0xff]  ;;  %v732_v46 = vld [vmem:[%s2354_s5 + $0xd8] sm:$0xff] }
  0x15   : > { %1539 = vmatpush3.msra.mxu0 %v499_v6  ;;  %1573 = vmatprep.subr.mxu1 %v1739_v1  ;;  %v717_v45 = vld [vmem:[%s2354_s5 + $0x60] sm:$0xff]  ;;  %v748_v47 = vld [vmem:[%s2354_s5 + $0x158] sm:$0xff]  ;;  %v731_v49 = vld [vmem:[%s2354_s5 + $0xd0] sm:$0xff] }
  0x16   : > { %1540 = vmatprep.subr.mxu0 %v1739_v1  ;;  %1574 = vmatpush3.msra.mxu1 %v499_v6  ;;  %v716_v48 = vld [vmem:[%s2354_s5 + $0x58] sm:$0xff]  ;;  %v747_v50 = vld [vmem:[%s2354_s5 + $0x150] sm:$0xff]  ;;  %v730_v52 = vld [vmem:[%s2354_s5 + $0xc8] sm:$0xff] }
  0x17   : > { %1541 = vmatpush3.msra.mxu0 %v498_v7  ;;  %1575 = vmatprep.subr.mxu1 %v1739_v1  ;;  %v715_v51 = vld [vmem:[%s2354_s5 + $0x50] sm:$0xff]  ;;  %v746_v53 = vld [vmem:[%s2354_s5 + $0x148] sm:$0xff]  ;;  %v729_v55 = vld [vmem:[%s2354_s5 + $0xc0] sm:$0xff] }
  0x18   : > { %1542 = vmatprep.subr.mxu0 %v1739_v1  ;;  %1576 = vmatpush3.msra.mxu1 %v498_v7  ;;  %v714_v54 = vld [vmem:[%s2354_s5 + $0x48] sm:$0xff]  ;;  %v745_v56 = vld [vmem:[%s2354_s5 + $0x140] sm:$0xff]  ;;  %v728_v58 = vld [vmem:[%s2354_s5 + $0xb8] sm:$0xff] }
  0x19   : > { %1543 = vmatpush3.msra.mxu0 %v497_v8  ;;  %1577 = vmatprep.subr.mxu1 %v1739_v1  ;;  %v713_v57 = vld [vmem:[%s2354_s5 + $0x40] sm:$0xff]  ;;  %v744_v59 = vld [vmem:[%s2354_s5 + $0x138] sm:$0xff]  ;;  %v727_v61 = vld [vmem:[%s2354_s5 + $0xb0] sm:$0xff] }
  0x1a   : > { %1544 = vmatprep.subr.mxu0 %v1739_v1  ;;  %1578 = vmatpush3.msra.mxu1 %v497_v8  ;;  %v712_v60 = vld [vmem:[%s2354_s5 + $0x38] sm:$0xff]  ;;  %v743_v62 = vld [vmem:[%s2354_s5 + $0x130] sm:$0xff]  ;;  %v726_v0 = vld [vmem:[%s2354_s5 + $0xa8] sm:$0xff] }
  0x1b   : > { %1545 = vmatpush3.msra.mxu0 %v496_v9  ;;  %1579 = vmatprep.subr.mxu1 %v1739_v1  ;;  %v711_v63 = vld [vmem:[%s2354_s5 + $0x30] sm:$0xff]  ;;  %v742_v2 = vld [vmem:[%s2354_s5 + $0x128] sm:$0xff]  ;;  %v725_v4 = vld [vmem:[%s2354_s5 + $0xa0] sm:$0xff] }
  0x1c   : > { %1546 = vmatprep.subr.mxu0 %v1739_v1  ;;  %1580 = vmatpush3.msra.mxu1 %v496_v9  ;;  %v710_v3 = vld [vmem:[%s2354_s5 + $0x28] sm:$0xff]  ;;  %v741_v5 = vld [vmem:[%s2354_s5 + $0x120] sm:$0xff]  ;;  %v724_v7 = vld [vmem:[%s2354_s5 + $0x98] sm:$0xff] }
  0x1d   : > { %1547 = vmatpush3.msra.mxu0 %v495_v10  ;;  %1581 = vmatprep.subr.mxu1 %v1739_v1  ;;  %v709_v6 = vld [vmem:[%s2354_s5 + $0x20] sm:$0xff]  ;;  %v740_v8 = vld [vmem:[%s2354_s5 + $0x118] sm:$0xff]  ;;  %vm1396_vm3 = vmneg %vm699_vm2 }
  0x1e   : > { %1548 = vmatprep.subr.mxu0 %v1739_v1  ;;  %1582 = vmatpush3.msra.mxu1 %v495_v10  ;;  %v708_v9 = vld [vmem:[%s2354_s5 + $0x18] sm:$0xff]  ;;  %v723_v10 = vld [vmem:[%s2354_s5 + $0x90] sm:$0xff] }
  0x1f   : > { %1549 = vmatpush3.msra.mxu0 %v494_v11  ;;  %1583 = vmatprep.subr.mxu1 %v1739_v1 }
  0x20   : > { %1550 = vmatprep.subr.mxu0 %v1739_v1  ;;  %1584 = vmatpush3.msra.mxu1 %v494_v11  ;;  %v739_v11 = vld [vmem:[%s2354_s5 + $0x110] sm:$0xff] }
  0x21   : > { %1551 = vmatpush3.msra.mxu0 %v493_v12  ;;  %1585 = vmatprep.subr.mxu1 %v1739_v1 }
  0x22   : > { %1552 = vmatprep.subr.mxu0 %v1739_v1  ;;  %1586 = vmatpush3.msra.mxu1 %v493_v12  ;;  %v707_v12 = vld [vmem:[%s2354_s5 + $0x10] sm:$0xff] }
  0x23   : > { %1553 = vmatpush3.msra.mxu0 %v492_v13  ;;  %1587 = vmatprep.subr.mxu1 %v1739_v1 }
  0x24   : > { %1554 = vmatprep.subr.mxu0 %v1739_v1  ;;  %1588 = vmatpush3.msra.mxu1 %v492_v13  ;;  %v722_v13 = vld [vmem:[%s2354_s5 + $0x88] sm:$0xff] }
  0x25   : > { %1555 = vmatpush3.msra.mxu0 %v491_v14  ;;  %1589 = vmatprep.subr.mxu1 %v1739_v1 }
  0x26   : > { %1556 = vmatprep.subr.mxu0 %v1739_v1  ;;  %1590 = vmatpush3.msra.mxu1 %v491_v14  ;;  %v738_v14 = vld [vmem:[%s2354_s5 + $0x108] sm:$0xff] }
  0x27   : > { %1557 = vmatpush3.msra.mxu0 %v490_v15  ;;  %1591 = vmatprep.subr.mxu1 %v1739_v1 }
  0x28   : > { %1558 = vmatprep.subr.mxu0 %v1739_v1  ;;  %1592 = vmatpush3.msra.mxu1 %v490_v15  ;;  %v706_v15 = vld [vmem:[%s2354_s5 + $0x8] sm:$0xff] }
  0x29   : > { %1559 = vmatpush3.msra.mxu0 %v489_v16  ;;  %1593 = vmatprep.subr.mxu1 %v1739_v1 }
  0x2a   : > { %1560 = vmatprep.subr.mxu0 %v1739_v1  ;;  %1562 = vmatprep.mubr.msk.f32.mxu0 %vm1741_vm0, %v1739_v1 }
  0x2b   : > { %1561 = vmatpush3.msra.mxu0 %v488_v17  ;;  %1594 = vmatpush3.msra.mxu1 %v489_v16  ;;  %v721_v16 = vld [vmem:[%s2354_s5 + $0x80] sm:$0xff] }
  0x2c   : > { %1595 = vmatprep.subr.mxu1 %v1739_v1  ;;  %1597 = vmatprep.mubr.msk.f32.mxu1 %vm1741_vm0, %v1739_v1 }
  0x2d   : > { %1596 = vmatpush3.msra.mxu1 %v488_v17  ;;  %1443 = vmatprep.subr.mxu0 %v736_v34  ;;  %v705_v17 = vld [vmem:[%s2354_s5] sm:$0xff] }
  0x2e   : > { %1600 = vmatprep.subr.mxu1 %v1739_v1 }
  0x84   : > { %v484_v19 = vpop.permute.xlu0 %483 }
  0x85   : > { %v1922_v20 = vsel %vm486_vm1, %v480_v18, %v484_v19  ;;  %v737_v18 = vld [vmem:[%s2354_s5 + $0x100] sm:$0xff] }
  0x86   : > { %v506_v21 = vrot.slane %v1922_v20, 4  ;;  %v512_v22 = vmul.f32 %v1922_v20, %v1922_v20 }
  0x88   : > { %v507_v23 = vadd.f32 %v506_v21, %v1922_v20  ;;  %v513_v24 = vrot.slane %v512_v22, 4 }
  0x8a   : > { %v508_v25 = vrot.slane %v507_v23, 2  ;;  %v514_v26 = vadd.f32 %v513_v24, %v512_v22 }
  0x8c   : > { %v509_v27 = vadd.f32 %v508_v25, %v507_v23  ;;  %v515_v28 = vrot.slane %v514_v26, 2 }
  0x8e   : > { %v510_v29 = vrot.slane %v509_v27, 1  ;;  %v516_v30 = vadd.f32 %v515_v28, %v514_v26  ;;  %v663_v28 = vlaneseq }
  0x90   : > { %v511_v31 = vadd.f32 %v510_v29, %v509_v27  ;;  %v517_v32 = vrot.slane %v516_v30, 1 }
  0x92   : > { %1563 = vmatmul.mubr.f32.vlgmr.msra.gmra.mxu0 %v511_v31  ;;  %v518_v33 = vadd.f32 %v517_v32, %v516_v30  ;;  %v664_v30 = vshrl.u32 %v663_v28, 7  ;;  %v1227_v28 = vld [vmem:[%s2361_s12 + $0x20] sm:$0xff] }
  0x93   : > { %1444 = vmatpush3.msra.mxu0 %v720_v35 }
  0x94   : > { %1598 = vmatmul.mubr.f32.vlgmr.msra.gmra.mxu1 %v518_v33  ;;  %1445 = vmatprep.subr.mxu0 %v735_v37  ;;  %v2091_v31 = vsub.s32 0, %v664_v30  ;;  %v1225_v30 = vld [vmem:[%s2361_s12 + $0x10] sm:$0xff] }
  0x95   : > { %1632 = vmatprep.mubr.msk.f32.mxu1 %vm1741_vm0, %v1739_v1  ;;  %1601 = vmatpush3.msra.mxu1 %v752_v36  ;;  %v1392_v36 = vld [vmem:[%s2352_s3] ss:$0 sm:$0xff] }
  0x96   : > { %1602 = vmatprep.subr.mxu1 %v1739_v1  ;;  %1446 = vmatpush3.msra.mxu0 %v719_v38  ;;  %v1393_v38 = vld [vmem:[%s2353_s4] ss:$0 sm:$0xff] }
  0x97   : > { %1603 = vmatpush3.msra.mxu1 %v751_v39  ;;  %1447 = vmatprep.subr.mxu0 %v734_v40 }
  0x98   : > { %1604 = vmatprep.subr.mxu1 %v1739_v1  ;;  %1448 = vmatpush3.msra.mxu0 %v718_v42 }
  0x99   : > { %1605 = vmatpush3.msra.mxu1 %v750_v41  ;;  %1449 = vmatprep.subr.mxu0 %v733_v43 }
  0x9a   : > { %1606 = vmatprep.subr.mxu1 %v1739_v1  ;;  %1450 = vmatpush3.msra.mxu0 %v717_v45 }
  0x9b   : > { %1607 = vmatpush3.msra.mxu1 %v749_v44  ;;  %1451 = vmatprep.subr.mxu0 %v732_v46 }
  0x9c   : > { %1608 = vmatprep.subr.mxu1 %v1739_v1  ;;  %1452 = vmatpush3.msra.mxu0 %v716_v48  ;;  %v907_v48 = vld [vmem:[%s2356_s7 + $0x38] sm:$0xff] }
  0x9d   : > { %1609 = vmatpush3.msra.mxu1 %v748_v47  ;;  %1453 = vmatprep.subr.mxu0 %v731_v49  ;;  %v906_v49 = vld [vmem:[%s2356_s7 + $0x30] sm:$0xff] }
  0x9e   : > { %1610 = vmatprep.subr.mxu1 %v1739_v1  ;;  %1454 = vmatpush3.msra.mxu0 %v715_v51  ;;  %v904_v51 = vld [vmem:[%s2356_s7 + $0x20] sm:$0xff] }
  0x9f   : > { %1611 = vmatpush3.msra.mxu1 %v747_v50  ;;  %1455 = vmatprep.subr.mxu0 %v730_v52  ;;  %v905_v50 = vld [vmem:[%s2356_s7 + $0x28] sm:$0xff]  ;;  %v903_v52 = vld [vmem:[%s2356_s7 + $0x18] sm:$0xff] }
  0xa0   : > { %1612 = vmatprep.subr.mxu1 %v1739_v1  ;;  %1456 = vmatpush3.msra.mxu0 %v714_v54  ;;  %v901_v54 = vld [vmem:[%s2356_s7 + $0x8] sm:$0xff] }
  0xa1   : > { %1613 = vmatpush3.msra.mxu1 %v746_v53  ;;  %1457 = vmatprep.subr.mxu0 %v729_v55  ;;  %v902_v53 = vld [vmem:[%s2356_s7 + $0x10] sm:$0xff]  ;;  %v900_v55 = vld [vmem:[%s2356_s7] sm:$0xff] }
  0xa2   : > { %1614 = vmatprep.subr.mxu1 %v1739_v1  ;;  %1458 = vmatpush3.msra.mxu0 %v713_v57 }
  0xa3   : > { %1615 = vmatpush3.msra.mxu1 %v745_v56  ;;  %1459 = vmatprep.subr.mxu0 %v728_v58  ;;  %v1395_v58 = vld [vmem:[%s2355_s6] ss:$0 sm:$0xff] }
  0xa4   : > { %1616 = vmatprep.subr.mxu1 %v1739_v1  ;;  %1460 = vmatpush3.msra.mxu0 %v712_v60 }
  0xa5   : > { %1617 = vmatpush3.msra.mxu1 %v744_v59  ;;  %1461 = vmatprep.subr.mxu0 %v727_v61 }
  0xa6   : > { %1618 = vmatprep.subr.mxu1 %v1739_v1  ;;  %1462 = vmatpush3.msra.mxu0 %v711_v63 }
  0xa7   : > { %1619 = vmatpush3.msra.mxu1 %v743_v62  ;;  %1463 = vmatprep.subr.mxu0 %v726_v0 }
  0xa8   : > { %1620 = vmatprep.subr.mxu1 %v1739_v1  ;;  %1464 = vmatpush3.msra.mxu0 %v710_v3 }
  0xa9   : > { %1621 = vmatpush3.msra.mxu1 %v742_v2  ;;  %1465 = vmatprep.subr.mxu0 %v725_v4 }
  0xaa   : > { %1622 = vmatprep.subr.mxu1 %v1739_v1  ;;  %1466 = vmatpush3.msra.mxu0 %v709_v6 }
  0xab   : > { %1623 = vmatpush3.msra.mxu1 %v741_v5  ;;  %1467 = vmatprep.subr.mxu0 %v724_v7 }
  0xac   : > { %1624 = vmatprep.subr.mxu1 %v1739_v1  ;;  %1468 = vmatpush3.msra.mxu0 %v708_v9 }
  0xad   : > { %1625 = vmatpush3.msra.mxu1 %v740_v8  ;;  %1469 = vmatprep.subr.mxu0 %v723_v10 }
  0xae   : > { %1626 = vmatprep.subr.mxu1 %v1739_v1  ;;  %1470 = vmatpush3.msra.mxu0 %v707_v12 }
  0xaf   : > { %1627 = vmatpush3.msra.mxu1 %v739_v11  ;;  %1471 = vmatprep.subr.mxu0 %v722_v13 }
  0xb0   : > { %1628 = vmatprep.subr.mxu1 %v1739_v1  ;;  %1472 = vmatpush3.msra.mxu0 %v706_v15 }
  0xb1   : > { %1629 = vmatpush3.msra.mxu1 %v738_v14  ;;  %1473 = vmatprep.subr.mxu0 %v721_v16  ;;  %v1238_v16 = vld [vmem:[%s2361_s12 + $0x78] sm:$0xff] }
  0xb2   : > { %1630 = vmatprep.subr.mxu1 %v1739_v1  ;;  %1474 = vmatpush3.msra.mxu0 %v705_v17  ;;  %v1237_v17 = vld [vmem:[%s2361_s12 + $0x70] sm:$0xff] }
  0xb3   : > { %1631 = vmatpush3.msra.mxu1 %v737_v18  ;;  %1635 = vmatprep.subr.mxu0 %v1739_v1  ;;  %v1236_v18 = vld [vmem:[%s2361_s12 + $0x68] sm:$0xff] }
  0xb4   : > { %1654 = vmatprep.subr.mxu1 %v1739_v1 }
 0x152   : > { %v585_v19 = vpop.f32.mrf.mxu0 }
 0x153   : > { %v589_v21 = vmul.f32 0.03125, %v585_v19  ;;  %v1235_v19 = vld [vmem:[%s2361_s12 + $0x60] sm:$0xff] }
 0x154   : > { %v1564_v22 = vpop.f32.mrf.mxu0  ;;  %v656_v23 = vpop.f32.mrf.mxu1 }
 0x155   : > { %v661_v24 = vmul.f32 %v589_v21, %v589_v21  ;;  %v660_v25 = vmul.f32 0.03125, %v656_v23  ;;  %v666_v32 = vrot.slane %v589_v21, %v2091_v31  ;;  %v1234_v21 = vld [vmem:[%s2361_s12 + $0x58] sm:$0xff]  ;;  %v1233_v22 = vld [vmem:[%s2361_s12 + $0x50] sm:$0xff]  ;;  %v1232_v23 = vld [vmem:[%s2361_s12 + $0x48] sm:$0xff] }
 0x156   : > { %v1599_v26 = vpop.f32.mrf.mxu1 }
 0x157   : > { %v662_v27 = vsub.f32 %v660_v25, %v661_v24  ;;  %v667_v34 = vsub.f32 %v1922_v20, %v666_v32  ;;  %v1231_v24 = vld [vmem:[%s2361_s12 + $0x40] sm:$0xff]  ;;  %v1230_v25 = vld [vmem:[%s2361_s12 + $0x38] sm:$0xff]  ;;  %v1229_v26 = vld [vmem:[%s2361_s12 + $0x30] sm:$0xff] }
 0x158   : > { %v1224_v32 = vld [vmem:[%s2361_s12 + $0x8] sm:$0xff] }
 0x159   : > { %v668_v29 = vadd.f32 1e-05, %v662_v27  ;;  %v1228_v27 = vld [vmem:[%s2361_s12 + $0x28] sm:$0xff] }
 0x15b   : > { %1719 = vrsqrt.f32 %v668_v29  ;;  %v1226_v29 = vld [vmem:[%s2361_s12 + $0x18] sm:$0xff] }
 0x168   : > { %v1720_v33 = vpop.eup %1719 }
 0x169   : > { %v673_v35 = vrot.slane %v1720_v33, %v2091_v31  ;;  %v1223_v33 = vld [vmem:[%s2361_s12] sm:$0xff] }
 0x16b   : > { %v674_v37 = vmul.f32 %v673_v35, %v667_v34  ;;  %v1134_v34 = vld [vmem:[%s2359_s10 + $0x78] sm:$0xff]  ;;  %v1133_v35 = vld [vmem:[%s2359_s10 + $0x70] sm:$0xff] }
 0x16d   : > { %v681_v39 = vmul.f32 %v1392_v36, %v674_v37  ;;  %v1132_v36 = vld [vmem:[%s2359_s10 + $0x68] sm:$0xff]  ;;  %v1130_v37 = vld [vmem:[%s2359_s10 + $0x58] sm:$0xff] }
 0x16f   : > { %v688_v40 = vadd.f32 %v1393_v38, %v681_v39  ;;  %v1129_v38 = vld [vmem:[%s2359_s10 + $0x50] sm:$0xff]  ;;  %v1128_v39 = vld [vmem:[%s2359_s10 + $0x48] sm:$0xff] }
 0x171   : > { %v1394_v41 = vmul.f32 -1.442695, %v688_v40 }
 0x173   : > { %1721 = vpow2.f32 %v1394_v41  ;;  %v1126_v41 = vld [vmem:[%s2359_s10 + $0x38] sm:$0xff] }
 0x180   : > { %v1722_v42 = vpop.eup %1721 }
 0x181   : > { %v692_v43 = vadd.f32 1.0, %v1722_v42  ;;  %v1125_v42 = vld [vmem:[%s2359_s10 + $0x30] sm:$0xff] }
 0x183   : > { %1723 = vrcp.f32 %v692_v43  ;;  %v1124_v43 = vld [vmem:[%s2359_s10 + $0x28] sm:$0xff] }
 0x190   : > { %v1724_v44 = vpop.eup %1723 }
 0x191   : > { %v695_v45 = vmul.f32 %v1724_v44, %v688_v40  ;;  %v1127_v40 = vld [vmem:[%s2359_s10 + $0x40] sm:$0xff] }
 0x192   : > { %v1123_v44 = vld [vmem:[%s2359_s10 + $0x20] sm:$0xff] }
 0x193   : > { %v697_v46 = vrot.slane %v695_v45, 7  ;;  %v701_v47 = vrot.slane %v695_v45, 1  ;;  %824 = vmatprep.mubr.f32.mxu0 %v695_v45  ;;  %v1122_v45 = vld [vmem:[%s2359_s10 + $0x18] sm:$0xff] }
 0x195   : > { %1397 = vmatmul.mubr.msk.f32.vlgmr.msra.gmra.mxu0 %vm1396_vm3, %v697_v46  ;;  %1633 = vmatmul.mubr.msk.f32.vlgmr.msra.gmra.mxu1 %vm703_vm4, %v701_v47  ;;  %v1121_v46 = vld [vmem:[%s2359_s10 + $0x10] sm:$0xff]  ;;  %v1120_v47 = vld [vmem:[%s2359_s10 + $0x8] sm:$0xff] }
 0x196   : > { %1651 = vmatprep.mubr.msk.f32.mxu0 %vm1741_vm0, %v1739_v1  ;;  %1670 = vmatprep.mubr.msk.f32.mxu1 %vm1741_vm0, %v1739_v1 }
 0x197   : > { %1636 = vmatpush3.msra.mxu0 %v907_v48  ;;  %1655 = vmatpush3.msra.mxu1 %v907_v48  ;;  %v1119_v48 = vld [vmem:[%s2359_s10] sm:$0xff] }
 0x198   : > { %1637 = vmatprep.subr.mxu0 %v1739_v1  ;;  %1656 = vmatprep.subr.mxu1 %v1739_v1 }
 0x199   : > { %1638 = vmatpush3.msra.mxu0 %v906_v49  ;;  %1657 = vmatpush3.msra.mxu1 %v906_v49  ;;  %v1142_v49 = vld [vmem:[%s2359_s10 + $0xb8] sm:$0xff] }
 0x19a   : > { %1639 = vmatprep.subr.mxu0 %v1739_v1  ;;  %1658 = vmatprep.subr.mxu1 %v1739_v1 }
 0x19b   : > { %1640 = vmatpush3.msra.mxu0 %v905_v50  ;;  %1659 = vmatpush3.msra.mxu1 %v905_v50  ;;  %v1141_v50 = vld [vmem:[%s2359_s10 + $0xb0] sm:$0xff] }
 0x19c   : > { %1641 = vmatprep.subr.mxu0 %v1739_v1  ;;  %1660 = vmatprep.subr.mxu1 %v1739_v1 }
 0x19d   : > { %1642 = vmatpush3.msra.mxu0 %v904_v51  ;;  %1661 = vmatpush3.msra.mxu1 %v904_v51  ;;  %v1140_v51 = vld [vmem:[%s2359_s10 + $0xa8] sm:$0xff] }
 0x19e   : > { %1643 = vmatprep.subr.mxu0 %v1739_v1  ;;  %1662 = vmatprep.subr.mxu1 %v1739_v1 }
 0x19f   : > { %1644 = vmatpush3.msra.mxu0 %v903_v52  ;;  %1663 = vmatpush3.msra.mxu1 %v903_v52  ;;  %v1139_v52 = vld [vmem:[%s2359_s10 + $0xa0] sm:$0xff] }
 0x1a0   : > { %1645 = vmatprep.subr.mxu0 %v1739_v1  ;;  %1664 = vmatprep.subr.mxu1 %v1739_v1 }
 0x1a1   : > { %1646 = vmatpush3.msra.mxu0 %v902_v53  ;;  %1665 = vmatpush3.msra.mxu1 %v902_v53  ;;  %v1138_v53 = vld [vmem:[%s2359_s10 + $0x98] sm:$0xff] }
 0x1a2   : > { %1647 = vmatprep.subr.mxu0 %v1739_v1  ;;  %1666 = vmatprep.subr.mxu1 %v1739_v1 }
 0x1a3   : > { %1648 = vmatpush3.msra.mxu0 %v901_v54  ;;  %1667 = vmatpush3.msra.mxu1 %v901_v54  ;;  %v1137_v54 = vld [vmem:[%s2359_s10 + $0x90] sm:$0xff] }
 0x1a4   : > { %1649 = vmatprep.subr.mxu0 %v1739_v1  ;;  %1668 = vmatprep.subr.mxu1 %v1739_v1 }
 0x1a5   : > { %1650 = vmatpush3.msra.mxu0 %v900_v55  ;;  %1669 = vmatpush3.msra.mxu1 %v900_v55  ;;  %v1136_v55 = vld [vmem:[%s2359_s10 + $0x88] sm:$0xff] }
 0x1a6   : > { %1673 = vmatprep.subr.mxu1 %v1739_v1  ;;  %1153 = vmatprep.subr.mxu0 %v1739_v1 }
 0x255   : > { %v1475_v56 = vpop.f32.mrf.mxu0  ;;  %v896_v57 = vpop.f32.mrf.mxu1 }
 0x257   : > { %v1476_v59 = vpop.f32.mrf.mxu0  ;;  %v1634_v60 = vpop.f32.mrf.mxu1 }
 0x258   : > { %v1477_v61 = vadd.f32 %v1476_v59, %v1475_v56 }
 0x25a   : > { %v827_v62 = vadd.f32 %v1477_v61, %v1395_v58 }
 0x25c   : > { %v2151_v63 = vadd.f32 %v896_v57, %v827_v62 }
 0x25e   : > { %v910_v0 = vsel %vm486_vm1, %v2151_v63, 0.0  ;;  %v917_v2 = vmul.f32 %v2151_v63, %v2151_v63 }
 0x25f   : > { %v911_v3 = vrot.slane %v910_v0, 4 }
 0x260   : > { %v918_v4 = vsel %vm486_vm1, %v917_v2, 0.0 }
 0x261   : > { %v912_v5 = vadd.f32 %v911_v3, %v910_v0  ;;  %v919_v6 = vrot.slane %v918_v4, 4 }
 0x263   : > { %v913_v7 = vrot.slane %v912_v5, 2  ;;  %v920_v8 = vadd.f32 %v919_v6, %v918_v4 }
 0x265   : > { %v914_v9 = vadd.f32 %v913_v7, %v912_v5  ;;  %v921_v10 = vrot.slane %v920_v8, 2 }
 0x267   : > { %v915_v11 = vrot.slane %v914_v9, 1  ;;  %v922_v12 = vadd.f32 %v921_v10, %v920_v8  ;;  %v1402_v8 = vld [vmem:[%s2358_s9] ss:$0 sm:$0xff] }
 0x269   : > { %v916_v13 = vadd.f32 %v915_v11, %v914_v9  ;;  %v923_v14 = vrot.slane %v922_v12, 1 }
 0x26b   : > { %1652 = vmatmul.mubr.msk.f32.vlgmr.msra.gmra.mxu0 %vm486_vm1, %v916_v13  ;;  %v924_v15 = vadd.f32 %v923_v14, %v922_v12 }
 0x26c   : > { %1154 = vmatpush1.msra.mxu0 %v1134_v34 }
 0x26d   : > { %1671 = vmatmul.mubr.msk.f32.vlgmr.msra.gmra.mxu1 %vm486_vm1, %v924_v15  ;;  %1155 = vmatprep.subr.mxu0 %v1739_v1 }
 0x26e   : > { %1674 = vmatpush3.msra.mxu1 %v1238_v16  ;;  %1705 = vmatprep.mubr.msk.f32.mxu1 %vm1741_vm0, %v1739_v1 }
 0x26f   : > { %1675 = vmatprep.subr.mxu1 %v1739_v1  ;;  %1156 = vmatpush1.msra.mxu0 %v1133_v35 }
 0x270   : > { %1676 = vmatpush3.msra.mxu1 %v1237_v17  ;;  %1157 = vmatprep.subr.mxu0 %v1739_v1 }
 0x271   : > { %1677 = vmatprep.subr.mxu1 %v1739_v1  ;;  %1158 = vmatpush1.msra.mxu0 %v1132_v36 }
 0x272   : > { %1678 = vmatpush3.msra.mxu1 %v1236_v18  ;;  %1159 = vmatprep.subr.mxu0 %v1739_v1 }
 0x273   : > { %1679 = vmatprep.subr.mxu1 %v1739_v1 }
 0x274   : > { %1680 = vmatpush3.msra.mxu1 %v1235_v19 }
 0x275   : > { %1681 = vmatprep.subr.mxu1 %v1739_v1 }
 0x276   : > { %1682 = vmatpush3.msra.mxu1 %v1234_v21 }
 0x277   : > { %1683 = vmatprep.subr.mxu1 %v1739_v1 }
 0x278   : > { %1684 = vmatpush3.msra.mxu1 %v1233_v22 }
 0x279   : > { %1685 = vmatprep.subr.mxu1 %v1739_v1 }
 0x27a   : > { %1686 = vmatpush3.msra.mxu1 %v1232_v23 }
 0x27b   : > { %1687 = vmatprep.subr.mxu1 %v1739_v1 }
 0x27c   : > { %1688 = vmatpush3.msra.mxu1 %v1231_v24  ;;  %v1406_v24 = vld [vmem:[%s2362_s13] ss:$0 sm:$0xff] }
 0x27d   : > { %1689 = vmatprep.subr.mxu1 %v1739_v1 }
 0x27e   : > { %1690 = vmatpush3.msra.mxu1 %v1230_v25  ;;  %v1404_v25 = vld [vmem:[%s2360_s11] ss:$0 sm:$0xff] }
 0x27f   : > { %1691 = vmatprep.subr.mxu1 %v1739_v1 }
 0x280   : > { %1692 = vmatpush3.msra.mxu1 %v1229_v26 }
 0x281   : > { %1693 = vmatprep.subr.mxu1 %v1739_v1 }
 0x282   : > { %1694 = vmatpush3.msra.mxu1 %v1228_v27 }
 0x283   : > { %1695 = vmatprep.subr.mxu1 %v1739_v1 }
 0x284   : > { %1696 = vmatpush3.msra.mxu1 %v1227_v28 }
 0x285   : > { %1697 = vmatprep.subr.mxu1 %v1739_v1 }
 0x286   : > { %1698 = vmatpush3.msra.mxu1 %v1226_v29 }
 0x287   : > { %1699 = vmatprep.subr.mxu1 %v1739_v1 }
 0x288   : > { %1700 = vmatpush3.msra.mxu1 %v1225_v30 }
 0x289   : > { %1701 = vmatprep.subr.mxu1 %v1739_v1 }
 0x28a   : > { %1702 = vmatpush3.msra.mxu1 %v1224_v32 }
 0x28b   : > { %1703 = vmatprep.subr.mxu1 %v1739_v1 }
 0x28c   : > { %1704 = vmatpush3.msra.mxu1 %v1223_v33 }
 0x28d   : > { %1706 = vmatmul.mubr.f32.vlgmr.msra.gmra.mxu1 %v1922_v20  ;;  %v1131_v20 = vld [vmem:[%s2359_s10 + $0x60] sm:$0xff] }
 0x28e   : > { %1160 = vmatpush1.msra.mxu0 %v1131_v20 }
 0x28f   : > { %1161 = vmatprep.subr.mxu0 %v1739_v1 }
 0x290   : > { %1162 = vmatpush1.msra.mxu0 %v1130_v37 }
 0x291   : > { %1163 = vmatprep.subr.mxu0 %v1739_v1 }
 0x292   : > { %1164 = vmatpush1.msra.mxu0 %v1129_v38 }
 0x293   : > { %1165 = vmatprep.subr.mxu0 %v1739_v1 }
 0x294   : > { %1166 = vmatpush1.msra.mxu0 %v1128_v39 }
 0x295   : > { %1167 = vmatprep.subr.mxu0 %v1739_v1 }
 0x296   : > { %1168 = vmatpush1.msra.mxu0 %v1127_v40 }
 0x297   : > { %1169 = vmatprep.subr.mxu0 %v1739_v1 }
 0x298   : > { %1170 = vmatpush1.msra.mxu0 %v1126_v41 }
 0x299   : > { %1171 = vmatprep.subr.mxu0 %v1739_v1 }
 0x29a   : > { %1172 = vmatpush1.msra.mxu0 %v1125_v42 }
 0x29b   : > { %1173 = vmatprep.subr.mxu0 %v1739_v1 }
 0x29c   : > { %1174 = vmatpush1.msra.mxu0 %v1124_v43 }
 0x29d   : > { %1175 = vmatprep.subr.mxu0 %v1739_v1 }
 0x29e   : > { %1176 = vmatpush1.msra.mxu0 %v1123_v44 }
 0x29f   : > { %1177 = vmatprep.subr.mxu0 %v1739_v1 }
 0x2a0   : > { %1178 = vmatpush1.msra.mxu0 %v1122_v45 }
 0x2a1   : > { %1179 = vmatprep.subr.mxu0 %v1739_v1 }
 0x2a2   : > { %1180 = vmatpush1.msra.mxu0 %v1121_v46 }
 0x2a3   : > { %1181 = vmatprep.subr.mxu0 %v1739_v1 }
 0x2a4   : > { %1182 = vmatpush1.msra.mxu0 %v1120_v47 }
 0x2a5   : > { %1183 = vmatprep.subr.mxu0 %v1739_v1 }
 0x2a6   : > { %1184 = vmatpush1.msra.mxu0 %v1119_v48 }
 0x2a7   : > { %1201 = vmatprep.subr.mxu0 %v1739_v1 }
 0x2a8   : > { %1202 = vmatpush2.msra.mxu0 %v1142_v49 }
 0x2a9   : > { %1203 = vmatprep.subr.mxu0 %v1739_v1 }
 0x2aa   : > { %1204 = vmatpush2.msra.mxu0 %v1141_v50 }
 0x2ab   : > { %1205 = vmatprep.subr.mxu0 %v1739_v1 }
 0x2ac   : > { %1206 = vmatpush2.msra.mxu0 %v1140_v51 }
 0x2ad   : > { %1207 = vmatprep.subr.mxu0 %v1739_v1 }
 0x2ae   : > { %1208 = vmatpush2.msra.mxu0 %v1139_v52 }
 0x2af   : > { %1209 = vmatprep.subr.mxu0 %v1739_v1 }
 0x2b0   : > { %1210 = vmatpush2.msra.mxu0 %v1138_v53 }
 0x2b1   : > { %1211 = vmatprep.subr.mxu0 %v1739_v1 }
 0x2b2   : > { %1212 = vmatpush2.msra.mxu0 %v1137_v54 }
 0x2b3   : > { %1213 = vmatprep.subr.mxu0 %v1739_v1 }
 0x2b4   : > { %1214 = vmatpush2.msra.mxu0 %v1136_v55 }
 0x2b5   : > { %1215 = vmatprep.subr.mxu0 %v1739_v1  ;;  %v1401_v1 = vld [vmem:[%s2357_s8] ss:$0 sm:$0xff] }
 0x32b   : > { %v994_v56 = vpop.f32.mrf.mxu0 }
 0x32c   : > { %v998_v57 = vmul.f32 0.0625, %v994_v56 }
 0x32d   : > { %v1653_v58 = vpop.f32.mrf.mxu0  ;;  %v1068_v59 = vpop.f32.mrf.mxu1 }
 0x32e   : > { %v1073_v60 = vmul.f32 %v998_v57, %v998_v57  ;;  %v1072_v61 = vmul.f32 0.0625, %v1068_v59  ;;  %v1078_v3 = vrot.slane %v998_v57, %v2091_v31 }
 0x32f   : > { %v1672_v62 = vpop.f32.mrf.mxu1 }
 0x330   : > { %v1074_v0 = vsub.f32 %v1072_v61, %v1073_v60  ;;  %v1079_v5 = vsub.f32 %v2151_v63, %v1078_v3 }
 0x332   : > { %v1080_v2 = vadd.f32 1e-05, %v1074_v0 }
 0x334   : > { %1725 = vrsqrt.f32 %v1080_v2 }
 0x341   : > { %v1726_v4 = vpop.eup %1725 }
 0x342   : > { %v1085_v6 = vrot.slane %v1726_v4, %v2091_v31  ;;  %v1135_v31 = vld [vmem:[%s2359_s10 + $0x80] sm:$0xff] }
 0x343   : > { %1216 = vmatpush2.msra.mxu0 %v1135_v31 }
 0x344   : > { %v1086_v7 = vmul.f32 %v1085_v6, %v1079_v5 }
 0x346   : > { %v1093_v9 = vmul.f32 %v1401_v1, %v1086_v7 }
 0x348   : > { %v1100_v10 = vadd.f32 %v1402_v8, %v1093_v9 }
 0x34a   : > { %v1403_v11 = vmul.f32 -1.442695, %v1100_v10 }
 0x34c   : > { %1727 = vpow2.f32 %v1403_v11 }
 0x34d   : > { %v1312_v12 = vpop.f32.mrf.mxu1 }
 0x34e   : > { %v1313_v27 = vadd.f32 %v1406_v24, %v1312_v12 }
 0x34f   : > { %v1707_v13 = vpop.f32.mrf.mxu1 }
 0x359   : > { %v1728_v14 = vpop.eup %1727 }
 0x35a   : > { %v1104_v15 = vadd.f32 1.0, %v1728_v14 }
 0x35c   : > { %1729 = vrcp.f32 %v1104_v15 }
 0x369   : > { %v1730_v63 = vpop.eup %1729 }
 0x36a   : > { %v1107_v16 = vmul.f32 %v1730_v63, %v1100_v10 }
 0x36c   : > { %1115 = vrot.lane.b32.xlu0 %v1107_v16, %s1740_s27  ;;  %v1112_v17 = vrot.slane %v1107_v16, 1  ;;  %v1109_v19 = vrot.slane %v1107_v16, 7 }
 0x36e   : > { %v1114_v18 = vsel %vm703_vm4, %v1112_v17, 0.0  ;;  %v1111_v22 = vsel %vm699_vm2, 0.0, %v1109_v19 }
 0x36f   : > { %1405 = vmatprep.mubr.msk.f32.mxu0 %vm486_vm1, %v1114_v18 }
 0x3de   : > { %v1116_v21 = vpop.permute.xlu0 %1115 }
 0x3df   : > { %v1118_v23 = vsel %vm486_vm1, %v1111_v22, %v1116_v21 }
 0x3e0   : > { %1218 = vmatmul.mubr.f32.vlgmr.msra.gmra.mxu0 %v1118_v23 }
 0x4a0   : > { %v1219_v26 = vpop.f32.mrf.mxu0 }
 0x4a1   : > { %v1220_v28 = vadd.f32 %v1404_v25, %v1219_v26 }
 0x4a2   : > { %v1221_v29 = vpop.f32.mrf.mxu0 }
 0x4a3   : > { %v1316_v30 = vadd.f32 %v1313_v27, %v1220_v28 }
 0x4a5   : > { %v1317_v32 = vmul.f32 0.70710677, %v1316_v30 }
 0x4a7   : > { %1318 = vst.msk [vmem:[%s479_s28] sm:$0xff] %vm486_vm1, %v1317_v32 }
 0x4a8 PF: > { %s24_s29 = sadd.s32 1, %s1737_s29  }
 0x4a9   : > { %p21_p4 = scmp.ge.s32.totalorder %s24_s29, 4  }
 0x4ab   :  { %23 = sbr.rel (!%p21_p4) target bundleno = 1 (0x1), region = 109 }

// kernel: unet_forward.19
= control target key start
LH: loop header
LB: loop body
LE: loop exit
PB: predicated region body
PF: predicated region fallthrough
CT: control target
= control target key end

     0   :  { %s1752_s29 = smov 0   ;;  %s2207_s0 = inlined_call_operand.vmem [shape: f32[2,8,64], index: 0, kind: input, shape index: {}]   ;;  %s2208_s1 = inlined_call_operand.vmem [shape: f32[2,8,32], index: 1, kind: input, shape index: {}]   ;;  %s2209_s2 = inlined_call_operand.vmem [shape: f32[96,96], index: 2, kind: input, shape index: {}]   ;;  %s2210_s3 = inlined_call_operand.vmem [shape: f32[1,96], index: 3, kind: input, shape index: {}]   ;;  %s2211_s4 = inlined_call_operand.vmem [shape: f32[1,96], index: 4, kind: input, shape index: {}]   ;;  %s2212_s5 = inlined_call_operand.vmem [shape: f32[288,64], index: 5, kind: input, shape index: {}]   ;;  %s2213_s6 = inlined_call_operand.vmem [shape: f32[1,64], index: 6, kind: input, shape index: {}]   ;;  %s2214_s7 = inlined_call_operand.vmem [shape: f32[64,64], index: 7, kind: input, shape index: {}]   ;;  %s2215_s8 = inlined_call_operand.vmem [shape: f32[1,64], index: 8, kind: input, shape index: {}]   ;;  %s2216_s9 = inlined_call_operand.vmem [shape: f32[1,64], index: 9, kind: input, shape index: {}]   ;;  %s2217_s10 = inlined_call_operand.vmem [shape: f32[192,64], index: 10, kind: input, shape index: {}]   ;;  %s2218_s11 = inlined_call_operand.vmem [shape: f32[1,64], index: 11, kind: input, shape index: {}]   ;;  %s2219_s12 = inlined_call_operand.vmem [shape: f32[96,64], index: 12, kind: input, shape index: {}]   ;;  %s2220_s13 = inlined_call_operand.vmem [shape: f32[1,64], index: 13, kind: input, shape index: {}]   ;;  %s2221_s14 = inlined_call_operand.vmem [shape: f32[2,8,64], index: 14, kind: output, shape index: {}]  }
   0x1 LB: > { %s1388_s30 = sadd.s32 4294967295, %s1671_s29   ;;  %p1392_p0 = scmp.ge.s32.totalorder %s1671_s29, 1  ;;  %s1671_s29 = sphi %s1752_s29, %s24_s29  }
   0x2   : > { %p420_p1 = scmp.lt.s32.totalorder %s1671_s29, 3 }
   0x4   : > { %p421_p2 = pnand %p1392_p0, %p420_p1 }
   0x5   : > { %p468_p3 = scmp.lt.s32.totalorder (!%p421_p2), %s1388_s30, 1  ;;  %s1674_s27 = smov (!%p421_p2), 64  }
   0x6   : > { %424 = sbr.rel (%p421_p2) target bundleno = 1325 (0x52d), region = 76  ;;  %s1676_s17 = smov (!%p421_p2), 96  }
   0xb   : > { %v499_v0 = vld [vmem:[%s2209_s2 + $0x58] sm:$0xff]  ;;  %v1673_v1 = vmov 0.0   ;;  %v498_v2 = vld [vmem:[%s2209_s2 + $0x50] sm:$0xff]  ;;  %s2223_s30 = smov (!%p468_p3, %s1388_s30), 1  ;;  %v497_v3 = vld [vmem:[%s2209_s2 + $0x48] sm:$0xff]  ;;  %vm1675_vm0 = vmmov 0  }
   0xc   : > { %1511 = vmatprep.subr.mxu0 %v1673_v1  ;;  %1538 = vmatprep.subr.mxu1 %v1673_v1  ;;  %s1773_s21 = sshll.u32 %s2223_s30, 3  ;;  %v496_v4 = vld [vmem:[%s2209_s2 + $0x40] sm:$0xff]  ;;  %v495_v6 = vld [vmem:[%s2209_s2 + $0x38] sm:$0xff]  ;;  %v494_v7 = vld [vmem:[%s2209_s2 + $0x30] sm:$0xff]  ;;  %vm486_vm1 = vcmask 523264   ;;  %vm502_vm2 = vcmask 785408  }
   0xd   : > { %1512 = vmatpush3.msra.mxu0 %v499_v0  ;;  %1539 = vmatpush3.msra.mxu1 %v499_v0  ;;  %s475_s24 = scalar_lea.vmem %s2208_s1, %s1773_s21  ;;  %v493_v8 = vld [vmem:[%s2209_s2 + $0x28] sm:$0xff]  ;;  %v492_v9 = vld [vmem:[%s2209_s2 + $0x20] sm:$0xff]  ;;  %v491_v10 = vld [vmem:[%s2209_s2 + $0x18] sm:$0xff]  ;;  %s471_s18 = scalar_lea.vmem %s2207_s0, %s1773_s21  ;;  %vm708_vm3 = vcmask 1046528   ;;  %vm704_vm4 = vcmask 1040384   ;;  %vm762_vm5 = vcmask 261120  }
   0xe   : > { %1513 = vmatprep.subr.mxu0 %v1673_v1  ;;  %1540 = vmatprep.subr.mxu1 %v1673_v1  ;;  %v481_v5 = vld [vmem:[%s475_s24] sm:$0xff]  ;;  %v490_v11 = vld [vmem:[%s2209_s2 + $0x10] sm:$0xff]  ;;  %v489_v12 = vld [vmem:[%s2209_s2 + $0x8] sm:$0xff]  ;;  %s479_s28 = scalar_lea.vmem %s2221_s14, %s1773_s21 }
   0xf   : > { %1514 = vmatpush3.msra.mxu0 %v498_v2  ;;  %1541 = vmatpush3.msra.mxu1 %v498_v2  ;;  %v488_v13 = vld [vmem:[%s2209_s2] sm:$0xff]  ;;  %v750_v32 = vld [vmem:[%s2212_s5 + $0xf8] sm:$0xff]  ;;  %v749_v34 = vld [vmem:[%s2212_s5 + $0xf0] sm:$0xff] }
  0x10   : > { %1515 = vmatprep.subr.mxu0 %v1673_v1  ;;  %1542 = vmatprep.subr.mxu1 %v1673_v1  ;;  %v480_v14 = vld [vmem:[%s471_s18] sm:$0xff]  ;;  %v734_v33 = vld [vmem:[%s2212_s5 + $0x78] sm:$0xff]  ;;  %v733_v35 = vld [vmem:[%s2212_s5 + $0x70] sm:$0xff] }
  0x11   : > { %1516 = vmatpush3.msra.mxu0 %v497_v3  ;;  %1543 = vmatpush3.msra.mxu1 %v497_v3  ;;  %v748_v36 = vld [vmem:[%s2212_s5 + $0xe8] sm:$0xff]  ;;  %v747_v38 = vld [vmem:[%s2212_s5 + $0xe0] sm:$0xff]  ;;  %v746_v40 = vld [vmem:[%s2212_s5 + $0xd8] sm:$0xff] }
  0x12   : > { %483 = vrot.lane.b32.xlu0 %v481_v5, %s1674_s27  ;;  %1517 = vmatprep.subr.mxu0 %v1673_v1  ;;  %v732_v37 = vld [vmem:[%s2212_s5 + $0x68] sm:$0xff]  ;;  %v731_v39 = vld [vmem:[%s2212_s5 + $0x60] sm:$0xff]  ;;  %v730_v41 = vld [vmem:[%s2212_s5 + $0x58] sm:$0xff] }
  0x13   : > { %1518 = vmatpush3.msra.mxu0 %v496_v4  ;;  %1544 = vmatprep.subr.mxu1 %v1673_v1  ;;  %v745_v42 = vld [vmem:[%s2212_s5 + $0xd0] sm:$0xff]  ;;  %v754_v43 = vld [vmem:[%s2212_s5 + $0x118] sm:$0xff]  ;;  %v744_v46 = vld [vmem:[%s2212_s5 + $0xc8] sm:$0xff] }
  0x14   : > { %1519 = vmatprep.subr.mxu0 %v1673_v1  ;;  %1545 = vmatpush3.msra.mxu1 %v496_v4  ;;  %v729_v44 = vld [vmem:[%s2212_s5 + $0x50] sm:$0xff]  ;;  %v728_v47 = vld [vmem:[%s2212_s5 + $0x48] sm:$0xff]  ;;  %v743_v48 = vld [vmem:[%s2212_s5 + $0xc0] sm:$0xff] }
  0x15   : > { %1520 = vmatpush3.msra.mxu0 %v495_v6  ;;  %1546 = vmatprep.subr.mxu1 %v1673_v1  ;;  %v753_v45 = vld [vmem:[%s2212_s5 + $0x110] sm:$0xff]  ;;  %v727_v49 = vld [vmem:[%s2212_s5 + $0x40] sm:$0xff]  ;;  %v742_v50 = vld [vmem:[%s2212_s5 + $0xb8] sm:$0xff] }
  0x16   : > { %1521 = vmatprep.subr.mxu0 %v1673_v1  ;;  %1547 = vmatpush3.msra.mxu1 %v495_v6  ;;  %v726_v51 = vld [vmem:[%s2212_s5 + $0x38] sm:$0xff]  ;;  %v741_v52 = vld [vmem:[%s2212_s5 + $0xb0] sm:$0xff]  ;;  %v740_v54 = vld [vmem:[%s2212_s5 + $0xa8] sm:$0xff]  ;;  %v668_v6 = vlaneseq }
  0x17   : > { %1522 = vmatpush3.msra.mxu0 %v494_v7  ;;  %1548 = vmatprep.subr.mxu1 %v1673_v1  ;;  %v725_v53 = vld [vmem:[%s2212_s5 + $0x30] sm:$0xff]  ;;  %v724_v55 = vld [vmem:[%s2212_s5 + $0x28] sm:$0xff]  ;;  %v739_v56 = vld [vmem:[%s2212_s5 + $0xa0] sm:$0xff] }
  0x18   : > { %1523 = vmatprep.subr.mxu0 %v1673_v1  ;;  %1549 = vmatpush3.msra.mxu1 %v494_v7  ;;  %v723_v57 = vld [vmem:[%s2212_s5 + $0x20] sm:$0xff]  ;;  %v738_v58 = vld [vmem:[%s2212_s5 + $0x98] sm:$0xff]  ;;  %v737_v60 = vld [vmem:[%s2212_s5 + $0x90] sm:$0xff] }
  0x19   : > { %1524 = vmatpush3.msra.mxu0 %v493_v8  ;;  %1550 = vmatprep.subr.mxu1 %v1673_v1  ;;  %v722_v59 = vld [vmem:[%s2212_s5 + $0x18] sm:$0xff] }
  0x1a   : > { %1525 = vmatprep.subr.mxu0 %v1673_v1  ;;  %1551 = vmatpush3.msra.mxu1 %v493_v8  ;;  %v669_v8 = vshrl.u32 %v668_v6, 7 }
  0x1b   : > { %1526 = vmatpush3.msra.mxu0 %v492_v9  ;;  %1552 = vmatprep.subr.mxu1 %v1673_v1 }
  0x1c   : > { %1527 = vmatprep.subr.mxu0 %v1673_v1  ;;  %1553 = vmatpush3.msra.mxu1 %v492_v9  ;;  %v1937_v9 = vsub.s32 0, %v669_v8  ;;  %v1239_v8 = vld [vmem:[%s2219_s12 + $0x58] sm:$0xff] }
  0x1d   : > { %1528 = vmatpush3.msra.mxu0 %v491_v10  ;;  %1554 = vmatprep.subr.mxu1 %v1673_v1 }
  0x1e   : > { %1529 = vmatprep.subr.mxu0 %v1673_v1  ;;  %1555 = vmatpush3.msra.mxu1 %v491_v10 }
  0x1f   : > { %1530 = vmatpush3.msra.mxu0 %v490_v11  ;;  %1556 = vmatprep.subr.mxu1 %v1673_v1 }
  0x20   : > { %1531 = vmatprep.subr.mxu0 %v1673_v1  ;;  %1557 = vmatpush3.msra.mxu1 %v490_v11 }
  0x21   : > { %1532 = vmatpush3.msra.mxu0 %v489_v12  ;;  %1558 = vmatprep.subr.mxu1 %v1673_v1 }
  0x22   : > { %1533 = vmatprep.subr.mxu0 %v1673_v1  ;;  %1535 = vmatprep.mubr.msk.f32.mxu0 %vm1675_vm0, %v1673_v1 }
  0x23   : > { %1534 = vmatpush3.msra.mxu0 %v488_v13  ;;  %1559 = vmatpush3.msra.mxu1 %v489_v12 }
  0x24   : > { %1560 = vmatprep.subr.mxu1 %v1673_v1  ;;  %1562 = vmatprep.mubr.msk.f32.mxu1 %vm1675_vm0, %v1673_v1 }
  0x25   : > { %1561 = vmatpush3.msra.mxu1 %v488_v13  ;;  %1440 = vmatprep.subr.mxu0 %v750_v32 }
  0x26   : > { %1565 = vmatprep.subr.mxu1 %v1673_v1 }
  0x84   : > { %v484_v15 = vpop.permute.xlu0 %483 }
  0x85   : > { %v1837_v16 = vsel %vm486_vm1, %v480_v14, %v484_v15  ;;  %v1398_v14 = vld [vmem:[%s2210_s3] ss:$0 sm:$0xff] }
  0x86   : > { %v503_v17 = vsel %vm502_vm2, %v1837_v16, 0.0  ;;  %v510_v18 = vmul.f32 %v1837_v16, %v1837_v16 }
  0x87   : > { %v504_v19 = vrot.slane %v503_v17, 4 }
  0x88   : > { %v511_v20 = vsel %vm502_vm2, %v510_v18, 0.0 }
  0x89   : > { %v505_v21 = vadd.f32 %v504_v19, %v503_v17  ;;  %v512_v22 = vrot.slane %v511_v20, 4  ;;  %v1399_v17 = vld [vmem:[%s2211_s4] ss:$0 sm:$0xff] }
  0x8b   : > { %v506_v23 = vrot.slane %v505_v21, 2  ;;  %v513_v24 = vadd.f32 %v512_v22, %v511_v20 }
  0x8d   : > { %v507_v25 = vadd.f32 %v506_v23, %v505_v21  ;;  %v514_v26 = vrot.slane %v513_v24, 2  ;;  %v721_v23 = vld [vmem:[%s2212_s5 + $0x10] sm:$0xff] }
  0x8f   : > { %v508_v27 = vrot.slane %v507_v25, 1  ;;  %v515_v28 = vadd.f32 %v514_v26, %v513_v24  ;;  %v752_v24 = vld [vmem:[%s2212_s5 + $0x108] sm:$0xff] }
  0x90   : > { %v720_v26 = vld [vmem:[%s2212_s5 + $0x8] sm:$0xff] }
  0x91   : > { %v509_v29 = vadd.f32 %v508_v27, %v507_v25  ;;  %v516_v30 = vrot.slane %v515_v28, 1  ;;  %v736_v25 = vld [vmem:[%s2212_s5 + $0x88] sm:$0xff]  ;;  %v751_v27 = vld [vmem:[%s2212_s5 + $0x100] sm:$0xff] }
  0x93   : > { %1536 = vmatmul.mubr.msk.f32.vlgmr.msra.gmra.mxu0 %vm502_vm2, %v509_v29  ;;  %v517_v31 = vadd.f32 %v516_v30, %v515_v28  ;;  %v735_v28 = vld [vmem:[%s2212_s5 + $0x80] sm:$0xff] }
  0x94   : > { %1441 = vmatpush3.msra.mxu0 %v734_v33  ;;  %v719_v29 = vld [vmem:[%s2212_s5] sm:$0xff] }
  0x95   : > { %1563 = vmatmul.mubr.msk.f32.vlgmr.msra.gmra.mxu1 %vm502_vm2, %v517_v31  ;;  %1442 = vmatprep.subr.mxu0 %v749_v34 }
  0x96   : > { %1573 = vmatprep.mubr.msk.f32.mxu1 %vm1675_vm0, %v1673_v1  ;;  %1443 = vmatpush3.msra.mxu0 %v733_v35 }
  0x97   : > { %1444 = vmatprep.subr.mxu0 %v748_v36  ;;  %1566 = vmatpush3.msra.mxu1 %v754_v43  ;;  %v909_v43 = vld [vmem:[%s2214_s7 + $0x20] sm:$0xff] }
  0x98   : > { %1445 = vmatpush3.msra.mxu0 %v732_v37  ;;  %1567 = vmatprep.subr.mxu1 %v1673_v1 }
  0x99   : > { %1446 = vmatprep.subr.mxu0 %v747_v38  ;;  %1568 = vmatpush3.msra.mxu1 %v753_v45  ;;  %v907_v45 = vld [vmem:[%s2214_s7 + $0x10] sm:$0xff] }
  0x9a   : > { %1447 = vmatpush3.msra.mxu0 %v731_v39  ;;  %1569 = vmatprep.subr.mxu1 %v1673_v1 }
  0x9b   : > { %1448 = vmatprep.subr.mxu0 %v746_v40  ;;  %1570 = vmatpush3.msra.mxu1 %v752_v24  ;;  %v912_v40 = vld [vmem:[%s2214_s7 + $0x38] sm:$0xff]  ;;  %v1137_v24 = vld [vmem:[%s2217_s10 + $0x68] sm:$0xff] }
  0x9c   : > { %1449 = vmatpush3.msra.mxu0 %v730_v41  ;;  %1571 = vmatprep.subr.mxu1 %v1673_v1  ;;  %v911_v41 = vld [vmem:[%s2214_s7 + $0x30] sm:$0xff] }
  0x9d   : > { %1450 = vmatprep.subr.mxu0 %v745_v42  ;;  %1572 = vmatpush3.msra.mxu1 %v751_v27  ;;  %v910_v42 = vld [vmem:[%s2214_s7 + $0x28] sm:$0xff] }
  0x9e   : > { %1451 = vmatpush3.msra.mxu0 %v729_v44  ;;  %1576 = vmatprep.subr.mxu1 %v1673_v1  ;;  %v908_v44 = vld [vmem:[%s2214_s7 + $0x18] sm:$0xff]  ;;  %v1133_v27 = vld [vmem:[%s2217_s10 + $0x48] sm:$0xff] }
  0x9f   : > { %1452 = vmatprep.subr.mxu0 %v744_v46  ;;  %v906_v46 = vld [vmem:[%s2214_s7 + $0x8] sm:$0xff] }
  0xa0   : > { %1453 = vmatpush3.msra.mxu0 %v728_v47  ;;  %v905_v47 = vld [vmem:[%s2214_s7] sm:$0xff] }
  0xa1   : > { %1454 = vmatprep.subr.mxu0 %v743_v48 }
  0xa2   : > { %1455 = vmatpush3.msra.mxu0 %v727_v49 }
  0xa3   : > { %1456 = vmatprep.subr.mxu0 %v742_v50 }
  0xa4   : > { %1457 = vmatpush3.msra.mxu0 %v726_v51  ;;  %v1401_v51 = vld [vmem:[%s2213_s6] ss:$0 sm:$0xff] }
  0xa5   : > { %1458 = vmatprep.subr.mxu0 %v741_v52 }
  0xa6   : > { %1459 = vmatpush3.msra.mxu0 %v725_v53 }
  0xa7   : > { %1460 = vmatprep.subr.mxu0 %v740_v54 }
  0xa8   : > { %1461 = vmatpush3.msra.mxu0 %v724_v55 }
  0xa9   : > { %1462 = vmatprep.subr.mxu0 %v739_v56 }
  0xaa   : > { %1463 = vmatpush3.msra.mxu0 %v723_v57 }
  0xab   : > { %1464 = vmatprep.subr.mxu0 %v738_v58 }
  0xac   : > { %1465 = vmatpush3.msra.mxu0 %v722_v59 }
  0xad   : > { %1466 = vmatprep.subr.mxu0 %v737_v60 }
  0xae   : > { %1467 = vmatpush3.msra.mxu0 %v721_v23  ;;  %v1138_v23 = vld [vmem:[%s2217_s10 + $0x70] sm:$0xff] }
  0xaf   : > { %1468 = vmatprep.subr.mxu0 %v736_v25  ;;  %v1135_v25 = vld [vmem:[%s2217_s10 + $0x58] sm:$0xff] }
  0xb0   : > { %1469 = vmatpush3.msra.mxu0 %v720_v26  ;;  %v1134_v26 = vld [vmem:[%s2217_s10 + $0x50] sm:$0xff] }
  0xb1   : > { %1470 = vmatprep.subr.mxu0 %v735_v28  ;;  %v1132_v28 = vld [vmem:[%s2217_s10 + $0x40] sm:$0xff] }
  0xb2   : > { %1471 = vmatpush3.msra.mxu0 %v719_v29  ;;  %v1131_v29 = vld [vmem:[%s2217_s10 + $0x38] sm:$0xff] }
  0xb3   : > { %1158 = vmatprep.subr.mxu0 %v1673_v1 }
 0x153   : > { %v587_v61 = vpop.f32.mrf.mxu0 }
 0x154   : > { %v591_v62 = vmul.f32 0.041666668, %v587_v61 }
 0x155   : > { %v1537_v63 = vpop.f32.mrf.mxu0  ;;  %v661_v0 = vpop.f32.mrf.mxu1 }
 0x156   : > { %v666_v2 = vmul.f32 %v591_v62, %v591_v62  ;;  %v665_v3 = vmul.f32 0.041666668, %v661_v0  ;;  %v671_v10 = vrot.slane %v591_v62, %v1937_v9 }
 0x157   : > { %v1564_v4 = vpop.f32.mrf.mxu1 }
 0x158   : > { %v667_v5 = vsub.f32 %v665_v3, %v666_v2  ;;  %v672_v12 = vsub.f32 %v1837_v16, %v671_v10  ;;  %v1238_v10 = vld [vmem:[%s2219_s12 + $0x50] sm:$0xff] }
 0x15a   : > { %v673_v7 = vadd.f32 1e-05, %v667_v5 }
 0x15c   : > { %1653 = vrsqrt.f32 %v673_v7 }
 0x169   : > { %v1654_v11 = vpop.eup %1653 }
 0x16a   : > { %v678_v13 = vrot.slane %v1654_v11, %v1937_v9  ;;  %v1237_v11 = vld [vmem:[%s2219_s12 + $0x48] sm:$0xff] }
 0x16c   : > { %v679_v15 = vmul.f32 %v678_v13, %v672_v12  ;;  %v1236_v12 = vld [vmem:[%s2219_s12 + $0x40] sm:$0xff]  ;;  %v1235_v13 = vld [vmem:[%s2219_s12 + $0x38] sm:$0xff] }
 0x16e   : > { %v686_v18 = vmul.f32 %v1398_v14, %v679_v15  ;;  %v1234_v14 = vld [vmem:[%s2219_s12 + $0x30] sm:$0xff]  ;;  %v1233_v15 = vld [vmem:[%s2219_s12 + $0x28] sm:$0xff] }
 0x170   : > { %v693_v19 = vadd.f32 %v1399_v17, %v686_v18  ;;  %v1232_v17 = vld [vmem:[%s2219_s12 + $0x20] sm:$0xff]  ;;  %v1231_v18 = vld [vmem:[%s2219_s12 + $0x18] sm:$0xff] }
 0x172   : > { %v1400_v20 = vmul.f32 -1.442695, %v693_v19 }
 0x174   : > { %1655 = vpow2.f32 %v1400_v20  ;;  %v1229_v20 = vld [vmem:[%s2219_s12 + $0x8] sm:$0xff] }
 0x181   : > { %v1656_v21 = vpop.eup %1655 }
 0x182   : > { %v697_v22 = vadd.f32 1.0, %v1656_v21  ;;  %v1228_v21 = vld [vmem:[%s2219_s12] sm:$0xff] }
 0x184   : > { %1657 = vrcp.f32 %v697_v22  ;;  %v1139_v22 = vld [vmem:[%s2217_s10 + $0x78] sm:$0xff] }
 0x191   : > { %v1658_v30 = vpop.eup %1657 }
 0x192   : > { %v700_v31 = vmul.f32 %v1658_v30, %v693_v19  ;;  %v1230_v19 = vld [vmem:[%s2219_s12 + $0x10] sm:$0xff] }
 0x193   : > { %v1130_v30 = vld [vmem:[%s2217_s10 + $0x30] sm:$0xff] }
 0x194   : > { %710 = vrot.lane.b32.xlu0 %v700_v31, %s1676_s17  ;;  %v706_v32 = vrot.slane %v700_v31, 1  ;;  %v702_v34 = vrot.slane %v700_v31, 7  ;;  %v1129_v31 = vld [vmem:[%s2217_s10 + $0x28] sm:$0xff] }
 0x196   : > { %v709_v33 = vsel %vm708_vm3, %v706_v32, 0.0  ;;  %v705_v37 = vsel %vm704_vm4, 0.0, %v702_v34  ;;  %v1128_v32 = vld [vmem:[%s2217_s10 + $0x20] sm:$0xff]  ;;  %v1126_v34 = vld [vmem:[%s2217_s10 + $0x10] sm:$0xff] }
 0x197   : > { %714 = vrot.lane.b32.xlu1 %v709_v33, %s1674_s27  ;;  %v1127_v33 = vld [vmem:[%s2217_s10 + $0x18] sm:$0xff] }
 0x206   : > { %v711_v35 = vpop.permute.xlu0 %710 }
 0x207   : > { %v717_v39 = vsel %vm502_vm2, %v705_v37, %v711_v35  ;;  %v1147_v37 = vld [vmem:[%s2217_s10 + $0xb8] sm:$0xff] }
 0x209   : > { %v715_v36 = vpop.permute.xlu1 %714 }
 0x20a   : > { %1574 = vmatmul.mubr.msk.f32.vlgmr.msra.gmra.mxu1 %vm762_vm5, %v715_v36  ;;  %v718_v38 = vsel %vm486_vm1, %v711_v35, %v715_v36  ;;  %v1125_v35 = vld [vmem:[%s2217_s10 + $0x8] sm:$0xff]  ;;  %v1124_v36 = vld [vmem:[%s2217_s10] sm:$0xff] }
 0x20b   : > { %829 = vmatprep.mubr.f32.mxu0 %v718_v38  ;;  %1592 = vmatprep.mubr.msk.f32.mxu1 %vm1675_vm0, %v1673_v1  ;;  %v1146_v38 = vld [vmem:[%s2217_s10 + $0xb0] sm:$0xff] }
 0x20c   : > { %830 = vmatmul.mubr.f32.vlgmr.msra.gmra.mxu0 %v717_v39  ;;  %1577 = vmatpush3.msra.mxu1 %v912_v40  ;;  %v1145_v39 = vld [vmem:[%s2217_s10 + $0xa8] sm:$0xff] }
 0x20d   : > { %1578 = vmatprep.subr.mxu1 %v1673_v1  ;;  %1159 = vmatpush1.msra.mxu0 %v1139_v22 }
 0x20e   : > { %1579 = vmatpush3.msra.mxu1 %v911_v41  ;;  %1160 = vmatprep.subr.mxu0 %v1673_v1 }
 0x20f   : > { %1580 = vmatprep.subr.mxu1 %v1673_v1  ;;  %1161 = vmatpush1.msra.mxu0 %v1138_v23 }
 0x210   : > { %1581 = vmatpush3.msra.mxu1 %v910_v42  ;;  %1162 = vmatprep.subr.mxu0 %v1673_v1 }
 0x211   : > { %1582 = vmatprep.subr.mxu1 %v1673_v1  ;;  %1163 = vmatpush1.msra.mxu0 %v1137_v24 }
 0x212   : > { %1583 = vmatpush3.msra.mxu1 %v909_v43  ;;  %1164 = vmatprep.subr.mxu0 %v1673_v1 }
 0x213   : > { %1584 = vmatprep.subr.mxu1 %v1673_v1 }
 0x214   : > { %1585 = vmatpush3.msra.mxu1 %v908_v44 }
 0x215   : > { %1586 = vmatprep.subr.mxu1 %v1673_v1 }
 0x216   : > { %1587 = vmatpush3.msra.mxu1 %v907_v45 }
 0x217   : > { %1588 = vmatprep.subr.mxu1 %v1673_v1 }
 0x218   : > { %1589 = vmatpush3.msra.mxu1 %v906_v46 }
 0x219   : > { %1590 = vmatprep.subr.mxu1 %v1673_v1 }
 0x21a   : > { %1591 = vmatpush3.msra.mxu1 %v905_v47 }
 0x21b   : > { %1595 = vmatprep.subr.mxu1 %v1673_v1 }
 0x2ca   : > { %v901_v48 = vpop.f32.mrf.mxu1 }
 0x2cc   : > { %v1472_v49 = vpop.f32.mrf.mxu0  ;;  %v1575_v50 = vpop.f32.mrf.mxu1 }
 0x2ce   : > { %v1473_v52 = vpop.f32.mrf.mxu0 }
 0x2cf   : > { %v1474_v53 = vadd.f32 %v1473_v52, %v1472_v49 }
 0x2d1   : > { %v832_v54 = vadd.f32 %v1474_v53, %v1401_v51 }
 0x2d3   : > { %v2014_v55 = vadd.f32 %v901_v48, %v832_v54 }
 0x2d5   : > { %v915_v56 = vsel %vm486_vm1, %v2014_v55, 0.0  ;;  %v922_v57 = vmul.f32 %v2014_v55, %v2014_v55 }
 0x2d6   : > { %v916_v58 = vrot.slane %v915_v56, 4 }
 0x2d7   : > { %v923_v60 = vsel %vm486_vm1, %v922_v57, 0.0 }
 0x2d8   : > { %v917_v59 = vadd.f32 %v916_v58, %v915_v56  ;;  %v924_v63 = vrot.slane %v923_v60, 4 }
 0x2da   : > { %v918_v61 = vrot.slane %v917_v59, 2  ;;  %v925_v2 = vadd.f32 %v924_v63, %v923_v60  ;;  %v1406_v60 = vld [vmem:[%s2216_s9] ss:$0 sm:$0xff] }
 0x2dc   : > { %v919_v62 = vadd.f32 %v918_v61, %v917_v59  ;;  %v926_v4 = vrot.slane %v925_v2, 2 }
 0x2de   : > { %v920_v0 = vrot.slane %v919_v62, 1  ;;  %v927_v5 = vadd.f32 %v926_v4, %v925_v2 }
 0x2e0   : > { %v921_v3 = vadd.f32 %v920_v0, %v919_v62  ;;  %v928_v6 = vrot.slane %v927_v5, 1 }
 0x2e2   : > { %1593 = vmatmul.mubr.msk.f32.vlgmr.msra.gmra.mxu1 %vm486_vm1, %v921_v3  ;;  %v929_v7 = vadd.f32 %v928_v6, %v927_v5 }
 0x2e3   : > { %1596 = vmatpush3.msra.mxu1 %v912_v40  ;;  %1611 = vmatprep.mubr.msk.f32.mxu1 %vm1675_vm0, %v1673_v1  ;;  %v1144_v40 = vld [vmem:[%s2217_s10 + $0xa0] sm:$0xff] }
 0x2e4   : > { %1597 = vmatprep.subr.mxu1 %v1673_v1 }
 0x2e5   : > { %1598 = vmatpush3.msra.mxu1 %v911_v41  ;;  %v1143_v41 = vld [vmem:[%s2217_s10 + $0x98] sm:$0xff] }
 0x2e6   : > { %1599 = vmatprep.subr.mxu1 %v1673_v1 }
 0x2e7   : > { %1600 = vmatpush3.msra.mxu1 %v910_v42  ;;  %v1142_v42 = vld [vmem:[%s2217_s10 + $0x90] sm:$0xff] }
 0x2e8   : > { %1601 = vmatprep.subr.mxu1 %v1673_v1 }
 0x2e9   : > { %1602 = vmatpush3.msra.mxu1 %v909_v43  ;;  %v1141_v43 = vld [vmem:[%s2217_s10 + $0x88] sm:$0xff] }
 0x2ea   : > { %1603 = vmatprep.subr.mxu1 %v1673_v1 }
 0x2eb   : > { %1604 = vmatpush3.msra.mxu1 %v908_v44 }
 0x2ec   : > { %1605 = vmatprep.subr.mxu1 %v1673_v1 }
 0x2ed   : > { %1606 = vmatpush3.msra.mxu1 %v907_v45 }
 0x2ee   : > { %1607 = vmatprep.subr.mxu1 %v1673_v1 }
 0x2ef   : > { %1608 = vmatpush3.msra.mxu1 %v906_v46 }
 0x2f0   : > { %1609 = vmatprep.subr.mxu1 %v1673_v1 }
 0x2f1   : > { %1610 = vmatpush3.msra.mxu1 %v905_v47 }
 0x2f2   : > { %1612 = vmatmul.mubr.msk.f32.vlgmr.msra.gmra.mxu1 %vm486_vm1, %v929_v7  ;;  %1614 = vmatprep.subr.mxu1 %v1673_v1 }
 0x2f3   : > { %1615 = vmatpush3.msra.mxu1 %v1239_v8  ;;  %1638 = vmatprep.mubr.msk.f32.mxu1 %vm1675_vm0, %v1673_v1 }
 0x2f4   : > { %1616 = vmatprep.subr.mxu1 %v1673_v1 }
 0x2f5   : > { %1617 = vmatpush3.msra.mxu1 %v1238_v10 }
 0x2f6   : > { %1618 = vmatprep.subr.mxu1 %v1673_v1 }
 0x2f7   : > { %1619 = vmatpush3.msra.mxu1 %v1237_v11 }
 0x2f8   : > { %1620 = vmatprep.subr.mxu1 %v1673_v1 }
 0x2f9   : > { %1621 = vmatpush3.msra.mxu1 %v1236_v12  ;;  %v1410_v12 = vld [vmem:[%s2220_s13] ss:$0 sm:$0xff] }
 0x2fa   : > { %1622 = vmatprep.subr.mxu1 %v1673_v1 }
 0x2fb   : > { %1623 = vmatpush3.msra.mxu1 %v1235_v13  ;;  %v1408_v13 = vld [vmem:[%s2218_s11] ss:$0 sm:$0xff] }
 0x2fc   : > { %1624 = vmatprep.subr.mxu1 %v1673_v1 }
 0x2fd   : > { %1625 = vmatpush3.msra.mxu1 %v1234_v14 }
 0x2fe   : > { %1626 = vmatprep.subr.mxu1 %v1673_v1 }
 0x2ff   : > { %1627 = vmatpush3.msra.mxu1 %v1233_v15 }
 0x300   : > { %1628 = vmatprep.subr.mxu1 %v1673_v1 }
 0x301   : > { %1629 = vmatpush3.msra.mxu1 %v1232_v17 }
 0x302   : > { %1630 = vmatprep.subr.mxu1 %v1673_v1 }
 0x303   : > { %1631 = vmatpush3.msra.mxu1 %v1231_v18 }
 0x304   : > { %1632 = vmatprep.subr.mxu1 %v1673_v1 }
 0x305   : > { %1633 = vmatpush3.msra.mxu1 %v1230_v19 }
 0x306   : > { %1634 = vmatprep.subr.mxu1 %v1673_v1 }
 0x307   : > { %1635 = vmatpush3.msra.mxu1 %v1229_v20 }
 0x308   : > { %1636 = vmatprep.subr.mxu1 %v1673_v1 }
 0x309   : > { %1637 = vmatpush3.msra.mxu1 %v1228_v21 }
 0x30a   : > { %1639 = vmatmul.mubr.msk.f32.vlgmr.msra.gmra.mxu1 %vm502_vm2, %v1837_v16  ;;  %v1136_v16 = vld [vmem:[%s2217_s10 + $0x60] sm:$0xff] }
 0x30b   : > { %1165 = vmatpush1.msra.mxu0 %v1136_v16 }
 0x30c   : > { %1166 = vmatprep.subr.mxu0 %v1673_v1 }
 0x30d   : > { %1167 = vmatpush1.msra.mxu0 %v1135_v25 }
 0x30e   : > { %1168 = vmatprep.subr.mxu0 %v1673_v1 }
 0x30f   : > { %1169 = vmatpush1.msra.mxu0 %v1134_v26 }
 0x310   : > { %1170 = vmatprep.subr.mxu0 %v1673_v1 }
 0x311   : > { %1171 = vmatpush1.msra.mxu0 %v1133_v27 }
 0x312   : > { %1172 = vmatprep.subr.mxu0 %v1673_v1 }
 0x313   : > { %1173 = vmatpush1.msra.mxu0 %v1132_v28 }
 0x314   : > { %1174 = vmatprep.subr.mxu0 %v1673_v1 }
 0x315   : > { %1175 = vmatpush1.msra.mxu0 %v1131_v29 }
 0x316   : > { %1176 = vmatprep.subr.mxu0 %v1673_v1 }
 0x317   : > { %1177 = vmatpush1.msra.mxu0 %v1130_v30 }
 0x318   : > { %1178 = vmatprep.subr.mxu0 %v1673_v1 }
 0x319   : > { %1179 = vmatpush1.msra.mxu0 %v1129_v31 }
 0x31a   : > { %1180 = vmatprep.subr.mxu0 %v1673_v1 }
 0x31b   : > { %1181 = vmatpush1.msra.mxu0 %v1128_v32 }
 0x31c   : > { %1182 = vmatprep.subr.mxu0 %v1673_v1 }
 0x31d   : > { %1183 = vmatpush1.msra.mxu0 %v1127_v33 }
 0x31e   : > { %1184 = vmatprep.subr.mxu0 %v1673_v1 }
 0x31f   : > { %1185 = vmatpush1.msra.mxu0 %v1126_v34 }
 0x320   : > { %1186 = vmatprep.subr.mxu0 %v1673_v1 }
 0x321   : > { %1187 = vmatpush1.msra.mxu0 %v1125_v35 }
 0x322   : > { %1188 = vmatprep.subr.mxu0 %v1673_v1 }
 0x323   : > { %1189 = vmatpush1.msra.mxu0 %v1124_v36 }
 0x324   : > { %1206 = vmatprep.subr.mxu0 %v1673_v1 }
 0x325   : > { %1207 = vmatpush2.msra.mxu0 %v1147_v37 }
 0x326   : > { %1208 = vmatprep.subr.mxu0 %v1673_v1 }
 0x327   : > { %1209 = vmatpush2.msra.mxu0 %v1146_v38 }
 0x328   : > { %1210 = vmatprep.subr.mxu0 %v1673_v1 }
 0x329   : > { %1211 = vmatpush2.msra.mxu0 %v1145_v39 }
 0x32a   : > { %1212 = vmatprep.subr.mxu0 %v1673_v1 }
 0x32b   : > { %1213 = vmatpush2.msra.mxu0 %v1144_v40 }
 0x32c   : > { %1214 = vmatprep.subr.mxu0 %v1673_v1 }
 0x32d   : > { %1215 = vmatpush2.msra.mxu0 %v1143_v41 }
 0x32e   : > { %1216 = vmatprep.subr.mxu0 %v1673_v1 }
 0x32f   : > { %1217 = vmatpush2.msra.mxu0 %v1142_v42 }
 0x330   : > { %1218 = vmatprep.subr.mxu0 %v1673_v1 }
 0x331   : > { %1219 = vmatpush2.msra.mxu0 %v1141_v43 }
 0x332   : > { %1220 = vmatprep.subr.mxu0 %v1673_v1  ;;  %v1405_v1 = vld [vmem:[%s2215_s8] ss:$0 sm:$0xff] }
 0x3a2   : > { %v999_v44 = vpop.f32.mrf.mxu1 }
 0x3a3   : > { %v1003_v46 = vmul.f32 0.0625, %v999_v44 }
 0x3a4   : > { %v1594_v45 = vpop.f32.mrf.mxu1 }
 0x3a5   : > { %v1078_v48 = vmul.f32 %v1003_v46, %v1003_v46  ;;  %v1083_v53 = vrot.slane %v1003_v46, %v1937_v9 }
 0x3a7   : > { %v1084_v56 = vsub.f32 %v2014_v55, %v1083_v53 }
 0x3b2   : > { %v1073_v47 = vpop.f32.mrf.mxu1 }
 0x3b3   : > { %v1077_v49 = vmul.f32 0.0625, %v1073_v47 }
 0x3b4   : > { %v1613_v50 = vpop.f32.mrf.mxu1 }
 0x3b5   : > { %v1079_v51 = vsub.f32 %v1077_v49, %v1078_v48 }
 0x3b7   : > { %v1085_v52 = vadd.f32 1e-05, %v1079_v51 }
 0x3b9   : > { %1659 = vrsqrt.f32 %v1085_v52 }
 0x3c6   : > { %v1660_v54 = vpop.eup %1659 }
 0x3c7   : > { %v1090_v57 = vrot.slane %v1660_v54, %v1937_v9  ;;  %v1140_v9 = vld [vmem:[%s2217_s10 + $0x80] sm:$0xff] }
 0x3c8   : > { %1221 = vmatpush2.msra.mxu0 %v1140_v9 }
 0x3c9   : > { %v1091_v58 = vmul.f32 %v1090_v57, %v1084_v56 }
 0x3ca   : > { %v1316_v59 = vpop.f32.mrf.mxu1 }
 0x3cb   : > { %v1098_v61 = vmul.f32 %v1405_v1, %v1091_v58  ;;  %v1317_v15 = vadd.f32 %v1410_v12, %v1316_v59 }
 0x3cc   : > { %v1640_v62 = vpop.f32.mrf.mxu1 }
 0x3cd   : > { %v1105_v63 = vadd.f32 %v1406_v60, %v1098_v61 }
 0x3cf   : > { %v1407_v0 = vmul.f32 -1.442695, %v1105_v63 }
 0x3d1   : > { %1661 = vpow2.f32 %v1407_v0 }
 0x3de   : > { %v1662_v2 = vpop.eup %1661 }
 0x3df   : > { %v1109_v3 = vadd.f32 1.0, %v1662_v2 }
 0x3e1   : > { %1663 = vrcp.f32 %v1109_v3 }
 0x3ee   : > { %v1664_v55 = vpop.eup %1663 }
 0x3ef   : > { %v1112_v4 = vmul.f32 %v1664_v55, %v1105_v63 }
 0x3f1   : > { %1120 = vrot.lane.b32.xlu1 %v1112_v4, %s1674_s27  ;;  %v1117_v5 = vrot.slane %v1112_v4, 1  ;;  %v1114_v7 = vrot.slane %v1112_v4, 7 }
 0x3f3   : > { %v1119_v6 = vsel %vm708_vm3, %v1117_v5, 0.0  ;;  %v1116_v10 = vsel %vm704_vm4, 0.0, %v1114_v7 }
 0x3f4   : > { %1409 = vmatprep.mubr.msk.f32.mxu0 %vm486_vm1, %v1119_v6 }
 0x463   : > { %v1121_v8 = vpop.permute.xlu1 %1120 }
 0x464   : > { %v1123_v11 = vsel %vm486_vm1, %v1116_v10, %v1121_v8 }
 0x465   : > { %1223 = vmatmul.mubr.f32.vlgmr.msra.gmra.mxu0 %v1123_v11 }
 0x525   : > { %v1224_v14 = vpop.f32.mrf.mxu0 }
 0x526   : > { %v1225_v17 = vadd.f32 %v1408_v13, %v1224_v14 }
 0x527   : > { %v1226_v18 = vpop.f32.mrf.mxu0 }
 0x528   : > { %v1320_v19 = vadd.f32 %v1317_v15, %v1225_v17 }
 0x52a   : > { %v1321_v20 = vmul.f32 0.70710677, %v1320_v19 }
 0x52c   : > { %1322 = vst.msk [vmem:[%s479_s28] sm:$0xff] %vm486_vm1, %v1321_v20 }
 0x52d PF: > { %s24_s29 = sadd.s32 1, %s1671_s29  }
 0x52e   : > { %p21_p4 = scmp.ge.s32.totalorder %s24_s29, 4  }
 0x530   :  { %23 = sbr.rel (!%p21_p4) target bundleno = 1 (0x1), region = 109 }

// kernel: unet_forward.20
= control target key start
LH: loop header
LB: loop body
LE: loop exit
PB: predicated region body
PF: predicated region fallthrough
CT: control target
= control target key end

     0   :  { %s390_s12 = smov 0   ;;  %s520_s0 = inlined_call_operand.vmem [shape: f32[2,8,64], index: 0, kind: input, shape index: {}]   ;;  %s521_s1 = inlined_call_operand.vmem [shape: f32[192,128], index: 1, kind: input, shape index: {}]   ;;  %s522_s2 = inlined_call_operand.vmem [shape: f32[1,128], index: 2, kind: input, shape index: {}]   ;;  %s523_s3 = inlined_call_operand.vmem [shape: f32[2,8,128], index: 3, kind: output, shape index: {}]  }
   0x1 LB: > { %s339_s13 = sadd.s32 4294967295, %s366_s12   ;;  %p343_p0 = scmp.ge.s32.totalorder %s366_s12, 1  ;;  %s366_s12 = sphi %s390_s12, %s13_s12  }
   0x2   : > { %p136_p1 = scmp.lt.s32.totalorder %s366_s12, 3 }
   0x4   : > { %p137_p2 = pnand %p343_p0, %p136_p1 }
   0x5   : > { %p158_p3 = scmp.lt.s32.totalorder (!%p137_p2), %s339_s13, 1  ;;  %s369_s26 = smov (!%p137_p2), 64  }
   0x6   : > { %140 = sbr.rel (%p137_p2) target bundleno = 327 (0x147), region = 32 }
   0xb   : > { %v196_v0 = vld [vmem:[%s521_s1 + $0x78] sm:$0xff]  ;;  %v368_v1 = vmov 0.0   ;;  %v195_v2 = vld [vmem:[%s521_s1 + $0x70] sm:$0xff]  ;;  %s525_s13 = smov (!%p158_p3, %s339_s13), 1  ;;  %v194_v3 = vld [vmem:[%s521_s1 + $0x68] sm:$0xff]  ;;  %vm174_vm0 = vcmask 1046528  }
   0xc   : > { %215 = vmatprep.subr.mxu0 %v368_v1  ;;  %s344_s20 = sshll.u32 %s525_s13, 3  ;;  %v193_v4 = vld [vmem:[%s521_s1 + $0x60] sm:$0xff]  ;;  %v192_v6 = vld [vmem:[%s521_s1 + $0x58] sm:$0xff]  ;;  %vm179_vm1 = vcmask 523264   ;;  %v191_v8 = vld [vmem:[%s521_s1 + $0x50] sm:$0xff]  ;;  %vm170_vm2 = vcmask 1040384  }
   0xd   : > { %216 = vmatpush1.msra.mxu0 %v196_v0  ;;  %s161_s23 = scalar_lea.vmem %s520_s0, %s344_s20  ;;  %v190_v10 = vld [vmem:[%s521_s1 + $0x48] sm:$0xff]  ;;  %v189_v11 = vld [vmem:[%s521_s1 + $0x40] sm:$0xff]  ;;  %v188_v12 = vld [vmem:[%s521_s1 + $0x38] sm:$0xff] }
   0xe   : > { %217 = vmatprep.subr.mxu0 %v368_v1  ;;  %v421_v5 = vld [vmem:[%s161_s23] sm:$0xff]  ;;  %v187_v13 = vld [vmem:[%s521_s1 + $0x30] sm:$0xff]  ;;  %v186_v14 = vld [vmem:[%s521_s1 + $0x28] sm:$0xff]  ;;  %s165_s23 = scalar_lea.vmem %s523_s3, %s344_s20 }
   0xf   : > { %218 = vmatpush1.msra.mxu0 %v195_v2  ;;  %176 = vrot.lane.b32.xlu0 %v421_v5, %s369_s26  ;;  %v172_v7 = vrot.slane %v421_v5, 1  ;;  %v185_v15 = vld [vmem:[%s521_s1 + $0x20] sm:$0xff]  ;;  %v184_v16 = vld [vmem:[%s521_s1 + $0x18] sm:$0xff]  ;;  %v183_v17 = vld [vmem:[%s521_s1 + $0x10] sm:$0xff]  ;;  %v168_v28 = vrot.slane %v421_v5, 7 }
  0x10   : > { %219 = vmatprep.subr.mxu0 %v368_v1  ;;  %v182_v18 = vld [vmem:[%s521_s1 + $0x8] sm:$0xff]  ;;  %v181_v19 = vld [vmem:[%s521_s1] sm:$0xff]  ;;  %v204_v20 = vld [vmem:[%s521_s1 + $0xb8] sm:$0xff] }
  0x11   : > { %220 = vmatpush1.msra.mxu0 %v194_v3  ;;  %v175_v9 = vsel %vm174_vm0, %v172_v7, 0.0  ;;  %v203_v21 = vld [vmem:[%s521_s1 + $0xb0] sm:$0xff]  ;;  %v202_v22 = vld [vmem:[%s521_s1 + $0xa8] sm:$0xff]  ;;  %v201_v23 = vld [vmem:[%s521_s1 + $0xa0] sm:$0xff]  ;;  %v171_v29 = vsel %vm170_vm2, 0.0, %v168_v28 }
  0x12   : > { %221 = vmatprep.subr.mxu0 %v368_v1  ;;  %347 = vmatprep.mubr.msk.f32.mxu0 %vm179_vm1, %v175_v9  ;;  %v200_v24 = vld [vmem:[%s521_s1 + $0x98] sm:$0xff]  ;;  %v199_v25 = vld [vmem:[%s521_s1 + $0x90] sm:$0xff]  ;;  %v198_v26 = vld [vmem:[%s521_s1 + $0x88] sm:$0xff] }
  0x13   : > { %222 = vmatpush1.msra.mxu0 %v193_v4  ;;  %v197_v27 = vld [vmem:[%s521_s1 + $0x80] sm:$0xff] }
  0x14   : > { %223 = vmatprep.subr.mxu0 %v368_v1  ;;  %v346_v32 = vld [vmem:[%s522_s2] ss:$0 sm:$0xff] }
  0x15   : > { %224 = vmatpush1.msra.mxu0 %v192_v6 }
  0x16   : > { %225 = vmatprep.subr.mxu0 %v368_v1 }
  0x17   : > { %226 = vmatpush1.msra.mxu0 %v191_v8 }
  0x18   : > { %227 = vmatprep.subr.mxu0 %v368_v1 }
  0x19   : > { %228 = vmatpush1.msra.mxu0 %v190_v10 }
  0x1a   : > { %229 = vmatprep.subr.mxu0 %v368_v1 }
  0x1b   : > { %230 = vmatpush1.msra.mxu0 %v189_v11 }
  0x1c   : > { %231 = vmatprep.subr.mxu0 %v368_v1 }
  0x1d   : > { %232 = vmatpush1.msra.mxu0 %v188_v12 }
  0x1e   : > { %233 = vmatprep.subr.mxu0 %v368_v1 }
  0x1f   : > { %234 = vmatpush1.msra.mxu0 %v187_v13 }
  0x20   : > { %235 = vmatprep.subr.mxu0 %v368_v1 }
  0x21   : > { %236 = vmatpush1.msra.mxu0 %v186_v14 }
  0x22   : > { %237 = vmatprep.subr.mxu0 %v368_v1 }
  0x23   : > { %238 = vmatpush1.msra.mxu0 %v185_v15 }
  0x24   : > { %239 = vmatprep.subr.mxu0 %v368_v1 }
  0x25   : > { %240 = vmatpush1.msra.mxu0 %v184_v16 }
  0x26   : > { %241 = vmatprep.subr.mxu0 %v368_v1 }
  0x27   : > { %242 = vmatpush1.msra.mxu0 %v183_v17 }
  0x28   : > { %243 = vmatprep.subr.mxu0 %v368_v1 }
  0x29   : > { %244 = vmatpush1.msra.mxu0 %v182_v18 }
  0x2a   : > { %245 = vmatprep.subr.mxu0 %v368_v1 }
  0x2b   : > { %246 = vmatpush1.msra.mxu0 %v181_v19 }
  0x2c   : > { %263 = vmatprep.subr.mxu0 %v368_v1 }
  0x2d   : > { %264 = vmatpush2.msra.mxu0 %v204_v20 }
  0x2e   : > { %265 = vmatprep.subr.mxu0 %v368_v1 }
  0x2f   : > { %266 = vmatpush2.msra.mxu0 %v203_v21 }
  0x30   : > { %267 = vmatprep.subr.mxu0 %v368_v1 }
  0x31   : > { %268 = vmatpush2.msra.mxu0 %v202_v22 }
  0x32   : > { %269 = vmatprep.subr.mxu0 %v368_v1 }
  0x33   : > { %270 = vmatpush2.msra.mxu0 %v201_v23 }
  0x34   : > { %271 = vmatprep.subr.mxu0 %v368_v1 }
  0x35   : > { %272 = vmatpush2.msra.mxu0 %v200_v24 }
  0x36   : > { %273 = vmatprep.subr.mxu0 %v368_v1 }
  0x37   : > { %274 = vmatpush2.msra.mxu0 %v199_v25 }
  0x38   : > { %275 = vmatprep.subr.mxu0 %v368_v1 }
  0x39   : > { %276 = vmatpush2.msra.mxu0 %v198_v26 }
  0x3a   : > { %277 = vmatprep.subr.mxu0 %v368_v1 }
  0x3b   : > { %278 = vmatpush2.msra.mxu0 %v197_v27 }
  0x81   : > { %v177_v30 = vpop.permute.xlu0 %176 }
  0x82   : > { %v180_v31 = vsel %vm179_vm1, %v171_v29, %v177_v30 }
  0x83   : > { %280 = vmatmul.mubr.f32.vlgmr.msra.gmra.mxu0 %v180_v31 }
 0x143   : > { %v281_v33 = vpop.f32.mrf.mxu0 }
 0x144   : > { %v282_v34 = vadd.f32 %v346_v32, %v281_v33 }
 0x145   : > { %v283_v35 = vpop.f32.mrf.mxu0 }
 0x146   : > { %285 = vst [vmem:[%s165_s23] sm:$0xff] %v282_v34 }
 0x147 PF: > { %s13_s12 = sadd.s32 1, %s366_s12  }
 0x148   : > { %p10_p4 = scmp.ge.s32.totalorder %s13_s12, 4  }
 0x14a   :  { %12 = sbr.rel (!%p10_p4) target bundleno = 1 (0x1), region = 62 }

// kernel: unet_forward.23
= control target key start
LH: loop header
LB: loop body
LE: loop exit
PB: predicated region body
PF: predicated region fallthrough
CT: control target
= control target key end

     0   :  { %s830_s21 = smov 0   ;;  %s933_s0 = inlined_call_operand.vmem [shape: f32[2,16,32], index: 0, kind: input, shape index: {}]   ;;  %s934_s1 = inlined_call_operand.vmem [shape: f32[32,32], index: 1, kind: input, shape index: {}]   ;;  %s935_s2 = inlined_call_operand.vmem [shape: f32[1,32], index: 2, kind: input, shape index: {}]   ;;  %s936_s3 = inlined_call_operand.vmem [shape: f32[1,32], index: 3, kind: input, shape index: {}]   ;;  %s937_s4 = inlined_call_operand.vmem [shape: f32[96,128], index: 4, kind: input, shape index: {}]   ;;  %s938_s5 = inlined_call_operand.vmem [shape: f32[1,128], index: 5, kind: input, shape index: {}]   ;;  %s939_s6 = inlined_call_operand.vmem [shape: f32[2,16,128], index: 6, kind: output, shape index: {}]  }
   0x1 LB: > { %s666_s22 = sadd.s32 4294967295, %s789_s21   ;;  %p670_p0 = scmp.ge.s32.totalorder %s789_s21, 1  ;;  %s789_s21 = sphi %s830_s21, %s16_s21  }
   0x2   : > { %p212_p1 = scmp.lt.s32.totalorder %s789_s21, 3 }
   0x4   : > { %p213_p2 = pnand %p670_p0, %p212_p1 }
   0x5   : > { %p242_p3 = scmp.lt.s32.totalorder (!%p213_p2), %s666_s22, 1  ;;  %s793_s18 = smov (!%p213_p2), 32  }
   0x6   : > { %216 = sbr.rel (%p213_p2) target bundleno = 615 (0x267), region = 44  ;;  %s794_s19 = smov (!%p213_p2), 64  }
   0xb   : > { %v257_v0 = vld [vmem:[%s934_s1 + $0x18] sm:$0xff]  ;;  %v791_v1 = vmov 0.0   ;;  %v256_v2 = vld [vmem:[%s934_s1 + $0x10] sm:$0xff]  ;;  %vm792_vm0 = vmmov 0   ;;  %s941_s22 = smov (!%p242_p3, %s666_s22), 1  ;;  %v255_v3 = vld [vmem:[%s934_s1 + $0x8] sm:$0xff]  ;;  %v431_v43 = vlaneseq }
   0xc   : > { %712 = vmatprep.subr.mxu1 %v791_v1  ;;  %720 = vmatprep.mubr.msk.f32.mxu1 %vm792_vm0, %v791_v1  ;;  %s686_s29 = sshll.u32 %s941_s22, 4  ;;  %vm260_vm1 = vcmask 261120   ;;  %v254_v4 = vld [vmem:[%s934_s1] sm:$0xff]  ;;  %v519_v27 = vld [vmem:[%s937_s4 + $0x58] sm:$0xff]  ;;  %v518_v28 = vld [vmem:[%s937_s4 + $0x50] sm:$0xff]  ;;  %vm484_vm2 = vcmask 1046528  }
   0xd   : > { %713 = vmatpush3.msra.mxu1 %v257_v0  ;;  %s246_s10 = scalar_lea.vmem %s933_s0, %s686_s29  ;;  %734 = vmatprep.subr.mxu0 %v519_v27  ;;  %v517_v29 = vld [vmem:[%s937_s4 + $0x48] sm:$0xff]  ;;  %v516_v30 = vld [vmem:[%s937_s4 + $0x40] sm:$0xff]  ;;  %v515_v31 = vld [vmem:[%s937_s4 + $0x38] sm:$0xff]  ;;  %v432_v45 = vshrl.u32 %v431_v43, 7  ;;  %vm477_vm3 = vcmask 1040384   ;;  %vm505_vm4 = vcmask 523264   ;;  %s251_s26 = scalar_lea.vmem %s939_s6, %s686_s29 }
   0xe   : > { %714 = vmatprep.subr.mxu1 %v791_v1  ;;  %v859_v5 = vld [vmem:[%s246_s10] sm:$0xff]  ;;  %v861_v6 = vld [vmem:[%s246_s10 + $0x8] sm:$0xff]  ;;  %735 = vmatpush3.msra.mxu0 %v519_v27  ;;  %v514_v32 = vld [vmem:[%s937_s4 + $0x30] sm:$0xff]  ;;  %vm527_vm5 = vcmask 785408  }
   0xf   : > { %715 = vmatpush3.msra.mxu1 %v256_v2  ;;  %v261_v7 = vsel %vm260_vm1, %v859_v5, 0.0  ;;  %v262_v8 = vsel %vm260_vm1, %v861_v6, 0.0  ;;  %v270_v9 = vmul.f32 %v859_v5, %v859_v5  ;;  %v271_v10 = vmul.f32 %v861_v6, %v861_v6  ;;  %736 = vmatprep.subr.mxu0 %v518_v28  ;;  %v513_v33 = vld [vmem:[%s937_s4 + $0x28] sm:$0xff]  ;;  %v512_v34 = vld [vmem:[%s937_s4 + $0x20] sm:$0xff] }
  0x10   : > { %716 = vmatprep.subr.mxu1 %v791_v1  ;;  %v263_v11 = vadd.f32 %v262_v8, %v261_v7  ;;  %737 = vmatpush3.msra.mxu0 %v518_v28  ;;  %v433_v46 = vsub.s32 0, %v432_v45  ;;  %v677_v52 = vld [vmem:[%s935_s2] ss:$0 sm:$0xff] }
  0x11   : > { %717 = vmatpush3.msra.mxu1 %v255_v3  ;;  %v272_v12 = vsel %vm260_vm1, %v270_v9, 0.0  ;;  %v273_v13 = vsel %vm260_vm1, %v271_v10, 0.0  ;;  %738 = vmatprep.subr.mxu0 %v517_v29  ;;  %v678_v55 = vld [vmem:[%s936_s3] ss:$0 sm:$0xff] }
  0x12   : > { %718 = vmatprep.subr.mxu1 %v791_v1  ;;  %v264_v14 = vrot.slane %v263_v11, 4  ;;  %v274_v15 = vadd.f32 %v273_v13, %v272_v12  ;;  %739 = vmatpush3.msra.mxu0 %v517_v29 }
  0x13   : > { %719 = vmatpush3.msra.mxu1 %v254_v4  ;;  %740 = vmatprep.subr.mxu0 %v516_v30 }
  0x14   : > { %723 = vmatprep.subr.mxu1 %v791_v1  ;;  %v265_v16 = vadd.f32 %v264_v14, %v263_v11  ;;  %v275_v17 = vrot.slane %v274_v15, 4  ;;  %741 = vmatpush3.msra.mxu0 %v516_v30 }
  0x15   : > { %742 = vmatprep.subr.mxu0 %v515_v31 }
  0x16   : > { %v266_v18 = vrot.slane %v265_v16, 2  ;;  %v276_v19 = vadd.f32 %v275_v17, %v274_v15  ;;  %743 = vmatpush3.msra.mxu0 %v515_v31 }
  0x17   : > { %744 = vmatprep.subr.mxu0 %v514_v32 }
  0x18   : > { %v267_v20 = vadd.f32 %v266_v18, %v265_v16  ;;  %v277_v21 = vrot.slane %v276_v19, 2  ;;  %745 = vmatpush3.msra.mxu0 %v514_v32 }
  0x19   : > { %746 = vmatprep.subr.mxu0 %v513_v33 }
  0x1a   : > { %v268_v22 = vrot.slane %v267_v20, 1  ;;  %v278_v23 = vadd.f32 %v277_v21, %v276_v19  ;;  %747 = vmatpush3.msra.mxu0 %v513_v33 }
  0x1b   : > { %748 = vmatprep.subr.mxu0 %v512_v34 }
  0x1c   : > { %v269_v24 = vadd.f32 %v268_v22, %v267_v20  ;;  %v279_v25 = vrot.slane %v278_v23, 1  ;;  %749 = vmatpush3.msra.mxu0 %v512_v34 }
  0x1e   : > { %721 = vmatmul.mubr.msk.f32.vlgmr.msra.gmra.mxu1 %vm260_vm1, %v269_v24  ;;  %v280_v26 = vadd.f32 %v279_v25, %v278_v23 }
  0x1f   : > { %724 = vmatpush3.msra.mxu1 %v257_v0  ;;  %731 = vmatprep.mubr.msk.f32.mxu1 %vm792_vm0, %v791_v1 }
  0x20   : > { %725 = vmatprep.subr.mxu1 %v791_v1 }
  0x21   : > { %726 = vmatpush3.msra.mxu1 %v256_v2  ;;  %v511_v2 = vld [vmem:[%s937_s4 + $0x18] sm:$0xff] }
  0x22   : > { %727 = vmatprep.subr.mxu1 %v791_v1  ;;  %750 = vmatprep.subr.mxu0 %v511_v2 }
  0x23   : > { %728 = vmatpush3.msra.mxu1 %v255_v3  ;;  %v510_v3 = vld [vmem:[%s937_s4 + $0x10] sm:$0xff]  ;;  %751 = vmatpush3.msra.mxu0 %v511_v2 }
  0x24   : > { %729 = vmatprep.subr.mxu1 %v791_v1  ;;  %752 = vmatprep.subr.mxu0 %v510_v3 }
  0x25   : > { %730 = vmatpush3.msra.mxu1 %v254_v4  ;;  %753 = vmatpush3.msra.mxu0 %v510_v3  ;;  %v509_v4 = vld [vmem:[%s937_s4 + $0x8] sm:$0xff] }
  0x26   : > { %732 = vmatmul.mubr.msk.f32.vlgmr.msra.gmra.mxu1 %vm260_vm1, %v280_v26  ;;  %754 = vmatprep.subr.mxu0 %v509_v4  ;;  %v681_v26 = vld [vmem:[%s938_s5] ss:$0 sm:$0xff] }
  0x27   : > { %755 = vmatpush3.msra.mxu0 %v509_v4 }
  0xde   : > { %v350_v35 = vpop.f32.mrf.mxu1 }
  0xdf   : > { %v354_v37 = vmul.f32 0.0625, %v350_v35 }
  0xe0   : > { %v722_v36 = vpop.f32.mrf.mxu1 }
  0xe1   : > { %v429_v39 = vmul.f32 %v354_v37, %v354_v37  ;;  %v434_v47 = vrot.slane %v354_v37, %v433_v46 }
  0xe3   : > { %v435_v49 = vsub.f32 %v859_v5, %v434_v47  ;;  %v436_v50 = vsub.f32 %v861_v6, %v434_v47  ;;  %v508_v5 = vld [vmem:[%s937_s4] sm:$0xff] }
  0xe4   : > { %756 = vmatprep.subr.mxu0 %v508_v5 }
  0xe5   : > { %757 = vmatpush3.msra.mxu0 %v508_v5 }
  0xe6   : > { %v424_v38 = vpop.f32.mrf.mxu1 }
  0xe7   : > { %v428_v40 = vmul.f32 0.0625, %v424_v38 }
  0xe8   : > { %v733_v41 = vpop.f32.mrf.mxu1 }
  0xe9   : > { %v430_v42 = vsub.f32 %v428_v40, %v429_v39 }
  0xeb   : > { %v437_v44 = vadd.f32 1e-05, %v430_v42 }
  0xed   : > { %773 = vrsqrt.f32 %v437_v44 }
  0xfa   : > { %v774_v48 = vpop.eup %773 }
  0xfb   : > { %v442_v51 = vrot.slane %v774_v48, %v433_v46 }
  0xfd   : > { %v443_v53 = vmul.f32 %v442_v51, %v435_v49  ;;  %v444_v54 = vmul.f32 %v442_v51, %v436_v50 }
  0xff   : > { %v451_v56 = vmul.f32 %v677_v52, %v443_v53  ;;  %v452_v57 = vmul.f32 %v677_v52, %v444_v54 }
 0x101   : > { %v459_v58 = vadd.f32 %v678_v55, %v451_v56  ;;  %v460_v59 = vadd.f32 %v678_v55, %v452_v57 }
 0x103   : > { %v679_v60 = vmul.f32 -1.442695, %v459_v58  ;;  %v680_v61 = vmul.f32 -1.442695, %v460_v59 }
 0x105   : > { %775 = vpow2.f32 %v679_v60 }
 0x106   : > { %777 = vpow2.f32 %v680_v61 }
 0x112   : > { %v776_v62 = vpop.eup %775 }
 0x113   : > { %v778_v63 = vpop.eup %777  ;;  %v467_v0 = vadd.f32 1.0, %v776_v62 }
 0x114   : > { %v468_v1 = vadd.f32 1.0, %v778_v63 }
 0x115   : > { %779 = vrcp.f32 %v467_v0 }
 0x116   : > { %781 = vrcp.f32 %v468_v1 }
 0x122   : > { %v780_v6 = vpop.eup %779 }
 0x123   : > { %v782_v7 = vpop.eup %781  ;;  %v473_v8 = vmul.f32 %v780_v6, %v459_v58 }
 0x124   : > { %v474_v9 = vmul.f32 %v782_v7, %v460_v59 }
 0x125   : > { %490 = vrot.lane.b32.xlu0 %v473_v8, %s793_s18  ;;  %v485_v10 = vrot.slane %v473_v8, 1  ;;  %v478_v11 = vrot.slane %v473_v8, 7 }
 0x126   : > { %v486_v12 = vrot.slane %v474_v9, 1  ;;  %v479_v13 = vrot.slane %v474_v9, 7 }
 0x127   : > { %v483_v18 = vsel %vm477_vm3, 0.0, %v478_v11 }
 0x128   : > { %v487_v14 = vsel %vm484_vm2, %v485_v10, %v486_v12  ;;  %v480_v15 = vsel %vm477_vm3, %v478_v11, %v479_v13  ;;  %v489_v16 = vsel %vm484_vm2, %v486_v12, 0.0 }
 0x129   : > { %497 = vrot.lane.b32.xlu1 %v487_v14, %s794_s19  ;;  %492 = vrot.lane.b32.xlu0 %v474_v9, %s793_s18 }
 0x12d   : > { %499 = vrot.lane.b32.xlu1 %v489_v16, %s794_s19 }
 0x197   : > { %v491_v17 = vpop.permute.xlu0 %490 }
 0x198   : > { %v503_v19 = vsel %vm260_vm1, %v483_v18, %v491_v17 }
 0x19b   : > { %v498_v20 = vpop.permute.xlu1 %497  ;;  %v493_v21 = vpop.permute.xlu0 %492 }
 0x19c   : > { %v506_v22 = vsel %vm505_vm4, %v503_v19, %v498_v20  ;;  %v504_v23 = vsel %vm260_vm1, %v480_v15, %v493_v21 }
 0x19d   : > { %758 = vmatprep.mubr.msk.f32.mxu0 %vm527_vm5, %v506_v22 }
 0x19f   : > { %v500_v24 = vpop.permute.xlu1 %499 }
 0x1a0   : > { %v507_v25 = vsel %vm505_vm4, %v504_v23, %v500_v24 }
 0x1a1   : > { %759 = vmatmul.mubr.msk.f32.vlgmr.msra.gmra.mxu0 %vm527_vm5, %v507_v25 }
 0x261   : > { %v760_v27 = vpop.f32.mrf.mxu0 }
 0x262   : > { %v606_v28 = vadd.f32 %v760_v27, %v681_v26 }
 0x263   : > { %v600_v29 = vpop.f32.mrf.mxu0 }
 0x264   : > { %610 = vst [vmem:[%s251_s26 + $0x8] sm:$0xff] %v606_v28  ;;  %v601_v30 = vadd.f32 %v681_v26, %v600_v29 }
 0x266   : > { %609 = vst [vmem:[%s251_s26] sm:$0xff] %v601_v30 }
 0x267 PF: > { %s16_s21 = sadd.s32 1, %s789_s21  }
 0x268   : > { %p13_p4 = scmp.ge.s32.totalorder %s16_s21, 4  }
 0x26a   :  { %15 = sbr.rel (!%p13_p4) target bundleno = 1 (0x1), region = 74 }

// kernel: unet_forward.22
= control target key start
LH: loop header
LB: loop body
LE: loop exit
PB: predicated region body
PF: predicated region fallthrough
CT: control target
= control target key end

     0   :  { %s1696_s29 = smov 0   ;;  %s2040_s0 = inlined_call_operand.vmem [shape: f32[2,16,32], index: 0, kind: input, shape index: {}]   ;;  %s2041_s1 = inlined_call_operand.vmem [shape: f32[2,16,32], index: 1, kind: input, shape index: {}]   ;;  %s2042_s2 = inlined_call_operand.vmem [shape: f32[64,64], index: 2, kind: input, shape index: {}]   ;;  %s2043_s3 = inlined_call_operand.vmem [shape: f32[1,64], index: 3, kind: input, shape index: {}]   ;;  %s2044_s4 = inlined_call_operand.vmem [shape: f32[1,64], index: 4, kind: input, shape index: {}]   ;;  %s2045_s5 = inlined_call_operand.vmem [shape: f32[192,32], index: 5, kind: input, shape index: {}]   ;;  %s2046_s6 = inlined_call_operand.vmem [shape: f32[1,32], index: 6, kind: input, shape index: {}]   ;;  %s2047_s7 = inlined_call_operand.vmem [shape: f32[32,32], index: 7, kind: input, shape index: {}]   ;;  %s2048_s8 = inlined_call_operand.vmem [shape: f32[1,32], index: 8, kind: input, shape index: {}]   ;;  %s2049_s9 = inlined_call_operand.vmem [shape: f32[1,32], index: 9, kind: input, shape index: {}]   ;;  %s2050_s10 = inlined_call_operand.vmem [shape: f32[96,32], index: 10, kind: input, shape index: {}]   ;;  %s2051_s11 = inlined_call_operand.vmem [shape: f32[1,32], index: 11, kind: input, shape index: {}]   ;;  %s2052_s12 = inlined_call_operand.vmem [shape: f32[64,32], index: 12, kind: input, shape index: {}]   ;;  %s2053_s13 = inlined_call_operand.vmem [shape: f32[1,32], index: 13, kind: input, shape index: {}]   ;;  %s2054_s14 = inlined_call_operand.vmem [shape: f32[2,16,32], index: 14, kind: output, shape index: {}]  }
   0x1 LB: > { %s1382_s30 = sadd.s32 4294967295, %s1615_s29   ;;  %p1386_p0 = scmp.ge.s32.totalorder %s1615_s29, 1  ;;  %s1615_s29 = sphi %s1696_s29, %s24_s29  }
   0x2   : > { %p422_p1 = scmp.lt.s32.totalorder %s1615_s29, 3 }
   0x4   : > { %p423_p2 = pnand %p1386_p0, %p422_p1 }
   0x5   : > { %p473_p3 = scmp.lt.s32.totalorder (!%p423_p2), %s1382_s30, 1  ;;  %s1618_s27 = smov (!%p423_p2), 32  }
   0x6   : > { %426 = sbr.rel (%p423_p2) target bundleno = 1343 (0x53f), region = 76  ;;  %s1620_s25 = smov (!%p423_p2), 64  }
   0xb   : > { %v510_v0 = vld [vmem:[%s2042_s2 + $0x38] sm:$0xff]  ;;  %v1617_v1 = vmov 0.0   ;;  %v509_v2 = vld [vmem:[%s2042_s2 + $0x30] sm:$0xff]  ;;  %s2056_s30 = smov (!%p473_p3, %s1382_s30), 1  ;;  %v508_v3 = vld [vmem:[%s2042_s2 + $0x28] sm:$0xff]  ;;  %vm1619_vm0 = vmmov 0  }
   0xc   : > { %1471 = vmatprep.subr.mxu0 %v1617_v1  ;;  %1490 = vmatprep.subr.mxu1 %v1617_v1  ;;  %s1717_s21 = sshll.u32 %s2056_s30, 4  ;;  %v507_v4 = vld [vmem:[%s2042_s2 + $0x20] sm:$0xff]  ;;  %v506_v6 = vld [vmem:[%s2042_s2 + $0x18] sm:$0xff]  ;;  %v505_v8 = vld [vmem:[%s2042_s2 + $0x10] sm:$0xff]  ;;  %vm500_vm1 = vcmask 261120   ;;  %vm513_vm2 = vcmask 523264  }
   0xd   : > { %1472 = vmatpush3.msra.mxu0 %v510_v0  ;;  %1491 = vmatpush3.msra.mxu1 %v510_v0  ;;  %s482_s24 = scalar_lea.vmem %s2041_s1, %s1717_s21  ;;  %v504_v9 = vld [vmem:[%s2042_s2 + $0x8] sm:$0xff]  ;;  %v503_v10 = vld [vmem:[%s2042_s2] sm:$0xff]  ;;  %v766_v37 = vld [vmem:[%s2045_s5 + $0x78] sm:$0xff]  ;;  %vm737_vm3 = vcmask 1046528   ;;  %vm730_vm4 = vcmask 1040384   ;;  %vm1131_vm5 = vcmask 785408   ;;  %s487_s20 = scalar_lea.vmem %s2054_s14, %s1717_s21 }
   0xe   : > { %1473 = vmatprep.subr.mxu0 %v1617_v1  ;;  %1492 = vmatprep.subr.mxu1 %v1617_v1  ;;  %v490_v5 = vld [vmem:[%s482_s24] sm:$0xff]  ;;  %v491_v7 = vld [vmem:[%s482_s24 + $0x8] sm:$0xff]  ;;  %s477_s24 = scalar_lea.vmem %s2040_s0, %s1717_s21  ;;  %v765_v38 = vld [vmem:[%s2045_s5 + $0x70] sm:$0xff] }
   0xf   : > { %1474 = vmatpush3.msra.mxu0 %v509_v2  ;;  %1493 = vmatpush3.msra.mxu1 %v509_v2  ;;  %v488_v11 = vld [vmem:[%s477_s24] sm:$0xff]  ;;  %v489_v14 = vld [vmem:[%s477_s24 + $0x8] sm:$0xff]  ;;  %v762_v41 = vld [vmem:[%s2045_s5 + $0x58] sm:$0xff] }
  0x10   : > { %1475 = vmatprep.subr.mxu0 %v1617_v1  ;;  %1494 = vmatprep.subr.mxu1 %v1617_v1  ;;  %v764_v39 = vld [vmem:[%s2045_s5 + $0x68] sm:$0xff]  ;;  %v763_v40 = vld [vmem:[%s2045_s5 + $0x60] sm:$0xff]  ;;  %v761_v42 = vld [vmem:[%s2045_s5 + $0x50] sm:$0xff] }
  0x11   : > { %1476 = vmatpush3.msra.mxu0 %v508_v3  ;;  %1495 = vmatpush3.msra.mxu1 %v508_v3  ;;  %v760_v43 = vld [vmem:[%s2045_s5 + $0x48] sm:$0xff]  ;;  %v759_v44 = vld [vmem:[%s2045_s5 + $0x40] sm:$0xff]  ;;  %v758_v45 = vld [vmem:[%s2045_s5 + $0x38] sm:$0xff] }
  0x12   : > { %494 = vrot.lane.b32.xlu0 %v490_v5, %s1618_s27  ;;  %1477 = vmatprep.subr.mxu0 %v1617_v1  ;;  %v757_v46 = vld [vmem:[%s2045_s5 + $0x30] sm:$0xff]  ;;  %v756_v47 = vld [vmem:[%s2045_s5 + $0x28] sm:$0xff]  ;;  %v755_v48 = vld [vmem:[%s2045_s5 + $0x20] sm:$0xff]  ;;  %v684_v5 = vlaneseq }
  0x13   : > { %1478 = vmatpush3.msra.mxu0 %v507_v4  ;;  %1496 = vmatprep.subr.mxu1 %v1617_v1  ;;  %v754_v49 = vld [vmem:[%s2045_s5 + $0x18] sm:$0xff]  ;;  %v753_v50 = vld [vmem:[%s2045_s5 + $0x10] sm:$0xff]  ;;  %v752_v51 = vld [vmem:[%s2045_s5 + $0x8] sm:$0xff] }
  0x14   : > { %1479 = vmatprep.subr.mxu0 %v1617_v1  ;;  %1497 = vmatpush3.msra.mxu1 %v507_v4  ;;  %v751_v52 = vld [vmem:[%s2045_s5] sm:$0xff]  ;;  %v774_v53 = vld [vmem:[%s2045_s5 + $0xb8] sm:$0xff]  ;;  %v773_v54 = vld [vmem:[%s2045_s5 + $0xb0] sm:$0xff] }
  0x15   : > { %1480 = vmatpush3.msra.mxu0 %v506_v6  ;;  %1498 = vmatprep.subr.mxu1 %v1617_v1  ;;  %v772_v55 = vld [vmem:[%s2045_s5 + $0xa8] sm:$0xff]  ;;  %v771_v56 = vld [vmem:[%s2045_s5 + $0xa0] sm:$0xff]  ;;  %v770_v57 = vld [vmem:[%s2045_s5 + $0x98] sm:$0xff] }
  0x16   : > { %496 = vrot.lane.b32.xlu0 %v491_v7, %s1618_s27  ;;  %1481 = vmatprep.subr.mxu0 %v1617_v1  ;;  %v769_v58 = vld [vmem:[%s2045_s5 + $0x90] sm:$0xff]  ;;  %v768_v59 = vld [vmem:[%s2045_s5 + $0x88] sm:$0xff]  ;;  %v685_v7 = vshrl.u32 %v684_v5, 7 }
  0x17   : > { %1482 = vmatpush3.msra.mxu0 %v505_v8  ;;  %1499 = vmatpush3.msra.mxu1 %v506_v6 }
  0x18   : > { %1483 = vmatprep.subr.mxu0 %v1617_v1  ;;  %1500 = vmatprep.subr.mxu1 %v1617_v1 }
  0x19   : > { %1484 = vmatpush3.msra.mxu0 %v504_v9  ;;  %1501 = vmatpush3.msra.mxu1 %v505_v8  ;;  %v1874_v8 = vsub.s32 0, %v685_v7 }
  0x1a   : > { %1485 = vmatprep.subr.mxu0 %v1617_v1  ;;  %1502 = vmatprep.subr.mxu1 %v1617_v1 }
  0x1b   : > { %1486 = vmatpush3.msra.mxu0 %v503_v10  ;;  %1487 = vmatprep.mubr.msk.f32.mxu0 %vm1619_vm0, %v1617_v1 }
  0x1c   : > { %1503 = vmatpush3.msra.mxu1 %v504_v9  ;;  %1506 = vmatprep.mubr.msk.f32.mxu1 %vm1619_vm0, %v1617_v1 }
  0x1d   : > { %1504 = vmatprep.subr.mxu1 %v1617_v1  ;;  %787 = vmatprep.subr.mxu0 %v1617_v1 }
  0x1e   : > { %1505 = vmatpush3.msra.mxu1 %v503_v10 }
  0x1f   : > { %1509 = vmatprep.subr.mxu1 %v1617_v1 }
  0x84   : > { %v495_v12 = vpop.permute.xlu0 %494 }
  0x85   : > { %v1763_v13 = vsel %vm500_vm1, %v488_v11, %v495_v12 }
  0x86   : > { %v523_v15 = vmul.f32 %v1763_v13, %v1763_v13  ;;  %v514_v18 = vsel %vm513_vm2, %v1763_v13, 0.0 }
  0x88   : > { %v497_v16 = vpop.permute.xlu0 %496  ;;  %v525_v22 = vsel %vm513_vm2, %v523_v15, 0.0  ;;  %v1395_v15 = vld [vmem:[%s2043_s3] ss:$0 sm:$0xff] }
  0x89   : > { %v1768_v17 = vsel %vm500_vm1, %v489_v14, %v497_v16 }
  0x8a   : > { %v515_v19 = vsel %vm513_vm2, %v1768_v17, 0.0  ;;  %v524_v20 = vmul.f32 %v1768_v17, %v1768_v17 }
  0x8b   : > { %v516_v21 = vadd.f32 %v515_v19, %v514_v18  ;;  %v1396_v19 = vld [vmem:[%s2044_s4] ss:$0 sm:$0xff] }
  0x8c   : > { %v526_v23 = vsel %vm513_vm2, %v524_v20, 0.0 }
  0x8d   : > { %v517_v24 = vrot.slane %v516_v21, 4  ;;  %v527_v25 = vadd.f32 %v526_v23, %v525_v22 }
  0x8f   : > { %v518_v26 = vadd.f32 %v517_v24, %v516_v21  ;;  %v528_v27 = vrot.slane %v527_v25, 4 }
  0x91   : > { %v519_v28 = vrot.slane %v518_v26, 2  ;;  %v529_v29 = vadd.f32 %v528_v27, %v527_v25 }
  0x93   : > { %v520_v30 = vadd.f32 %v519_v28, %v518_v26  ;;  %v530_v31 = vrot.slane %v529_v29, 2 }
  0x95   : > { %v521_v32 = vrot.slane %v520_v30, 1  ;;  %v531_v33 = vadd.f32 %v530_v31, %v529_v29 }
  0x97   : > { %v522_v34 = vadd.f32 %v521_v32, %v520_v30  ;;  %v532_v35 = vrot.slane %v531_v33, 1  ;;  %v767_v30 = vld [vmem:[%s2045_s5 + $0x80] sm:$0xff] }
  0x99   : > { %1488 = vmatmul.mubr.msk.f32.vlgmr.msra.gmra.mxu0 %vm513_vm2, %v522_v34  ;;  %v533_v36 = vadd.f32 %v532_v35, %v531_v33 }
  0x9a   : > { %788 = vmatpush1.msra.mxu0 %v766_v37 }
  0x9b   : > { %1507 = vmatmul.mubr.msk.f32.vlgmr.msra.gmra.mxu1 %vm513_vm2, %v533_v36  ;;  %789 = vmatprep.subr.mxu0 %v1617_v1 }
  0x9c   : > { %1517 = vmatprep.mubr.msk.f32.mxu1 %vm1619_vm0, %v1617_v1  ;;  %790 = vmatpush1.msra.mxu0 %v765_v38 }
  0x9d   : > { %791 = vmatprep.subr.mxu0 %v1617_v1 }
  0x9e   : > { %792 = vmatpush1.msra.mxu0 %v764_v39 }
  0x9f   : > { %793 = vmatprep.subr.mxu0 %v1617_v1 }
  0xa0   : > { %794 = vmatpush1.msra.mxu0 %v763_v40 }
  0xa1   : > { %795 = vmatprep.subr.mxu0 %v1617_v1 }
  0xa2   : > { %796 = vmatpush1.msra.mxu0 %v762_v41 }
  0xa3   : > { %797 = vmatprep.subr.mxu0 %v1617_v1 }
  0xa4   : > { %798 = vmatpush1.msra.mxu0 %v761_v42 }
  0xa5   : > { %799 = vmatprep.subr.mxu0 %v1617_v1 }
  0xa6   : > { %800 = vmatpush1.msra.mxu0 %v760_v43 }
  0xa7   : > { %801 = vmatprep.subr.mxu0 %v1617_v1 }
  0xa8   : > { %802 = vmatpush1.msra.mxu0 %v759_v44 }
  0xa9   : > { %803 = vmatprep.subr.mxu0 %v1617_v1 }
  0xaa   : > { %804 = vmatpush1.msra.mxu0 %v758_v45 }
  0xab   : > { %805 = vmatprep.subr.mxu0 %v1617_v1 }
  0xac   : > { %806 = vmatpush1.msra.mxu0 %v757_v46 }
  0xad   : > { %807 = vmatprep.subr.mxu0 %v1617_v1 }
  0xae   : > { %808 = vmatpush1.msra.mxu0 %v756_v47  ;;  %v865_v47 = vld [vmem:[%s2047_s7 + $0x18] sm:$0xff] }
  0xaf   : > { %809 = vmatprep.subr.mxu0 %v1617_v1  ;;  %1510 = vmatpush3.msra.mxu1 %v865_v47 }
  0xb0   : > { %810 = vmatpush1.msra.mxu0 %v755_v48  ;;  %1511 = vmatprep.subr.mxu1 %v1617_v1  ;;  %v864_v48 = vld [vmem:[%s2047_s7 + $0x10] sm:$0xff] }
  0xb1   : > { %811 = vmatprep.subr.mxu0 %v1617_v1  ;;  %1512 = vmatpush3.msra.mxu1 %v864_v48 }
  0xb2   : > { %812 = vmatpush1.msra.mxu0 %v754_v49  ;;  %1513 = vmatprep.subr.mxu1 %v1617_v1  ;;  %v863_v49 = vld [vmem:[%s2047_s7 + $0x8] sm:$0xff] }
  0xb3   : > { %813 = vmatprep.subr.mxu0 %v1617_v1  ;;  %1514 = vmatpush3.msra.mxu1 %v863_v49 }
  0xb4   : > { %814 = vmatpush1.msra.mxu0 %v753_v50  ;;  %v862_v50 = vld [vmem:[%s2047_s7] sm:$0xff]  ;;  %1515 = vmatprep.subr.mxu1 %v1617_v1 }
  0xb5   : > { %815 = vmatprep.subr.mxu0 %v1617_v1  ;;  %1516 = vmatpush3.msra.mxu1 %v862_v50 }
  0xb6   : > { %816 = vmatpush1.msra.mxu0 %v752_v51  ;;  %1520 = vmatprep.subr.mxu1 %v1617_v1  ;;  %v1399_v51 = vld [vmem:[%s2046_s6] ss:$0 sm:$0xff] }
  0xb7   : > { %817 = vmatprep.subr.mxu0 %v1617_v1 }
  0xb8   : > { %818 = vmatpush1.msra.mxu0 %v751_v52 }
  0xb9   : > { %835 = vmatprep.subr.mxu0 %v1617_v1 }
  0xba   : > { %836 = vmatpush2.msra.mxu0 %v774_v53 }
  0xbb   : > { %837 = vmatprep.subr.mxu0 %v1617_v1 }
  0xbc   : > { %838 = vmatpush2.msra.mxu0 %v773_v54 }
  0xbd   : > { %839 = vmatprep.subr.mxu0 %v1617_v1 }
  0xbe   : > { %840 = vmatpush2.msra.mxu0 %v772_v55 }
  0xbf   : > { %841 = vmatprep.subr.mxu0 %v1617_v1 }
  0xc0   : > { %842 = vmatpush2.msra.mxu0 %v771_v56 }
  0xc1   : > { %843 = vmatprep.subr.mxu0 %v1617_v1 }
  0xc2   : > { %844 = vmatpush2.msra.mxu0 %v770_v57 }
  0xc3   : > { %845 = vmatprep.subr.mxu0 %v1617_v1 }
  0xc4   : > { %846 = vmatpush2.msra.mxu0 %v769_v58 }
  0xc5   : > { %847 = vmatprep.subr.mxu0 %v1617_v1 }
  0xc6   : > { %848 = vmatpush2.msra.mxu0 %v768_v59 }
  0xc7   : > { %849 = vmatprep.subr.mxu0 %v1617_v1 }
  0xc8   : > { %850 = vmatpush2.msra.mxu0 %v767_v30 }
 0x159   : > { %v603_v60 = vpop.f32.mrf.mxu0 }
 0x15a   : > { %v607_v61 = vmul.f32 0.03125, %v603_v60 }
 0x15b   : > { %v1489_v62 = vpop.f32.mrf.mxu0  ;;  %v677_v63 = vpop.f32.mrf.mxu1 }
 0x15c   : > { %v682_v0 = vmul.f32 %v607_v61, %v607_v61  ;;  %v681_v2 = vmul.f32 0.03125, %v677_v63  ;;  %v687_v9 = vrot.slane %v607_v61, %v1874_v8 }
 0x15d   : > { %v1508_v3 = vpop.f32.mrf.mxu1 }
 0x15e   : > { %v683_v4 = vsub.f32 %v681_v2, %v682_v0  ;;  %v688_v11 = vsub.f32 %v1763_v13, %v687_v9  ;;  %v689_v12 = vsub.f32 %v1768_v17, %v687_v9 }
 0x160   : > { %v690_v6 = vadd.f32 1e-05, %v683_v4 }
 0x162   : > { %1589 = vrsqrt.f32 %v690_v6 }
 0x16f   : > { %v1590_v10 = vpop.eup %1589 }
 0x170   : > { %v695_v14 = vrot.slane %v1590_v10, %v1874_v8 }
 0x172   : > { %v696_v16 = vmul.f32 %v695_v14, %v688_v11  ;;  %v697_v18 = vmul.f32 %v695_v14, %v689_v12 }
 0x174   : > { %v704_v20 = vmul.f32 %v1395_v15, %v696_v16  ;;  %v705_v21 = vmul.f32 %v1395_v15, %v697_v18  ;;  %v1123_v18 = vld [vmem:[%s2050_s10 + $0x58] sm:$0xff] }
 0x176   : > { %v712_v22 = vadd.f32 %v1396_v19, %v704_v20  ;;  %v713_v23 = vadd.f32 %v1396_v19, %v705_v21  ;;  %v1122_v19 = vld [vmem:[%s2050_s10 + $0x50] sm:$0xff]  ;;  %v1121_v20 = vld [vmem:[%s2050_s10 + $0x48] sm:$0xff]  ;;  %v1119_v21 = vld [vmem:[%s2050_s10 + $0x38] sm:$0xff] }
 0x178   : > { %v1397_v24 = vmul.f32 -1.442695, %v712_v22  ;;  %v1398_v25 = vmul.f32 -1.442695, %v713_v23 }
 0x17a   : > { %1591 = vpow2.f32 %v1397_v24  ;;  %v1116_v24 = vld [vmem:[%s2050_s10 + $0x20] sm:$0xff] }
 0x17b   : > { %1593 = vpow2.f32 %v1398_v25  ;;  %v1115_v25 = vld [vmem:[%s2050_s10 + $0x18] sm:$0xff] }
 0x187   : > { %v1592_v26 = vpop.eup %1591 }
 0x188   : > { %v1594_v27 = vpop.eup %1593  ;;  %v720_v28 = vadd.f32 1.0, %v1592_v26  ;;  %v1114_v26 = vld [vmem:[%s2050_s10 + $0x10] sm:$0xff] }
 0x189   : > { %v721_v29 = vadd.f32 1.0, %v1594_v27 }
 0x18a   : > { %1595 = vrcp.f32 %v720_v28 }
 0x18b   : > { %1597 = vrcp.f32 %v721_v29 }
 0x197   : > { %v1596_v31 = vpop.eup %1595 }
 0x198   : > { %v1598_v32 = vpop.eup %1597  ;;  %v726_v33 = vmul.f32 %v1596_v31, %v712_v22  ;;  %v1118_v22 = vld [vmem:[%s2050_s10 + $0x30] sm:$0xff] }
 0x199   : > { %v727_v34 = vmul.f32 %v1598_v32, %v713_v23  ;;  %v1117_v23 = vld [vmem:[%s2050_s10 + $0x28] sm:$0xff] }
 0x19a   : > { %743 = vrot.lane.b32.xlu1 %v726_v33, %s1620_s25  ;;  %v738_v35 = vrot.slane %v726_v33, 1  ;;  %v731_v36 = vrot.slane %v726_v33, 7 }
 0x19b   : > { %v739_v37 = vrot.slane %v727_v34, 1  ;;  %v732_v38 = vrot.slane %v727_v34, 7 }
 0x19c   : > { %v736_v42 = vsel %vm730_vm4, 0.0, %v731_v36 }
 0x19d   : > { %v740_v39 = vsel %vm737_vm3, %v738_v35, %v739_v37  ;;  %v733_v40 = vsel %vm730_vm4, %v731_v36, %v732_v38  ;;  %v742_v44 = vsel %vm737_vm3, %v739_v37, 0.0 }
 0x19e   : > { %1400 = vmatprep.mubr.msk.f32.mxu0 %vm513_vm2, %v740_v39  ;;  %745 = vrot.lane.b32.xlu1 %v727_v34, %s1620_s25 }
 0x20c   : > { %v744_v41 = vpop.permute.xlu1 %743 }
 0x20d   : > { %v749_v43 = vsel %vm513_vm2, %v736_v42, %v744_v41  ;;  %v1404_v41 = vld [vmem:[%s2048_s8] ss:$0 sm:$0xff] }
 0x20e   : > { %852 = vmatmul.mubr.f32.vlgmr.msra.gmra.mxu0 %v749_v43 }
 0x20f   : > { %1401 = vmatprep.mubr.msk.f32.mxu0 %vm513_vm2, %v742_v44  ;;  %v1405_v44 = vld [vmem:[%s2049_s9] ss:$0 sm:$0xff] }
 0x210   : > { %v746_v45 = vpop.permute.xlu1 %745 }
 0x211   : > { %v750_v46 = vsel %vm513_vm2, %v733_v40, %v746_v45 }
 0x212   : > { %857 = vmatmul.mubr.f32.gmra.mxu0 %v750_v46 }
 0x2ce   : > { %v853_v52 = vpop.f32.mrf.mxu0 }
 0x2cf   : > { %v1918_v53 = vadd.f32 %v1399_v51, %v853_v52 }
 0x2d0   : > { %v855_v54 = vpop.f32.mrf.mxu0 }
 0x2d1   : > { %v877_v56 = vmul.f32 %v1918_v53, %v1918_v53  ;;  %v868_v59 = vsel %vm500_vm1, %v1918_v53, 0.0  ;;  %v1113_v54 = vld [vmem:[%s2050_s10 + $0x8] sm:$0xff] }
 0x2d2   : > { %v858_v55 = vpop.f32.mrf.mxu0 }
 0x2d3   : > { %v1922_v57 = vadd.f32 %v1399_v51, %v858_v55  ;;  %v879_v63 = vsel %vm500_vm1, %v877_v56, 0.0  ;;  %v1112_v55 = vld [vmem:[%s2050_s10] sm:$0xff]  ;;  %v1220_v56 = vld [vmem:[%s2052_s12 + $0x38] sm:$0xff] }
 0x2d4   : > { %v860_v58 = vpop.f32.mrf.mxu0 }
 0x2d5   : > { %v869_v60 = vsel %vm500_vm1, %v1922_v57, 0.0  ;;  %v878_v61 = vmul.f32 %v1922_v57, %v1922_v57 }
 0x2d6   : > { %v870_v62 = vadd.f32 %v869_v60, %v868_v59 }
 0x2d7   : > { %v880_v0 = vsel %vm500_vm1, %v878_v61, 0.0 }
 0x2d8   : > { %v871_v2 = vrot.slane %v870_v62, 4  ;;  %v881_v3 = vadd.f32 %v880_v0, %v879_v63 }
 0x2da   : > { %v872_v4 = vadd.f32 %v871_v2, %v870_v62  ;;  %v882_v5 = vrot.slane %v881_v3, 4 }
 0x2dc   : > { %v873_v6 = vrot.slane %v872_v4, 2  ;;  %v883_v7 = vadd.f32 %v882_v5, %v881_v3 }
 0x2de   : > { %v874_v9 = vadd.f32 %v873_v6, %v872_v4  ;;  %v884_v10 = vrot.slane %v883_v7, 2 }
 0x2e0   : > { %v875_v11 = vrot.slane %v874_v9, 1  ;;  %v885_v12 = vadd.f32 %v884_v10, %v883_v7 }
 0x2e2   : > { %v876_v14 = vadd.f32 %v875_v11, %v874_v9  ;;  %v886_v15 = vrot.slane %v885_v12, 1 }
 0x2e4   : > { %1518 = vmatmul.mubr.msk.f32.vlgmr.msra.gmra.mxu1 %vm500_vm1, %v876_v14  ;;  %v887_v16 = vadd.f32 %v886_v15, %v885_v12 }
 0x2e5   : > { %1521 = vmatpush3.msra.mxu1 %v865_v47  ;;  %1528 = vmatprep.mubr.msk.f32.mxu1 %vm1619_vm0, %v1617_v1 }
 0x2e6   : > { %1522 = vmatprep.subr.mxu1 %v1617_v1 }
 0x2e7   : > { %1523 = vmatpush3.msra.mxu1 %v864_v48 }
 0x2e8   : > { %1524 = vmatprep.subr.mxu1 %v1617_v1 }
 0x2e9   : > { %1525 = vmatpush3.msra.mxu1 %v863_v49 }
 0x2ea   : > { %1526 = vmatprep.subr.mxu1 %v1617_v1  ;;  %v1120_v1 = vld [vmem:[%s2050_s10 + $0x40] sm:$0xff] }
 0x2eb   : > { %1527 = vmatpush3.msra.mxu1 %v862_v50 }
 0x2ec   : > { %1529 = vmatmul.mubr.msk.f32.vlgmr.msra.gmra.mxu1 %vm500_vm1, %v887_v16  ;;  %1531 = vmatprep.subr.mxu1 %v1123_v18  ;;  %v1219_v16 = vld [vmem:[%s2052_s12 + $0x30] sm:$0xff] }
 0x2ed   : > { %1532 = vmatpush3.msra.mxu1 %v1123_v18  ;;  %v1218_v18 = vld [vmem:[%s2052_s12 + $0x28] sm:$0xff] }
 0x2ee   : > { %1533 = vmatprep.subr.mxu1 %v1122_v19 }
 0x2ef   : > { %1534 = vmatpush3.msra.mxu1 %v1122_v19  ;;  %v1217_v19 = vld [vmem:[%s2052_s12 + $0x20] sm:$0xff] }
 0x2f0   : > { %1535 = vmatprep.subr.mxu1 %v1121_v20 }
 0x2f1   : > { %1536 = vmatpush3.msra.mxu1 %v1121_v20  ;;  %v1216_v20 = vld [vmem:[%s2052_s12 + $0x18] sm:$0xff] }
 0x2f2   : > { %1537 = vmatprep.subr.mxu1 %v1120_v1 }
 0x2f3   : > { %1538 = vmatpush3.msra.mxu1 %v1120_v1  ;;  %v1214_v1 = vld [vmem:[%s2052_s12 + $0x8] sm:$0xff] }
 0x2f4   : > { %1539 = vmatprep.subr.mxu1 %v1119_v21 }
 0x2f5   : > { %1540 = vmatpush3.msra.mxu1 %v1119_v21  ;;  %v1213_v21 = vld [vmem:[%s2052_s12] sm:$0xff] }
 0x2f6   : > { %1541 = vmatprep.subr.mxu1 %v1118_v22 }
 0x2f7   : > { %1542 = vmatpush3.msra.mxu1 %v1118_v22 }
 0x2f8   : > { %1543 = vmatprep.subr.mxu1 %v1117_v23 }
 0x2f9   : > { %1544 = vmatpush3.msra.mxu1 %v1117_v23  ;;  %v1408_v23 = vld [vmem:[%s2051_s11] ss:$0 sm:$0xff] }
 0x2fa   : > { %1545 = vmatprep.subr.mxu1 %v1116_v24 }
 0x2fb   : > { %1546 = vmatpush3.msra.mxu1 %v1116_v24 }
 0x2fc   : > { %1547 = vmatprep.subr.mxu1 %v1115_v25 }
 0x2fd   : > { %1548 = vmatpush3.msra.mxu1 %v1115_v25  ;;  %v1411_v25 = vld [vmem:[%s2053_s13] ss:$0 sm:$0xff] }
 0x2fe   : > { %1549 = vmatprep.subr.mxu1 %v1114_v26 }
 0x2ff   : > { %1550 = vmatpush3.msra.mxu1 %v1114_v26 }
 0x300   : > { %1551 = vmatprep.subr.mxu1 %v1113_v54 }
 0x301   : > { %1552 = vmatpush3.msra.mxu1 %v1113_v54 }
 0x302   : > { %1553 = vmatprep.subr.mxu1 %v1112_v55 }
 0x303   : > { %1554 = vmatpush3.msra.mxu1 %v1112_v55 }
 0x304   : > { %1558 = vmatprep.subr.mxu1 %v1220_v56 }
 0x3a4   : > { %v957_v27 = vpop.f32.mrf.mxu1 }
 0x3a5   : > { %v961_v29 = vmul.f32 0.0625, %v957_v27 }
 0x3a6   : > { %v1519_v28 = vpop.f32.mrf.mxu1 }
 0x3a7   : > { %v1036_v31 = vmul.f32 %v961_v29, %v961_v29  ;;  %v1041_v36 = vrot.slane %v961_v29, %v1874_v8 }
 0x3a9   : > { %v1042_v38 = vsub.f32 %v1918_v53, %v1041_v36  ;;  %v1043_v39 = vsub.f32 %v1922_v57, %v1041_v36 }
 0x3ac   : > { %v1031_v30 = vpop.f32.mrf.mxu1 }
 0x3ad   : > { %v1035_v32 = vmul.f32 0.0625, %v1031_v30 }
 0x3ae   : > { %v1530_v33 = vpop.f32.mrf.mxu1 }
 0x3af   : > { %v1037_v34 = vsub.f32 %v1035_v32, %v1036_v31 }
 0x3b1   : > { %v1044_v35 = vadd.f32 1e-05, %v1037_v34 }
 0x3b3   : > { %1599 = vrsqrt.f32 %v1044_v35 }
 0x3c0   : > { %v1600_v37 = vpop.eup %1599 }
 0x3c1   : > { %v1049_v40 = vrot.slane %v1600_v37, %v1874_v8 }
 0x3c3   : > { %v1051_v42 = vmul.f32 %v1049_v40, %v1043_v39  ;;  %v1050_v43 = vmul.f32 %v1049_v40, %v1042_v38 }
 0x3c5   : > { %v1059_v45 = vmul.f32 %v1404_v41, %v1051_v42  ;;  %v1058_v46 = vmul.f32 %v1404_v41, %v1050_v43 }
 0x3c7   : > { %v1067_v47 = vadd.f32 %v1405_v44, %v1059_v45  ;;  %v1066_v48 = vadd.f32 %v1405_v44, %v1058_v46 }
 0x3c9   : > { %v1407_v49 = vmul.f32 -1.442695, %v1067_v47  ;;  %v1406_v50 = vmul.f32 -1.442695, %v1066_v48 }
 0x3cb   : > { %1601 = vpow2.f32 %v1407_v49 }
 0x3cc   : > { %1603 = vpow2.f32 %v1406_v50 }
 0x3d8   : > { %v1602_v51 = vpop.eup %1601 }
 0x3d9   : > { %v1604_v8 = vpop.eup %1603  ;;  %v1075_v52 = vadd.f32 1.0, %v1602_v51 }
 0x3da   : > { %v1074_v53 = vadd.f32 1.0, %v1604_v8 }
 0x3db   : > { %1605 = vrcp.f32 %v1075_v52 }
 0x3dc   : > { %1607 = vrcp.f32 %v1074_v53 }
 0x3e8   : > { %v1606_v57 = vpop.eup %1605 }
 0x3e9   : > { %v1608_v58 = vpop.eup %1607  ;;  %v1081_v59 = vmul.f32 %v1606_v57, %v1067_v47 }
 0x3ea   : > { %v1080_v60 = vmul.f32 %v1608_v58, %v1066_v48 }
 0x3eb   : > { %1097 = vrot.lane.b32.xlu1 %v1081_v59, %s1618_s27  ;;  %v1091_v61 = vrot.slane %v1081_v59, 1  ;;  %v1085_v62 = vrot.slane %v1081_v59, 7 }
 0x3ec   : > { %1095 = vrot.lane.b32.xlu0 %v1080_v60, %s1618_s27  ;;  %v1090_v63 = vrot.slane %v1080_v60, 1  ;;  %v1084_v0 = vrot.slane %v1080_v60, 7 }
 0x3ed   : > { %v1094_v2 = vsel %vm737_vm3, %v1091_v61, 0.0 }
 0x3ee   : > { %v1092_v3 = vsel %vm737_vm3, %v1090_v63, %v1091_v61  ;;  %v1086_v4 = vsel %vm730_vm4, %v1084_v0, %v1085_v62  ;;  %v1089_v9 = vsel %vm730_vm4, 0.0, %v1084_v0 }
 0x3ef   : > { %1104 = vrot.lane.b32.xlu1 %v1094_v2, %s1620_s25 }
 0x3f0   : > { %1102 = vrot.lane.b32.xlu0 %v1092_v3, %s1620_s25 }
 0x45d   : > { %v1098_v5 = vpop.permute.xlu1 %1097 }
 0x45e   : > { %v1096_v6 = vpop.permute.xlu0 %1095  ;;  %v1109_v7 = vsel %vm500_vm1, %v1086_v4, %v1098_v5 }
 0x45f   : > { %v1108_v11 = vsel %vm500_vm1, %v1089_v9, %v1096_v6 }
 0x461   : > { %v1105_v10 = vpop.permute.xlu1 %1104 }
 0x462   : > { %v1111_v12 = vsel %vm513_vm2, %v1109_v7, %v1105_v10  ;;  %v1103_v14 = vpop.permute.xlu0 %1102 }
 0x463   : > { %v1110_v15 = vsel %vm513_vm2, %v1108_v11, %v1103_v14 }
 0x464   : > { %1555 = vmatprep.mubr.msk.f32.mxu1 %vm1131_vm5, %v1110_v15 }
 0x465   : > { %1556 = vmatmul.mubr.msk.f32.vlgmr.msra.gmra.mxu1 %vm1131_vm5, %v1111_v12 }
 0x466   : > { %1559 = vmatpush3.msra.mxu1 %v1220_v56  ;;  %1574 = vmatprep.mubr.msk.f32.mxu1 %vm513_vm2, %v1763_v13  ;;  %v1215_v13 = vld [vmem:[%s2052_s12 + $0x10] sm:$0xff] }
 0x467   : > { %1560 = vmatprep.subr.mxu1 %v1219_v16 }
 0x468   : > { %1561 = vmatpush3.msra.mxu1 %v1219_v16 }
 0x469   : > { %1562 = vmatprep.subr.mxu1 %v1218_v18 }
 0x46a   : > { %1563 = vmatpush3.msra.mxu1 %v1218_v18 }
 0x46b   : > { %1564 = vmatprep.subr.mxu1 %v1217_v19 }
 0x46c   : > { %1565 = vmatpush3.msra.mxu1 %v1217_v19 }
 0x46d   : > { %1566 = vmatprep.subr.mxu1 %v1216_v20 }
 0x46e   : > { %1567 = vmatpush3.msra.mxu1 %v1216_v20 }
 0x46f   : > { %1568 = vmatprep.subr.mxu1 %v1215_v13 }
 0x470   : > { %1569 = vmatpush3.msra.mxu1 %v1215_v13 }
 0x471   : > { %1570 = vmatprep.subr.mxu1 %v1214_v1 }
 0x472   : > { %1571 = vmatpush3.msra.mxu1 %v1214_v1 }
 0x473   : > { %1572 = vmatprep.subr.mxu1 %v1213_v21 }
 0x474   : > { %1573 = vmatpush3.msra.mxu1 %v1213_v21 }
 0x475   : > { %1575 = vmatmul.mubr.msk.f32.vlgmr.msra.gmra.mxu1 %vm513_vm2, %v1768_v17 }
 0x525   : > { %v1557_v22 = vpop.f32.mrf.mxu1 }
 0x526   : > { %v1210_v27 = vadd.f32 %v1557_v22, %v1408_v23 }
 0x527   : > { %v1204_v24 = vpop.f32.mrf.mxu1 }
 0x528   : > { %v1205_v30 = vadd.f32 %v1408_v23, %v1204_v24 }
 0x535   : > { %v1576_v26 = vpop.f32.mrf.mxu1 }
 0x536   : > { %v1306_v28 = vadd.f32 %v1576_v26, %v1411_v25 }
 0x537   : > { %v1300_v29 = vpop.f32.mrf.mxu1 }
 0x538   : > { %v1310_v31 = vadd.f32 %v1306_v28, %v1210_v27  ;;  %v1301_v32 = vadd.f32 %v1411_v25, %v1300_v29 }
 0x53a   : > { %v1312_v17 = vmul.f32 0.70710677, %v1310_v31  ;;  %v1309_v33 = vadd.f32 %v1301_v32, %v1205_v30 }
 0x53c   : > { %1314 = vst.msk [vmem:[%s487_s20 + $0x8] sm:$0xff] %vm500_vm1, %v1312_v17  ;;  %v1311_v34 = vmul.f32 0.70710677, %v1309_v33 }
 0x53e   : > { %1313 = vst.msk [vmem:[%s487_s20] sm:$0xff] %vm500_vm1, %v1311_v34 }
 0x53f PF: > { %s24_s29 = sadd.s32 1, %s1615_s29  }
 0x540   : > { %p21_p4 = scmp.ge.s32.totalorder %s24_s29, 4  }
 0x542   :  { %23 = sbr.rel (!%p21_p4) target bundleno = 1 (0x1), region = 109 }

// kernel: unet_forward.21
= control target key start
LH: loop header
LB: loop body
LE: loop exit
PB: predicated region body
PF: predicated region fallthrough
CT: control target
= control target key end

     0   :  { %s1892_s29 = smov 0   ;;  %s2282_s0 = inlined_call_operand.vmem [shape: f32[2,16,64], index: 0, kind: input, shape index: {}]   ;;  %s2283_s1 = inlined_call_operand.vmem [shape: f32[2,16,32], index: 1, kind: input, shape index: {}]   ;;  %s2284_s2 = inlined_call_operand.vmem [shape: f32[96,96], index: 2, kind: input, shape index: {}]   ;;  %s2285_s3 = inlined_call_operand.vmem [shape: f32[1,96], index: 3, kind: input, shape index: {}]   ;;  %s2286_s4 = inlined_call_operand.vmem [shape: f32[1,96], index: 4, kind: input, shape index: {}]   ;;  %s2287_s5 = inlined_call_operand.vmem [shape: f32[288,32], index: 5, kind: input, shape index: {}]   ;;  %s2288_s6 = inlined_call_operand.vmem [shape: f32[1,32], index: 6, kind: input, shape index: {}]   ;;  %s2289_s7 = inlined_call_operand.vmem [shape: f32[32,32], index: 7, kind: input, shape index: {}]   ;;  %s2290_s8 = inlined_call_operand.vmem [shape: f32[1,32], index: 8, kind: input, shape index: {}]   ;;  %s2291_s9 = inlined_call_operand.vmem [shape: f32[1,32], index: 9, kind: input, shape index: {}]   ;;  %s2292_s10 = inlined_call_operand.vmem [shape: f32[96,32], index: 10, kind: input, shape index: {}]   ;;  %s2293_s11 = inlined_call_operand.vmem [shape: f32[1,32], index: 11, kind: input, shape index: {}]   ;;  %s2294_s12 = inlined_call_operand.vmem [shape: f32[96,32], index: 12, kind: input, shape index: {}]   ;;  %s2295_s13 = inlined_call_operand.vmem [shape: f32[1,32], index: 13, kind: input, shape index: {}]   ;;  %s2296_s14 = inlined_call_operand.vmem [shape: f32[2,16,32], index: 14, kind: output, shape index: {}]  }
   0x1 LB: > { %s1485_s30 = sadd.s32 4294967295, %s1810_s29   ;;  %p1489_p0 = scmp.ge.s32.totalorder %s1810_s29, 1  ;;  %s1810_s29 = sphi %s1892_s29, %s24_s29  }
   0x2   : > { %p422_p1 = scmp.lt.s32.totalorder %s1810_s29, 3 }
   0x4   : > { %p423_p2 = pnand %p1489_p0, %p422_p1 }
   0x5   : > { %p473_p3 = scmp.lt.s32.totalorder (!%p423_p2), %s1485_s30, 1  ;;  %s1813_s27 = smov (!%p423_p2), 64  }
   0x6   : > { %426 = sbr.rel (%p423_p2) target bundleno = 1339 (0x53b), region = 76  ;;  %s1815_s19 = smov (!%p423_p2), 96  }
   0x7   : > { %s1816_s15 = smov (!%p423_p2), 32  }
   0xb   : > { %v514_v0 = vld [vmem:[%s2284_s2 + $0x58] sm:$0xff]  ;;  %v1812_v1 = vmov 0.0   ;;  %v513_v2 = vld [vmem:[%s2284_s2 + $0x50] sm:$0xff]  ;;  %s2298_s30 = smov (!%p473_p3, %s1485_s30), 1  ;;  %v512_v3 = vld [vmem:[%s2284_s2 + $0x48] sm:$0xff]  ;;  %vm1814_vm0 = vmmov 0  }
   0xc   : > { %1630 = vmatprep.subr.mxu0 %v1812_v1  ;;  %1657 = vmatprep.subr.mxu1 %v1812_v1  ;;  %s1913_s21 = sshll.u32 %s2298_s30, 4  ;;  %v511_v4 = vld [vmem:[%s2284_s2 + $0x40] sm:$0xff]  ;;  %v510_v6 = vld [vmem:[%s2284_s2 + $0x38] sm:$0xff]  ;;  %v509_v8 = vld [vmem:[%s2284_s2 + $0x30] sm:$0xff]  ;;  %vm500_vm1 = vcmask 523264   ;;  %vm517_vm2 = vcmask 785408  }
   0xd   : > { %1631 = vmatpush3.msra.mxu0 %v514_v0  ;;  %1658 = vmatpush3.msra.mxu1 %v514_v0  ;;  %s482_s24 = scalar_lea.vmem %s2283_s1, %s1913_s21  ;;  %v508_v9 = vld [vmem:[%s2284_s2 + $0x28] sm:$0xff]  ;;  %v507_v10 = vld [vmem:[%s2284_s2 + $0x20] sm:$0xff]  ;;  %v506_v11 = vld [vmem:[%s2284_s2 + $0x18] sm:$0xff]  ;;  %s477_s18 = scalar_lea.vmem %s2282_s0, %s1913_s21  ;;  %vm741_vm3 = vcmask 1046528   ;;  %vm734_vm4 = vcmask 1040384   ;;  %vm807_vm5 = vcmask 261120  }
   0xe   : > { %1632 = vmatprep.subr.mxu0 %v1812_v1  ;;  %1659 = vmatprep.subr.mxu1 %v1812_v1  ;;  %v490_v5 = vld [vmem:[%s482_s24] sm:$0xff]  ;;  %v491_v7 = vld [vmem:[%s482_s24 + $0x8] sm:$0xff]  ;;  %v505_v12 = vld [vmem:[%s2284_s2 + $0x10] sm:$0xff]  ;;  %s487_s22 = scalar_lea.vmem %s2296_s14, %s1913_s21 }
   0xf   : > { %1633 = vmatpush3.msra.mxu0 %v513_v2  ;;  %1660 = vmatpush3.msra.mxu1 %v513_v2  ;;  %v504_v13 = vld [vmem:[%s2284_s2 + $0x8] sm:$0xff]  ;;  %v503_v14 = vld [vmem:[%s2284_s2] sm:$0xff]  ;;  %v795_v41 = vld [vmem:[%s2287_s5 + $0xf8] sm:$0xff] }
  0x10   : > { %1634 = vmatprep.subr.mxu0 %v1812_v1  ;;  %1661 = vmatprep.subr.mxu1 %v1812_v1  ;;  %v488_v15 = vld [vmem:[%s477_s18] sm:$0xff]  ;;  %v489_v18 = vld [vmem:[%s477_s18 + $0x8] sm:$0xff]  ;;  %v779_v42 = vld [vmem:[%s2287_s5 + $0x78] sm:$0xff] }
  0x11   : > { %1635 = vmatpush3.msra.mxu0 %v512_v3  ;;  %1662 = vmatpush3.msra.mxu1 %v512_v3  ;;  %v794_v43 = vld [vmem:[%s2287_s5 + $0xf0] sm:$0xff]  ;;  %v793_v45 = vld [vmem:[%s2287_s5 + $0xe8] sm:$0xff]  ;;  %v792_v47 = vld [vmem:[%s2287_s5 + $0xe0] sm:$0xff] }
  0x12   : > { %494 = vrot.lane.b32.xlu0 %v490_v5, %s1813_s27  ;;  %1636 = vmatprep.subr.mxu0 %v1812_v1  ;;  %v778_v44 = vld [vmem:[%s2287_s5 + $0x70] sm:$0xff]  ;;  %v777_v46 = vld [vmem:[%s2287_s5 + $0x68] sm:$0xff]  ;;  %v776_v48 = vld [vmem:[%s2287_s5 + $0x60] sm:$0xff] }
  0x13   : > { %1637 = vmatpush3.msra.mxu0 %v511_v4  ;;  %1663 = vmatprep.subr.mxu1 %v1812_v1  ;;  %v791_v49 = vld [vmem:[%s2287_s5 + $0xd8] sm:$0xff]  ;;  %v790_v51 = vld [vmem:[%s2287_s5 + $0xd0] sm:$0xff]  ;;  %v789_v53 = vld [vmem:[%s2287_s5 + $0xc8] sm:$0xff] }
  0x14   : > { %1638 = vmatprep.subr.mxu0 %v1812_v1  ;;  %1664 = vmatpush3.msra.mxu1 %v511_v4  ;;  %v775_v50 = vld [vmem:[%s2287_s5 + $0x58] sm:$0xff]  ;;  %v774_v52 = vld [vmem:[%s2287_s5 + $0x50] sm:$0xff]  ;;  %v773_v54 = vld [vmem:[%s2287_s5 + $0x48] sm:$0xff] }
  0x15   : > { %1639 = vmatpush3.msra.mxu0 %v510_v6  ;;  %1665 = vmatprep.subr.mxu1 %v1812_v1  ;;  %v788_v55 = vld [vmem:[%s2287_s5 + $0xc0] sm:$0xff]  ;;  %v787_v57 = vld [vmem:[%s2287_s5 + $0xb8] sm:$0xff]  ;;  %v786_v59 = vld [vmem:[%s2287_s5 + $0xb0] sm:$0xff] }
  0x16   : > { %496 = vrot.lane.b32.xlu0 %v491_v7, %s1813_s27  ;;  %1640 = vmatprep.subr.mxu0 %v1812_v1  ;;  %v772_v56 = vld [vmem:[%s2287_s5 + $0x40] sm:$0xff]  ;;  %v771_v58 = vld [vmem:[%s2287_s5 + $0x38] sm:$0xff]  ;;  %v770_v60 = vld [vmem:[%s2287_s5 + $0x30] sm:$0xff] }
  0x17   : > { %1641 = vmatpush3.msra.mxu0 %v509_v8  ;;  %1666 = vmatpush3.msra.mxu1 %v510_v6  ;;  %v785_v61 = vld [vmem:[%s2287_s5 + $0xa8] sm:$0xff]  ;;  %v784_v63 = vld [vmem:[%s2287_s5 + $0xa0] sm:$0xff]  ;;  %v783_v2 = vld [vmem:[%s2287_s5 + $0x98] sm:$0xff] }
  0x18   : > { %1642 = vmatprep.subr.mxu0 %v1812_v1  ;;  %1667 = vmatprep.subr.mxu1 %v1812_v1  ;;  %v769_v62 = vld [vmem:[%s2287_s5 + $0x28] sm:$0xff]  ;;  %v768_v0 = vld [vmem:[%s2287_s5 + $0x20] sm:$0xff]  ;;  %v767_v3 = vld [vmem:[%s2287_s5 + $0x18] sm:$0xff] }
  0x19   : > { %1643 = vmatpush3.msra.mxu0 %v508_v9  ;;  %1668 = vmatpush3.msra.mxu1 %v509_v8  ;;  %v782_v4 = vld [vmem:[%s2287_s5 + $0x90] sm:$0xff] }
  0x1a   : > { %1644 = vmatprep.subr.mxu0 %v1812_v1  ;;  %1669 = vmatprep.subr.mxu1 %v1812_v1 }
  0x1b   : > { %1645 = vmatpush3.msra.mxu0 %v507_v10  ;;  %1670 = vmatpush3.msra.mxu1 %v508_v9 }
  0x1c   : > { %1646 = vmatprep.subr.mxu0 %v1812_v1  ;;  %1671 = vmatprep.subr.mxu1 %v1812_v1 }
  0x1d   : > { %1647 = vmatpush3.msra.mxu0 %v506_v11  ;;  %1672 = vmatpush3.msra.mxu1 %v507_v10 }
  0x1e   : > { %1648 = vmatprep.subr.mxu0 %v1812_v1  ;;  %1673 = vmatprep.subr.mxu1 %v1812_v1 }
  0x1f   : > { %1649 = vmatpush3.msra.mxu0 %v505_v12  ;;  %1674 = vmatpush3.msra.mxu1 %v506_v11 }
  0x20   : > { %1650 = vmatprep.subr.mxu0 %v1812_v1  ;;  %1675 = vmatprep.subr.mxu1 %v1812_v1 }
  0x21   : > { %1651 = vmatpush3.msra.mxu0 %v504_v13  ;;  %1676 = vmatpush3.msra.mxu1 %v505_v12 }
  0x22   : > { %1652 = vmatprep.subr.mxu0 %v1812_v1  ;;  %1677 = vmatprep.subr.mxu1 %v1812_v1 }
  0x23   : > { %1653 = vmatpush3.msra.mxu0 %v503_v14  ;;  %1654 = vmatprep.mubr.msk.f32.mxu0 %vm1814_vm0, %v1812_v1 }
  0x24   : > { %1678 = vmatpush3.msra.mxu1 %v504_v13  ;;  %1681 = vmatprep.mubr.msk.f32.mxu1 %vm1814_vm0, %v1812_v1  ;;  %v688_v13 = vlaneseq }
  0x25   : > { %1679 = vmatprep.subr.mxu1 %v1812_v1  ;;  %1548 = vmatprep.subr.mxu0 %v795_v41  ;;  %v765_v41 = vld [vmem:[%s2287_s5 + $0x8] sm:$0xff] }
  0x26   : > { %1680 = vmatpush3.msra.mxu1 %v503_v14 }
  0x84   : > { %v495_v16 = vpop.permute.xlu0 %494 }
  0x85   : > { %v1977_v17 = vsel %vm500_vm1, %v488_v15, %v495_v16  ;;  %v689_v15 = vshrl.u32 %v688_v13, 7  ;;  %v1313_v13 = vld [vmem:[%s2294_s12 + $0x8] sm:$0xff] }
  0x86   : > { %v527_v19 = vmul.f32 %v1977_v17, %v1977_v17  ;;  %v518_v22 = vsel %vm517_vm2, %v1977_v17, 0.0 }
  0x87   : > { %v2075_v16 = vsub.s32 0, %v689_v15  ;;  %v965_v15 = vld [vmem:[%s2289_s7 + $0x18] sm:$0xff] }
  0x88   : > { %v497_v20 = vpop.permute.xlu0 %496  ;;  %v529_v26 = vsel %vm517_vm2, %v527_v19, 0.0 }
  0x89   : > { %v1982_v21 = vsel %vm500_vm1, %v489_v18, %v497_v20 }
  0x8a   : > { %v519_v23 = vsel %vm517_vm2, %v1982_v21, 0.0  ;;  %v528_v24 = vmul.f32 %v1982_v21, %v1982_v21 }
  0x8b   : > { %v520_v25 = vadd.f32 %v519_v23, %v518_v22 }
  0x8c   : > { %v530_v27 = vsel %vm517_vm2, %v528_v24, 0.0  ;;  %v1498_v24 = vld [vmem:[%s2285_s3] ss:$0 sm:$0xff] }
  0x8d   : > { %v521_v28 = vrot.slane %v520_v25, 4  ;;  %v531_v29 = vadd.f32 %v530_v27, %v529_v26  ;;  %v1499_v27 = vld [vmem:[%s2286_s4] ss:$0 sm:$0xff] }
  0x8f   : > { %v522_v30 = vadd.f32 %v521_v28, %v520_v25  ;;  %v532_v31 = vrot.slane %v531_v29, 4 }
  0x91   : > { %v523_v32 = vrot.slane %v522_v30, 2  ;;  %v533_v33 = vadd.f32 %v532_v31, %v531_v29 }
  0x93   : > { %v524_v34 = vadd.f32 %v523_v32, %v522_v30  ;;  %v534_v35 = vrot.slane %v533_v33, 2 }
  0x95   : > { %v525_v36 = vrot.slane %v524_v34, 1  ;;  %v535_v37 = vadd.f32 %v534_v35, %v533_v33 }
  0x97   : > { %v526_v38 = vadd.f32 %v525_v36, %v524_v34  ;;  %v536_v39 = vrot.slane %v535_v37, 1 }
  0x99   : > { %1655 = vmatmul.mubr.msk.f32.vlgmr.msra.gmra.mxu0 %vm517_vm2, %v526_v38  ;;  %v537_v40 = vadd.f32 %v536_v39, %v535_v37  ;;  %v766_v38 = vld [vmem:[%s2287_s5 + $0x10] sm:$0xff]  ;;  %v799_v39 = vld [vmem:[%s2287_s5 + $0x118] sm:$0xff] }
  0x9a   : > { %1549 = vmatpush3.msra.mxu0 %v779_v42  ;;  %1684 = vmatprep.subr.mxu1 %v799_v39  ;;  %v798_v42 = vld [vmem:[%s2287_s5 + $0x110] sm:$0xff] }
  0x9b   : > { %1682 = vmatmul.mubr.msk.f32.vlgmr.msra.gmra.mxu1 %vm517_vm2, %v537_v40  ;;  %1550 = vmatprep.subr.mxu0 %v794_v43  ;;  %v781_v40 = vld [vmem:[%s2287_s5 + $0x88] sm:$0xff]  ;;  %v780_v43 = vld [vmem:[%s2287_s5 + $0x80] sm:$0xff] }
  0x9c   : > { %1551 = vmatpush3.msra.mxu0 %v778_v44  ;;  %1685 = vmatpush3.msra.mxu1 %v799_v39  ;;  %v764_v44 = vld [vmem:[%s2287_s5] sm:$0xff] }
  0x9d   : > { %1552 = vmatprep.subr.mxu0 %v793_v45  ;;  %1686 = vmatprep.subr.mxu1 %v798_v42  ;;  %v797_v45 = vld [vmem:[%s2287_s5 + $0x108] sm:$0xff] }
  0x9e   : > { %1553 = vmatpush3.msra.mxu0 %v777_v46  ;;  %1687 = vmatpush3.msra.mxu1 %v798_v42  ;;  %v1323_v46 = vld [vmem:[%s2294_s12 + $0x58] sm:$0xff] }
  0x9f   : > { %1554 = vmatprep.subr.mxu0 %v792_v47  ;;  %1688 = vmatprep.subr.mxu1 %v797_v45  ;;  %v796_v47 = vld [vmem:[%s2287_s5 + $0x100] sm:$0xff] }
  0xa0   : > { %1555 = vmatpush3.msra.mxu0 %v776_v48  ;;  %1689 = vmatpush3.msra.mxu1 %v797_v45 }
  0xa1   : > { %1556 = vmatprep.subr.mxu0 %v791_v49  ;;  %1690 = vmatprep.subr.mxu1 %v796_v47 }
  0xa2   : > { %1557 = vmatpush3.msra.mxu0 %v775_v50  ;;  %1691 = vmatpush3.msra.mxu1 %v796_v47 }
  0xa3   : > { %1558 = vmatprep.subr.mxu0 %v790_v51  ;;  %1695 = vmatprep.subr.mxu1 %v1812_v1 }
  0xa4   : > { %1559 = vmatpush3.msra.mxu0 %v774_v52 }
  0xa5   : > { %1560 = vmatprep.subr.mxu0 %v789_v53 }
  0xa6   : > { %1561 = vmatpush3.msra.mxu0 %v773_v54 }
  0xa7   : > { %1562 = vmatprep.subr.mxu0 %v788_v55 }
  0xa8   : > { %1563 = vmatpush3.msra.mxu0 %v772_v56 }
  0xa9   : > { %1564 = vmatprep.subr.mxu0 %v787_v57 }
  0xaa   : > { %1565 = vmatpush3.msra.mxu0 %v771_v58 }
  0xab   : > { %1566 = vmatprep.subr.mxu0 %v786_v59 }
  0xac   : > { %1567 = vmatpush3.msra.mxu0 %v770_v60 }
  0xad   : > { %1568 = vmatprep.subr.mxu0 %v785_v61 }
  0xae   : > { %1569 = vmatpush3.msra.mxu0 %v769_v62 }
  0xaf   : > { %1570 = vmatprep.subr.mxu0 %v784_v63 }
  0xb0   : > { %1571 = vmatpush3.msra.mxu0 %v768_v0  ;;  %v1322_v0 = vld [vmem:[%s2294_s12 + $0x50] sm:$0xff] }
  0xb1   : > { %1572 = vmatprep.subr.mxu0 %v783_v2 }
  0xb2   : > { %1573 = vmatpush3.msra.mxu0 %v767_v3 }
  0xb3   : > { %1574 = vmatprep.subr.mxu0 %v782_v4  ;;  %v1321_v4 = vld [vmem:[%s2294_s12 + $0x48] sm:$0xff] }
  0xb4   : > { %1575 = vmatpush3.msra.mxu0 %v766_v38 }
  0xb5   : > { %1576 = vmatprep.subr.mxu0 %v781_v40 }
  0xb6   : > { %1577 = vmatpush3.msra.mxu0 %v765_v41 }
  0xb7   : > { %1578 = vmatprep.subr.mxu0 %v780_v43 }
  0xb8   : > { %1579 = vmatpush3.msra.mxu0 %v764_v44 }
  0xb9   : > { %1744 = vmatprep.subr.mxu0 %v1323_v46 }
 0x159   : > { %v607_v5 = vpop.f32.mrf.mxu0 }
 0x15a   : > { %v611_v6 = vmul.f32 0.020833334, %v607_v5 }
 0x15b   : > { %v1656_v7 = vpop.f32.mrf.mxu0  ;;  %v681_v8 = vpop.f32.mrf.mxu1 }
 0x15c   : > { %v686_v9 = vmul.f32 %v611_v6, %v611_v6  ;;  %v685_v10 = vmul.f32 0.020833334, %v681_v8  ;;  %v691_v18 = vrot.slane %v611_v6, %v2075_v16  ;;  %v1320_v7 = vld [vmem:[%s2294_s12 + $0x40] sm:$0xff]  ;;  %v1319_v8 = vld [vmem:[%s2294_s12 + $0x38] sm:$0xff] }
 0x15d   : > { %v1683_v11 = vpop.f32.mrf.mxu1 }
 0x15e   : > { %v687_v12 = vsub.f32 %v685_v10, %v686_v9  ;;  %v692_v20 = vsub.f32 %v1977_v17, %v691_v18  ;;  %v693_v22 = vsub.f32 %v1982_v21, %v691_v18  ;;  %v1318_v9 = vld [vmem:[%s2294_s12 + $0x30] sm:$0xff]  ;;  %v1317_v10 = vld [vmem:[%s2294_s12 + $0x28] sm:$0xff]  ;;  %v1315_v11 = vld [vmem:[%s2294_s12 + $0x18] sm:$0xff] }
 0x15f   : > { %v964_v18 = vld [vmem:[%s2289_s7 + $0x10] sm:$0xff] }
 0x160   : > { %v694_v14 = vadd.f32 1e-05, %v687_v12  ;;  %v1314_v12 = vld [vmem:[%s2294_s12 + $0x10] sm:$0xff] }
 0x162   : > { %1784 = vrsqrt.f32 %v694_v14  ;;  %v1312_v14 = vld [vmem:[%s2294_s12] sm:$0xff] }
 0x16f   : > { %v1785_v19 = vpop.eup %1784 }
 0x170   : > { %v699_v23 = vrot.slane %v1785_v19, %v2075_v16  ;;  %v963_v19 = vld [vmem:[%s2289_s7 + $0x8] sm:$0xff] }
 0x172   : > { %v701_v25 = vmul.f32 %v699_v23, %v693_v22  ;;  %v700_v26 = vmul.f32 %v699_v23, %v692_v20 }
 0x174   : > { %v709_v28 = vmul.f32 %v1498_v24, %v701_v25  ;;  %v708_v29 = vmul.f32 %v1498_v24, %v700_v26  ;;  %v1502_v24 = vld [vmem:[%s2288_s6] ss:$0 sm:$0xff] }
 0x176   : > { %v717_v30 = vadd.f32 %v1499_v27, %v709_v28  ;;  %v716_v31 = vadd.f32 %v1499_v27, %v708_v29 }
 0x178   : > { %v1501_v32 = vmul.f32 -1.442695, %v717_v30  ;;  %v1500_v33 = vmul.f32 -1.442695, %v716_v31 }
 0x17a   : > { %1786 = vpow2.f32 %v1501_v32 }
 0x17b   : > { %1788 = vpow2.f32 %v1500_v33 }
 0x187   : > { %v1787_v34 = vpop.eup %1786 }
 0x188   : > { %v1789_v35 = vpop.eup %1788  ;;  %v725_v36 = vadd.f32 1.0, %v1787_v34 }
 0x189   : > { %v724_v37 = vadd.f32 1.0, %v1789_v35 }
 0x18a   : > { %1790 = vrcp.f32 %v725_v36 }
 0x18b   : > { %1792 = vrcp.f32 %v724_v37 }
 0x197   : > { %v1791_v48 = vpop.eup %1790 }
 0x198   : > { %v1793_v49 = vpop.eup %1792  ;;  %v731_v50 = vmul.f32 %v1791_v48, %v717_v30 }
 0x199   : > { %v730_v51 = vmul.f32 %v1793_v49, %v716_v31 }
 0x19a   : > { %749 = vrot.lane.b32.xlu0 %v731_v50, %s1815_s19  ;;  %v743_v52 = vrot.slane %v731_v50, 1  ;;  %v736_v53 = vrot.slane %v731_v50, 7 }
 0x19b   : > { %747 = vrot.lane.b32.xlu1 %v730_v51, %s1815_s19  ;;  %v742_v54 = vrot.slane %v730_v51, 1  ;;  %v735_v55 = vrot.slane %v730_v51, 7 }
 0x19c   : > { %v746_v58 = vsel %vm741_vm3, %v743_v52, 0.0 }
 0x19d   : > { %v744_v56 = vsel %vm741_vm3, %v742_v54, %v743_v52  ;;  %v737_v57 = vsel %vm734_vm4, %v735_v55, %v736_v53  ;;  %v740_v61 = vsel %vm734_vm4, 0.0, %v735_v55  ;;  %v1223_v54 = vld [vmem:[%s2292_s10 + $0x58] sm:$0xff]  ;;  %v1222_v55 = vld [vmem:[%s2292_s10 + $0x50] sm:$0xff] }
 0x19f   : > { %754 = vrot.lane.b32.xlu1 %v744_v56, %s1813_s27  ;;  %v1221_v56 = vld [vmem:[%s2292_s10 + $0x48] sm:$0xff] }
 0x1a3   : > { %756 = vrot.lane.b32.xlu1 %v746_v58, %s1813_s27  ;;  %v1218_v58 = vld [vmem:[%s2292_s10 + $0x30] sm:$0xff] }
 0x20c   : > { %v750_v2 = vpop.permute.xlu0 %749 }
 0x20d   : > { %v748_v59 = vpop.permute.xlu1 %747  ;;  %v761_v6 = vsel %vm517_vm2, %v737_v57, %v750_v2  ;;  %v1219_v57 = vld [vmem:[%s2292_s10 + $0x38] sm:$0xff] }
 0x20e   : > { %v760_v63 = vsel %vm517_vm2, %v740_v61, %v748_v59  ;;  %v1215_v61 = vld [vmem:[%s2292_s10 + $0x18] sm:$0xff] }
 0x211   : > { %v755_v60 = vpop.permute.xlu1 %754 }
 0x212   : > { %1692 = vmatprep.mubr.msk.f32.mxu1 %vm807_vm5, %v755_v60  ;;  %v762_v62 = vsel %vm500_vm1, %v748_v59, %v755_v60  ;;  %v1217_v59 = vld [vmem:[%s2292_s10 + $0x28] sm:$0xff]  ;;  %v1216_v60 = vld [vmem:[%s2292_s10 + $0x20] sm:$0xff] }
 0x213   : > { %876 = vmatprep.mubr.f32.mxu0 %v762_v62 }
 0x214   : > { %877 = vmatmul.mubr.f32.vlgmr.msra.gmra.mxu0 %v760_v63 }
 0x215   : > { %1745 = vmatpush3.msra.mxu0 %v1323_v46  ;;  %v757_v3 = vpop.permute.xlu1 %756 }
 0x216   : > { %1746 = vmatprep.subr.mxu0 %v1322_v0  ;;  %1693 = vmatmul.mubr.msk.f32.vlgmr.msra.gmra.mxu1 %vm807_vm5, %v757_v3  ;;  %v763_v5 = vsel %vm500_vm1, %v750_v2, %v757_v3 }
 0x217   : > { %1747 = vmatpush3.msra.mxu0 %v1322_v0  ;;  %881 = vmatprep.mubr.f32.mxu0 %v763_v5 }
 0x218   : > { %1748 = vmatprep.subr.mxu0 %v1321_v4  ;;  %882 = vmatmul.mubr.f32.gmra.mxu0 %v761_v6 }
 0x219   : > { %1749 = vmatpush3.msra.mxu0 %v1321_v4  ;;  %1768 = vmatprep.mubr.msk.f32.mxu0 %vm517_vm2, %v1977_v17  ;;  %v1316_v17 = vld [vmem:[%s2294_s12 + $0x20] sm:$0xff] }
 0x21a   : > { %1750 = vmatprep.subr.mxu0 %v1320_v7  ;;  %1703 = vmatprep.mubr.msk.f32.mxu1 %vm1814_vm0, %v1812_v1 }
 0x21b   : > { %1751 = vmatpush3.msra.mxu0 %v1320_v7  ;;  %1696 = vmatpush3.msra.mxu1 %v965_v15 }
 0x21c   : > { %1752 = vmatprep.subr.mxu0 %v1319_v8  ;;  %1697 = vmatprep.subr.mxu1 %v1812_v1 }
 0x21d   : > { %1753 = vmatpush3.msra.mxu0 %v1319_v8  ;;  %1698 = vmatpush3.msra.mxu1 %v964_v18 }
 0x21e   : > { %1754 = vmatprep.subr.mxu0 %v1318_v9  ;;  %1699 = vmatprep.subr.mxu1 %v1812_v1 }
 0x21f   : > { %1755 = vmatpush3.msra.mxu0 %v1318_v9  ;;  %1700 = vmatpush3.msra.mxu1 %v963_v19 }
 0x220   : > { %1756 = vmatprep.subr.mxu0 %v1317_v10  ;;  %1701 = vmatprep.subr.mxu1 %v1812_v1 }
 0x221   : > { %1757 = vmatpush3.msra.mxu0 %v1317_v10 }
 0x222   : > { %1758 = vmatprep.subr.mxu0 %v1316_v17 }
 0x223   : > { %1759 = vmatpush3.msra.mxu0 %v1316_v17 }
 0x224   : > { %1760 = vmatprep.subr.mxu0 %v1315_v11 }
 0x225   : > { %1761 = vmatpush3.msra.mxu0 %v1315_v11 }
 0x226   : > { %1762 = vmatprep.subr.mxu0 %v1314_v12 }
 0x227   : > { %1763 = vmatpush3.msra.mxu0 %v1314_v12  ;;  %v1507_v12 = vld [vmem:[%s2290_s8] ss:$0 sm:$0xff] }
 0x228   : > { %1764 = vmatprep.subr.mxu0 %v1313_v13 }
 0x229   : > { %1765 = vmatpush3.msra.mxu0 %v1313_v13 }
 0x22a   : > { %1766 = vmatprep.subr.mxu0 %v1312_v14 }
 0x22b   : > { %1767 = vmatpush3.msra.mxu0 %v1312_v14 }
 0x22c   : > { %1769 = vmatmul.mubr.msk.f32.vlgmr.msra.gmra.mxu0 %vm517_vm2, %v1982_v21  ;;  %v962_v21 = vld [vmem:[%s2289_s7] sm:$0xff] }
 0x22d   : > { %1702 = vmatpush3.msra.mxu1 %v962_v21 }
 0x22e   : > { %1706 = vmatprep.subr.mxu1 %v1812_v1 }
 0x2d4   : > { %v1580_v20 = vpop.f32.mrf.mxu0 }
 0x2d6   : > { %v1581_v22 = vpop.f32.mrf.mxu0  ;;  %v1694_v23 = vpop.f32.mrf.mxu1 }
 0x2d7   : > { %v1582_v25 = vadd.f32 %v1581_v22, %v1580_v20 }
 0x2d8   : > { %v1583_v26 = vpop.f32.mrf.mxu0  ;;  %v953_v28 = vpop.f32.mrf.mxu1 }
 0x2d9   : > { %v879_v27 = vadd.f32 %v1582_v25, %v1502_v24 }
 0x2da   : > { %v1584_v29 = vpop.f32.mrf.mxu0 }
 0x2db   : > { %v2188_v30 = vadd.f32 %v953_v28, %v879_v27  ;;  %v1585_v31 = vadd.f32 %v1584_v29, %v1583_v26  ;;  %v1214_v27 = vld [vmem:[%s2292_s10 + $0x10] sm:$0xff]  ;;  %v1213_v28 = vld [vmem:[%s2292_s10 + $0x8] sm:$0xff]  ;;  %v1212_v29 = vld [vmem:[%s2292_s10] sm:$0xff] }
 0x2dd   : > { %v884_v32 = vadd.f32 %v1585_v31, %v1502_v24  ;;  %v977_v33 = vmul.f32 %v2188_v30, %v2188_v30  ;;  %v968_v35 = vsel %vm807_vm5, %v2188_v30, 0.0 }
 0x2df   : > { %v2192_v34 = vadd.f32 %v1694_v23, %v884_v32  ;;  %v979_v39 = vsel %vm807_vm5, %v977_v33, 0.0 }
 0x2e1   : > { %v969_v36 = vsel %vm807_vm5, %v2192_v34, 0.0  ;;  %v978_v37 = vmul.f32 %v2192_v34, %v2192_v34 }
 0x2e2   : > { %v970_v38 = vadd.f32 %v969_v36, %v968_v35 }
 0x2e3   : > { %v980_v40 = vsel %vm807_vm5, %v978_v37, 0.0 }
 0x2e4   : > { %v971_v41 = vrot.slane %v970_v38, 4  ;;  %v981_v42 = vadd.f32 %v980_v40, %v979_v39 }
 0x2e6   : > { %v972_v43 = vadd.f32 %v971_v41, %v970_v38  ;;  %v982_v44 = vrot.slane %v981_v42, 4 }
 0x2e8   : > { %v973_v45 = vrot.slane %v972_v43, 2  ;;  %v983_v46 = vadd.f32 %v982_v44, %v981_v42 }
 0x2ea   : > { %v974_v47 = vadd.f32 %v973_v45, %v972_v43  ;;  %v984_v48 = vrot.slane %v983_v46, 2 }
 0x2ec   : > { %v975_v49 = vrot.slane %v974_v47, 1  ;;  %v985_v51 = vadd.f32 %v984_v48, %v983_v46 }
 0x2ee   : > { %v976_v50 = vadd.f32 %v975_v49, %v974_v47  ;;  %v986_v52 = vrot.slane %v985_v51, 1 }
 0x2f0   : > { %1704 = vmatmul.mubr.msk.f32.vlgmr.msra.gmra.mxu1 %vm807_vm5, %v976_v50  ;;  %v987_v53 = vadd.f32 %v986_v52, %v985_v51  ;;  %v1770_v50 = vpop.f32.mrf.mxu0  ;;  %v1514_v51 = vld [vmem:[%s2295_s13] ss:$0 sm:$0xff] }
 0x2f1   : > { %1707 = vmatpush3.msra.mxu1 %v965_v15  ;;  %1714 = vmatprep.mubr.msk.f32.mxu1 %vm1814_vm0, %v1812_v1  ;;  %v1508_v15 = vld [vmem:[%s2291_s9] ss:$0 sm:$0xff] }
 0x2f2   : > { %1708 = vmatprep.subr.mxu1 %v1812_v1  ;;  %v1511_v52 = vld [vmem:[%s2293_s11] ss:$0 sm:$0xff] }
 0x2f3   : > { %1709 = vmatpush3.msra.mxu1 %v964_v18 }
 0x2f4   : > { %1710 = vmatprep.subr.mxu1 %v1812_v1 }
 0x2f5   : > { %1711 = vmatpush3.msra.mxu1 %v963_v19 }
 0x2f6   : > { %1712 = vmatprep.subr.mxu1 %v1812_v1  ;;  %v1220_v1 = vld [vmem:[%s2292_s10 + $0x40] sm:$0xff] }
 0x2f7   : > { %1713 = vmatpush3.msra.mxu1 %v962_v21 }
 0x2f8   : > { %1715 = vmatmul.mubr.msk.f32.vlgmr.msra.gmra.mxu1 %vm807_vm5, %v987_v53  ;;  %1717 = vmatprep.subr.mxu1 %v1223_v54  ;;  %v1403_v53 = vpop.f32.mrf.mxu0 }
 0x2f9   : > { %1718 = vmatpush3.msra.mxu1 %v1223_v54 }
 0x2fa   : > { %1719 = vmatprep.subr.mxu1 %v1222_v55 }
 0x2fb   : > { %1720 = vmatpush3.msra.mxu1 %v1222_v55  ;;  %v1409_v55 = vadd.f32 %v1770_v50, %v1514_v51 }
 0x2fc   : > { %1721 = vmatprep.subr.mxu1 %v1221_v56 }
 0x2fd   : > { %1722 = vmatpush3.msra.mxu1 %v1221_v56 }
 0x2fe   : > { %1723 = vmatprep.subr.mxu1 %v1220_v1 }
 0x2ff   : > { %1724 = vmatpush3.msra.mxu1 %v1220_v1 }
 0x300   : > { %1725 = vmatprep.subr.mxu1 %v1219_v57 }
 0x301   : > { %1726 = vmatpush3.msra.mxu1 %v1219_v57  ;;  %v1404_v57 = vadd.f32 %v1514_v51, %v1403_v53 }
 0x302   : > { %1727 = vmatprep.subr.mxu1 %v1218_v58 }
 0x303   : > { %1728 = vmatpush3.msra.mxu1 %v1218_v58 }
 0x304   : > { %1729 = vmatprep.subr.mxu1 %v1217_v59 }
 0x305   : > { %1730 = vmatpush3.msra.mxu1 %v1217_v59 }
 0x306   : > { %1731 = vmatprep.subr.mxu1 %v1216_v60 }
 0x307   : > { %1732 = vmatpush3.msra.mxu1 %v1216_v60 }
 0x308   : > { %1733 = vmatprep.subr.mxu1 %v1215_v61 }
 0x309   : > { %1734 = vmatpush3.msra.mxu1 %v1215_v61 }
 0x30a   : > { %1735 = vmatprep.subr.mxu1 %v1214_v27 }
 0x30b   : > { %1736 = vmatpush3.msra.mxu1 %v1214_v27 }
 0x30c   : > { %1737 = vmatprep.subr.mxu1 %v1213_v28 }
 0x30d   : > { %1738 = vmatpush3.msra.mxu1 %v1213_v28 }
 0x30e   : > { %1739 = vmatprep.subr.mxu1 %v1212_v29 }
 0x30f   : > { %1740 = vmatpush3.msra.mxu1 %v1212_v29 }
 0x3b0   : > { %v1057_v62 = vpop.f32.mrf.mxu1 }
 0x3b1   : > { %v1061_v0 = vmul.f32 0.0625, %v1057_v62 }
 0x3b2   : > { %v1705_v63 = vpop.f32.mrf.mxu1 }
 0x3b3   : > { %v1136_v3 = vmul.f32 %v1061_v0, %v1061_v0  ;;  %v1141_v8 = vrot.slane %v1061_v0, %v2075_v16 }
 0x3b5   : > { %v1142_v10 = vsub.f32 %v2188_v30, %v1141_v8  ;;  %v1143_v17 = vsub.f32 %v2192_v34, %v1141_v8 }
 0x3b8   : > { %v1131_v2 = vpop.f32.mrf.mxu1 }
 0x3b9   : > { %v1135_v4 = vmul.f32 0.0625, %v1131_v2 }
 0x3ba   : > { %v1716_v5 = vpop.f32.mrf.mxu1 }
 0x3bb   : > { %v1137_v6 = vsub.f32 %v1135_v4, %v1136_v3 }
 0x3bd   : > { %v1144_v7 = vadd.f32 1e-05, %v1137_v6 }
 0x3bf   : > { %1794 = vrsqrt.f32 %v1144_v7 }
 0x3cc   : > { %v1795_v9 = vpop.eup %1794 }
 0x3cd   : > { %v1149_v11 = vrot.slane %v1795_v9, %v2075_v16 }
 0x3cf   : > { %v1151_v13 = vmul.f32 %v1149_v11, %v1143_v17  ;;  %v1150_v14 = vmul.f32 %v1149_v11, %v1142_v10 }
 0x3d1   : > { %v1159_v18 = vmul.f32 %v1507_v12, %v1151_v13  ;;  %v1158_v19 = vmul.f32 %v1507_v12, %v1150_v14 }
 0x3d3   : > { %v1167_v21 = vadd.f32 %v1508_v15, %v1159_v18  ;;  %v1166_v20 = vadd.f32 %v1508_v15, %v1158_v19 }
 0x3d5   : > { %v1510_v22 = vmul.f32 -1.442695, %v1167_v21  ;;  %v1509_v23 = vmul.f32 -1.442695, %v1166_v20 }
 0x3d7   : > { %1796 = vpow2.f32 %v1510_v22 }
 0x3d8   : > { %1798 = vpow2.f32 %v1509_v23 }
 0x3e4   : > { %v1797_v24 = vpop.eup %1796 }
 0x3e5   : > { %v1799_v16 = vpop.eup %1798  ;;  %v1175_v25 = vadd.f32 1.0, %v1797_v24 }
 0x3e6   : > { %v1174_v26 = vadd.f32 1.0, %v1799_v16 }
 0x3e7   : > { %1800 = vrcp.f32 %v1175_v25 }
 0x3e8   : > { %1802 = vrcp.f32 %v1174_v26 }
 0x3f4   : > { %v1801_v30 = vpop.eup %1800 }
 0x3f5   : > { %v1803_v31 = vpop.eup %1802  ;;  %v1181_v32 = vmul.f32 %v1801_v30, %v1167_v21 }
 0x3f6   : > { %v1180_v33 = vmul.f32 %v1803_v31, %v1166_v20 }
 0x3f7   : > { %1197 = vrot.lane.b32.xlu1 %v1181_v32, %s1816_s15  ;;  %v1191_v34 = vrot.slane %v1181_v32, 1  ;;  %v1185_v35 = vrot.slane %v1181_v32, 7 }
 0x3f8   : > { %1195 = vrot.lane.b32.xlu0 %v1180_v33, %s1816_s15  ;;  %v1190_v36 = vrot.slane %v1180_v33, 1  ;;  %v1184_v37 = vrot.slane %v1180_v33, 7 }
 0x3f9   : > { %v1194_v38 = vsel %vm741_vm3, %v1191_v34, 0.0 }
 0x3fa   : > { %v1192_v39 = vsel %vm741_vm3, %v1190_v36, %v1191_v34  ;;  %v1186_v40 = vsel %vm734_vm4, %v1184_v37, %v1185_v35  ;;  %v1189_v44 = vsel %vm734_vm4, 0.0, %v1184_v37 }
 0x3fb   : > { %1204 = vrot.lane.b32.xlu1 %v1194_v38, %s1813_s27 }
 0x3fc   : > { %1202 = vrot.lane.b32.xlu0 %v1192_v39, %s1813_s27 }
 0x469   : > { %v1198_v41 = vpop.permute.xlu1 %1197 }
 0x46a   : > { %v1196_v42 = vpop.permute.xlu0 %1195  ;;  %v1209_v43 = vsel %vm807_vm5, %v1186_v40, %v1198_v41 }
 0x46b   : > { %v1208_v46 = vsel %vm807_vm5, %v1189_v44, %v1196_v42 }
 0x46d   : > { %v1205_v45 = vpop.permute.xlu1 %1204 }
 0x46e   : > { %v1211_v47 = vsel %vm500_vm1, %v1209_v43, %v1205_v45  ;;  %v1203_v48 = vpop.permute.xlu0 %1202 }
 0x46f   : > { %v1210_v49 = vsel %vm500_vm1, %v1208_v46, %v1203_v48 }
 0x470   : > { %1741 = vmatprep.mubr.msk.f32.mxu1 %vm517_vm2, %v1210_v49 }
 0x471   : > { %1742 = vmatmul.mubr.msk.f32.vlgmr.msra.gmra.mxu1 %vm517_vm2, %v1211_v47 }
 0x531   : > { %v1743_v54 = vpop.f32.mrf.mxu1 }
 0x532   : > { %v1309_v56 = vadd.f32 %v1743_v54, %v1511_v52 }
 0x533   : > { %v1303_v1 = vpop.f32.mrf.mxu1 }
 0x534   : > { %v1413_v58 = vadd.f32 %v1409_v55, %v1309_v56  ;;  %v1304_v59 = vadd.f32 %v1511_v52, %v1303_v1 }
 0x536   : > { %v1415_v60 = vmul.f32 0.70710677, %v1413_v58  ;;  %v1412_v61 = vadd.f32 %v1404_v57, %v1304_v59 }
 0x538   : > { %1417 = vst.msk [vmem:[%s487_s22 + $0x8] sm:$0xff] %vm807_vm5, %v1415_v60  ;;  %v1414_v62 = vmul.f32 0.70710677, %v1412_v61 }
 0x53a   : > { %1416 = vst.msk [vmem:[%s487_s22] sm:$0xff] %vm807_vm5, %v1414_v62 }
 0x53b PF: > { %s24_s29 = sadd.s32 1, %s1810_s29  }
 0x53c   : > { %p21_p4 = scmp.ge.s32.totalorder %s24_s29, 4  }
 0x53e   :  { %23 = sbr.rel (!%p21_p4) target bundleno = 1 (0x1), region = 109 }

</bundles_post_ra>
